<compile_context>
chip_gen: v6e
topology: v6e:2x2x1
jax: 0.10.0
libtpu: 0.0.40
codegen_flags: <defaults>
</compile_context>

<pallas_src>
import math

import jax
import jax.numpy as jnp
from jax import lax
from jax.experimental import pallas as pl
from jax.experimental.pallas import tpu as pltpu

# ---------------- config (TAGANConfig-equivalent, small synthetic sizes) ------
T = 8            # len(graph_sequence) / temporal_window_size
N = 16           # nodes per snapshot
F_IN = 16        # node_feature_dim
H = 32           # hidden_dim
NUM_HEADS = 4
HEAD_DIM = H // NUM_HEADS
NUM_LAYERS = 2   # geometric attention layers
OUT_DIM = 4      # output_dim (>1 -> softmax predictions)
TN = T * N       # 128 rows -> full sublane/lane tiles for every matmul
QKV_W = 3 * H    # 96
QKV_PAD = 128    # lane-padded fused QKV width (lane-dense MXU RHS)
LANES = 128
NEG_INF = -1e9
# edge_feature_dim = 0 -> edge_embedding is None (matches the None branch)

# ---- packed weight slab row offsets (all multiples of 8 -> clean f32 slices) --
W_EMB_OFF = 0                              # [F_IN, H]
G_QKV_OFF = W_EMB_OFF + F_IN               # NUM_LAYERS x [H, 128] fused QKV
G_WO_OFF  = G_QKV_OFF + NUM_LAYERS * H     # NUM_LAYERS x [H, H]
T_QKV_OFF = G_WO_OFF + NUM_LAYERS * H      # [H, 128] fused QKV
T_WO_OFF  = T_QKV_OFF + H                  # [H, H]
C_W1_OFF  = T_WO_OFF + H                   # [H, H]
C_W2_OFF  = C_W1_OFF + H                   # [H, OUT_DIM]
W_ROWS    = C_W2_OFF + H                   # 272 rows total

# ---- packed bias / LayerNorm vector slab row indices --------------------------
V_B_EMB, V_SKIP_G, V_SKIP_B = 0, 1, 2
V_G_BASE = 3                               # per layer: +0 bqkv, +1 bo, +2 ln_g, +3 ln_b
V_T_BQKV = V_G_BASE + 4 * NUM_LAYERS       # 11
V_T_BO, V_T_LNG, V_T_LNB = V_T_BQKV + 1, V_T_BQKV + 2, V_T_BQKV + 3
V_C_B1, V_C_G1, V_C_BE1, V_C_B2 = V_T_LNB + 1, V_T_LNB + 2, V_T_LNB + 3, V_T_LNB + 4
V_ROWS = 24                                # 19 rows used, padded to multiple of 8


# --------------------------- single fused kernel ------------------------------
def tagan_fused_kernel(feats_ref, masks_ref, w_ref, v_ref, out_ref):
    bf16 = jnp.bfloat16

    def mxu(a, b):
        # bf16 MXU operands, f32 accumulation (native path on v6e/v7x; cast is
        # only at the MXU input, all elementwise math stays f32 for v5e).
        return jnp.dot(a.astype(bf16), b.astype(bf16),
                       preferred_element_type=jnp.float32)

    def mxu_nt(a, b):
        # scores: contract last dim of both operands (no explicit k transpose)
        return lax.dot_general(a.astype(bf16), b.astype(bf16),
                               (((1,), (1,)), ((), ())),
                               preferred_element_type=jnp.float32)

    def layer_norm(x, g, b, eps=1e-5):
        mu = jnp.mean(x, axis=-1, keepdims=True)
        var = jnp.mean((x - mu) ** 2, axis=-1, keepdims=True)
        return (x - mu) * lax.rsqrt(var + eps) * g + b

    def softmax_last(s):
        s = s - jnp.max(s, axis=-1, keepdims=True)
        p = jnp.exp(s)
        return p * pl.reciprocal(jnp.sum(p, axis=-1, keepdims=True), approx=True)

    vbank = v_ref[...]                                   # [24, 128] f32, one load

    def vec(i, w=H):
        return vbank[i:i + 1, 0:w]                       # [1, w] static slice

    def mha(x, mask_view, w_qkv, b_qkv, w_o, b_o):
        """Multi-head attention on [TN,H] rows with a dense additive mask.

        1/sqrt(HEAD_DIM) is already folded into the Q weights. Masked score
        entries are -1e9 and exp() to exactly 0, so per-block softmax is
        preserved by the dense formulation."""
        mask_add = mask_view[...]                        # [TN, TN] f32
        qkv = mxu(x, w_qkv) + b_qkv                      # [TN, 128]
        acc = jnp.zeros((TN, H), jnp.float32)
        for h in range(NUM_HEADS):
            sl = slice(h * HEAD_DIM, (h + 1) * HEAD_DIM)
            q_h = qkv[:, h * HEAD_DIM:(h + 1) * HEAD_DIM]
            k_h = qkv[:, H + h * HEAD_DIM:H + (h + 1) * HEAD_DIM]
            v_h = qkv[:, 2 * H + h * HEAD_DIM:2 * H + (h + 1) * HEAD_DIM]
            s = mxu_nt(q_h, k_h) + mask_add              # dense [128,128] scores
            p = softmax_last(s)
            o_h = mxu(p, v_h)                            # [TN, HEAD_DIM]
            # fold the output projection per head (no lane concat / XLU plumbing)
            acc = acc + mxu(o_h, w_o[sl, :])
        return acc + b_o

    # ---- node embedding: all T*N rows at once (one [128,16]x[16,32] matmul) --
    x = mxu(feats_ref[...], w_ref[W_EMB_OFF:W_EMB_OFF + F_IN, 0:H]) + vec(V_B_EMB)
    skip = x

    # ---- geometric encoder: NUM_LAYERS adjacency-masked MHA layers -----------
    for l in range(NUM_LAYERS):
        w_qkv = w_ref[G_QKV_OFF + l * H:G_QKV_OFF + (l + 1) * H, :]       # [32,128]
        w_o = w_ref[G_WO_OFF + l * H:G_WO_OFF + (l + 1) * H, 0:H]         # [32,32]
        vb = V_G_BASE + 4 * l
        attn = mha(x, masks_ref.at[0:TN, :],
                   w_qkv, vbank[vb:vb + 1, :], w_o, vec(vb + 1))
        x = layer_norm(x + attn, vec(vb + 2), vec(vb + 3))
        if l == 0:
            # x = x + skip_layer_norm(skip_features)
            x = x + layer_norm(skip, vec(V_SKIP_G), vec(V_SKIP_B))

    # ---- TemporalPropagation: reference forward's fallback path (identity) ---

    # ---- temporal MHA over T, done IN PLACE in the [T*N] layout via the
    #      precomputed same-node additive mask (no transpose / perm matmul) ----
    attn = mha(x, masks_ref.at[TN:2 * TN, :],
               w_ref[T_QKV_OFF:T_QKV_OFF + H, :],
               vbank[V_T_BQKV:V_T_BQKV + 1, :],
               w_ref[T_WO_OFF:T_WO_OFF + H, 0:H],
               vec(V_T_BO))
    y = layer_norm(x + attn, vec(V_T_LNG), vec(V_T_LNB))                 # [TN, H]

    # ---- pooling: mean over nodes per timestep then over timesteps
    #      (== overall mean over all (t, n) rows since every step has N nodes) -
    g = jnp.mean(y, axis=0, keepdims=True)                               # [1, H]

    # ---- 2-layer classification head: Linear -> LN -> ReLU -> Linear ---------
    h1 = mxu(g, w_ref[C_W1_OFF:C_W1_OFF + H, 0:H]) + vec(V_C_B1)
    h1 = jnp.maximum(layer_norm(h1, vec(V_C_G1), vec(V_C_BE1)), 0.0)
    logits = mxu(h1, w_ref[C_W2_OFF:C_W2_OFF + H, 0:OUT_DIM]) + vec(V_C_B2, OUT_DIM)
    e = jnp.exp(logits - jnp.max(logits, axis=-1, keepdims=True))
    preds = e / jnp.sum(e, axis=-1, keepdims=True)   # exact softmax for outputs

    # ---- lane-dense output slab: row 0 = logits, row 1 = predictions ---------
    out_ref[...] = jnp.zeros((8, LANES), jnp.float32)
    out_ref[0:1, 0:OUT_DIM] = logits
    out_ref[1:2, 0:OUT_DIM] = preds


# ------------------------------- wrapper ---------------------------------------
def _full_spec(arr):
    nd = arr.ndim
    return pl.BlockSpec(arr.shape, lambda i, _nd=nd: (0,) * _nd)


def build_masks(adj):
    """Additive -1e9 masks precomputed in the wrapper (merged into one slab).

    rows 0:TN   : block-diagonal adjacency mask for the geometric attention
                  (row t*N+n may attend col s*N+m iff t==s and adj[t,n,m]>0)
    rows TN:2TN : same-node mask for the temporal attention in [T*N] layout
                  (row t*N+n may attend col s*N+m iff m==n; all-ones over T)
    """
    eye_t = jnp.eye(T, dtype=jnp.float32)
    geo_allow = (eye_t[:, None, :, None] * adj[:, :, None, :]).reshape(TN, TN)
    geo_mask = jnp.where(geo_allow > 0.0, 0.0, NEG_INF).astype(jnp.float32)
    node_idx = jnp.arange(TN) % N
    temp_mask = jnp.where(node_idx[:, None] == node_idx[None, :],
                          0.0, NEG_INF).astype(jnp.float32)
    return jnp.concatenate([geo_mask, temp_mask], axis=0)        # [2*TN, TN]


def tagan_forward(feats, adj, w_slab, v_slab):
    feats2d = feats.reshape(TN, F_IN)        # contiguous reshape in the wrapper
    masks = build_masks(adj)
    args = (feats2d, masks, w_slab, v_slab)  # 4 input DMAs (was 26)
    out = pl.pallas_call(
        tagan_fused_kernel,
        out_shape=jax.ShapeDtypeStruct((8, LANES), jnp.float32),
        grid_spec=pltpu.PrefetchScalarGridSpec(
            num_scalar_prefetch=0,
            grid=(1,),
            in_specs=[_full_spec(a) for a in args],
            out_specs=pl.BlockSpec((8, LANES), lambda i: (0, 0)),
        ),
        # Fully fused single grid step; at this size launch/DMA overhead is the
        # lever, not megacore sharding. If batched over multiple graph
        # sequences, add a leading "parallel" batch axis here to use both v7x
        # TensorCores.
        compiler_params=pltpu.CompilerParams(
            dimension_semantics=("arbitrary",)),
    )(*args)
    logits = out[0:1, 0:OUT_DIM]
    predictions = out[1:2, 0:OUT_DIM]
    # labels=None -> loss is None (loss path not run), matching forward().
    return {'logits': logits, 'predictions': predictions, 'loss': None}


# ----------------------------- parameter init / packing -------------------------
def _xavier(key, shape):
    fan_in, fan_out = shape[-2], shape[-1]
    limit = math.sqrt(6.0 / (fan_in + fan_out))
    return jax.random.uniform(key, shape, jnp.float32, -limit, limit)


def _fuse_qkv(wq, wk, wv):
    """Concat Q/K/V weights along the output dim, fold 1/sqrt(d) into Q, pad to 128."""
    inv_sqrt_d = 1.0 / math.sqrt(HEAD_DIM)
    w = jnp.concatenate([wq * inv_sqrt_d, wk, wv], axis=-1)       # [..., H, 3H]
    pad_widths = [(0, 0)] * (w.ndim - 1) + [(0, QKV_PAD - QKV_W)]
    return jnp.pad(w, pad_widths)
    # NOTE: Q biases would need the same 1/sqrt(d) scaling; they are zero here
    # (matches nn.Linear zero-init in _init_parameters / default MHA init).


def init_params(key):
    keys = jax.random.split(key, 16)
    p = {}
    # node embedding (xavier_uniform weight, zero bias -- matches _init_parameters)
    p['w_emb'] = _xavier(keys[0], (F_IN, H))
    p['b_emb'] = jnp.zeros((1, H), jnp.float32)
    # geometric attention layers (stacked over NUM_LAYERS), fused lane-padded QKV
    wq = _xavier(keys[1], (NUM_LAYERS, H, H))
    wk = _xavier(keys[2], (NUM_LAYERS, H, H))
    wv = _xavier(keys[3], (NUM_LAYERS, H, H))
    p['g_wqkv'] = _fuse_qkv(wq, wk, wv)                           # [L, H, 128]
    p['g_bqkv'] = jnp.zeros((NUM_LAYERS, 1, QKV_PAD), jnp.float32)
    p['g_wo'] = _xavier(keys[4], (NUM_LAYERS, H, H))
    p['g_bo'] = jnp.zeros((NUM_LAYERS, 1, H), jnp.float32)
    p['g_ln_g'] = jnp.ones((NUM_LAYERS, 1, H), jnp.float32)
    p['g_ln_b'] = jnp.zeros((NUM_LAYERS, 1, H), jnp.float32)
    p['skip_g'] = jnp.ones((1, H), jnp.float32)
    p['skip_b'] = jnp.zeros((1, H), jnp.float32)
    # temporal attention (fused lane-padded QKV)
    twq = _xavier(keys[5], (H, H))
    twk = _xavier(keys[6], (H, H))
    twv = _xavier(keys[7], (H, H))
    p['t_wqkv'] = _fuse_qkv(twq, twk, twv)                        # [H, 128]
    p['t_bqkv'] = jnp.zeros((1, QKV_PAD), jnp.float32)
    p['t_wo'] = _xavier(keys[8], (H, H))
    p['t_bo'] = jnp.zeros((1, H), jnp.float32)
    p['t_ln_g'] = jnp.ones((1, H), jnp.float32)
    p['t_ln_b'] = jnp.zeros((1, H), jnp.float32)
    # classification head (2-layer MLP with LayerNorm)
    p['c_w1'] = _xavier(keys[9], (H, H))
    p['c_b1'] = jnp.zeros((1, H), jnp.float32)
    p['c_g1'] = jnp.ones((1, H), jnp.float32)
    p['c_be1'] = jnp.zeros((1, H), jnp.float32)
    p['c_w2'] = _xavier(keys[10], (H, OUT_DIM))
    p['c_b2'] = jnp.zeros((1, OUT_DIM), jnp.float32)
    return p


def pack_params(p):
    """Pack every weight into one [272,128] slab and every bias/LN vector into
    one [24,128] slab (done once, outside the per-call path)."""
    def pad_lanes(w):
        return jnp.pad(w, ((0, 0), (0, LANES - w.shape[1])))

    w_rows = [pad_lanes(p['w_emb'])]
    for l in range(NUM_LAYERS):
        w_rows.append(p['g_wqkv'][l])
    for l in range(NUM_LAYERS):
        w_rows.append(pad_lanes(p['g_wo'][l]))
    w_rows += [p['t_wqkv'], pad_lanes(p['t_wo']),
               pad_lanes(p['c_w1']), pad_lanes(p['c_w2'])]
    w_slab = jnp.concatenate(w_rows, axis=0)
    assert w_slab.shape == (W_ROWS, LANES)

    v_rows = [pad_lanes(p['b_emb']), pad_lanes(p['skip_g']), pad_lanes(p['skip_b'])]
    for l in range(NUM_LAYERS):
        v_rows += [pad_lanes(p['g_bqkv'][l]), pad_lanes(p['g_bo'][l]),
                   pad_lanes(p['g_ln_g'][l]), pad_lanes(p['g_ln_b'][l])]
    v_rows += [pad_lanes(p['t_bqkv']), pad_lanes(p['t_bo']),
               pad_lanes(p['t_ln_g']), pad_lanes(p['t_ln_b']),
               pad_lanes(p['c_b1']), pad_lanes(p['c_g1']),
               pad_lanes(p['c_be1']), pad_lanes(p['c_b2'])]
    v_slab = jnp.concatenate(v_rows, axis=0)
    v_slab = jnp.pad(v_slab, ((0, V_ROWS - v_slab.shape[0]), (0, 0)))
    return w_slab, v_slab


# --------------------------------- driver ---------------------------------------
if __name__ == "__main__":
    key = jax.random.PRNGKey(0)
    k_feat, k_adj, k_param = jax.random.split(key, 3)

    node_features = jax.random.normal(k_feat, (T, N, F_IN), jnp.float32)
    adjacency = (jax.random.uniform(k_adj, (T, N, N)) < 0.3).astype(jnp.float32)
    adjacency = jnp.maximum(adjacency, jnp.eye(N, dtype=jnp.float32)[None])  # self loops

    params = init_params(k_param)
    w_slab, v_slab = pack_params(params)

    outputs = jax.jit(tagan_forward)(node_features, adjacency, w_slab, v_slab)
    jax.block_until_ready((outputs['logits'], outputs['predictions']))
    print("KERNEL_OK")
</pallas_src>

<mosaic_0001>
module attributes {stable_mosaic.version = 11 : i64} {
  func.func @tagan_fused_kernel(%arg0: i32, %arg1: memref<128x16xf32, #tpu.memory_space<vmem>>, %arg2: memref<256x128xf32, #tpu.memory_space<vmem>>, %arg3: memref<272x128xf32, #tpu.memory_space<vmem>>, %arg4: memref<24x128xf32, #tpu.memory_space<vmem>>, %arg5: memref<8x128xf32, #tpu.memory_space<vmem>>) attributes {dimension_semantics = [#tpu.dimension_semantics<arbitrary>], iteration_bounds = array<i64: 1>, scalar_prefetch = 0 : i64, scratch_operands = 0 : i64, tpu.core_type = #tpu.core_type<tc>, window_params = [{pipeline_mode = #tpu.pipeline_mode<synchronous>, transform_indices = @transform_0, window_bounds = array<i64: 128, 16>}, {pipeline_mode = #tpu.pipeline_mode<synchronous>, transform_indices = @transform_1, window_bounds = array<i64: 256, 128>}, {pipeline_mode = #tpu.pipeline_mode<synchronous>, transform_indices = @transform_2, window_bounds = array<i64: 272, 128>}, {pipeline_mode = #tpu.pipeline_mode<synchronous>, transform_indices = @transform_3, window_bounds = array<i64: 24, 128>}, {pipeline_mode = #tpu.pipeline_mode<synchronous>, transform_indices = @transform_4, window_bounds = array<i64: 8, 128>}]} {
    %c0 = arith.constant 0 : index
    %c0_0 = arith.constant 0 : index
    %0 = vector.load %arg4[%c0, %c0_0] : memref<24x128xf32, #tpu.memory_space<vmem>>, vector<24x128xf32>
    %c0_1 = arith.constant 0 : index
    %c0_2 = arith.constant 0 : index
    %1 = vector.load %arg1[%c0_1, %c0_2] : memref<128x16xf32, #tpu.memory_space<vmem>>, vector<128x16xf32>
    %c0_3 = arith.constant 0 : index
    %c0_4 = arith.constant 0 : index
    %2 = vector.load %arg3[%c0_3, %c0_4] : memref<272x128xf32, #tpu.memory_space<vmem>>, vector<16x32xf32>
    %3 = arith.truncf %1 : vector<128x16xf32> to vector<128x16xbf16>
    %4 = arith.truncf %2 : vector<16x32xf32> to vector<16x32xbf16>
    %cst = arith.constant dense<0.000000e+00> : vector<128x32xf32>
    %5 = tpu.matmul %3, %4, %cst {dimension_numbers = #tpu.dot_dimension_numbers<[1], [0], [0], [1], [0, 0, 1, 1], [], []>} : vector<128x16xbf16>, vector<16x32xbf16>, vector<128x32xf32> -> vector<128x32xf32>
    %6 = vector.extract_strided_slice %0 {offsets = [0, 0], sizes = [1, 32], strides = [1, 1]} : vector<24x128xf32> to vector<1x32xf32>
    %7 = vector.broadcast %6 : vector<1x32xf32> to vector<128x32xf32>
    %8 = arith.addf %5, %7 : vector<128x32xf32>
    %c16 = arith.constant 16 : index
    %c0_5 = arith.constant 0 : index
    %9 = vector.load %arg3[%c16, %c0_5] : memref<272x128xf32, #tpu.memory_space<vmem>>, vector<32x128xf32>
    %c80 = arith.constant 80 : index
    %c0_6 = arith.constant 0 : index
    %10 = vector.load %arg3[%c80, %c0_6] : memref<272x128xf32, #tpu.memory_space<vmem>>, vector<32x32xf32>
    %11 = vector.extract_strided_slice %0 {offsets = [3, 0], sizes = [1, 128], strides = [1, 1]} : vector<24x128xf32> to vector<1x128xf32>
    %12 = vector.extract_strided_slice %0 {offsets = [4, 0], sizes = [1, 32], strides = [1, 1]} : vector<24x128xf32> to vector<1x32xf32>
    %c0_7 = arith.constant 0 : index
    %c0_8 = arith.constant 0 : index
    %13 = vector.load %arg2[%c0_7, %c0_8] : memref<256x128xf32, #tpu.memory_space<vmem>>, vector<128x128xf32>
    %14 = arith.truncf %8 : vector<128x32xf32> to vector<128x32xbf16>
    %15 = arith.truncf %9 : vector<32x128xf32> to vector<32x128xbf16>
    %cst_9 = arith.constant dense<0.000000e+00> : vector<128x128xf32>
    %16 = tpu.matmul %14, %15, %cst_9 {dimension_numbers = #tpu.dot_dimension_numbers<[1], [0], [0], [1], [0, 0, 1, 1], [], []>} : vector<128x32xbf16>, vector<32x128xbf16>, vector<128x128xf32> -> vector<128x128xf32>
    %17 = vector.broadcast %11 : vector<1x128xf32> to vector<128x128xf32>
    %18 = arith.addf %16, %17 : vector<128x128xf32>
    %cst_10 = arith.constant 0.000000e+00 : f32
    %19 = vector.broadcast %cst_10 : f32 to vector<128x32xf32>
    %20 = vector.extract_strided_slice %18 {offsets = [0, 0], sizes = [128, 8], strides = [1, 1]} : vector<128x128xf32> to vector<128x8xf32>
    %21 = vector.extract_strided_slice %18 {offsets = [0, 32], sizes = [128, 8], strides = [1, 1]} : vector<128x128xf32> to vector<128x8xf32>
    %22 = vector.extract_strided_slice %18 {offsets = [0, 64], sizes = [128, 8], strides = [1, 1]} : vector<128x128xf32> to vector<128x8xf32>
    %23 = arith.truncf %20 : vector<128x8xf32> to vector<128x8xbf16>
    %24 = arith.truncf %21 : vector<128x8xf32> to vector<128x8xbf16>
    %cst_11 = arith.constant dense<0.000000e+00> : vector<128x128xf32>
    %25 = tpu.matmul %23, %24, %cst_11 {dimension_numbers = #tpu.dot_dimension_numbers<[1], [1], [0], [0], [0, 0, 1, 0], [], []>} : vector<128x8xbf16>, vector<128x8xbf16>, vector<128x128xf32> -> vector<128x128xf32>
    %26 = arith.addf %25, %13 : vector<128x128xf32>
    %cst_12 = arith.constant dense<0xFF800000> : vector<128xf32>
    %27 = vector.multi_reduction <maximumf>, %26, %cst_12 [1] : vector<128x128xf32> to vector<128xf32>
    %28 = vector.shape_cast %27 : vector<128xf32> to vector<128x1xf32>
    %29 = vector.broadcast %28 : vector<128x1xf32> to vector<128x128xf32>
    %30 = arith.subf %26, %29 : vector<128x128xf32>
    %31 = math.exp %30 : vector<128x128xf32>
    %cst_13 = arith.constant dense<0.000000e+00> : vector<128xf32>
    %32 = vector.multi_reduction <add>, %31, %cst_13 [1] : vector<128x128xf32> to vector<128xf32>
    %33 = vector.shape_cast %32 : vector<128xf32> to vector<128x1xf32>
    %34 = tpu.reciprocal %33 {approx = true} : vector<128x1xf32> -> vector<128x1xf32>
    %35 = vector.broadcast %34 : vector<128x1xf32> to vector<128x128xf32>
    %36 = arith.mulf %31, %35 : vector<128x128xf32>
    %37 = arith.truncf %36 : vector<128x128xf32> to vector<128x128xbf16>
    %38 = arith.truncf %22 : vector<128x8xf32> to vector<128x8xbf16>
    %cst_14 = arith.constant dense<0.000000e+00> : vector<128x8xf32>
    %39 = tpu.matmul %37, %38, %cst_14 {dimension_numbers = #tpu.dot_dimension_numbers<[1], [0], [0], [1], [0, 0, 1, 1], [], []>} : vector<128x128xbf16>, vector<128x8xbf16>, vector<128x8xf32> -> vector<128x8xf32>
    %40 = vector.extract_strided_slice %10 {offsets = [0, 0], sizes = [8, 32], strides = [1, 1]} : vector<32x32xf32> to vector<8x32xf32>
    %41 = arith.truncf %39 : vector<128x8xf32> to vector<128x8xbf16>
    %42 = arith.truncf %40 : vector<8x32xf32> to vector<8x32xbf16>
    %cst_15 = arith.constant dense<0.000000e+00> : vector<128x32xf32>
    %43 = tpu.matmul %41, %42, %cst_15 {dimension_numbers = #tpu.dot_dimension_numbers<[1], [0], [0], [1], [0, 0, 1, 1], [], []>} : vector<128x8xbf16>, vector<8x32xbf16>, vector<128x32xf32> -> vector<128x32xf32>
    %44 = arith.addf %19, %43 : vector<128x32xf32>
    %45 = vector.extract_strided_slice %18 {offsets = [0, 8], sizes = [128, 8], strides = [1, 1]} : vector<128x128xf32> to vector<128x8xf32>
    %46 = vector.extract_strided_slice %18 {offsets = [0, 40], sizes = [128, 8], strides = [1, 1]} : vector<128x128xf32> to vector<128x8xf32>
    %47 = vector.extract_strided_slice %18 {offsets = [0, 72], sizes = [128, 8], strides = [1, 1]} : vector<128x128xf32> to vector<128x8xf32>
    %48 = arith.truncf %45 : vector<128x8xf32> to vector<128x8xbf16>
    %49 = arith.truncf %46 : vector<128x8xf32> to vector<128x8xbf16>
    %cst_16 = arith.constant dense<0.000000e+00> : vector<128x128xf32>
    %50 = tpu.matmul %48, %49, %cst_16 {dimension_numbers = #tpu.dot_dimension_numbers<[1], [1], [0], [0], [0, 0, 1, 0], [], []>} : vector<128x8xbf16>, vector<128x8xbf16>, vector<128x128xf32> -> vector<128x128xf32>
    %51 = arith.addf %50, %13 : vector<128x128xf32>
    %cst_17 = arith.constant dense<0xFF800000> : vector<128xf32>
    %52 = vector.multi_reduction <maximumf>, %51, %cst_17 [1] : vector<128x128xf32> to vector<128xf32>
    %53 = vector.shape_cast %52 : vector<128xf32> to vector<128x1xf32>
    %54 = vector.broadcast %53 : vector<128x1xf32> to vector<128x128xf32>
    %55 = arith.subf %51, %54 : vector<128x128xf32>
    %56 = math.exp %55 : vector<128x128xf32>
    %cst_18 = arith.constant dense<0.000000e+00> : vector<128xf32>
    %57 = vector.multi_reduction <add>, %56, %cst_18 [1] : vector<128x128xf32> to vector<128xf32>
    %58 = vector.shape_cast %57 : vector<128xf32> to vector<128x1xf32>
    %59 = tpu.reciprocal %58 {approx = true} : vector<128x1xf32> -> vector<128x1xf32>
    %60 = vector.broadcast %59 : vector<128x1xf32> to vector<128x128xf32>
    %61 = arith.mulf %56, %60 : vector<128x128xf32>
    %62 = arith.truncf %61 : vector<128x128xf32> to vector<128x128xbf16>
    %63 = arith.truncf %47 : vector<128x8xf32> to vector<128x8xbf16>
    %cst_19 = arith.constant dense<0.000000e+00> : vector<128x8xf32>
    %64 = tpu.matmul %62, %63, %cst_19 {dimension_numbers = #tpu.dot_dimension_numbers<[1], [0], [0], [1], [0, 0, 1, 1], [], []>} : vector<128x128xbf16>, vector<128x8xbf16>, vector<128x8xf32> -> vector<128x8xf32>
    %65 = vector.extract_strided_slice %10 {offsets = [8, 0], sizes = [8, 32], strides = [1, 1]} : vector<32x32xf32> to vector<8x32xf32>
    %66 = arith.truncf %64 : vector<128x8xf32> to vector<128x8xbf16>
    %67 = arith.truncf %65 : vector<8x32xf32> to vector<8x32xbf16>
    %cst_20 = arith.constant dense<0.000000e+00> : vector<128x32xf32>
    %68 = tpu.matmul %66, %67, %cst_20 {dimension_numbers = #tpu.dot_dimension_numbers<[1], [0], [0], [1], [0, 0, 1, 1], [], []>} : vector<128x8xbf16>, vector<8x32xbf16>, vector<128x32xf32> -> vector<128x32xf32>
    %69 = arith.addf %44, %68 : vector<128x32xf32>
    %70 = vector.extract_strided_slice %18 {offsets = [0, 16], sizes = [128, 8], strides = [1, 1]} : vector<128x128xf32> to vector<128x8xf32>
    %71 = vector.extract_strided_slice %18 {offsets = [0, 48], sizes = [128, 8], strides = [1, 1]} : vector<128x128xf32> to vector<128x8xf32>
    %72 = vector.extract_strided_slice %18 {offsets = [0, 80], sizes = [128, 8], strides = [1, 1]} : vector<128x128xf32> to vector<128x8xf32>
    %73 = arith.truncf %70 : vector<128x8xf32> to vector<128x8xbf16>
    %74 = arith.truncf %71 : vector<128x8xf32> to vector<128x8xbf16>
    %cst_21 = arith.constant dense<0.000000e+00> : vector<128x128xf32>
    %75 = tpu.matmul %73, %74, %cst_21 {dimension_numbers = #tpu.dot_dimension_numbers<[1], [1], [0], [0], [0, 0, 1, 0], [], []>} : vector<128x8xbf16>, vector<128x8xbf16>, vector<128x128xf32> -> vector<128x128xf32>
    %76 = arith.addf %75, %13 : vector<128x128xf32>
    %cst_22 = arith.constant dense<0xFF800000> : vector<128xf32>
    %77 = vector.multi_reduction <maximumf>, %76, %cst_22 [1] : vector<128x128xf32> to vector<128xf32>
    %78 = vector.shape_cast %77 : vector<128xf32> to vector<128x1xf32>
    %79 = vector.broadcast %78 : vector<128x1xf32> to vector<128x128xf32>
    %80 = arith.subf %76, %79 : vector<128x128xf32>
    %81 = math.exp %80 : vector<128x128xf32>
    %cst_23 = arith.constant dense<0.000000e+00> : vector<128xf32>
    %82 = vector.multi_reduction <add>, %81, %cst_23 [1] : vector<128x128xf32> to vector<128xf32>
    %83 = vector.shape_cast %82 : vector<128xf32> to vector<128x1xf32>
    %84 = tpu.reciprocal %83 {approx = true} : vector<128x1xf32> -> vector<128x1xf32>
    %85 = vector.broadcast %84 : vector<128x1xf32> to vector<128x128xf32>
    %86 = arith.mulf %81, %85 : vector<128x128xf32>
    %87 = arith.truncf %86 : vector<128x128xf32> to vector<128x128xbf16>
    %88 = arith.truncf %72 : vector<128x8xf32> to vector<128x8xbf16>
    %cst_24 = arith.constant dense<0.000000e+00> : vector<128x8xf32>
    %89 = tpu.matmul %87, %88, %cst_24 {dimension_numbers = #tpu.dot_dimension_numbers<[1], [0], [0], [1], [0, 0, 1, 1], [], []>} : vector<128x128xbf16>, vector<128x8xbf16>, vector<128x8xf32> -> vector<128x8xf32>
    %90 = vector.extract_strided_slice %10 {offsets = [16, 0], sizes = [8, 32], strides = [1, 1]} : vector<32x32xf32> to vector<8x32xf32>
    %91 = arith.truncf %89 : vector<128x8xf32> to vector<128x8xbf16>
    %92 = arith.truncf %90 : vector<8x32xf32> to vector<8x32xbf16>
    %cst_25 = arith.constant dense<0.000000e+00> : vector<128x32xf32>
    %93 = tpu.matmul %91, %92, %cst_25 {dimension_numbers = #tpu.dot_dimension_numbers<[1], [0], [0], [1], [0, 0, 1, 1], [], []>} : vector<128x8xbf16>, vector<8x32xbf16>, vector<128x32xf32> -> vector<128x32xf32>
    %94 = arith.addf %69, %93 : vector<128x32xf32>
    %95 = vector.extract_strided_slice %18 {offsets = [0, 24], sizes = [128, 8], strides = [1, 1]} : vector<128x128xf32> to vector<128x8xf32>
    %96 = vector.extract_strided_slice %18 {offsets = [0, 56], sizes = [128, 8], strides = [1, 1]} : vector<128x128xf32> to vector<128x8xf32>
    %97 = vector.extract_strided_slice %18 {offsets = [0, 88], sizes = [128, 8], strides = [1, 1]} : vector<128x128xf32> to vector<128x8xf32>
    %98 = arith.truncf %95 : vector<128x8xf32> to vector<128x8xbf16>
    %99 = arith.truncf %96 : vector<128x8xf32> to vector<128x8xbf16>
    %cst_26 = arith.constant dense<0.000000e+00> : vector<128x128xf32>
    %100 = tpu.matmul %98, %99, %cst_26 {dimension_numbers = #tpu.dot_dimension_numbers<[1], [1], [0], [0], [0, 0, 1, 0], [], []>} : vector<128x8xbf16>, vector<128x8xbf16>, vector<128x128xf32> -> vector<128x128xf32>
    %101 = arith.addf %100, %13 : vector<128x128xf32>
    %cst_27 = arith.constant dense<0xFF800000> : vector<128xf32>
    %102 = vector.multi_reduction <maximumf>, %101, %cst_27 [1] : vector<128x128xf32> to vector<128xf32>
    %103 = vector.shape_cast %102 : vector<128xf32> to vector<128x1xf32>
    %104 = vector.broadcast %103 : vector<128x1xf32> to vector<128x128xf32>
    %105 = arith.subf %101, %104 : vector<128x128xf32>
    %106 = math.exp %105 : vector<128x128xf32>
    %cst_28 = arith.constant dense<0.000000e+00> : vector<128xf32>
    %107 = vector.multi_reduction <add>, %106, %cst_28 [1] : vector<128x128xf32> to vector<128xf32>
    %108 = vector.shape_cast %107 : vector<128xf32> to vector<128x1xf32>
    %109 = tpu.reciprocal %108 {approx = true} : vector<128x1xf32> -> vector<128x1xf32>
    %110 = vector.broadcast %109 : vector<128x1xf32> to vector<128x128xf32>
    %111 = arith.mulf %106, %110 : vector<128x128xf32>
    %112 = arith.truncf %111 : vector<128x128xf32> to vector<128x128xbf16>
    %113 = arith.truncf %97 : vector<128x8xf32> to vector<128x8xbf16>
    %cst_29 = arith.constant dense<0.000000e+00> : vector<128x8xf32>
    %114 = tpu.matmul %112, %113, %cst_29 {dimension_numbers = #tpu.dot_dimension_numbers<[1], [0], [0], [1], [0, 0, 1, 1], [], []>} : vector<128x128xbf16>, vector<128x8xbf16>, vector<128x8xf32> -> vector<128x8xf32>
    %115 = vector.extract_strided_slice %10 {offsets = [24, 0], sizes = [8, 32], strides = [1, 1]} : vector<32x32xf32> to vector<8x32xf32>
    %116 = arith.truncf %114 : vector<128x8xf32> to vector<128x8xbf16>
    %117 = arith.truncf %115 : vector<8x32xf32> to vector<8x32xbf16>
    %cst_30 = arith.constant dense<0.000000e+00> : vector<128x32xf32>
    %118 = tpu.matmul %116, %117, %cst_30 {dimension_numbers = #tpu.dot_dimension_numbers<[1], [0], [0], [1], [0, 0, 1, 1], [], []>} : vector<128x8xbf16>, vector<8x32xbf16>, vector<128x32xf32> -> vector<128x32xf32>
    %119 = arith.addf %94, %118 : vector<128x32xf32>
    %120 = vector.broadcast %12 : vector<1x32xf32> to vector<128x32xf32>
    %121 = arith.addf %119, %120 : vector<128x32xf32>
    %122 = arith.addf %8, %121 : vector<128x32xf32>
    %123 = vector.extract_strided_slice %0 {offsets = [5, 0], sizes = [1, 32], strides = [1, 1]} : vector<24x128xf32> to vector<1x32xf32>
    %124 = vector.extract_strided_slice %0 {offsets = [6, 0], sizes = [1, 32], strides = [1, 1]} : vector<24x128xf32> to vector<1x32xf32>
    %cst_31 = arith.constant dense<0.000000e+00> : vector<128xf32>
    %125 = vector.multi_reduction <add>, %122, %cst_31 [1] : vector<128x32xf32> to vector<128xf32>
    %126 = vector.shape_cast %125 : vector<128xf32> to vector<128x1xf32>
    %cst_32 = arith.constant 3.200000e+01 : f32
    %127 = vector.broadcast %cst_32 : f32 to vector<128x1xf32>
    %128 = arith.divf %126, %127 : vector<128x1xf32>
    %129 = vector.broadcast %128 : vector<128x1xf32> to vector<128x32xf32>
    %130 = arith.subf %122, %129 : vector<128x32xf32>
    %131 = arith.mulf %130, %130 : vector<128x32xf32>
    %cst_33 = arith.constant dense<0.000000e+00> : vector<128xf32>
    %132 = vector.multi_reduction <add>, %131, %cst_33 [1] : vector<128x32xf32> to vector<128xf32>
    %133 = vector.shape_cast %132 : vector<128xf32> to vector<128x1xf32>
    %cst_34 = arith.constant 3.200000e+01 : f32
    %134 = vector.broadcast %cst_34 : f32 to vector<128x1xf32>
    %135 = arith.divf %133, %134 : vector<128x1xf32>
    %136 = vector.broadcast %128 : vector<128x1xf32> to vector<128x32xf32>
    %137 = arith.subf %122, %136 : vector<128x32xf32>
    %cst_35 = arith.constant 9.99999974E-6 : f32
    %138 = vector.broadcast %cst_35 : f32 to vector<128x1xf32>
    %139 = arith.addf %135, %138 : vector<128x1xf32>
    %140 = math.rsqrt %139 : vector<128x1xf32>
    %141 = vector.broadcast %140 : vector<128x1xf32> to vector<128x32xf32>
    %142 = arith.mulf %137, %141 : vector<128x32xf32>
    %143 = vector.broadcast %123 : vector<1x32xf32> to vector<128x32xf32>
    %144 = arith.mulf %142, %143 : vector<128x32xf32>
    %145 = vector.broadcast %124 : vector<1x32xf32> to vector<128x32xf32>
    %146 = arith.addf %144, %145 : vector<128x32xf32>
    %147 = vector.extract_strided_slice %0 {offsets = [1, 0], sizes = [1, 32], strides = [1, 1]} : vector<24x128xf32> to vector<1x32xf32>
    %148 = vector.extract_strided_slice %0 {offsets = [2, 0], sizes = [1, 32], strides = [1, 1]} : vector<24x128xf32> to vector<1x32xf32>
    %cst_36 = arith.constant dense<0.000000e+00> : vector<128xf32>
    %149 = vector.multi_reduction <add>, %8, %cst_36 [1] : vector<128x32xf32> to vector<128xf32>
    %150 = vector.shape_cast %149 : vector<128xf32> to vector<128x1xf32>
    %cst_37 = arith.constant 3.200000e+01 : f32
    %151 = vector.broadcast %cst_37 : f32 to vector<128x1xf32>
    %152 = arith.divf %150, %151 : vector<128x1xf32>
    %153 = vector.broadcast %152 : vector<128x1xf32> to vector<128x32xf32>
    %154 = arith.subf %8, %153 : vector<128x32xf32>
    %155 = arith.mulf %154, %154 : vector<128x32xf32>
    %cst_38 = arith.constant dense<0.000000e+00> : vector<128xf32>
    %156 = vector.multi_reduction <add>, %155, %cst_38 [1] : vector<128x32xf32> to vector<128xf32>
    %157 = vector.shape_cast %156 : vector<128xf32> to vector<128x1xf32>
    %cst_39 = arith.constant 3.200000e+01 : f32
    %158 = vector.broadcast %cst_39 : f32 to vector<128x1xf32>
    %159 = arith.divf %157, %158 : vector<128x1xf32>
    %160 = vector.broadcast %152 : vector<128x1xf32> to vector<128x32xf32>
    %161 = arith.subf %8, %160 : vector<128x32xf32>
    %cst_40 = arith.constant 9.99999974E-6 : f32
    %162 = vector.broadcast %cst_40 : f32 to vector<128x1xf32>
    %163 = arith.addf %159, %162 : vector<128x1xf32>
    %164 = math.rsqrt %163 : vector<128x1xf32>
    %165 = vector.broadcast %164 : vector<128x1xf32> to vector<128x32xf32>
    %166 = arith.mulf %161, %165 : vector<128x32xf32>
    %167 = vector.broadcast %147 : vector<1x32xf32> to vector<128x32xf32>
    %168 = arith.mulf %166, %167 : vector<128x32xf32>
    %169 = vector.broadcast %148 : vector<1x32xf32> to vector<128x32xf32>
    %170 = arith.addf %168, %169 : vector<128x32xf32>
    %171 = arith.addf %146, %170 : vector<128x32xf32>
    %c48 = arith.constant 48 : index
    %c0_41 = arith.constant 0 : index
    %172 = vector.load %arg3[%c48, %c0_41] : memref<272x128xf32, #tpu.memory_space<vmem>>, vector<32x128xf32>
    %c112 = arith.constant 112 : index
    %c0_42 = arith.constant 0 : index
    %173 = vector.load %arg3[%c112, %c0_42] : memref<272x128xf32, #tpu.memory_space<vmem>>, vector<32x32xf32>
    %174 = vector.extract_strided_slice %0 {offsets = [7, 0], sizes = [1, 128], strides = [1, 1]} : vector<24x128xf32> to vector<1x128xf32>
    %175 = vector.extract_strided_slice %0 {offsets = [8, 0], sizes = [1, 32], strides = [1, 1]} : vector<24x128xf32> to vector<1x32xf32>
    %c0_43 = arith.constant 0 : index
    %c0_44 = arith.constant 0 : index
    %176 = vector.load %arg2[%c0_43, %c0_44] : memref<256x128xf32, #tpu.memory_space<vmem>>, vector<128x128xf32>
    %177 = arith.truncf %171 : vector<128x32xf32> to vector<128x32xbf16>
    %178 = arith.truncf %172 : vector<32x128xf32> to vector<32x128xbf16>
    %cst_45 = arith.constant dense<0.000000e+00> : vector<128x128xf32>
    %179 = tpu.matmul %177, %178, %cst_45 {dimension_numbers = #tpu.dot_dimension_numbers<[1], [0], [0], [1], [0, 0, 1, 1], [], []>} : vector<128x32xbf16>, vector<32x128xbf16>, vector<128x128xf32> -> vector<128x128xf32>
    %180 = vector.broadcast %174 : vector<1x128xf32> to vector<128x128xf32>
    %181 = arith.addf %179, %180 : vector<128x128xf32>
    %cst_46 = arith.constant 0.000000e+00 : f32
    %182 = vector.broadcast %cst_46 : f32 to vector<128x32xf32>
    %183 = vector.extract_strided_slice %181 {offsets = [0, 0], sizes = [128, 8], strides = [1, 1]} : vector<128x128xf32> to vector<128x8xf32>
    %184 = vector.extract_strided_slice %181 {offsets = [0, 32], sizes = [128, 8], strides = [1, 1]} : vector<128x128xf32> to vector<128x8xf32>
    %185 = vector.extract_strided_slice %181 {offsets = [0, 64], sizes = [128, 8], strides = [1, 1]} : vector<128x128xf32> to vector<128x8xf32>
    %186 = arith.truncf %183 : vector<128x8xf32> to vector<128x8xbf16>
    %187 = arith.truncf %184 : vector<128x8xf32> to vector<128x8xbf16>
    %cst_47 = arith.constant dense<0.000000e+00> : vector<128x128xf32>
    %188 = tpu.matmul %186, %187, %cst_47 {dimension_numbers = #tpu.dot_dimension_numbers<[1], [1], [0], [0], [0, 0, 1, 0], [], []>} : vector<128x8xbf16>, vector<128x8xbf16>, vector<128x128xf32> -> vector<128x128xf32>
    %189 = arith.addf %188, %176 : vector<128x128xf32>
    %cst_48 = arith.constant dense<0xFF800000> : vector<128xf32>
    %190 = vector.multi_reduction <maximumf>, %189, %cst_48 [1] : vector<128x128xf32> to vector<128xf32>
    %191 = vector.shape_cast %190 : vector<128xf32> to vector<128x1xf32>
    %192 = vector.broadcast %191 : vector<128x1xf32> to vector<128x128xf32>
    %193 = arith.subf %189, %192 : vector<128x128xf32>
    %194 = math.exp %193 : vector<128x128xf32>
    %cst_49 = arith.constant dense<0.000000e+00> : vector<128xf32>
    %195 = vector.multi_reduction <add>, %194, %cst_49 [1] : vector<128x128xf32> to vector<128xf32>
    %196 = vector.shape_cast %195 : vector<128xf32> to vector<128x1xf32>
    %197 = tpu.reciprocal %196 {approx = true} : vector<128x1xf32> -> vector<128x1xf32>
    %198 = vector.broadcast %197 : vector<128x1xf32> to vector<128x128xf32>
    %199 = arith.mulf %194, %198 : vector<128x128xf32>
    %200 = arith.truncf %199 : vector<128x128xf32> to vector<128x128xbf16>
    %201 = arith.truncf %185 : vector<128x8xf32> to vector<128x8xbf16>
    %cst_50 = arith.constant dense<0.000000e+00> : vector<128x8xf32>
    %202 = tpu.matmul %200, %201, %cst_50 {dimension_numbers = #tpu.dot_dimension_numbers<[1], [0], [0], [1], [0, 0, 1, 1], [], []>} : vector<128x128xbf16>, vector<128x8xbf16>, vector<128x8xf32> -> vector<128x8xf32>
    %203 = vector.extract_strided_slice %173 {offsets = [0, 0], sizes = [8, 32], strides = [1, 1]} : vector<32x32xf32> to vector<8x32xf32>
    %204 = arith.truncf %202 : vector<128x8xf32> to vector<128x8xbf16>
    %205 = arith.truncf %203 : vector<8x32xf32> to vector<8x32xbf16>
    %cst_51 = arith.constant dense<0.000000e+00> : vector<128x32xf32>
    %206 = tpu.matmul %204, %205, %cst_51 {dimension_numbers = #tpu.dot_dimension_numbers<[1], [0], [0], [1], [0, 0, 1, 1], [], []>} : vector<128x8xbf16>, vector<8x32xbf16>, vector<128x32xf32> -> vector<128x32xf32>
    %207 = arith.addf %182, %206 : vector<128x32xf32>
    %208 = vector.extract_strided_slice %181 {offsets = [0, 8], sizes = [128, 8], strides = [1, 1]} : vector<128x128xf32> to vector<128x8xf32>
    %209 = vector.extract_strided_slice %181 {offsets = [0, 40], sizes = [128, 8], strides = [1, 1]} : vector<128x128xf32> to vector<128x8xf32>
    %210 = vector.extract_strided_slice %181 {offsets = [0, 72], sizes = [128, 8], strides = [1, 1]} : vector<128x128xf32> to vector<128x8xf32>
    %211 = arith.truncf %208 : vector<128x8xf32> to vector<128x8xbf16>
    %212 = arith.truncf %209 : vector<128x8xf32> to vector<128x8xbf16>
    %cst_52 = arith.constant dense<0.000000e+00> : vector<128x128xf32>
    %213 = tpu.matmul %211, %212, %cst_52 {dimension_numbers = #tpu.dot_dimension_numbers<[1], [1], [0], [0], [0, 0, 1, 0], [], []>} : vector<128x8xbf16>, vector<128x8xbf16>, vector<128x128xf32> -> vector<128x128xf32>
    %214 = arith.addf %213, %176 : vector<128x128xf32>
    %cst_53 = arith.constant dense<0xFF800000> : vector<128xf32>
    %215 = vector.multi_reduction <maximumf>, %214, %cst_53 [1] : vector<128x128xf32> to vector<128xf32>
    %216 = vector.shape_cast %215 : vector<128xf32> to vector<128x1xf32>
    %217 = vector.broadcast %216 : vector<128x1xf32> to vector<128x128xf32>
    %218 = arith.subf %214, %217 : vector<128x128xf32>
    %219 = math.exp %218 : vector<128x128xf32>
    %cst_54 = arith.constant dense<0.000000e+00> : vector<128xf32>
    %220 = vector.multi_reduction <add>, %219, %cst_54 [1] : vector<128x128xf32> to vector<128xf32>
    %221 = vector.shape_cast %220 : vector<128xf32> to vector<128x1xf32>
    %222 = tpu.reciprocal %221 {approx = true} : vector<128x1xf32> -> vector<128x1xf32>
    %223 = vector.broadcast %222 : vector<128x1xf32> to vector<128x128xf32>
    %224 = arith.mulf %219, %223 : vector<128x128xf32>
    %225 = arith.truncf %224 : vector<128x128xf32> to vector<128x128xbf16>
    %226 = arith.truncf %210 : vector<128x8xf32> to vector<128x8xbf16>
    %cst_55 = arith.constant dense<0.000000e+00> : vector<128x8xf32>
    %227 = tpu.matmul %225, %226, %cst_55 {dimension_numbers = #tpu.dot_dimension_numbers<[1], [0], [0], [1], [0, 0, 1, 1], [], []>} : vector<128x128xbf16>, vector<128x8xbf16>, vector<128x8xf32> -> vector<128x8xf32>
    %228 = vector.extract_strided_slice %173 {offsets = [8, 0], sizes = [8, 32], strides = [1, 1]} : vector<32x32xf32> to vector<8x32xf32>
    %229 = arith.truncf %227 : vector<128x8xf32> to vector<128x8xbf16>
    %230 = arith.truncf %228 : vector<8x32xf32> to vector<8x32xbf16>
    %cst_56 = arith.constant dense<0.000000e+00> : vector<128x32xf32>
    %231 = tpu.matmul %229, %230, %cst_56 {dimension_numbers = #tpu.dot_dimension_numbers<[1], [0], [0], [1], [0, 0, 1, 1], [], []>} : vector<128x8xbf16>, vector<8x32xbf16>, vector<128x32xf32> -> vector<128x32xf32>
    %232 = arith.addf %207, %231 : vector<128x32xf32>
    %233 = vector.extract_strided_slice %181 {offsets = [0, 16], sizes = [128, 8], strides = [1, 1]} : vector<128x128xf32> to vector<128x8xf32>
    %234 = vector.extract_strided_slice %181 {offsets = [0, 48], sizes = [128, 8], strides = [1, 1]} : vector<128x128xf32> to vector<128x8xf32>
    %235 = vector.extract_strided_slice %181 {offsets = [0, 80], sizes = [128, 8], strides = [1, 1]} : vector<128x128xf32> to vector<128x8xf32>
    %236 = arith.truncf %233 : vector<128x8xf32> to vector<128x8xbf16>
    %237 = arith.truncf %234 : vector<128x8xf32> to vector<128x8xbf16>
    %cst_57 = arith.constant dense<0.000000e+00> : vector<128x128xf32>
    %238 = tpu.matmul %236, %237, %cst_57 {dimension_numbers = #tpu.dot_dimension_numbers<[1], [1], [0], [0], [0, 0, 1, 0], [], []>} : vector<128x8xbf16>, vector<128x8xbf16>, vector<128x128xf32> -> vector<128x128xf32>
    %239 = arith.addf %238, %176 : vector<128x128xf32>
    %cst_58 = arith.constant dense<0xFF800000> : vector<128xf32>
    %240 = vector.multi_reduction <maximumf>, %239, %cst_58 [1] : vector<128x128xf32> to vector<128xf32>
    %241 = vector.shape_cast %240 : vector<128xf32> to vector<128x1xf32>
    %242 = vector.broadcast %241 : vector<128x1xf32> to vector<128x128xf32>
    %243 = arith.subf %239, %242 : vector<128x128xf32>
    %244 = math.exp %243 : vector<128x128xf32>
    %cst_59 = arith.constant dense<0.000000e+00> : vector<128xf32>
    %245 = vector.multi_reduction <add>, %244, %cst_59 [1] : vector<128x128xf32> to vector<128xf32>
    %246 = vector.shape_cast %245 : vector<128xf32> to vector<128x1xf32>
    %247 = tpu.reciprocal %246 {approx = true} : vector<128x1xf32> -> vector<128x1xf32>
    %248 = vector.broadcast %247 : vector<128x1xf32> to vector<128x128xf32>
    %249 = arith.mulf %244, %248 : vector<128x128xf32>
    %250 = arith.truncf %249 : vector<128x128xf32> to vector<128x128xbf16>
    %251 = arith.truncf %235 : vector<128x8xf32> to vector<128x8xbf16>
    %cst_60 = arith.constant dense<0.000000e+00> : vector<128x8xf32>
    %252 = tpu.matmul %250, %251, %cst_60 {dimension_numbers = #tpu.dot_dimension_numbers<[1], [0], [0], [1], [0, 0, 1, 1], [], []>} : vector<128x128xbf16>, vector<128x8xbf16>, vector<128x8xf32> -> vector<128x8xf32>
    %253 = vector.extract_strided_slice %173 {offsets = [16, 0], sizes = [8, 32], strides = [1, 1]} : vector<32x32xf32> to vector<8x32xf32>
    %254 = arith.truncf %252 : vector<128x8xf32> to vector<128x8xbf16>
    %255 = arith.truncf %253 : vector<8x32xf32> to vector<8x32xbf16>
    %cst_61 = arith.constant dense<0.000000e+00> : vector<128x32xf32>
    %256 = tpu.matmul %254, %255, %cst_61 {dimension_numbers = #tpu.dot_dimension_numbers<[1], [0], [0], [1], [0, 0, 1, 1], [], []>} : vector<128x8xbf16>, vector<8x32xbf16>, vector<128x32xf32> -> vector<128x32xf32>
    %257 = arith.addf %232, %256 : vector<128x32xf32>
    %258 = vector.extract_strided_slice %181 {offsets = [0, 24], sizes = [128, 8], strides = [1, 1]} : vector<128x128xf32> to vector<128x8xf32>
    %259 = vector.extract_strided_slice %181 {offsets = [0, 56], sizes = [128, 8], strides = [1, 1]} : vector<128x128xf32> to vector<128x8xf32>
    %260 = vector.extract_strided_slice %181 {offsets = [0, 88], sizes = [128, 8], strides = [1, 1]} : vector<128x128xf32> to vector<128x8xf32>
    %261 = arith.truncf %258 : vector<128x8xf32> to vector<128x8xbf16>
    %262 = arith.truncf %259 : vector<128x8xf32> to vector<128x8xbf16>
    %cst_62 = arith.constant dense<0.000000e+00> : vector<128x128xf32>
    %263 = tpu.matmul %261, %262, %cst_62 {dimension_numbers = #tpu.dot_dimension_numbers<[1], [1], [0], [0], [0, 0, 1, 0], [], []>} : vector<128x8xbf16>, vector<128x8xbf16>, vector<128x128xf32> -> vector<128x128xf32>
    %264 = arith.addf %263, %176 : vector<128x128xf32>
    %cst_63 = arith.constant dense<0xFF800000> : vector<128xf32>
    %265 = vector.multi_reduction <maximumf>, %264, %cst_63 [1] : vector<128x128xf32> to vector<128xf32>
    %266 = vector.shape_cast %265 : vector<128xf32> to vector<128x1xf32>
    %267 = vector.broadcast %266 : vector<128x1xf32> to vector<128x128xf32>
    %268 = arith.subf %264, %267 : vector<128x128xf32>
    %269 = math.exp %268 : vector<128x128xf32>
    %cst_64 = arith.constant dense<0.000000e+00> : vector<128xf32>
    %270 = vector.multi_reduction <add>, %269, %cst_64 [1] : vector<128x128xf32> to vector<128xf32>
    %271 = vector.shape_cast %270 : vector<128xf32> to vector<128x1xf32>
    %272 = tpu.reciprocal %271 {approx = true} : vector<128x1xf32> -> vector<128x1xf32>
    %273 = vector.broadcast %272 : vector<128x1xf32> to vector<128x128xf32>
    %274 = arith.mulf %269, %273 : vector<128x128xf32>
    %275 = arith.truncf %274 : vector<128x128xf32> to vector<128x128xbf16>
    %276 = arith.truncf %260 : vector<128x8xf32> to vector<128x8xbf16>
    %cst_65 = arith.constant dense<0.000000e+00> : vector<128x8xf32>
    %277 = tpu.matmul %275, %276, %cst_65 {dimension_numbers = #tpu.dot_dimension_numbers<[1], [0], [0], [1], [0, 0, 1, 1], [], []>} : vector<128x128xbf16>, vector<128x8xbf16>, vector<128x8xf32> -> vector<128x8xf32>
    %278 = vector.extract_strided_slice %173 {offsets = [24, 0], sizes = [8, 32], strides = [1, 1]} : vector<32x32xf32> to vector<8x32xf32>
    %279 = arith.truncf %277 : vector<128x8xf32> to vector<128x8xbf16>
    %280 = arith.truncf %278 : vector<8x32xf32> to vector<8x32xbf16>
    %cst_66 = arith.constant dense<0.000000e+00> : vector<128x32xf32>
    %281 = tpu.matmul %279, %280, %cst_66 {dimension_numbers = #tpu.dot_dimension_numbers<[1], [0], [0], [1], [0, 0, 1, 1], [], []>} : vector<128x8xbf16>, vector<8x32xbf16>, vector<128x32xf32> -> vector<128x32xf32>
    %282 = arith.addf %257, %281 : vector<128x32xf32>
    %283 = vector.broadcast %175 : vector<1x32xf32> to vector<128x32xf32>
    %284 = arith.addf %282, %283 : vector<128x32xf32>
    %285 = arith.addf %171, %284 : vector<128x32xf32>
    %286 = vector.extract_strided_slice %0 {offsets = [9, 0], sizes = [1, 32], strides = [1, 1]} : vector<24x128xf32> to vector<1x32xf32>
    %287 = vector.extract_strided_slice %0 {offsets = [10, 0], sizes = [1, 32], strides = [1, 1]} : vector<24x128xf32> to vector<1x32xf32>
    %cst_67 = arith.constant dense<0.000000e+00> : vector<128xf32>
    %288 = vector.multi_reduction <add>, %285, %cst_67 [1] : vector<128x32xf32> to vector<128xf32>
    %289 = vector.shape_cast %288 : vector<128xf32> to vector<128x1xf32>
    %cst_68 = arith.constant 3.200000e+01 : f32
    %290 = vector.broadcast %cst_68 : f32 to vector<128x1xf32>
    %291 = arith.divf %289, %290 : vector<128x1xf32>
    %292 = vector.broadcast %291 : vector<128x1xf32> to vector<128x32xf32>
    %293 = arith.subf %285, %292 : vector<128x32xf32>
    %294 = arith.mulf %293, %293 : vector<128x32xf32>
    %cst_69 = arith.constant dense<0.000000e+00> : vector<128xf32>
    %295 = vector.multi_reduction <add>, %294, %cst_69 [1] : vector<128x32xf32> to vector<128xf32>
    %296 = vector.shape_cast %295 : vector<128xf32> to vector<128x1xf32>
    %cst_70 = arith.constant 3.200000e+01 : f32
    %297 = vector.broadcast %cst_70 : f32 to vector<128x1xf32>
    %298 = arith.divf %296, %297 : vector<128x1xf32>
    %299 = vector.broadcast %291 : vector<128x1xf32> to vector<128x32xf32>
    %300 = arith.subf %285, %299 : vector<128x32xf32>
    %cst_71 = arith.constant 9.99999974E-6 : f32
    %301 = vector.broadcast %cst_71 : f32 to vector<128x1xf32>
    %302 = arith.addf %298, %301 : vector<128x1xf32>
    %303 = math.rsqrt %302 : vector<128x1xf32>
    %304 = vector.broadcast %303 : vector<128x1xf32> to vector<128x32xf32>
    %305 = arith.mulf %300, %304 : vector<128x32xf32>
    %306 = vector.broadcast %286 : vector<1x32xf32> to vector<128x32xf32>
    %307 = arith.mulf %305, %306 : vector<128x32xf32>
    %308 = vector.broadcast %287 : vector<1x32xf32> to vector<128x32xf32>
    %309 = arith.addf %307, %308 : vector<128x32xf32>
    %c144 = arith.constant 144 : index
    %c0_72 = arith.constant 0 : index
    %310 = vector.load %arg3[%c144, %c0_72] : memref<272x128xf32, #tpu.memory_space<vmem>>, vector<32x128xf32>
    %311 = vector.extract_strided_slice %0 {offsets = [11, 0], sizes = [1, 128], strides = [1, 1]} : vector<24x128xf32> to vector<1x128xf32>
    %c176 = arith.constant 176 : index
    %c0_73 = arith.constant 0 : index
    %312 = vector.load %arg3[%c176, %c0_73] : memref<272x128xf32, #tpu.memory_space<vmem>>, vector<32x32xf32>
    %313 = vector.extract_strided_slice %0 {offsets = [12, 0], sizes = [1, 32], strides = [1, 1]} : vector<24x128xf32> to vector<1x32xf32>
    %c128 = arith.constant 128 : index
    %c0_74 = arith.constant 0 : index
    %314 = vector.load %arg2[%c128, %c0_74] : memref<256x128xf32, #tpu.memory_space<vmem>>, vector<128x128xf32>
    %315 = arith.truncf %309 : vector<128x32xf32> to vector<128x32xbf16>
    %316 = arith.truncf %310 : vector<32x128xf32> to vector<32x128xbf16>
    %cst_75 = arith.constant dense<0.000000e+00> : vector<128x128xf32>
    %317 = tpu.matmul %315, %316, %cst_75 {dimension_numbers = #tpu.dot_dimension_numbers<[1], [0], [0], [1], [0, 0, 1, 1], [], []>} : vector<128x32xbf16>, vector<32x128xbf16>, vector<128x128xf32> -> vector<128x128xf32>
    %318 = vector.broadcast %311 : vector<1x128xf32> to vector<128x128xf32>
    %319 = arith.addf %317, %318 : vector<128x128xf32>
    %cst_76 = arith.constant 0.000000e+00 : f32
    %320 = vector.broadcast %cst_76 : f32 to vector<128x32xf32>
    %321 = vector.extract_strided_slice %319 {offsets = [0, 0], sizes = [128, 8], strides = [1, 1]} : vector<128x128xf32> to vector<128x8xf32>
    %322 = vector.extract_strided_slice %319 {offsets = [0, 32], sizes = [128, 8], strides = [1, 1]} : vector<128x128xf32> to vector<128x8xf32>
    %323 = vector.extract_strided_slice %319 {offsets = [0, 64], sizes = [128, 8], strides = [1, 1]} : vector<128x128xf32> to vector<128x8xf32>
    %324 = arith.truncf %321 : vector<128x8xf32> to vector<128x8xbf16>
    %325 = arith.truncf %322 : vector<128x8xf32> to vector<128x8xbf16>
    %cst_77 = arith.constant dense<0.000000e+00> : vector<128x128xf32>
    %326 = tpu.matmul %324, %325, %cst_77 {dimension_numbers = #tpu.dot_dimension_numbers<[1], [1], [0], [0], [0, 0, 1, 0], [], []>} : vector<128x8xbf16>, vector<128x8xbf16>, vector<128x128xf32> -> vector<128x128xf32>
    %327 = arith.addf %326, %314 : vector<128x128xf32>
    %cst_78 = arith.constant dense<0xFF800000> : vector<128xf32>
    %328 = vector.multi_reduction <maximumf>, %327, %cst_78 [1] : vector<128x128xf32> to vector<128xf32>
    %329 = vector.shape_cast %328 : vector<128xf32> to vector<128x1xf32>
    %330 = vector.broadcast %329 : vector<128x1xf32> to vector<128x128xf32>
    %331 = arith.subf %327, %330 : vector<128x128xf32>
    %332 = math.exp %331 : vector<128x128xf32>
    %cst_79 = arith.constant dense<0.000000e+00> : vector<128xf32>
    %333 = vector.multi_reduction <add>, %332, %cst_79 [1] : vector<128x128xf32> to vector<128xf32>
    %334 = vector.shape_cast %333 : vector<128xf32> to vector<128x1xf32>
    %335 = tpu.reciprocal %334 {approx = true} : vector<128x1xf32> -> vector<128x1xf32>
    %336 = vector.broadcast %335 : vector<128x1xf32> to vector<128x128xf32>
    %337 = arith.mulf %332, %336 : vector<128x128xf32>
    %338 = arith.truncf %337 : vector<128x128xf32> to vector<128x128xbf16>
    %339 = arith.truncf %323 : vector<128x8xf32> to vector<128x8xbf16>
    %cst_80 = arith.constant dense<0.000000e+00> : vector<128x8xf32>
    %340 = tpu.matmul %338, %339, %cst_80 {dimension_numbers = #tpu.dot_dimension_numbers<[1], [0], [0], [1], [0, 0, 1, 1], [], []>} : vector<128x128xbf16>, vector<128x8xbf16>, vector<128x8xf32> -> vector<128x8xf32>
    %341 = vector.extract_strided_slice %312 {offsets = [0, 0], sizes = [8, 32], strides = [1, 1]} : vector<32x32xf32> to vector<8x32xf32>
    %342 = arith.truncf %340 : vector<128x8xf32> to vector<128x8xbf16>
    %343 = arith.truncf %341 : vector<8x32xf32> to vector<8x32xbf16>
    %cst_81 = arith.constant dense<0.000000e+00> : vector<128x32xf32>
    %344 = tpu.matmul %342, %343, %cst_81 {dimension_numbers = #tpu.dot_dimension_numbers<[1], [0], [0], [1], [0, 0, 1, 1], [], []>} : vector<128x8xbf16>, vector<8x32xbf16>, vector<128x32xf32> -> vector<128x32xf32>
    %345 = arith.addf %320, %344 : vector<128x32xf32>
    %346 = vector.extract_strided_slice %319 {offsets = [0, 8], sizes = [128, 8], strides = [1, 1]} : vector<128x128xf32> to vector<128x8xf32>
    %347 = vector.extract_strided_slice %319 {offsets = [0, 40], sizes = [128, 8], strides = [1, 1]} : vector<128x128xf32> to vector<128x8xf32>
    %348 = vector.extract_strided_slice %319 {offsets = [0, 72], sizes = [128, 8], strides = [1, 1]} : vector<128x128xf32> to vector<128x8xf32>
    %349 = arith.truncf %346 : vector<128x8xf32> to vector<128x8xbf16>
    %350 = arith.truncf %347 : vector<128x8xf32> to vector<128x8xbf16>
    %cst_82 = arith.constant dense<0.000000e+00> : vector<128x128xf32>
    %351 = tpu.matmul %349, %350, %cst_82 {dimension_numbers = #tpu.dot_dimension_numbers<[1], [1], [0], [0], [0, 0, 1, 0], [], []>} : vector<128x8xbf16>, vector<128x8xbf16>, vector<128x128xf32> -> vector<128x128xf32>
    %352 = arith.addf %351, %314 : vector<128x128xf32>
    %cst_83 = arith.constant dense<0xFF800000> : vector<128xf32>
    %353 = vector.multi_reduction <maximumf>, %352, %cst_83 [1] : vector<128x128xf32> to vector<128xf32>
    %354 = vector.shape_cast %353 : vector<128xf32> to vector<128x1xf32>
    %355 = vector.broadcast %354 : vector<128x1xf32> to vector<128x128xf32>
    %356 = arith.subf %352, %355 : vector<128x128xf32>
    %357 = math.exp %356 : vector<128x128xf32>
    %cst_84 = arith.constant dense<0.000000e+00> : vector<128xf32>
    %358 = vector.multi_reduction <add>, %357, %cst_84 [1] : vector<128x128xf32> to vector<128xf32>
    %359 = vector.shape_cast %358 : vector<128xf32> to vector<128x1xf32>
    %360 = tpu.reciprocal %359 {approx = true} : vector<128x1xf32> -> vector<128x1xf32>
    %361 = vector.broadcast %360 : vector<128x1xf32> to vector<128x128xf32>
    %362 = arith.mulf %357, %361 : vector<128x128xf32>
    %363 = arith.truncf %362 : vector<128x128xf32> to vector<128x128xbf16>
    %364 = arith.truncf %348 : vector<128x8xf32> to vector<128x8xbf16>
    %cst_85 = arith.constant dense<0.000000e+00> : vector<128x8xf32>
    %365 = tpu.matmul %363, %364, %cst_85 {dimension_numbers = #tpu.dot_dimension_numbers<[1], [0], [0], [1], [0, 0, 1, 1], [], []>} : vector<128x128xbf16>, vector<128x8xbf16>, vector<128x8xf32> -> vector<128x8xf32>
    %366 = vector.extract_strided_slice %312 {offsets = [8, 0], sizes = [8, 32], strides = [1, 1]} : vector<32x32xf32> to vector<8x32xf32>
    %367 = arith.truncf %365 : vector<128x8xf32> to vector<128x8xbf16>
    %368 = arith.truncf %366 : vector<8x32xf32> to vector<8x32xbf16>
    %cst_86 = arith.constant dense<0.000000e+00> : vector<128x32xf32>
    %369 = tpu.matmul %367, %368, %cst_86 {dimension_numbers = #tpu.dot_dimension_numbers<[1], [0], [0], [1], [0, 0, 1, 1], [], []>} : vector<128x8xbf16>, vector<8x32xbf16>, vector<128x32xf32> -> vector<128x32xf32>
    %370 = arith.addf %345, %369 : vector<128x32xf32>
    %371 = vector.extract_strided_slice %319 {offsets = [0, 16], sizes = [128, 8], strides = [1, 1]} : vector<128x128xf32> to vector<128x8xf32>
    %372 = vector.extract_strided_slice %319 {offsets = [0, 48], sizes = [128, 8], strides = [1, 1]} : vector<128x128xf32> to vector<128x8xf32>
    %373 = vector.extract_strided_slice %319 {offsets = [0, 80], sizes = [128, 8], strides = [1, 1]} : vector<128x128xf32> to vector<128x8xf32>
    %374 = arith.truncf %371 : vector<128x8xf32> to vector<128x8xbf16>
    %375 = arith.truncf %372 : vector<128x8xf32> to vector<128x8xbf16>
    %cst_87 = arith.constant dense<0.000000e+00> : vector<128x128xf32>
    %376 = tpu.matmul %374, %375, %cst_87 {dimension_numbers = #tpu.dot_dimension_numbers<[1], [1], [0], [0], [0, 0, 1, 0], [], []>} : vector<128x8xbf16>, vector<128x8xbf16>, vector<128x128xf32> -> vector<128x128xf32>
    %377 = arith.addf %376, %314 : vector<128x128xf32>
    %cst_88 = arith.constant dense<0xFF800000> : vector<128xf32>
    %378 = vector.multi_reduction <maximumf>, %377, %cst_88 [1] : vector<128x128xf32> to vector<128xf32>
    %379 = vector.shape_cast %378 : vector<128xf32> to vector<128x1xf32>
    %380 = vector.broadcast %379 : vector<128x1xf32> to vector<128x128xf32>
    %381 = arith.subf %377, %380 : vector<128x128xf32>
    %382 = math.exp %381 : vector<128x128xf32>
    %cst_89 = arith.constant dense<0.000000e+00> : vector<128xf32>
    %383 = vector.multi_reduction <add>, %382, %cst_89 [1] : vector<128x128xf32> to vector<128xf32>
    %384 = vector.shape_cast %383 : vector<128xf32> to vector<128x1xf32>
    %385 = tpu.reciprocal %384 {approx = true} : vector<128x1xf32> -> vector<128x1xf32>
    %386 = vector.broadcast %385 : vector<128x1xf32> to vector<128x128xf32>
    %387 = arith.mulf %382, %386 : vector<128x128xf32>
    %388 = arith.truncf %387 : vector<128x128xf32> to vector<128x128xbf16>
    %389 = arith.truncf %373 : vector<128x8xf32> to vector<128x8xbf16>
    %cst_90 = arith.constant dense<0.000000e+00> : vector<128x8xf32>
    %390 = tpu.matmul %388, %389, %cst_90 {dimension_numbers = #tpu.dot_dimension_numbers<[1], [0], [0], [1], [0, 0, 1, 1], [], []>} : vector<128x128xbf16>, vector<128x8xbf16>, vector<128x8xf32> -> vector<128x8xf32>
    %391 = vector.extract_strided_slice %312 {offsets = [16, 0], sizes = [8, 32], strides = [1, 1]} : vector<32x32xf32> to vector<8x32xf32>
    %392 = arith.truncf %390 : vector<128x8xf32> to vector<128x8xbf16>
    %393 = arith.truncf %391 : vector<8x32xf32> to vector<8x32xbf16>
    %cst_91 = arith.constant dense<0.000000e+00> : vector<128x32xf32>
    %394 = tpu.matmul %392, %393, %cst_91 {dimension_numbers = #tpu.dot_dimension_numbers<[1], [0], [0], [1], [0, 0, 1, 1], [], []>} : vector<128x8xbf16>, vector<8x32xbf16>, vector<128x32xf32> -> vector<128x32xf32>
    %395 = arith.addf %370, %394 : vector<128x32xf32>
    %396 = vector.extract_strided_slice %319 {offsets = [0, 24], sizes = [128, 8], strides = [1, 1]} : vector<128x128xf32> to vector<128x8xf32>
    %397 = vector.extract_strided_slice %319 {offsets = [0, 56], sizes = [128, 8], strides = [1, 1]} : vector<128x128xf32> to vector<128x8xf32>
    %398 = vector.extract_strided_slice %319 {offsets = [0, 88], sizes = [128, 8], strides = [1, 1]} : vector<128x128xf32> to vector<128x8xf32>
    %399 = arith.truncf %396 : vector<128x8xf32> to vector<128x8xbf16>
    %400 = arith.truncf %397 : vector<128x8xf32> to vector<128x8xbf16>
    %cst_92 = arith.constant dense<0.000000e+00> : vector<128x128xf32>
    %401 = tpu.matmul %399, %400, %cst_92 {dimension_numbers = #tpu.dot_dimension_numbers<[1], [1], [0], [0], [0, 0, 1, 0], [], []>} : vector<128x8xbf16>, vector<128x8xbf16>, vector<128x128xf32> -> vector<128x128xf32>
    %402 = arith.addf %401, %314 : vector<128x128xf32>
    %cst_93 = arith.constant dense<0xFF800000> : vector<128xf32>
    %403 = vector.multi_reduction <maximumf>, %402, %cst_93 [1] : vector<128x128xf32> to vector<128xf32>
    %404 = vector.shape_cast %403 : vector<128xf32> to vector<128x1xf32>
    %405 = vector.broadcast %404 : vector<128x1xf32> to vector<128x128xf32>
    %406 = arith.subf %402, %405 : vector<128x128xf32>
    %407 = math.exp %406 : vector<128x128xf32>
    %cst_94 = arith.constant dense<0.000000e+00> : vector<128xf32>
    %408 = vector.multi_reduction <add>, %407, %cst_94 [1] : vector<128x128xf32> to vector<128xf32>
    %409 = vector.shape_cast %408 : vector<128xf32> to vector<128x1xf32>
    %410 = tpu.reciprocal %409 {approx = true} : vector<128x1xf32> -> vector<128x1xf32>
    %411 = vector.broadcast %410 : vector<128x1xf32> to vector<128x128xf32>
    %412 = arith.mulf %407, %411 : vector<128x128xf32>
    %413 = arith.truncf %412 : vector<128x128xf32> to vector<128x128xbf16>
    %414 = arith.truncf %398 : vector<128x8xf32> to vector<128x8xbf16>
    %cst_95 = arith.constant dense<0.000000e+00> : vector<128x8xf32>
    %415 = tpu.matmul %413, %414, %cst_95 {dimension_numbers = #tpu.dot_dimension_numbers<[1], [0], [0], [1], [0, 0, 1, 1], [], []>} : vector<128x128xbf16>, vector<128x8xbf16>, vector<128x8xf32> -> vector<128x8xf32>
    %416 = vector.extract_strided_slice %312 {offsets = [24, 0], sizes = [8, 32], strides = [1, 1]} : vector<32x32xf32> to vector<8x32xf32>
    %417 = arith.truncf %415 : vector<128x8xf32> to vector<128x8xbf16>
    %418 = arith.truncf %416 : vector<8x32xf32> to vector<8x32xbf16>
    %cst_96 = arith.constant dense<0.000000e+00> : vector<128x32xf32>
    %419 = tpu.matmul %417, %418, %cst_96 {dimension_numbers = #tpu.dot_dimension_numbers<[1], [0], [0], [1], [0, 0, 1, 1], [], []>} : vector<128x8xbf16>, vector<8x32xbf16>, vector<128x32xf32> -> vector<128x32xf32>
    %420 = arith.addf %395, %419 : vector<128x32xf32>
    %421 = vector.broadcast %313 : vector<1x32xf32> to vector<128x32xf32>
    %422 = arith.addf %420, %421 : vector<128x32xf32>
    %423 = arith.addf %309, %422 : vector<128x32xf32>
    %424 = vector.extract_strided_slice %0 {offsets = [13, 0], sizes = [1, 32], strides = [1, 1]} : vector<24x128xf32> to vector<1x32xf32>
    %425 = vector.extract_strided_slice %0 {offsets = [14, 0], sizes = [1, 32], strides = [1, 1]} : vector<24x128xf32> to vector<1x32xf32>
    %cst_97 = arith.constant dense<0.000000e+00> : vector<128xf32>
    %426 = vector.multi_reduction <add>, %423, %cst_97 [1] : vector<128x32xf32> to vector<128xf32>
    %427 = vector.shape_cast %426 : vector<128xf32> to vector<128x1xf32>
    %cst_98 = arith.constant 3.200000e+01 : f32
    %428 = vector.broadcast %cst_98 : f32 to vector<128x1xf32>
    %429 = arith.divf %427, %428 : vector<128x1xf32>
    %430 = vector.broadcast %429 : vector<128x1xf32> to vector<128x32xf32>
    %431 = arith.subf %423, %430 : vector<128x32xf32>
    %432 = arith.mulf %431, %431 : vector<128x32xf32>
    %cst_99 = arith.constant dense<0.000000e+00> : vector<128xf32>
    %433 = vector.multi_reduction <add>, %432, %cst_99 [1] : vector<128x32xf32> to vector<128xf32>
    %434 = vector.shape_cast %433 : vector<128xf32> to vector<128x1xf32>
    %cst_100 = arith.constant 3.200000e+01 : f32
    %435 = vector.broadcast %cst_100 : f32 to vector<128x1xf32>
    %436 = arith.divf %434, %435 : vector<128x1xf32>
    %437 = vector.broadcast %429 : vector<128x1xf32> to vector<128x32xf32>
    %438 = arith.subf %423, %437 : vector<128x32xf32>
    %cst_101 = arith.constant 9.99999974E-6 : f32
    %439 = vector.broadcast %cst_101 : f32 to vector<128x1xf32>
    %440 = arith.addf %436, %439 : vector<128x1xf32>
    %441 = math.rsqrt %440 : vector<128x1xf32>
    %442 = vector.broadcast %441 : vector<128x1xf32> to vector<128x32xf32>
    %443 = arith.mulf %438, %442 : vector<128x32xf32>
    %444 = vector.broadcast %424 : vector<1x32xf32> to vector<128x32xf32>
    %445 = arith.mulf %443, %444 : vector<128x32xf32>
    %446 = vector.broadcast %425 : vector<1x32xf32> to vector<128x32xf32>
    %447 = arith.addf %445, %446 : vector<128x32xf32>
    %cst_102 = arith.constant dense<0.000000e+00> : vector<32xf32>
    %448 = vector.multi_reduction <add>, %447, %cst_102 [0] : vector<128x32xf32> to vector<32xf32>
    %449 = vector.shape_cast %448 : vector<32xf32> to vector<1x32xf32>
    %cst_103 = arith.constant 1.280000e+02 : f32
    %450 = vector.broadcast %cst_103 : f32 to vector<1x32xf32>
    %451 = arith.divf %449, %450 : vector<1x32xf32>
    %c208 = arith.constant 208 : index
    %c0_104 = arith.constant 0 : index
    %452 = vector.load %arg3[%c208, %c0_104] : memref<272x128xf32, #tpu.memory_space<vmem>>, vector<32x32xf32>
    %453 = arith.truncf %451 : vector<1x32xf32> to vector<1x32xbf16>
    %454 = arith.truncf %452 : vector<32x32xf32> to vector<32x32xbf16>
    %cst_105 = arith.constant dense<0.000000e+00> : vector<1x32xf32>
    %455 = tpu.matmul %453, %454, %cst_105 {dimension_numbers = #tpu.dot_dimension_numbers<[1], [0], [0], [1], [0, 0, 1, 1], [], []>} : vector<1x32xbf16>, vector<32x32xbf16>, vector<1x32xf32> -> vector<1x32xf32>
    %456 = vector.extract_strided_slice %0 {offsets = [15, 0], sizes = [1, 32], strides = [1, 1]} : vector<24x128xf32> to vector<1x32xf32>
    %457 = arith.addf %455, %456 : vector<1x32xf32>
    %458 = vector.extract_strided_slice %0 {offsets = [16, 0], sizes = [1, 32], strides = [1, 1]} : vector<24x128xf32> to vector<1x32xf32>
    %459 = vector.extract_strided_slice %0 {offsets = [17, 0], sizes = [1, 32], strides = [1, 1]} : vector<24x128xf32> to vector<1x32xf32>
    %cst_106 = arith.constant dense<0.000000e+00> : vector<1xf32>
    %460 = vector.multi_reduction <add>, %457, %cst_106 [1] : vector<1x32xf32> to vector<1xf32>
    %461 = vector.shape_cast %460 : vector<1xf32> to vector<1x1xf32>
    %cst_107 = arith.constant 3.200000e+01 : f32
    %462 = vector.broadcast %cst_107 : f32 to vector<1x1xf32>
    %463 = arith.divf %461, %462 : vector<1x1xf32>
    %464 = vector.broadcast %463 : vector<1x1xf32> to vector<1x32xf32>
    %465 = arith.subf %457, %464 : vector<1x32xf32>
    %466 = arith.mulf %465, %465 : vector<1x32xf32>
    %cst_108 = arith.constant dense<0.000000e+00> : vector<1xf32>
    %467 = vector.multi_reduction <add>, %466, %cst_108 [1] : vector<1x32xf32> to vector<1xf32>
    %468 = vector.shape_cast %467 : vector<1xf32> to vector<1x1xf32>
    %cst_109 = arith.constant 3.200000e+01 : f32
    %469 = vector.broadcast %cst_109 : f32 to vector<1x1xf32>
    %470 = arith.divf %468, %469 : vector<1x1xf32>
    %471 = vector.broadcast %463 : vector<1x1xf32> to vector<1x32xf32>
    %472 = arith.subf %457, %471 : vector<1x32xf32>
    %cst_110 = arith.constant 9.99999974E-6 : f32
    %473 = vector.broadcast %cst_110 : f32 to vector<1x1xf32>
    %474 = arith.addf %470, %473 : vector<1x1xf32>
    %475 = math.rsqrt %474 : vector<1x1xf32>
    %476 = vector.broadcast %475 : vector<1x1xf32> to vector<1x32xf32>
    %477 = arith.mulf %472, %476 : vector<1x32xf32>
    %478 = arith.mulf %477, %458 : vector<1x32xf32>
    %479 = arith.addf %478, %459 : vector<1x32xf32>
    %cst_111 = arith.constant 0.000000e+00 : f32
    %480 = vector.broadcast %cst_111 : f32 to vector<1x32xf32>
    %481 = arith.maximumf %479, %480 : vector<1x32xf32>
    %c240 = arith.constant 240 : index
    %c0_112 = arith.constant 0 : index
    %482 = vector.load %arg3[%c240, %c0_112] : memref<272x128xf32, #tpu.memory_space<vmem>>, vector<32x4xf32>
    %483 = arith.truncf %481 : vector<1x32xf32> to vector<1x32xbf16>
    %484 = arith.truncf %482 : vector<32x4xf32> to vector<32x4xbf16>
    %cst_113 = arith.constant dense<0.000000e+00> : vector<1x4xf32>
    %485 = tpu.matmul %483, %484, %cst_113 {dimension_numbers = #tpu.dot_dimension_numbers<[1], [0], [0], [1], [0, 0, 1, 1], [], []>} : vector<1x32xbf16>, vector<32x4xbf16>, vector<1x4xf32> -> vector<1x4xf32>
    %486 = vector.extract_strided_slice %0 {offsets = [18, 0], sizes = [1, 4], strides = [1, 1]} : vector<24x128xf32> to vector<1x4xf32>
    %487 = arith.addf %485, %486 : vector<1x4xf32>
    %cst_114 = arith.constant dense<0xFF800000> : vector<1xf32>
    %488 = vector.multi_reduction <maximumf>, %487, %cst_114 [1] : vector<1x4xf32> to vector<1xf32>
    %489 = vector.shape_cast %488 : vector<1xf32> to vector<1x1xf32>
    %490 = vector.broadcast %489 : vector<1x1xf32> to vector<1x4xf32>
    %491 = arith.subf %487, %490 : vector<1x4xf32>
    %492 = math.exp %491 : vector<1x4xf32>
    %cst_115 = arith.constant dense<0.000000e+00> : vector<1xf32>
    %493 = vector.multi_reduction <add>, %492, %cst_115 [1] : vector<1x4xf32> to vector<1xf32>
    %494 = vector.shape_cast %493 : vector<1xf32> to vector<1x1xf32>
    %495 = vector.broadcast %494 : vector<1x1xf32> to vector<1x4xf32>
    %496 = arith.divf %492, %495 : vector<1x4xf32>
    %cst_116 = arith.constant 0.000000e+00 : f32
    %497 = vector.broadcast %cst_116 : f32 to vector<8x128xf32>
    %c0_117 = arith.constant 0 : index
    %c0_118 = arith.constant 0 : index
    %498 = vector.load %arg5[%c0_117, %c0_118] : memref<8x128xf32, #tpu.memory_space<vmem>>, vector<8x128xf32>
    tpu.vector_store %arg5[%c0_117, %c0_118], %497 {strides = array<i32>} : memref<8x128xf32, #tpu.memory_space<vmem>>, vector<8x128xf32>,
    %c0_119 = arith.constant 0 : index
    %c0_120 = arith.constant 0 : index
    %499 = vector.load %arg5[%c0_119, %c0_120] : memref<8x128xf32, #tpu.memory_space<vmem>>, vector<1x4xf32>
    tpu.vector_store %arg5[%c0_119, %c0_120], %487 {strides = array<i32>} : memref<8x128xf32, #tpu.memory_space<vmem>>, vector<1x4xf32>,
    %c1 = arith.constant 1 : index
    %c0_121 = arith.constant 0 : index
    %500 = vector.load %arg5[%c1, %c0_121] : memref<8x128xf32, #tpu.memory_space<vmem>>, vector<1x4xf32>
    tpu.vector_store %arg5[%c1, %c0_121], %496 {strides = array<i32>} : memref<8x128xf32, #tpu.memory_space<vmem>>, vector<1x4xf32>,
    return
  }
  func.func @transform_0(%arg0: i32) -> (i32, i32) {
    %c0_i32 = arith.constant 0 : i32
    %c0_i32_0 = arith.constant 0 : i32
    %c0_i32_1 = arith.constant 0 : i32
    return %c0_i32, %c0_i32_0 : i32, i32
  }
  func.func @transform_1(%arg0: i32) -> (i32, i32) {
    %c0_i32 = arith.constant 0 : i32
    %c0_i32_0 = arith.constant 0 : i32
    %c0_i32_1 = arith.constant 0 : i32
    return %c0_i32, %c0_i32_0 : i32, i32
  }
  func.func @transform_2(%arg0: i32) -> (i32, i32) {
    %c0_i32 = arith.constant 0 : i32
    %c0_i32_0 = arith.constant 0 : i32
    %c0_i32_1 = arith.constant 0 : i32
    return %c0_i32, %c0_i32_0 : i32, i32
  }
  func.func @transform_3(%arg0: i32) -> (i32, i32) {
    %c0_i32 = arith.constant 0 : i32
    %c0_i32_0 = arith.constant 0 : i32
    %c0_i32_1 = arith.constant 0 : i32
    return %c0_i32, %c0_i32_0 : i32, i32
  }
  func.func @transform_4(%arg0: i32) -> (i32, i32) {
    %c0_i32 = arith.constant 0 : i32
    %c0_i32_0 = arith.constant 0 : i32
    %c0_i32_1 = arith.constant 0 : i32
    return %c0_i32, %c0_i32_0 : i32, i32
  }
}

</mosaic_0001>

<bundles_post_ra>
// kernel: tagan_forward.1
= control target key start
LH: loop header
LB: loop body
LE: loop exit
PB: predicated region body
PF: predicated region fallthrough
CT: control target
= control target key end

     0   :  { %vm52_vm0 = vcmask 130048   ;;  %v48_v33 = vlaneseq  ;;  %vm212_vm1 = vcmask 261120   ;;  %vm366_vm2 = vcmask 64512   ;;  %s11961_s8 = smov 96   ;;  %s11962_s9 = smov 64   ;;  %s17328_s2 = inlined_call_operand.vmem [shape: f32[272,128], index: 2, kind: input, shape index: {}]   ;;  %s17329_s0 = inlined_call_operand.vmem [shape: f32[128,16], index: 0, kind: input, shape index: {}]   ;;  %s17330_s3 = inlined_call_operand.vmem [shape: f32[24,128], index: 3, kind: input, shape index: {}]   ;;  %s17331_s1 = inlined_call_operand.vmem [shape: f32[256,128], index: 1, kind: input, shape index: {}]   ;;  %s17332_s4 = inlined_call_operand.vmem [shape: f32[8,128], index: 4, kind: output, shape index: {}]  }
   0x1   :  { %v37_v0 = vld [vmem:[%s17328_s2] sm:$0xff]  ;;  %v38_v1 = vld [vmem:[%s17328_s2 + $0x8] sm:$0xff]  ;;  %v23_v5 = vld [vmem:[%s17329_s0 + $0x10] sm:$0xff]  ;;  %s11963_s18 = smov 88   ;;  %s11964_s19 = smov 120   ;;  %vm1277_vm3 = vcmask 1043456  }
   0x2   :  { %v21_v2 = vld [vmem:[%s17329_s0] sm:$0xff]  ;;  %v47_v3 = vpack.c.bf16 %v38_v1, %v37_v0  ;;  %v22_v4 = vld [vmem:[%s17329_s0 + $0x8] sm:$0xff]  ;;  %v24_v6 = vld [vmem:[%s17329_s0 + $0x18] sm:$0xff]  ;;  %v12073_v34 = vshrl.u32 %v48_v33, 7  ;;  %s11965_s22 = smov 56   ;;  %s11966_s23 = smov 80  }
   0x3   :  { %v39_v7 = vpack.c.bf16 %v22_v4, %v21_v2  ;;  %v25_v8 = vld [vmem:[%s17329_s0 + $0x20] sm:$0xff]  ;;  %v26_v9 = vld [vmem:[%s17329_s0 + $0x28] sm:$0xff]  ;;  %v40_v10 = vpack.c.bf16 %v24_v6, %v23_v5  ;;  %v27_v12 = vld [vmem:[%s17329_s0 + $0x30] sm:$0xff]  ;;  %s11967_s24 = smov 112   ;;  %s11968_s25 = smov 72   ;;  %vm11973_vm4 = vmmov 0  }
   0x4   :  { %9793 = vmatprep.subr.bf16.mxu0 %v47_v3  ;;  %v41_v11 = vpack.c.bf16 %v26_v9, %v25_v8  ;;  %v28_v13 = vld [vmem:[%s17329_s0 + $0x38] sm:$0xff]  ;;  %v29_v14 = vld [vmem:[%s17329_s0 + $0x40] sm:$0xff]  ;;  %v30_v15 = vld [vmem:[%s17329_s0 + $0x48] sm:$0xff]  ;;  %17401 = vst [vmem:[#allocation2_spill] sm:$0xff] %v12073_v34  ;;  %v17334_v35 = vsub.s32 0, %v12073_v34  ;;  %s11969_s26 = smov 104  }
   0x5   :  { %9794 = vmatpush3.bf16.msra.mxu0 %v47_v3  ;;  %9795 = vmatprep.mubr.msk.bf16.mxu0 %vm52_vm0, %v39_v7  ;;  %v42_v16 = vpack.c.bf16 %v28_v13, %v27_v12  ;;  %v43_v17 = vpack.c.bf16 %v30_v15, %v29_v14  ;;  %v31_v18 = vld [vmem:[%s17329_s0 + $0x50] sm:$0xff]  ;;  %v32_v19 = vld [vmem:[%s17329_s0 + $0x58] sm:$0xff]  ;;  %v33_v20 = vld [vmem:[%s17329_s0 + $0x60] sm:$0xff]  ;;  %v17333_v15 = vsub.s32 3, %v12073_v34  ;;  %s11970_s29 = smov 48   ;;  %s11971_s27 = smov 40  }
   0x6   :  { %v34_v21 = vld [vmem:[%s17329_s0 + $0x68] sm:$0xff]  ;;  %v44_v22 = vpack.c.bf16 %v32_v19, %v31_v18  ;;  %v35_v24 = vld [vmem:[%s17329_s0 + $0x70] sm:$0xff]  ;;  %v36_v25 = vld [vmem:[%s17329_s0 + $0x78] sm:$0xff]  ;;  %vm8939_vm5 = vcmask 253952   ;;  %vm9011_vm6 = vcmask 24576  }
   0x7   :  { %v45_v23 = vpack.c.bf16 %v34_v21, %v33_v20  ;;  %v46_v26 = vpack.c.bf16 %v36_v25, %v35_v24  ;;  %v176_v27 = vld [vmem:[%s17328_s2 + $0x20] sm:$0xff]  ;;  %v177_v28 = vld [vmem:[%s17328_s2 + $0x28] sm:$0xff]  ;;  %v174_v30 = vld [vmem:[%s17328_s2 + $0x10] sm:$0xff] }
   0x8   :  { %9796 = vmatmul.mubr.msk.bf16.vlgmr.msra.gmra.mxu0 %vm52_vm0, %v40_v10  ;;  %v207_v29 = vpack.c.bf16 %v177_v28, %v176_v27  ;;  %v175_v31 = vld [vmem:[%s17328_s2 + $0x18] sm:$0xff]  ;;  %v18_v37 = vld [vmem:[%s17330_s3] sm:$0xff] }
   0x9   :  { %9799 = vmatprep.mubr.msk.bf16.mxu0 %vm52_vm0, %v41_v11  ;;  %v206_v32 = vpack.c.bf16 %v175_v31, %v174_v30  ;;  %v51_v39 = vrot.slane %v18_v37, %v17334_v35  ;;  %v211_v18 = vrot.slane %v18_v37, %v17333_v15 }
   0xa   :  { %9811 = vmatprep.subr.bf16.mxu1 %v207_v29 }
   0xb   :  { %9812 = vmatpush3.bf16.msra.mxu1 %v207_v29 }
   0xc   :  { %9813 = vmatprep.subr.bf16.mxu1 %v206_v32 }
   0xf   :  { %9814 = vmatpush3.bf16.msra.mxu1 %v206_v32 }
  0x10   :  { %9800 = vmatmul.mubr.msk.bf16.gmra.mxu0 %vm52_vm0, %v42_v16 }
  0x11   :  { %9803 = vmatprep.mubr.msk.bf16.mxu0 %vm52_vm0, %v43_v17 }
  0x18   :  { %9804 = vmatmul.mubr.msk.bf16.gmra.mxu0 %vm52_vm0, %v44_v22 }
  0x19   :  { %9807 = vmatprep.mubr.msk.bf16.mxu0 %vm52_vm0, %v45_v23 }
  0x20   :  { %9808 = vmatmul.mubr.msk.bf16.gmra.mxu0 %vm52_vm0, %v46_v26 }
  0xc8   :  { %v9797_v36 = vpop.f32.mrf.mxu0 }
  0xc9   :  { %v12087_v45 = vadd.f32 %v9797_v36, %v51_v39 }
  0xca   :  { %v111_v38 = vpop.f32.mrf.mxu0 }
  0xcb   :  { %v12083_v43 = vadd.f32 %v111_v38, %v51_v39 }
  0xcc   :  { %v9798_v40 = vpop.f32.mrf.mxu0 }
  0xcd   :  { %v12081_v41 = vadd.f32 %v9798_v40, %v51_v39 }
  0xce   :  { %v114_v42 = vpop.f32.mrf.mxu0 }
  0xcf   :  { %v12085_v44 = vadd.f32 %v114_v42, %v51_v39  ;;  %v199_v49 = vpack.c.bf16 %v12081_v41, %v12087_v45 }
  0xd0   :  { %v9801_v46 = vpop.f32.mrf.mxu0 }
  0xd1   :  { %v198_v47 = vpack.c.bf16 %v12085_v44, %v12083_v43  ;;  %v12101_v55 = vadd.f32 %v9801_v46, %v51_v39 }
  0xd2   :  { %v127_v48 = vpop.f32.mrf.mxu0 }
  0xd3   :  { %9815 = vmatprep.mubr.msk.bf16.mxu1 %vm212_vm1, %v198_v47  ;;  %v12097_v53 = vadd.f32 %v127_v48, %v51_v39  ;;  %17405 = vst [vmem:[#allocation6_spill] sm:$0xff] %v12101_v55 }
  0xd4   :  { %v9802_v50 = vpop.f32.mrf.mxu0  ;;  %9816 = vmatmul.mubr.msk.bf16.vlgmr.msra.gmra.mxu1 %vm212_vm1, %v199_v49 }
  0xd5   :  { %v12095_v51 = vadd.f32 %v9802_v50, %v51_v39  ;;  %17403 = vst [vmem:[#allocation4_spill] sm:$0xff] %v12097_v53 }
  0xd6   :  { %v130_v52 = vpop.f32.mrf.mxu0 }
  0xd7   :  { %17402 = vst [vmem:[#allocation3_spill] sm:$0xff] %v12095_v51  ;;  %v12099_v54 = vadd.f32 %v130_v52, %v51_v39  ;;  %v201_v59 = vpack.c.bf16 %v12095_v51, %v12101_v55 }
  0xd8   :  { %v9805_v56 = vpop.f32.mrf.mxu0 }
  0xd9   :  { %17404 = vst [vmem:[#allocation5_spill] sm:$0xff] %v12099_v54  ;;  %v200_v57 = vpack.c.bf16 %v12099_v54, %v12097_v53  ;;  %v12115_v1 = vadd.f32 %v9805_v56, %v51_v39 }
  0xda   :  { %v143_v58 = vpop.f32.mrf.mxu0 }
  0xdb   :  { %9819 = vmatprep.mubr.msk.bf16.mxu1 %vm212_vm1, %v200_v57  ;;  %v12111_v63 = vadd.f32 %v143_v58, %v51_v39  ;;  %17409 = vst [vmem:[#allocation10_spill] sm:$0xff] %v12115_v1 }
  0xdc   :  { %v9806_v60 = vpop.f32.mrf.mxu0  ;;  %9820 = vmatmul.mubr.msk.bf16.gmra.mxu1 %vm212_vm1, %v201_v59 }
  0xdd   :  { %v12109_v61 = vadd.f32 %v9806_v60, %v51_v39  ;;  %17407 = vst [vmem:[#allocation8_spill] sm:$0xff] %v12111_v63 }
  0xde   :  { %v146_v62 = vpop.f32.mrf.mxu0 }
  0xdf   :  { %17406 = vst [vmem:[#allocation7_spill] sm:$0xff] %v12109_v61  ;;  %v12113_v0 = vadd.f32 %v146_v62, %v51_v39  ;;  %v203_v5 = vpack.c.bf16 %v12109_v61, %v12115_v1 }
  0xe0   :  { %v9809_v2 = vpop.f32.mrf.mxu0 }
  0xe1   :  { %17408 = vst [vmem:[#allocation9_spill] sm:$0xff] %v12113_v0  ;;  %v202_v3 = vpack.c.bf16 %v12113_v0, %v12111_v63  ;;  %v12129_v11 = vadd.f32 %v9809_v2, %v51_v39 }
  0xe2   :  { %v159_v4 = vpop.f32.mrf.mxu0 }
  0xe3   :  { %9823 = vmatprep.mubr.msk.bf16.mxu1 %vm212_vm1, %v202_v3  ;;  %v12125_v9 = vadd.f32 %v159_v4, %v51_v39  ;;  %17413 = vst [vmem:[#allocation14_spill] sm:$0xff] %v12129_v11 }
  0xe4   :  { %v9810_v6 = vpop.f32.mrf.mxu0  ;;  %9824 = vmatmul.mubr.msk.bf16.gmra.mxu1 %vm212_vm1, %v203_v5 }
  0xe5   :  { %v12123_v7 = vadd.f32 %v9810_v6, %v51_v39  ;;  %17411 = vst [vmem:[#allocation12_spill] sm:$0xff] %v12125_v9 }
  0xe6   :  { %v162_v8 = vpop.f32.mrf.mxu0 }
  0xe7   :  { %17410 = vst [vmem:[#allocation11_spill] sm:$0xff] %v12123_v7  ;;  %v12127_v10 = vadd.f32 %v162_v8, %v51_v39  ;;  %v205_v13 = vpack.c.bf16 %v12123_v7, %v12129_v11 }
  0xe9   :  { %17412 = vst [vmem:[#allocation13_spill] sm:$0xff] %v12127_v10  ;;  %v204_v12 = vpack.c.bf16 %v12127_v10, %v12125_v9 }
  0xeb   :  { %9827 = vmatprep.mubr.msk.bf16.mxu1 %vm212_vm1, %v204_v12 }
  0xec   :  { %9828 = vmatmul.mubr.msk.bf16.gmra.mxu1 %vm212_vm1, %v205_v13 }
 0x194   :  { %v9817_v14 = vpop.f32.mrf.mxu1 }
 0x195   :  { %v280_v4 = vadd.f32 %v9817_v14, %v211_v18 }
 0x196   :  { %v271_v16 = vpop.f32.mrf.mxu1 }
 0x197   :  { %v272_v20 = vadd.f32 %v271_v16, %v211_v18 }
 0x198   :  { %v9818_v17 = vpop.f32.mrf.mxu1 }
 0x199   :  { %v283_v2 = vadd.f32 %v9818_v17, %v211_v18 }
 0x19a   :  { %v274_v19 = vpop.f32.mrf.mxu1 }
 0x19b   :  { %v275_v21 = vadd.f32 %v274_v19, %v211_v18  ;;  %v12172_v5 = vpack.c.bf16 %v283_v2, %v280_v4 }
 0x19c   :  { %v9821_v22 = vpop.f32.mrf.mxu1 }
 0x19d   :  { %v12140_v23 = vpack.c.bf16 %v275_v21, %v272_v20  ;;  %v296_v62 = vadd.f32 %v9821_v22, %v211_v18 }
 0x19e   :  { %v287_v24 = vpop.f32.mrf.mxu1 }
 0x19f   :  { %17414 = vst [vmem:[#allocation15_spill] sm:$0xff] %v12140_v23  ;;  %9847 = vmatprep.mubr.msk.bf16.mxu0 %vm366_vm2, %v12140_v23  ;;  %v288_v47 = vadd.f32 %v287_v24, %v211_v18 }
 0x1a0   :  { %v9822_v25 = vpop.f32.mrf.mxu1 }
 0x1a1   :  { %v299_v59 = vadd.f32 %v9822_v25, %v211_v18 }
 0x1a2   :  { %v290_v26 = vpop.f32.mrf.mxu1 }
 0x1a3   :  { %v291_v40 = vadd.f32 %v290_v26, %v211_v18  ;;  %v12166_v3 = vpack.c.bf16 %v299_v59, %v296_v62 }
 0x1a4   :  { %v9825_v27 = vpop.f32.mrf.mxu1 }
 0x1a5   :  { %v312_v30 = vadd.f32 %v9825_v27, %v211_v18  ;;  %v12152_v52 = vpack.c.bf16 %v291_v40, %v288_v47 }
 0x1a6   :  { %v303_v28 = vpop.f32.mrf.mxu1 }
 0x1a7   :  { %v304_v38 = vadd.f32 %v303_v28, %v211_v18 }
 0x1a8   :  { %v9826_v29 = vpop.f32.mrf.mxu1 }
 0x1a9   :  { %v315_v31 = vadd.f32 %v9826_v29, %v211_v18 }
 0x1aa   :  { %v306_v32 = vpop.f32.mrf.mxu1 }
 0x1ab   :  { %v12144_v33 = vpack.c.bf16 %v315_v31, %v312_v30  ;;  %v307_v36 = vadd.f32 %v306_v32, %v211_v18 }
 0x1ac   :  { %v9829_v37 = vpop.f32.mrf.mxu1 }
 0x1ad   :  { %360 = vrot.lane.b32.xlu1 %v12144_v33, %s11961_s8  ;;  %v12148_v42 = vpack.c.bf16 %v307_v36, %v304_v38  ;;  %v328_v48 = vadd.f32 %v9829_v37, %v211_v18 }
 0x1ae   :  { %v319_v39 = vpop.f32.mrf.mxu1 }
 0x1af   :  { %v320_v58 = vadd.f32 %v319_v39, %v211_v18  ;;  %v12223_v39 = vld [vmem:[%s17331_s1 + $0x10] sm:$0xff] }
 0x1b0   :  { %v9830_v46 = vpop.f32.mrf.mxu1 }
 0x1b1   :  { %v331_v49 = vadd.f32 %v9830_v46, %v211_v18  ;;  %358 = vrot.lane.b32.xlu1 %v12148_v42, %s11961_s8 }
 0x1b2   :  { %v322_v50 = vpop.f32.mrf.mxu1 }
 0x1b3   :  { %v12154_v56 = vpack.c.bf16 %v331_v49, %v328_v48  ;;  %v323_v57 = vadd.f32 %v322_v50, %v211_v18  ;;  %v12231_v48 = vld [vmem:[%s17331_s1] sm:$0xff]  ;;  %v12237_v50 = vld [vmem:[%s17331_s1 + $0x8] sm:$0xff] }
 0x1b5   :  { %364 = vrot.lane.b32.xlu0 %v12154_v56, %s11961_s8  ;;  %354 = vrot.lane.b32.xlu1 %v12152_v52, %s11961_s8  ;;  %v12160_v60 = vpack.c.bf16 %v323_v57, %v320_v58  ;;  %v12245_v58 = vld [vmem:[%s17331_s1 + $0x18] sm:$0xff] }
 0x1b9   :  { %362 = vrot.lane.b32.xlu0 %v12160_v60, %s11961_s8  ;;  %350 = vrot.lane.b32.xlu1 %v12140_v23, %s11961_s8 }
 0x1bd   :  { %356 = vrot.lane.b32.xlu0 %v12166_v3, %s11961_s8  ;;  %678 = vrot.lane.b32.xlu1 %v12154_v56, %s11962_s9 }
 0x1c1   :  { %352 = vrot.lane.b32.xlu0 %v12172_v5, %s11961_s8  ;;  %672 = vrot.lane.b32.xlu1 %v12148_v42, %s11962_s9 }
 0x1c5   :  { %674 = vrot.lane.b32.xlu0 %v12144_v33, %s11962_s9  ;;  %670 = vrot.lane.b32.xlu1 %v12166_v3, %s11962_s9 }
 0x1c9   :  { %668 = vrot.lane.b32.xlu1 %v12152_v52, %s11962_s9 }
 0x1cd   :  { %666 = vrot.lane.b32.xlu1 %v12172_v5, %s11962_s9 }
 0x1d1   :  { %664 = vrot.lane.b32.xlu1 %v12140_v23, %s11962_s9 }
 0x1d5   :  { %676 = vrot.lane.b32.xlu1 %v12160_v60, %s11962_s9 }
 0x21f   :  { %v361_v6 = vpop.permute.xlu1 %360 }
 0x220   :  { %v407_v22 = vsel %vm366_vm2, %v361_v6, 0 }
 0x223   :  { %v359_v8 = vpop.permute.xlu1 %358 }
 0x224   :  { %v404_v27 = vsel %vm366_vm2, %v359_v8, 0 }
 0x227   :  { %v365_v12 = vpop.permute.xlu0 %364  ;;  %v355_v13 = vpop.permute.xlu1 %354 }
 0x228   :  { %10871 = vmatprep.subr.msk.bf16.mxu0 %vm366_vm2, %v365_v12  ;;  %v413_v14 = vsel %vm366_vm2, %v365_v12, 0  ;;  %v398_v36 = vsel %vm366_vm2, %v355_v13, 0 }
 0x229   :  { %9832 = vmatpush3.bf16.xpose.msra.mxu0 %v413_v14 }
 0x22b   :  { %v363_v16 = vpop.permute.xlu0 %362  ;;  %v351_v17 = vpop.permute.xlu1 %350 }
 0x22c   :  { %10872 = vmatprep.subr.msk.bf16.mxu0 %vm366_vm2, %v363_v16  ;;  %v410_v19 = vsel %vm366_vm2, %v363_v16, 0  ;;  %v392_v38 = vsel %vm366_vm2, %v351_v17, 0  ;;  %v12263_v16 = vld [vmem:[%s17331_s1 + $0x30] sm:$0xff] }
 0x22f   :  { %v679_v18 = vpop.permute.xlu1 %678  ;;  %v357_v25 = vpop.permute.xlu0 %356 }
 0x230   :  { %9863 = vmatprep.subr.bf16.mxu1 %v679_v18  ;;  %v401_v31 = vsel %vm366_vm2, %v357_v25, 0 }
 0x231   :  { %9834 = vmatpush3.bf16.xpose.msra.mxu0 %v410_v19  ;;  %9864 = vmatpush3.bf16.msra.mxu1 %v679_v18 }
 0x232   :  { %10873 = vmatprep.subr.msk.bf16.mxu0 %vm366_vm2, %v361_v6 }
 0x233   :  { %v673_v20 = vpop.permute.xlu1 %672  ;;  %v353_v28 = vpop.permute.xlu0 %352 }
 0x234   :  { %v395_v37 = vsel %vm366_vm2, %v353_v28, 0 }
 0x237   :  { %v671_v21 = vpop.permute.xlu1 %670  ;;  %v675_v32 = vpop.permute.xlu0 %674 }
 0x239   :  { %9836 = vmatpush3.bf16.xpose.msra.mxu0 %v407_v22 }
 0x23a   :  { %10874 = vmatprep.subr.msk.bf16.mxu0 %vm366_vm2, %v359_v8 }
 0x23b   :  { %v669_v24 = vpop.permute.xlu1 %668 }
 0x23f   :  { %v667_v26 = vpop.permute.xlu1 %666 }
 0x241   :  { %9838 = vmatpush3.bf16.xpose.msra.mxu0 %v404_v27 }
 0x242   :  { %10875 = vmatprep.subr.msk.bf16.mxu0 %vm366_vm2, %v357_v25 }
 0x243   :  { %v665_v29 = vpop.permute.xlu1 %664 }
 0x247   :  { %v677_v30 = vpop.permute.xlu1 %676 }
 0x248   :  { %9865 = vmatprep.subr.bf16.mxu1 %v677_v30 }
 0x249   :  { %9840 = vmatpush3.bf16.xpose.msra.mxu0 %v401_v31  ;;  %9866 = vmatpush3.bf16.msra.mxu1 %v677_v30  ;;  %v12312_v31 = vld [vmem:[%s17331_s1 + $0x40] sm:$0xff] }
 0x24a   :  { %10876 = vmatprep.subr.msk.bf16.mxu0 %vm366_vm2, %v355_v13  ;;  %9867 = vmatprep.subr.bf16.mxu1 %v675_v32 }
 0x24d   :  { %9868 = vmatpush3.bf16.msra.mxu1 %v675_v32 }
 0x24e   :  { %9869 = vmatprep.subr.bf16.mxu1 %v673_v20 }
 0x251   :  { %9842 = vmatpush3.bf16.xpose.msra.mxu0 %v398_v36  ;;  %9870 = vmatpush3.bf16.msra.mxu1 %v673_v20  ;;  %v12276_v20 = vld [vmem:[%s17331_s1 + $0x20] sm:$0xff] }
 0x252   :  { %10877 = vmatprep.subr.msk.bf16.mxu0 %vm366_vm2, %v353_v28  ;;  %9871 = vmatprep.subr.bf16.mxu1 %v671_v21  ;;  %v12303_v28 = vld [vmem:[%s17331_s1 + $0x58] sm:$0xff] }
 0x255   :  { %9872 = vmatpush3.bf16.msra.mxu1 %v671_v21 }
 0x256   :  { %9873 = vmatprep.subr.bf16.mxu1 %v669_v24 }
 0x259   :  { %9844 = vmatpush3.bf16.xpose.msra.mxu0 %v395_v37  ;;  %9874 = vmatpush3.bf16.msra.mxu1 %v669_v24  ;;  %v12285_v24 = vld [vmem:[%s17331_s1 + $0x28] sm:$0xff] }
 0x25a   :  { %10878 = vmatprep.subr.msk.bf16.mxu0 %vm366_vm2, %v351_v17  ;;  %9875 = vmatprep.subr.bf16.mxu1 %v667_v26  ;;  %v12268_v17 = vld [vmem:[%s17331_s1 + $0x38] sm:$0xff]  ;;  %v12321_v37 = vld [vmem:[%s17331_s1 + $0x48] sm:$0xff] }
 0x25d   :  { %9876 = vmatpush3.bf16.msra.mxu1 %v667_v26  ;;  %v12294_v26 = vld [vmem:[%s17331_s1 + $0x50] sm:$0xff] }
 0x25e   :  { %9877 = vmatprep.subr.bf16.mxu1 %v665_v29 }
 0x261   :  { %9846 = vmatpush3.bf16.xpose.msra.mxu0 %v392_v38  ;;  %9878 = vmatpush3.bf16.msra.mxu1 %v665_v29 }
 0x268   :  { %9848 = vmatmul.mubr.msk.bf16.vlgmr.msra.gmra.mxu0 %vm366_vm2, %v12172_v5 }
 0x269   :  { %9851 = vmatprep.mubr.msk.bf16.mxu0 %vm366_vm2, %v12152_v52 }
 0x270   :  { %9852 = vmatmul.mubr.msk.bf16.gmra.mxu0 %vm366_vm2, %v12166_v3 }
 0x271   :  { %9855 = vmatprep.mubr.msk.bf16.mxu0 %vm366_vm2, %v12148_v42 }
 0x278   :  { %9856 = vmatmul.mubr.msk.bf16.gmra.mxu0 %vm366_vm2, %v12144_v33 }
 0x279   :  { %9859 = vmatprep.mubr.msk.bf16.mxu0 %vm366_vm2, %v12160_v60 }
 0x280   :  { %9860 = vmatmul.mubr.msk.bf16.gmra.mxu0 %vm366_vm2, %v12154_v56 }
 0x328   :  { %v9849_v40 = vpop.f32.mrf.mxu0 }
 0x329   :  { %v12226_v46 = vadd.f32 %v9849_v40, %v12223_v39  ;;  %v12330_v40 = vld [vmem:[%s17331_s1 + $0x70] sm:$0xff] }
 0x32a   :  { %v449_v47 = vpop.f32.mrf.mxu0 }
 0x32b   :  { %516 = vmax.xlane.f32.xlu0 %v12226_v46  ;;  %v12240_v57 = vadd.f32 %v449_v47, %v12231_v48 }
 0x32c   :  { %v9850_v49 = vpop.f32.mrf.mxu0 }
 0x32d   :  { %v12252_v2 = vadd.f32 %v9850_v49, %v12245_v58  ;;  %v12339_v49 = vld [vmem:[%s17331_s1 + $0x78] sm:$0xff] }
 0x32e   :  { %v452_v59 = vpop.f32.mrf.mxu0 }
 0x32f   :  { %512 = vmax.xlane.f32.xlu0 %v12240_v57  ;;  %v12249_v62 = vadd.f32 %v452_v59, %v12237_v50 }
 0x330   :  { %v9853_v4 = vpop.f32.mrf.mxu0 }
 0x331   :  { %514 = vmax.xlane.f32.xlu1 %v12249_v62  ;;  %v12271_v19 = vadd.f32 %v9853_v4, %v12263_v16 }
 0x332   :  { %v465_v6 = vpop.f32.mrf.mxu0 }
 0x333   :  { %518 = vmax.xlane.f32.xlu0 %v12252_v2  ;;  %v12288_v25 = vadd.f32 %v465_v6, %v12276_v20  ;;  %v12348_v6 = vld [vmem:[%s17331_s1 + $0x60] sm:$0xff] }
 0x334   :  { %v9854_v8 = vpop.f32.mrf.mxu0 }
 0x335   :  { %v12279_v21 = vadd.f32 %v9854_v8, %v12268_v17 }
 0x336   :  { %v468_v12 = vpop.f32.mrf.mxu0 }
 0x337   :  { %v12298_v27 = vadd.f32 %v468_v12, %v12285_v24 }
 0x338   :  { %v9857_v13 = vpop.f32.mrf.mxu0 }
 0x339   :  { %v12306_v30 = vadd.f32 %v9857_v13, %v12294_v26  ;;  %v12357_v13 = vld [vmem:[%s17331_s1 + $0x68] sm:$0xff] }
 0x33a   :  { %v481_v14 = vpop.f32.mrf.mxu0 }
 0x33b   :  { %v12324_v38 = vadd.f32 %v481_v14, %v12312_v31 }
 0x33c   :  { %v9858_v18 = vpop.f32.mrf.mxu0 }
 0x33d   :  { %v12315_v32 = vadd.f32 %v9858_v18, %v12303_v28 }
 0x33e   :  { %v484_v22 = vpop.f32.mrf.mxu0 }
 0x33f   :  { %v12334_v47 = vadd.f32 %v484_v22, %v12321_v37 }
 0x340   :  { %v9861_v29 = vpop.f32.mrf.mxu0 }
 0x341   :  { %v12342_v4 = vadd.f32 %v9861_v29, %v12330_v40 }
 0x342   :  { %822 = vrot.lane.b32.xlu1 %v12160_v60, %s11963_s18  ;;  %v497_v36 = vpop.f32.mrf.mxu0 }
 0x343   :  { %v12360_v14 = vadd.f32 %v497_v36, %v12348_v6 }
 0x344   :  { %v9862_v59 = vpop.f32.mrf.mxu0 }
 0x345   :  { %v12351_v8 = vadd.f32 %v9862_v59, %v12339_v49 }
 0x346   :  { %v500_v12 = vpop.f32.mrf.mxu0 }
 0x347   :  { %v12365_v18 = vadd.f32 %v500_v12, %v12357_v13 }
 0x349   :  { %824 = vrot.lane.b32.xlu0 %v12154_v56, %s11963_s18 }
 0x366   :  { %524 = vmax.xlane.f32.xlu1 %v12271_v19 }
 0x368   :  { %526 = vmax.xlane.f32.xlu0 %v12279_v21 }
 0x36a   :  { %520 = vmax.xlane.f32.xlu1 %v12288_v25 }
 0x36c   :  { %522 = vmax.xlane.f32.xlu0 %v12298_v27 }
 0x36e   :  { %532 = vmax.xlane.f32.xlu1 %v12306_v30 }
 0x370   :  { %534 = vmax.xlane.f32.xlu0 %v12315_v32 }
 0x372   :  { %528 = vmax.xlane.f32.xlu1 %v12324_v38 }
 0x374   :  { %530 = vmax.xlane.f32.xlu0 %v12334_v47 }
 0x376   :  { %540 = vmax.xlane.f32.xlu1 %v12342_v4 }
 0x378   :  { %542 = vmax.xlane.f32.xlu0 %v12351_v8 }
 0x37a   :  { %536 = vmax.xlane.f32.xlu1 %v12360_v14 }
 0x37c   :  { %538 = vmax.xlane.f32.xlu0 %v12365_v18 }
 0x38b   :  { %820 = vrot.lane.b32.xlu1 %v12144_v33, %s11963_s18 }
 0x3b4   :  { %v517_v22 = vpop.xlane.xlu0 %516 }
 0x3b5   :  { %v546_v29 = vsub.f32 %v12226_v46, %v517_v22 }
 0x3b7   :  { %v564_v59 = vmul.f32 1.442695, %v546_v29 }
 0x3b8   :  { %v513_v15 = vpop.xlane.xlu0 %512 }
 0x3b9   :  { %10992 = vpow2.f32 %v564_v59  ;;  %v544_v36 = vsub.f32 %v12240_v57, %v513_v15 }
 0x3ba   :  { %v515_v35 = vpop.xlane.xlu1 %514 }
 0x3bb   :  { %v560_v7 = vmul.f32 1.442695, %v544_v36  ;;  %v545_v12 = vsub.f32 %v12249_v62, %v515_v35 }
 0x3bc   :  { %v519_v11 = vpop.xlane.xlu0 %518 }
 0x3bd   :  { %10994 = vpow2.f32 %v560_v7  ;;  %v547_v9 = vsub.f32 %v12252_v2, %v519_v11  ;;  %v562_v1 = vmul.f32 1.442695, %v545_v12 }
 0x3bf   :  { %v566_v10 = vmul.f32 1.442695, %v547_v9  ;;  %v12390_v9 = vpop.permute.xlu1 %822 }
 0x3c0   :  { %v12374_v34 = vpop.permute.xlu0 %824 }
 0x3c1   :  { %10996 = vpow2.f32 %v566_v10  ;;  %10879 = vmatprep.subr.msk.bf16.mxu1 %vm366_vm2, %v12374_v34 }
 0x3c2   :  { %10998 = vpow2.f32 %v562_v1 }
 0x3c6   :  { %v12378_v46 = vpop.eup %10992 }
 0x3c7   :  { %596 = vadd.xlane.f32.xlu0 %v12378_v46 }
 0x3ca   :  { %v12381_v15 = vpop.eup %10994 }
 0x3cb   :  { %592 = vadd.xlane.f32.xlu0 %v12381_v15 }
 0x3ce   :  { %v12384_v35 = vpop.eup %10996 }
 0x3cf   :  { %598 = vadd.xlane.f32.xlu0 %v12384_v35  ;;  %v12387_v7 = vpop.eup %10998 }
 0x3d3   :  { %594 = vadd.xlane.f32.xlu0 %v12387_v7 }
 0x3ef   :  { %v525_v10 = vpop.xlane.xlu1 %524 }
 0x3f0   :  { %v550_v1 = vsub.f32 %v12271_v19, %v525_v10 }
 0x3f1   :  { %v527_v11 = vpop.xlane.xlu0 %526 }
 0x3f2   :  { %v572_v57 = vmul.f32 1.442695, %v550_v1  ;;  %v551_v2 = vsub.f32 %v12279_v21, %v527_v11 }
 0x3f3   :  { %v521_v62 = vpop.xlane.xlu1 %520 }
 0x3f4   :  { %11000 = vpow2.f32 %v572_v57  ;;  %v548_v22 = vsub.f32 %v12288_v25, %v521_v62  ;;  %v574_v12 = vmul.f32 1.442695, %v551_v2 }
 0x3f5   :  { %v523_v29 = vpop.xlane.xlu0 %522 }
 0x3f6   :  { %v568_v59 = vmul.f32 1.442695, %v548_v22  ;;  %v549_v36 = vsub.f32 %v12298_v27, %v523_v29 }
 0x3f7   :  { %v533_v57 = vpop.xlane.xlu1 %532 }
 0x3f8   :  { %11002 = vpow2.f32 %v568_v59  ;;  %v570_v63 = vmul.f32 1.442695, %v549_v36  ;;  %v554_v2 = vsub.f32 %v12306_v30, %v533_v57 }
 0x3f9   :  { %v535_v27 = vpop.xlane.xlu0 %534 }
 0x3fa   :  { %11004 = vpow2.f32 %v570_v63  ;;  %v580_v29 = vmul.f32 1.442695, %v554_v2  ;;  %v555_v36 = vsub.f32 %v12315_v32, %v535_v27 }
 0x3fb   :  { %11006 = vpow2.f32 %v574_v12  ;;  %v529_v22 = vpop.xlane.xlu1 %528 }
 0x3fc   :  { %v552_v59 = vsub.f32 %v12324_v38, %v529_v22  ;;  %v582_v0 = vmul.f32 1.442695, %v555_v36 }
 0x3fd   :  { %v531_v10 = vpop.xlane.xlu0 %530 }
 0x3fe   :  { %v576_v12 = vmul.f32 1.442695, %v552_v59  ;;  %v553_v51 = vsub.f32 %v12334_v47, %v531_v10 }
 0x3ff   :  { %v541_v61 = vpop.xlane.xlu1 %540 }
 0x400   :  { %v558_v30 = vsub.f32 %v12342_v4, %v541_v61 }
 0x401   :  { %v12396_v55 = vpop.eup %11000  ;;  %v543_v63 = vpop.xlane.xlu0 %542 }
 0x402   :  { %604 = vadd.xlane.f32.xlu0 %v12396_v55  ;;  %v588_v38 = vmul.f32 1.442695, %v558_v30  ;;  %v559_v47 = vsub.f32 %v12351_v8, %v543_v63 }
 0x405   :  { %v12399_v19 = vpop.eup %11002  ;;  %v539_v1 = vpop.xlane.xlu0 %538 }
 0x406   :  { %600 = vadd.xlane.f32.xlu0 %v12399_v19  ;;  %v557_v11 = vsub.f32 %v12365_v18, %v539_v1  ;;  %v578_v18 = vmul.f32 1.442695, %v553_v51  ;;  %v537_v1 = vpop.xlane.xlu1 %536  ;;  %v590_v51 = vmul.f32 1.442695, %v559_v47  ;;  %v872_v47 = vsel %vm366_vm2, %v12374_v34, 0 }
 0x407   :  { %v12402_v21 = vpop.eup %11004 }
 0x408   :  { %602 = vadd.xlane.f32.xlu1 %v12402_v21  ;;  %v12405_v25 = vpop.eup %11006  ;;  %v586_v62 = vmul.f32 1.442695, %v557_v11  ;;  %v556_v11 = vsub.f32 %v12360_v14, %v537_v1 }
 0x40a   :  { %606 = vadd.xlane.f32.xlu0 %v12405_v25  ;;  %11008 = vpow2.f32 %v586_v62  ;;  %v584_v27 = vmul.f32 1.442695, %v556_v11 }
 0x40b   :  { %11010 = vpow2.f32 %v580_v29 }
 0x40c   :  { %11012 = vpow2.f32 %v576_v12 }
 0x40d   :  { %11014 = vpow2.f32 %v582_v0 }
 0x40e   :  { %11016 = vpow2.f32 %v578_v18 }
 0x40f   :  { %11018 = vpow2.f32 %v588_v38 }
 0x410   :  { %11020 = vpow2.f32 %v584_v27 }
 0x411   :  { %11022 = vpow2.f32 %v590_v51 }
 0x417   :  { %v12419_v54 = vpop.eup %11008 }
 0x418   :  { %v12424_v32 = vpop.eup %11010 }
 0x419   :  { %818 = vrot.lane.b32.xlu1 %v12148_v42, %s11963_s18  ;;  %v12428_v10 = vpop.eup %11012 }
 0x41a   :  { %v12431_v61 = vpop.eup %11014 }
 0x41b   :  { %v12434_v0 = vpop.eup %11016 }
 0x41c   :  { %v12439_v8 = vpop.eup %11018 }
 0x41d   :  { %v12444_v63 = vpop.eup %11020 }
 0x41e   :  { %v12449_v62 = vpop.eup %11022 }
 0x420   :  { %816 = vrot.lane.b32.xlu0 %v12166_v3, %s11963_s18 }
 0x424   :  { %814 = vrot.lane.b32.xlu0 %v12152_v52, %s11963_s18 }
 0x43d   :  { %618 = vadd.xlane.f32.xlu1 %v12419_v54 }
 0x443   :  { %612 = vadd.xlane.f32.xlu0 %v12424_v32 }
 0x447   :  { %608 = vadd.xlane.f32.xlu0 %v12428_v10 }
 0x44b   :  { %614 = vadd.xlane.f32.xlu0 %v12431_v61 }
 0x44e   :  { %810 = vrot.lane.b32.xlu1 %v12140_v23, %s11963_s18 }
 0x44f   :  { %610 = vadd.xlane.f32.xlu0 %v12434_v0 }
 0x450   :  { %v597_v4 = vpop.xlane.xlu0 %596 }
 0x452   :  { %802 = vrot.lane.b32.xlu1 %v12148_v42, %s11964_s19 }
 0x453   :  { %620 = vadd.xlane.f32.xlu0 %v12439_v8 }
 0x454   :  { %v593_v14 = vpop.xlane.xlu0 %592 }
 0x456   :  { %806 = vrot.lane.b32.xlu1 %v12160_v60, %s11964_s19 }
 0x457   :  { %616 = vadd.xlane.f32.xlu0 %v12444_v63 }
 0x458   :  { %v599_v57 = vpop.xlane.xlu0 %598 }
 0x459   :  { %11024 = vrcp.f32 %v599_v57 }
 0x45a   :  { %11026 = vrcp.f32 %v593_v14 }
 0x45b   :  { %622 = vadd.xlane.f32.xlu0 %v12449_v62  ;;  %11028 = vrcp.f32 %v597_v4 }
 0x45c   :  { %v595_v2 = vpop.xlane.xlu0 %594 }
 0x45d   :  { %11030 = vrcp.f32 %v595_v2 }
 0x466   :  { %v11025_v22 = vpop.eup %11024 }
 0x467   :  { %v11027_v29 = vpop.eup %11026  ;;  %v643_v12 = vmul.f32 %v11025_v22, %v12384_v35 }
 0x468   :  { %v11029_v59 = vpop.eup %11028  ;;  %v640_v18 = vmul.f32 %v11027_v29, %v12381_v15  ;;  %v821_v15 = vpop.permute.xlu1 %820 }
 0x469   :  { %v642_v1 = vmul.f32 %v11029_v59, %v12378_v46  ;;  %v869_v46 = vsel %vm366_vm2, %v12390_v9, 0  ;;  %v866_v34 = vsel %vm366_vm2, %v821_v15, 0 }
 0x46a   :  { %v11031_v36 = vpop.eup %11030 }
 0x46b   :  { %v641_v30 = vmul.f32 %v11031_v36, %v12387_v7  ;;  %v657_v11 = vpack.c.bf16 %v643_v12, %v642_v1 }
 0x46d   :  { %v656_v38 = vpack.c.bf16 %v641_v30, %v640_v18 }
 0x46f   :  { %9879 = vmatprep.mubr.bf16.mxu1 %v656_v38 }
 0x470   :  { %9880 = vmatmul.mubr.bf16.vlgmr.msra.gmra.mxu1 %v657_v11 }
 0x471   :  { %9896 = vmatpush3.bf16.xpose.msra.mxu1 %v872_v47  ;;  %812 = vrot.lane.b32.xlu0 %v12172_v5, %s11963_s18 }
 0x472   :  { %10880 = vmatprep.subr.msk.bf16.mxu1 %vm366_vm2, %v12390_v9 }
 0x475   :  { %794 = vrot.lane.b32.xlu0 %v12140_v23, %s11964_s19 }
 0x479   :  { %9898 = vmatpush3.bf16.xpose.msra.mxu1 %v869_v46  ;;  %796 = vrot.lane.b32.xlu0 %v12172_v5, %s11964_s19 }
 0x47a   :  { %10881 = vmatprep.subr.msk.bf16.mxu1 %vm366_vm2, %v821_v15 }
 0x47d   :  { %798 = vrot.lane.b32.xlu0 %v12152_v52, %s11964_s19 }
 0x481   :  { %9900 = vmatpush3.bf16.xpose.msra.mxu1 %v866_v34  ;;  %800 = vrot.lane.b32.xlu0 %v12166_v3, %s11964_s19 }
 0x485   :  { %804 = vrot.lane.b32.xlu0 %v12144_v33, %s11964_s19 }
 0x489   :  { %808 = vrot.lane.b32.xlu0 %v12154_v56, %s11964_s19 }
 0x48b   :  { %v605_v35 = vpop.xlane.xlu0 %604 }
 0x48f   :  { %v601_v7 = vpop.xlane.xlu0 %600 }
 0x490   :  { %11032 = vrcp.f32 %v601_v7 }
 0x491   :  { %11034 = vrcp.f32 %v605_v35  ;;  %v603_v9 = vpop.xlane.xlu1 %602 }
 0x492   :  { %11036 = vrcp.f32 %v603_v9 }
 0x493   :  { %v607_v27 = vpop.xlane.xlu0 %606 }
 0x494   :  { %11038 = vrcp.f32 %v607_v27 }
 0x495   :  { %v819_v51 = vpop.permute.xlu1 %818 }
 0x496   :  { %10882 = vmatprep.subr.msk.bf16.mxu1 %vm366_vm2, %v819_v51  ;;  %v863_v4 = vsel %vm366_vm2, %v819_v51, 0 }
 0x497   :  { %9902 = vmatpush3.bf16.xpose.msra.mxu1 %v863_v4  ;;  %v817_v14 = vpop.permute.xlu0 %816 }
 0x498   :  { %10883 = vmatprep.subr.msk.bf16.mxu1 %vm366_vm2, %v817_v14  ;;  %v860_v22 = vsel %vm366_vm2, %v817_v14, 0 }
 0x49b   :  { %v815_v59 = vpop.permute.xlu0 %814 }
 0x49c   :  { %v857_v47 = vsel %vm366_vm2, %v815_v59, 0 }
 0x49d   :  { %v11033_v57 = vpop.eup %11032 }
 0x49e   :  { %v11035_v2 = vpop.eup %11034  ;;  %v644_v36 = vmul.f32 %v11033_v57, %v12399_v19 }
 0x49f   :  { %v11037_v29 = vpop.eup %11036  ;;  %9904 = vmatpush3.bf16.xpose.msra.mxu1 %v860_v22  ;;  %v646_v1 = vmul.f32 %v11035_v2, %v12396_v55 }
 0x4a0   :  { %10884 = vmatprep.subr.msk.bf16.mxu1 %vm366_vm2, %v815_v59  ;;  %v645_v12 = vmul.f32 %v11037_v29, %v12402_v21 }
 0x4a1   :  { %v11039_v18 = vpop.eup %11038 }
 0x4a2   :  { %v658_v30 = vpack.c.bf16 %v645_v12, %v644_v36  ;;  %v647_v38 = vmul.f32 %v11039_v18, %v12405_v25 }
 0x4a4   :  { %9883 = vmatprep.mubr.bf16.mxu1 %v658_v30  ;;  %v659_v11 = vpack.c.bf16 %v647_v38, %v646_v1 }
 0x4a6   :  { %9884 = vmatmul.mubr.bf16.gmra.mxu1 %v659_v11 }
 0x4a7   :  { %9906 = vmatpush3.bf16.xpose.msra.mxu1 %v857_v47 }
 0x4c6   :  { %v619_v21 = vpop.xlane.xlu1 %618 }
 0x4ca   :  { %v811_v36 = vpop.permute.xlu1 %810 }
 0x4cb   :  { %v851_v38 = vsel %vm366_vm2, %v811_v36, 0 }
 0x4cc   :  { %v613_v46 = vpop.xlane.xlu0 %612 }
 0x4d0   :  { %v609_v15 = vpop.xlane.xlu0 %608 }
 0x4d4   :  { %v615_v34 = vpop.xlane.xlu0 %614 }
 0x4d5   :  { %11040 = vrcp.f32 %v615_v34 }
 0x4d6   :  { %11042 = vrcp.f32 %v609_v15 }
 0x4d7   :  { %11044 = vrcp.f32 %v613_v46 }
 0x4d8   :  { %v611_v19 = vpop.xlane.xlu0 %610 }
 0x4d9   :  { %11046 = vrcp.f32 %v611_v19 }
 0x4da   :  { %11048 = vrcp.f32 %v619_v21 }
 0x4dc   :  { %v621_v35 = vpop.xlane.xlu0 %620 }
 0x4e0   :  { %v617_v55 = vpop.xlane.xlu0 %616 }
 0x4e1   :  { %11050 = vrcp.f32 %v617_v55  ;;  %v803_v55 = vpop.permute.xlu1 %802 }
 0x4e2   :  { %v11041_v25 = vpop.eup %11040  ;;  %11052 = vrcp.f32 %v621_v35 }
 0x4e3   :  { %v11043_v7 = vpop.eup %11042  ;;  %v651_v4 = vmul.f32 %v11041_v25, %v12431_v61 }
 0x4e4   :  { %v623_v9 = vpop.xlane.xlu0 %622  ;;  %v11045_v27 = vpop.eup %11044  ;;  %v648_v14 = vmul.f32 %v11043_v7, %v12428_v10  ;;  %v178_v10 = vld [vmem:[%s17328_s2 + $0x50] sm:$0xff] }
 0x4e5   :  { %11054 = vrcp.f32 %v623_v9  ;;  %v650_v22 = vmul.f32 %v11045_v27, %v12424_v32  ;;  %v793_v30 = vpack.c.bf16 %v178_v10, %v178_v10 }
 0x4e6   :  { %v11047_v51 = vpop.eup %11046 }
 0x4e7   :  { %v649_v57 = vmul.f32 %v11047_v51, %v12434_v0  ;;  %v661_v12 = vpack.c.bf16 %v651_v4, %v650_v22  ;;  %v11049_v18 = vpop.eup %11048 }
 0x4e8   :  { %v813_v2 = vpop.permute.xlu0 %812  ;;  %v653_v0 = vmul.f32 %v11049_v18, %v12419_v54 }
 0x4e9   :  { %10885 = vmatprep.subr.msk.bf16.mxu1 %vm366_vm2, %v813_v2  ;;  %v854_v29 = vsel %vm366_vm2, %v813_v2, 0  ;;  %v660_v59 = vpack.c.bf16 %v649_v57, %v648_v14 }
 0x4ea   :  { %9908 = vmatpush3.bf16.xpose.msra.mxu1 %v854_v29 }
 0x4eb   :  { %9887 = vmatprep.mubr.bf16.mxu1 %v660_v59  ;;  %10886 = vmatprep.subr.msk.bf16.mxu1 %vm366_vm2, %v811_v36 }
 0x4ec   :  { %9888 = vmatmul.mubr.bf16.gmra.mxu1 %v661_v12  ;;  %v795_v46 = vpop.permute.xlu0 %794 }
 0x4ee   :  { %v11051_v61 = vpop.eup %11050 }
 0x4ef   :  { %v652_v32 = vmul.f32 %v11051_v61, %v12444_v63  ;;  %v11053_v1 = vpop.eup %11052  ;;  %v1403_v63 = vsel %vm1277_vm3, %v793_v30, 0 }
 0x4f0   :  { %v654_v15 = vmul.f32 %v11053_v1, %v12439_v8  ;;  %v797_v54 = vpop.permute.xlu0 %796 }
 0x4f1   :  { %v662_v11 = vpack.c.bf16 %v653_v0, %v652_v32 }
 0x4f2   :  { %v11055_v47 = vpop.eup %11054  ;;  %9910 = vmatpush3.bf16.xpose.msra.mxu1 %v851_v38 }
 0x4f3   :  { %9891 = vmatprep.mubr.bf16.mxu1 %v662_v11  ;;  %v655_v34 = vmul.f32 %v11055_v47, %v12449_v62  ;;  %10888 = vmatprep.subr.msk.bf16.mxu1 %vm1277_vm3, %v793_v30  ;;  %v807_v62 = vpop.permute.xlu1 %806 }
 0x4f4   :  { %v799_v21 = vpop.permute.xlu0 %798 }
 0x4f5   :  { %v663_v19 = vpack.c.bf16 %v655_v34, %v654_v15 }
 0x4f7   :  { %9892 = vmatmul.mubr.bf16.gmra.mxu1 %v663_v19 }
 0x4f8   :  { %9911 = vmatprep.mubr.msk.bf16.mxu1 %vm366_vm2, %v795_v46  ;;  %v801_v35 = vpop.permute.xlu0 %800 }
 0x4fc   :  { %v805_v8 = vpop.permute.xlu0 %804 }
 0x4ff   :  { %9912 = vmatmul.mubr.msk.bf16.vlgmr.msra.gmra.mxu1 %vm366_vm2, %v797_v54 }
 0x500   :  { %9915 = vmatprep.mubr.msk.bf16.mxu1 %vm366_vm2, %v799_v21  ;;  %9978 = vmatpush3.bf16.msra.mxu1 %v1403_v63  ;;  %v809_v25 = vpop.permute.xlu0 %808 }
 0x507   :  { %9916 = vmatmul.mubr.msk.bf16.gmra.mxu1 %vm366_vm2, %v801_v35 }
 0x508   :  { %9919 = vmatprep.mubr.msk.bf16.mxu1 %vm366_vm2, %v803_v55 }
 0x50f   :  { %9920 = vmatmul.mubr.msk.bf16.gmra.mxu1 %vm366_vm2, %v805_v8 }
 0x510   :  { %9923 = vmatprep.mubr.msk.bf16.mxu1 %vm366_vm2, %v807_v62 }
 0x517   :  { %9924 = vmatmul.mubr.msk.bf16.gmra.mxu1 %vm366_vm2, %v809_v25 }
 0x530   :  { %v9881_v7 = vpop.f32.mrf.mxu1 }
 0x532   :  { %v722_v9 = vpop.f32.mrf.mxu1 }
 0x534   :  { %v9882_v27 = vpop.f32.mrf.mxu1 }
 0x535   :  { %v786_v14 = vpack.c.bf16 %v9882_v27, %v9881_v7 }
 0x536   :  { %v725_v51 = vpop.f32.mrf.mxu1 }
 0x537   :  { %v785_v4 = vpack.c.bf16 %v725_v51, %v722_v9 }
 0x539   :  { %9979 = vmatprep.mubr.msk.bf16.mxu1 %vm366_vm2, %v785_v4 }
 0x53a   :  { %9980 = vmatmul.mubr.msk.bf16.vlgmr.msra.gmra.mxu1 %vm366_vm2, %v786_v14 }
 0x566   :  { %v9885_v57 = vpop.f32.mrf.mxu1 }
 0x568   :  { %v738_v2 = vpop.f32.mrf.mxu1 }
 0x56a   :  { %v9886_v22 = vpop.f32.mrf.mxu1 }
 0x56b   :  { %v788_v36 = vpack.c.bf16 %v9886_v22, %v9885_v57 }
 0x56c   :  { %v741_v29 = vpop.f32.mrf.mxu1 }
 0x56d   :  { %v787_v59 = vpack.c.bf16 %v741_v29, %v738_v2 }
 0x56f   :  { %9983 = vmatprep.mubr.msk.bf16.mxu1 %vm366_vm2, %v787_v59 }
 0x570   :  { %9984 = vmatmul.mubr.msk.bf16.gmra.mxu1 %vm366_vm2, %v788_v36 }
 0x5ac   :  { %v9889_v12 = vpop.f32.mrf.mxu1 }
 0x5ae   :  { %v754_v18 = vpop.f32.mrf.mxu1 }
 0x5b0   :  { %v9890_v10 = vpop.f32.mrf.mxu1 }
 0x5b1   :  { %v790_v0 = vpack.c.bf16 %v9890_v10, %v9889_v12 }
 0x5b2   :  { %v757_v61 = vpop.f32.mrf.mxu1 }
 0x5b3   :  { %v789_v32 = vpack.c.bf16 %v757_v61, %v754_v18 }
 0x5b5   :  { %9987 = vmatprep.mubr.msk.bf16.mxu1 %vm366_vm2, %v789_v32 }
 0x5b6   :  { %9988 = vmatmul.mubr.msk.bf16.gmra.mxu1 %vm366_vm2, %v790_v0 }
 0x5b7   :  { %v9893_v30 = vpop.f32.mrf.mxu1 }
 0x5b9   :  { %v770_v1 = vpop.f32.mrf.mxu1 }
 0x5bb   :  { %v9894_v38 = vpop.f32.mrf.mxu1 }
 0x5bc   :  { %v792_v46 = vpack.c.bf16 %v9894_v38, %v9893_v30 }
 0x5bd   :  { %v773_v11 = vpop.f32.mrf.mxu1 }
 0x5be   :  { %v791_v47 = vpack.c.bf16 %v773_v11, %v770_v1 }
 0x5bf   :  { %v9913_v15 = vpop.f32.mrf.mxu1 }
 0x5c0   :  { %v917_v34 = vadd.f32 %v9913_v15, %v12223_v39  ;;  %9991 = vmatprep.mubr.msk.bf16.mxu1 %vm366_vm2, %v791_v47 }
 0x5c1   :  { %v908_v19 = vpop.f32.mrf.mxu1  ;;  %9992 = vmatmul.mubr.msk.bf16.gmra.mxu1 %vm366_vm2, %v792_v46 }
 0x5c2   :  { %v909_v54 = vadd.f32 %v908_v19, %v12231_v48  ;;  %975 = vmax.xlane.f32.xlu0 %v917_v34 }
 0x5c3   :  { %v9914_v63 = vpop.f32.mrf.mxu1 }
 0x5c4   :  { %971 = vmax.xlane.f32.xlu1 %v909_v54  ;;  %v920_v35 = vadd.f32 %v9914_v63, %v12245_v58 }
 0x5c5   :  { %v911_v21 = vpop.f32.mrf.mxu1 }
 0x5c6   :  { %v12525_v55 = vadd.f32 %v911_v21, %v12237_v50 }
 0x5c7   :  { %v9917_v39 = vpop.f32.mrf.mxu1 }
 0x5c8   :  { %973 = vmax.xlane.f32.xlu0 %v12525_v55  ;;  %977 = vmax.xlane.f32.xlu1 %v920_v35  ;;  %v12533_v50 = vadd.f32 %v9917_v39, %v12263_v16 }
 0x5c9   :  { %v924_v48 = vpop.f32.mrf.mxu1 }
 0x5ca   :  { %v12541_v51 = vadd.f32 %v924_v48, %v12276_v20 }
 0x5cb   :  { %v9918_v8 = vpop.f32.mrf.mxu1 }
 0x5cc   :  { %v12536_v9 = vadd.f32 %v9918_v8, %v12268_v17 }
 0x5cd   :  { %v927_v62 = vpop.f32.mrf.mxu1 }
 0x5ce   :  { %v12544_v4 = vadd.f32 %v927_v62, %v12285_v24 }
 0x5cf   :  { %v9921_v25 = vpop.f32.mrf.mxu1 }
 0x5d0   :  { %v12549_v16 = vadd.f32 %v9921_v25, %v12294_v26 }
 0x5d1   :  { %v940_v7 = vpop.f32.mrf.mxu1 }
 0x5d2   :  { %v12557_v20 = vadd.f32 %v940_v7, %v12312_v31 }
 0x5d3   :  { %v9922_v58 = vpop.f32.mrf.mxu1 }
 0x5d4   :  { %v12552_v17 = vadd.f32 %v9922_v58, %v12303_v28 }
 0x5d5   :  { %v943_v27 = vpop.f32.mrf.mxu1 }
 0x5d6   :  { %v12560_v24 = vadd.f32 %v943_v27, %v12321_v37 }
 0x5d7   :  { %v9925_v14 = vpop.f32.mrf.mxu1 }
 0x5d8   :  { %v12565_v26 = vadd.f32 %v9925_v14, %v12330_v40 }
 0x5d9   :  { %1135 = vrot.lane.b32.xlu1 %v12160_v60, %s11965_s22  ;;  %v956_v57 = vpop.f32.mrf.mxu1 }
 0x5da   :  { %v12573_v31 = vadd.f32 %v956_v57, %v12348_v6 }
 0x5db   :  { %v9926_v2 = vpop.f32.mrf.mxu1 }
 0x5dc   :  { %v12568_v28 = vadd.f32 %v9926_v2, %v12339_v49 }
 0x5dd   :  { %v959_v22 = vpop.f32.mrf.mxu1 }
 0x5de   :  { %1137 = vrot.lane.b32.xlu0 %v12154_v56, %s11965_s22  ;;  %v12576_v37 = vadd.f32 %v959_v22, %v12357_v13 }
 0x5fd   :  { %983 = vmax.xlane.f32.xlu0 %v12533_v50  ;;  %985 = vmax.xlane.f32.xlu1 %v12536_v9 }
 0x601   :  { %981 = vmax.xlane.f32.xlu1 %v12544_v4  ;;  %979 = vmax.xlane.f32.xlu0 %v12541_v51 }
 0x605   :  { %991 = vmax.xlane.f32.xlu0 %v12549_v16  ;;  %993 = vmax.xlane.f32.xlu1 %v12552_v17 }
 0x609   :  { %989 = vmax.xlane.f32.xlu1 %v12560_v24  ;;  %987 = vmax.xlane.f32.xlu0 %v12557_v20 }
 0x60d   :  { %999 = vmax.xlane.f32.xlu0 %v12565_v26  ;;  %1001 = vmax.xlane.f32.xlu1 %v12568_v28 }
 0x611   :  { %997 = vmax.xlane.f32.xlu1 %v12576_v37  ;;  %995 = vmax.xlane.f32.xlu0 %v12573_v31 }
 0x627   :  { %1133 = vrot.lane.b32.xlu0 %v12144_v33, %s11965_s22 }
 0x62b   :  { %1131 = vrot.lane.b32.xlu0 %v12148_v42, %s11965_s22 }
 0x62f   :  { %1129 = vrot.lane.b32.xlu0 %v12166_v3, %s11965_s22 }
 0x633   :  { %1127 = vrot.lane.b32.xlu0 %v12152_v52, %s11965_s22 }
 0x637   :  { %1123 = vrot.lane.b32.xlu0 %v12140_v23, %s11965_s22 }
 0x64b   :  { %v976_v40 = vpop.xlane.xlu0 %975 }
 0x64c   :  { %v1005_v49 = vsub.f32 %v917_v34, %v976_v40 }
 0x64d   :  { %v972_v6 = vpop.xlane.xlu1 %971 }
 0x64e   :  { %v1023_v13 = vmul.f32 1.442695, %v1005_v49  ;;  %v1003_v29 = vsub.f32 %v909_v54, %v972_v6 }
 0x650   :  { %11056 = vpow2.f32 %v1023_v13  ;;  %v1019_v59 = vmul.f32 1.442695, %v1003_v29 }
 0x651   :  { %v978_v36 = vpop.xlane.xlu1 %977  ;;  %v974_v12 = vpop.xlane.xlu0 %973 }
 0x652   :  { %v1006_v18 = vsub.f32 %v920_v35, %v978_v36  ;;  %11058 = vpow2.f32 %v1019_v59  ;;  %v1004_v61 = vsub.f32 %v12525_v55, %v974_v12 }
 0x654   :  { %v1025_v10 = vmul.f32 1.442695, %v1006_v18  ;;  %v1021_v30 = vmul.f32 1.442695, %v1004_v61 }
 0x655   :  { %v1138_v32 = vpop.permute.xlu0 %1137  ;;  %v1136_v0 = vpop.permute.xlu1 %1135 }
 0x656   :  { %9927 = vmatprep.subr.bf16.mxu0 %v1138_v32  ;;  %11060 = vpow2.f32 %v1025_v10 }
 0x657   :  { %9928 = vmatpush3.bf16.msra.mxu0 %v1138_v32  ;;  %11062 = vpow2.f32 %v1021_v30 }
 0x658   :  { %9929 = vmatprep.subr.bf16.mxu0 %v1136_v0 }
 0x65b   :  { %9930 = vmatpush3.bf16.msra.mxu0 %v1136_v0 }
 0x65d   :  { %v12591_v1 = vpop.eup %11056 }
 0x65e   :  { %1055 = vadd.xlane.f32.xlu1 %v12591_v1 }
 0x65f   :  { %v12594_v38 = vpop.eup %11058 }
 0x662   :  { %1051 = vadd.xlane.f32.xlu1 %v12594_v38 }
 0x663   :  { %v12597_v11 = vpop.eup %11060 }
 0x664   :  { %v12600_v47 = vpop.eup %11062 }
 0x666   :  { %1057 = vadd.xlane.f32.xlu1 %v12597_v11 }
 0x66a   :  { %1053 = vadd.xlane.f32.xlu1 %v12600_v47 }
 0x67b   :  { %1125 = vrot.lane.b32.xlu1 %v12172_v5, %s11965_s22 }
 0x686   :  { %v986_v46 = vpop.xlane.xlu1 %985  ;;  %v984_v15 = vpop.xlane.xlu0 %983 }
 0x687   :  { %v1009_v54 = vsub.f32 %v12533_v50, %v984_v15  ;;  %v1010_v35 = vsub.f32 %v12536_v9, %v986_v46 }
 0x689   :  { %v1031_v62 = vmul.f32 1.442695, %v1009_v54  ;;  %v1033_v25 = vmul.f32 1.442695, %v1010_v35 }
 0x68a   :  { %v982_v34 = vpop.xlane.xlu1 %981  ;;  %v980_v19 = vpop.xlane.xlu0 %979 }
 0x68b   :  { %v1008_v63 = vsub.f32 %v12544_v4, %v982_v34  ;;  %v1007_v21 = vsub.f32 %v12541_v51, %v980_v19 }
 0x68d   :  { %v1029_v55 = vmul.f32 1.442695, %v1008_v63  ;;  %v1027_v39 = vmul.f32 1.442695, %v1007_v21 }
 0x68e   :  { %v994_v48 = vpop.xlane.xlu1 %993  ;;  %v992_v8 = vpop.xlane.xlu0 %991 }
 0x68f   :  { %11064 = vpow2.f32 %v1029_v55  ;;  %v1013_v4 = vsub.f32 %v12549_v16, %v992_v8  ;;  %v1014_v9 = vsub.f32 %v12552_v17, %v994_v48  ;;  %v179_v48 = vld [vmem:[%s17328_s2 + $0x58] sm:$0xff] }
 0x690   :  { %11066 = vpow2.f32 %v1027_v39 }
 0x691   :  { %11068 = vpow2.f32 %v1031_v62  ;;  %v1039_v22 = vmul.f32 1.442695, %v1013_v4  ;;  %v1041_v40 = vmul.f32 1.442695, %v1014_v9  ;;  %v1252_v62 = vpack.c.bf16 %v179_v48, %v179_v48 }
 0x692   :  { %v990_v7 = vpop.xlane.xlu1 %989  ;;  %v988_v58 = vpop.xlane.xlu0 %987  ;;  %11070 = vpow2.f32 %v1033_v25 }
 0x693   :  { %v1012_v27 = vsub.f32 %v12560_v24, %v990_v7  ;;  %v1011_v50 = vsub.f32 %v12557_v20, %v988_v58 }
 0x695   :  { %v1037_v51 = vmul.f32 1.442695, %v1012_v27  ;;  %v1035_v14 = vmul.f32 1.442695, %v1011_v50 }
 0x696   :  { %v1002_v57 = vpop.xlane.xlu1 %1001  ;;  %v1000_v2 = vpop.xlane.xlu0 %999 }
 0x697   :  { %11072 = vpow2.f32 %v1035_v14  ;;  %v1017_v16 = vsub.f32 %v12565_v26, %v1000_v2  ;;  %v1018_v17 = vsub.f32 %v12568_v28, %v1002_v57  ;;  %v1279_v2 = vsel %vm1277_vm3, %v1252_v62, 0 }
 0x698   :  { %11074 = vpow2.f32 %v1037_v51 }
 0x699   :  { %11076 = vpow2.f32 %v1039_v22  ;;  %v1049_v18 = vmul.f32 1.442695, %v1018_v17 }
 0x69a   :  { %v998_v49 = vpop.xlane.xlu1 %997  ;;  %v996_v6 = vpop.xlane.xlu0 %995  ;;  %11078 = vpow2.f32 %v1041_v40 }
 0x69b   :  { %v1016_v13 = vsub.f32 %v12576_v37, %v998_v49  ;;  %v1015_v24 = vsub.f32 %v12573_v31, %v996_v6  ;;  %v1047_v31 = vmul.f32 1.442695, %v1017_v16 }
 0x69c   :  { %v12615_v20 = vpop.eup %11064 }
 0x69d   :  { %v1045_v29 = vmul.f32 1.442695, %v1016_v13  ;;  %v1043_v59 = vmul.f32 1.442695, %v1015_v24  ;;  %1061 = vadd.xlane.f32.xlu0 %v12615_v20  ;;  %v12620_v36 = vpop.eup %11066 }
 0x69e   :  { %v1134_v12 = vpop.permute.xlu0 %1133  ;;  %v12623_v37 = vpop.eup %11068 }
 0x69f   :  { %1059 = vadd.xlane.f32.xlu1 %v12620_v36  ;;  %9931 = vmatprep.subr.bf16.mxu0 %v1134_v12  ;;  %11080 = vpow2.f32 %v1043_v59  ;;  %v12626_v26 = vpop.eup %11070 }
 0x6a0   :  { %9932 = vmatpush3.bf16.msra.mxu0 %v1134_v12  ;;  %11082 = vpow2.f32 %v1045_v29 }
 0x6a1   :  { %1063 = vadd.xlane.f32.xlu0 %v12623_v37  ;;  %11084 = vpow2.f32 %v1047_v31 }
 0x6a2   :  { %v1132_v28 = vpop.permute.xlu0 %1131  ;;  %11086 = vpow2.f32 %v1049_v18 }
 0x6a3   :  { %1065 = vadd.xlane.f32.xlu1 %v12626_v26  ;;  %9933 = vmatprep.subr.bf16.mxu0 %v1132_v28 }
 0x6a4   :  { %9934 = vmatpush3.bf16.msra.mxu0 %v1132_v28  ;;  %v12629_v10 = vpop.eup %11072 }
 0x6a5   :  { %v12631_v61 = vpop.eup %11074  ;;  %1067 = vadd.xlane.f32.xlu0 %v12629_v10 }
 0x6a6   :  { %v1130_v32 = vpop.permute.xlu0 %1129  ;;  %v12635_v0 = vpop.eup %11076 }
 0x6a7   :  { %1069 = vadd.xlane.f32.xlu1 %v12631_v61  ;;  %9935 = vmatprep.subr.bf16.mxu0 %v1130_v32  ;;  %v12637_v30 = vpop.eup %11078 }
 0x6a8   :  { %9936 = vmatpush3.bf16.msra.mxu0 %v1130_v32 }
 0x6a9   :  { %1071 = vadd.xlane.f32.xlu0 %v12635_v0 }
 0x6aa   :  { %v1128_v46 = vpop.permute.xlu0 %1127 }
 0x6ab   :  { %1073 = vadd.xlane.f32.xlu1 %v12637_v30  ;;  %9937 = vmatprep.subr.bf16.mxu0 %v1128_v46 }
 0x6ac   :  { %9938 = vmatpush3.bf16.msra.mxu0 %v1128_v46  ;;  %v12641_v15 = vpop.eup %11080 }
 0x6ad   :  { %v12643_v34 = vpop.eup %11082  ;;  %1075 = vadd.xlane.f32.xlu0 %v12641_v15 }
 0x6ae   :  { %v12647_v19 = vpop.eup %11084  ;;  %v1124_v8 = vpop.permute.xlu0 %1123 }
 0x6af   :  { %1077 = vadd.xlane.f32.xlu1 %v12643_v34  ;;  %v12649_v54 = vpop.eup %11086 }
 0x6b1   :  { %1079 = vadd.xlane.f32.xlu0 %v12647_v19 }
 0x6b3   :  { %1081 = vadd.xlane.f32.xlu1 %v12649_v54 }
 0x6c4   :  { %1530 = vrot.lane.b32.xlu1 %v12160_v60, %s11966_s23 }
 0x6c7   :  { %1532 = vrot.lane.b32.xlu0 %v12154_v56, %s11966_s23 }
 0x6c8   :  { %1528 = vrot.lane.b32.xlu1 %v12144_v33, %s11966_s23 }
 0x6cb   :  { %1526 = vrot.lane.b32.xlu0 %v12148_v42, %s11966_s23 }
 0x6cc   :  { %1524 = vrot.lane.b32.xlu1 %v12166_v3, %s11966_s23 }
 0x6cf   :  { %1522 = vrot.lane.b32.xlu0 %v12152_v52, %s11966_s23 }
 0x6d0   :  { %1520 = vrot.lane.b32.xlu1 %v12172_v5, %s11966_s23 }
 0x6d3   :  { %1518 = vrot.lane.b32.xlu0 %v12140_v23, %s11966_s23 }
 0x6d4   :  { %1502 = vrot.lane.b32.xlu1 %v12140_v23, %s11967_s24 }
 0x6d7   :  { %1504 = vrot.lane.b32.xlu0 %v12172_v5, %s11967_s24 }
 0x6d8   :  { %1506 = vrot.lane.b32.xlu1 %v12152_v52, %s11967_s24 }
 0x6db   :  { %1508 = vrot.lane.b32.xlu0 %v12166_v3, %s11967_s24 }
 0x6dc   :  { %1510 = vrot.lane.b32.xlu1 %v12148_v42, %s11967_s24 }
 0x6df   :  { %1512 = vrot.lane.b32.xlu0 %v12144_v33, %s11967_s24 }
 0x6e0   :  { %1514 = vrot.lane.b32.xlu1 %v12160_v60, %s11967_s24 }
 0x6e3   :  { %1516 = vrot.lane.b32.xlu0 %v12154_v56, %s11967_s24 }
 0x6e4   :  { %2131 = vrot.lane.b32.xlu1 %v12154_v56, %s11968_s25 }
 0x6e7   :  { %v1056_v63 = vpop.xlane.xlu1 %1055  ;;  %2129 = vrot.lane.b32.xlu0 %v12160_v60, %s11968_s25 }
 0x6e8   :  { %2127 = vrot.lane.b32.xlu1 %v12144_v33, %s11968_s25 }
 0x6eb   :  { %v1052_v21 = vpop.xlane.xlu1 %1051  ;;  %2125 = vrot.lane.b32.xlu0 %v12148_v42, %s11968_s25 }
 0x6ec   :  { %2123 = vrot.lane.b32.xlu1 %v12166_v3, %s11968_s25 }
 0x6ef   :  { %v1058_v35 = vpop.xlane.xlu1 %1057  ;;  %2121 = vrot.lane.b32.xlu0 %v12152_v52, %s11968_s25 }
 0x6f0   :  { %2119 = vrot.lane.b32.xlu1 %v12172_v5, %s11968_s25  ;;  %11088 = vrcp.f32 %v1058_v35 }
 0x6f1   :  { %11090 = vrcp.f32 %v1052_v21 }
 0x6f2   :  { %11092 = vrcp.f32 %v1056_v63 }
 0x6f3   :  { %v1054_v55 = vpop.xlane.xlu1 %1053  ;;  %2117 = vrot.lane.b32.xlu0 %v12140_v23, %s11968_s25 }
 0x6f4   :  { %11094 = vrcp.f32 %v1054_v55  ;;  %2101 = vrot.lane.b32.xlu1 %v12140_v23, %s11969_s26 }
 0x6f7   :  { %v1126_v39 = vpop.permute.xlu1 %1125  ;;  %2103 = vrot.lane.b32.xlu0 %v12172_v5, %s11969_s26 }
 0x6f8   :  { %2105 = vrot.lane.b32.xlu1 %v12152_v52, %s11969_s26  ;;  %9939 = vmatprep.subr.bf16.mxu0 %v1126_v39 }
 0x6f9   :  { %9940 = vmatpush3.bf16.msra.mxu0 %v1126_v39 }
 0x6fa   :  { %9941 = vmatprep.subr.bf16.mxu0 %v1124_v8 }
 0x6fb   :  { %2107 = vrot.lane.b32.xlu0 %v12166_v3, %s11969_s26 }
 0x6fc   :  { %2109 = vrot.lane.b32.xlu1 %v12148_v42, %s11969_s26 }
 0x6fd   :  { %v11089_v25 = vpop.eup %11088  ;;  %9942 = vmatpush3.bf16.msra.mxu0 %v1124_v8 }
 0x6fe   :  { %v11091_v7 = vpop.eup %11090  ;;  %10887 = vmatprep.subr.msk.bf16.mxu0 %vm1277_vm3, %v1252_v62  ;;  %v1102_v50 = vmul.f32 %v11089_v25, %v12597_v11 }
 0x6ff   :  { %v11093_v58 = vpop.eup %11092  ;;  %2111 = vrot.lane.b32.xlu0 %v12144_v33, %s11969_s26  ;;  %v1099_v4 = vmul.f32 %v11091_v7, %v12594_v38 }
 0x700   :  { %2113 = vrot.lane.b32.xlu1 %v12160_v60, %s11969_s26  ;;  %v1101_v51 = vmul.f32 %v11093_v58, %v12591_v1 }
 0x701   :  { %v11095_v27 = vpop.eup %11094 }
 0x702   :  { %v1100_v9 = vmul.f32 %v11095_v27, %v12600_v47  ;;  %v1116_v57 = vpack.c.bf16 %v1102_v50, %v1101_v51 }
 0x703   :  { %2115 = vrot.lane.b32.xlu0 %v12154_v56, %s11969_s26 }
 0x704   :  { %1843 = vrot.lane.b32.xlu1 %v12160_v60, %s11970_s29  ;;  %v1115_v14 = vpack.c.bf16 %v1100_v9, %v1099_v4 }
 0x706   :  { %9943 = vmatprep.mubr.bf16.mxu0 %v1115_v14 }
 0x707   :  { %9944 = vmatmul.mubr.bf16.vlgmr.msra.gmra.mxu0 %v1116_v57  ;;  %1845 = vrot.lane.b32.xlu0 %v12154_v56, %s11970_s29 }
 0x708   :  { %9960 = vmatpush3.bf16.msra.mxu0 %v1279_v2 }
 0x726   :  { %v1062_v38 = vpop.xlane.xlu0 %1061 }
 0x727   :  { %11096 = vrcp.f32 %v1062_v38 }
 0x728   :  { %v1060_v1 = vpop.xlane.xlu1 %1059 }
 0x729   :  { %11098 = vrcp.f32 %v1060_v1 }
 0x72a   :  { %v1064_v11 = vpop.xlane.xlu0 %1063 }
 0x72b   :  { %11100 = vrcp.f32 %v1064_v11 }
 0x72c   :  { %v1066_v47 = vpop.xlane.xlu1 %1065 }
 0x72d   :  { %11102 = vrcp.f32 %v1066_v47 }
 0x72e   :  { %v1068_v22 = vpop.xlane.xlu0 %1067 }
 0x72f   :  { %11104 = vrcp.f32 %v1068_v22 }
 0x730   :  { %v1070_v40 = vpop.xlane.xlu1 %1069 }
 0x731   :  { %11106 = vrcp.f32 %v1070_v40 }
 0x732   :  { %v1072_v49 = vpop.xlane.xlu0 %1071 }
 0x733   :  { %11108 = vrcp.f32 %v1072_v49 }
 0x734   :  { %v11097_v6 = vpop.eup %11096  ;;  %v1074_v13 = vpop.xlane.xlu1 %1073 }
 0x735   :  { %11110 = vrcp.f32 %v1074_v13  ;;  %v1104_v29 = vmul.f32 %v11097_v6, %v12615_v20 }
 0x736   :  { %v11099_v24 = vpop.eup %11098  ;;  %v1076_v16 = vpop.xlane.xlu0 %1075 }
 0x737   :  { %v1103_v17 = vmul.f32 %v11099_v24, %v12620_v36  ;;  %11112 = vrcp.f32 %v1076_v16 }
 0x738   :  { %v11101_v59 = vpop.eup %11100  ;;  %v1078_v12 = vpop.xlane.xlu1 %1077 }
 0x739   :  { %11114 = vrcp.f32 %v1078_v12  ;;  %v1117_v31 = vpack.c.bf16 %v1104_v29, %v1103_v17  ;;  %v1105_v32 = vmul.f32 %v11101_v59, %v12623_v37 }
 0x73a   :  { %v11103_v18 = vpop.eup %11102  ;;  %v1080_v28 = vpop.xlane.xlu0 %1079 }
 0x73b   :  { %9947 = vmatprep.mubr.bf16.mxu0 %v1117_v31  ;;  %v1106_v46 = vmul.f32 %v11103_v18, %v12626_v26  ;;  %11116 = vrcp.f32 %v1080_v28 }
 0x73c   :  { %v1082_v63 = vpop.xlane.xlu1 %1081  ;;  %v11105_v21 = vpop.eup %11104 }
 0x73d   :  { %11118 = vrcp.f32 %v1082_v63  ;;  %v1118_v35 = vpack.c.bf16 %v1106_v46, %v1105_v32  ;;  %v1107_v20 = vmul.f32 %v11105_v21, %v12629_v10 }
 0x73e   :  { %v11107_v36 = vpop.eup %11106  ;;  %v12734_v55 = vpop.permute.xlu0 %1532 }
 0x73f   :  { %9948 = vmatmul.mubr.bf16.gmra.mxu0 %v1118_v35  ;;  %v1108_v39 = vmul.f32 %v11107_v36, %v12631_v61  ;;  %10889 = vmatprep.subr.msk.bf16.mxu0 %vm366_vm2, %v12734_v55 }
 0x740   :  { %v12740_v48 = vpop.permute.xlu1 %1530  ;;  %v11109_v37 = vpop.eup %11108 }
 0x741   :  { %v1119_v26 = vpack.c.bf16 %v1108_v39, %v1107_v20  ;;  %v1109_v25 = vmul.f32 %v11109_v37, %v12635_v0 }
 0x742   :  { %v11111_v8 = vpop.eup %11110  ;;  %v12742_v62 = vpop.permute.xlu0 %1526 }
 0x743   :  { %9951 = vmatprep.mubr.bf16.mxu0 %v1119_v26  ;;  %v1110_v7 = vmul.f32 %v11111_v8, %v12637_v30 }
 0x744   :  { %v12746_v58 = vpop.permute.xlu1 %1528  ;;  %v11113_v10 = vpop.eup %11112 }
 0x745   :  { %v1120_v27 = vpack.c.bf16 %v1110_v7, %v1109_v25  ;;  %v1111_v4 = vmul.f32 %v11113_v10, %v12641_v15  ;;  %v1580_v10 = vsel %vm366_vm2, %v12734_v55, 0  ;;  %v1571_v55 = vsel %vm366_vm2, %v12742_v62, 0 }
 0x746   :  { %v11115_v61 = vpop.eup %11114  ;;  %v12748_v50 = vpop.permute.xlu0 %1522 }
 0x747   :  { %9952 = vmatmul.mubr.bf16.gmra.mxu0 %v1120_v27  ;;  %v1112_v9 = vmul.f32 %v11115_v61, %v12643_v34  ;;  %v1577_v27 = vsel %vm366_vm2, %v12740_v48, 0  ;;  %v1574_v61 = vsel %vm366_vm2, %v12746_v58, 0 }
 0x748   :  { %v1525_v51 = vpop.permute.xlu1 %1524  ;;  %v11117_v14 = vpop.eup %11116 }
 0x749   :  { %v1121_v57 = vpack.c.bf16 %v1112_v9, %v1111_v4  ;;  %v1113_v0 = vmul.f32 %v11117_v14, %v12647_v19  ;;  %v1568_v4 = vsel %vm366_vm2, %v1525_v51, 0 }
 0x74a   :  { %v11119_v2 = vpop.eup %11118  ;;  %v12752_v38 = vpop.permute.xlu0 %1518 }
 0x74b   :  { %9955 = vmatprep.mubr.bf16.mxu0 %v1121_v57  ;;  %v1114_v30 = vmul.f32 %v11119_v2, %v12649_v54 }
 0x74c   :  { %v1521_v1 = vpop.permute.xlu1 %1520 }
 0x74d   :  { %v1122_v11 = vpack.c.bf16 %v1114_v30, %v1113_v0  ;;  %v1562_v14 = vsel %vm366_vm2, %v1521_v1, 0 }
 0x74e   :  { %v12756_v47 = vpop.permute.xlu0 %1504 }
 0x74f   :  { %9956 = vmatmul.mubr.bf16.gmra.mxu0 %v1122_v11 }
 0x750   :  { %v12758_v22 = vpop.permute.xlu1 %1502 }
 0x752   :  { %v12760_v15 = vpop.permute.xlu0 %1508 }
 0x754   :  { %v12762_v34 = vpop.permute.xlu1 %1506 }
 0x756   :  { %v12764_v40 = vpop.permute.xlu0 %1512 }
 0x758   :  { %v12766_v49 = vpop.permute.xlu1 %1510 }
 0x75a   :  { %v12768_v6 = vpop.permute.xlu0 %1516 }
 0x75c   :  { %v12770_v19 = vpop.permute.xlu1 %1514 }
 0x75e   :  { %v12772_v54 = vpop.permute.xlu0 %2129 }
 0x760   :  { %v12774_v13 = vpop.permute.xlu1 %2131 }
 0x762   :  { %v12776_v24 = vpop.permute.xlu0 %2125 }
 0x764   :  { %v12778_v16 = vpop.permute.xlu1 %2127 }
 0x766   :  { %v12780_v17 = vpop.permute.xlu0 %2121 }
 0x768   :  { %v12782_v29 = vpop.permute.xlu1 %2123 }
 0x76a   :  { %v12784_v59 = vpop.permute.xlu0 %2117 }
 0x76c   :  { %v12786_v12 = vpop.permute.xlu1 %2119 }
 0x76e   :  { %v12788_v31 = vpop.permute.xlu0 %2103 }
 0x770   :  { %v12790_v18 = vpop.permute.xlu1 %2101 }
 0x772   :  { %v12792_v28 = vpop.permute.xlu0 %2107 }
 0x774   :  { %v12794_v32 = vpop.permute.xlu1 %2105 }
 0x776   :  { %v12796_v46 = vpop.permute.xlu0 %2111 }
 0x778   :  { %v12798_v63 = vpop.permute.xlu1 %2109 }
 0x77a   :  { %v12800_v21 = vpop.permute.xlu0 %2115 }
 0x77c   :  { %v12802_v35 = vpop.permute.xlu1 %2113 }
 0x77e   :  { %v1846_v36 = vpop.permute.xlu0 %1845 }
 0x77f   :  { %10027 = vmatprep.subr.bf16.mxu1 %v1846_v36 }
 0x780   :  { %v1844_v20 = vpop.permute.xlu1 %1843  ;;  %10028 = vmatpush3.bf16.msra.mxu1 %v1846_v36 }
 0x781   :  { %10029 = vmatprep.subr.bf16.mxu1 %v1844_v20 }
 0x784   :  { %10030 = vmatpush3.bf16.msra.mxu1 %v1844_v20 }
 0x7c7   :  { %v9945_v39 = vpop.f32.mrf.mxu0 }
 0x7c9   :  { %v1181_v37 = vpop.f32.mrf.mxu0 }
 0x7cb   :  { %v9946_v26 = vpop.f32.mrf.mxu0 }
 0x7cc   :  { %v1245_v7 = vpack.c.bf16 %v9946_v26, %v9945_v39 }
 0x7cd   :  { %v1184_v8 = vpop.f32.mrf.mxu0 }
 0x7ce   :  { %v1244_v25 = vpack.c.bf16 %v1184_v8, %v1181_v37 }
 0x7d0   :  { %9961 = vmatprep.mubr.msk.bf16.mxu0 %vm366_vm2, %v1244_v25 }
 0x7d1   :  { %9962 = vmatmul.mubr.msk.bf16.vlgmr.msra.gmra.mxu0 %vm366_vm2, %v1245_v7 }
 0x7d2   :  { %9996 = vmatpush3.bf16.xpose.msra.mxu0 %v1580_v10  ;;  %v2176_v10 = vsel %vm366_vm2, %v12772_v54, 0 }
 0x7d3   :  { %10890 = vmatprep.subr.msk.bf16.mxu0 %vm366_vm2, %v12740_v48  ;;  %v1565_v48 = vsel %vm366_vm2, %v12748_v50, 0 }
 0x7da   :  { %9998 = vmatpush3.bf16.xpose.msra.mxu0 %v1577_v27 }
 0x7db   :  { %10891 = vmatprep.subr.msk.bf16.mxu0 %vm366_vm2, %v12746_v58 }
 0x7e2   :  { %10000 = vmatpush3.bf16.xpose.msra.mxu0 %v1574_v61 }
 0x7e3   :  { %10892 = vmatprep.subr.msk.bf16.mxu0 %vm366_vm2, %v12742_v62 }
 0x7ea   :  { %10002 = vmatpush3.bf16.xpose.msra.mxu0 %v1571_v55  ;;  %v12945_v55 = vld [vmem:[%s17331_s1] sm:$0xff] }
 0x7eb   :  { %10893 = vmatprep.subr.msk.bf16.mxu0 %vm366_vm2, %v1525_v51 }
 0x7f2   :  { %10004 = vmatpush3.bf16.xpose.msra.mxu0 %v1568_v4 }
 0x7f3   :  { %10894 = vmatprep.subr.msk.bf16.mxu0 %vm366_vm2, %v12748_v50  ;;  %v1559_v50 = vsel %vm366_vm2, %v12752_v38, 0 }
 0x7fa   :  { %10006 = vmatpush3.bf16.xpose.msra.mxu0 %v1565_v48 }
 0x7fb   :  { %10895 = vmatprep.subr.msk.bf16.mxu0 %vm366_vm2, %v1521_v1 }
 0x7ff   :  { %v9949_v58 = vpop.f32.mrf.mxu0 }
 0x801   :  { %v1197_v9 = vpop.f32.mrf.mxu0 }
 0x802   :  { %10008 = vmatpush3.bf16.xpose.msra.mxu0 %v1562_v14 }
 0x803   :  { %10896 = vmatprep.subr.msk.bf16.mxu0 %vm366_vm2, %v12752_v38  ;;  %v9950_v62 = vpop.f32.mrf.mxu0  ;;  %v2179_v38 = vsel %vm366_vm2, %v12774_v13, 0 }
 0x804   :  { %v1247_v2 = vpack.c.bf16 %v9950_v62, %v9949_v58  ;;  %v12963_v62 = vld [vmem:[%s17331_s1 + $0x8] sm:$0xff] }
 0x805   :  { %v1200_v51 = vpop.f32.mrf.mxu0 }
 0x806   :  { %v1246_v57 = vpack.c.bf16 %v1200_v51, %v1197_v9  ;;  %v12955_v9 = vld [vmem:[%s17331_s1 + $0x18] sm:$0xff] }
 0x807   :  { %v9953_v0 = vpop.f32.mrf.mxu0 }
 0x808   :  { %9965 = vmatprep.mubr.msk.bf16.mxu0 %vm366_vm2, %v1246_v57 }
 0x809   :  { %v1213_v30 = vpop.f32.mrf.mxu0  ;;  %9966 = vmatmul.mubr.msk.bf16.gmra.mxu0 %vm366_vm2, %v1247_v2 }
 0x80a   :  { %10010 = vmatpush3.bf16.xpose.msra.mxu0 %v1559_v50 }
 0x80b   :  { %10898 = vmatprep.subr.msk.bf16.mxu0 %vm366_vm2, %v12774_v13  ;;  %v9954_v1 = vpop.f32.mrf.mxu0 }
 0x80c   :  { %v1249_v20 = vpack.c.bf16 %v9954_v1, %v9953_v0  ;;  %v12973_v0 = vld [vmem:[%s17331_s1 + $0x30] sm:$0xff]  ;;  %v12981_v1 = vld [vmem:[%s17331_s1 + $0x38] sm:$0xff] }
 0x80d   :  { %v1216_v11 = vpop.f32.mrf.mxu0 }
 0x80e   :  { %v1248_v36 = vpack.c.bf16 %v1216_v11, %v1213_v30 }
 0x80f   :  { %v9957_v39 = vpop.f32.mrf.mxu0 }
 0x810   :  { %9969 = vmatprep.mubr.msk.bf16.mxu0 %vm366_vm2, %v1248_v36 }
 0x811   :  { %v1229_v37 = vpop.f32.mrf.mxu0  ;;  %9970 = vmatmul.mubr.msk.bf16.gmra.mxu0 %vm366_vm2, %v1249_v20  ;;  %v12990_v20 = vld [vmem:[%s17331_s1 + $0x20] sm:$0xff] }
 0x813   :  { %v9958_v26 = vpop.f32.mrf.mxu0 }
 0x814   :  { %v1251_v7 = vpack.c.bf16 %v9958_v26, %v9957_v39  ;;  %v12999_v26 = vld [vmem:[%s17331_s1 + $0x28] sm:$0xff] }
 0x815   :  { %v1232_v8 = vpop.f32.mrf.mxu0 }
 0x816   :  { %v1250_v25 = vpack.c.bf16 %v1232_v8, %v1229_v37 }
 0x818   :  { %9973 = vmatprep.mubr.msk.bf16.mxu0 %vm366_vm2, %v1250_v25 }
 0x819   :  { %9974 = vmatmul.mubr.msk.bf16.gmra.mxu0 %vm366_vm2, %v1251_v7  ;;  %v13008_v7 = vld [vmem:[%s17331_s1 + $0x50] sm:$0xff] }
 0x81a   :  { %10011 = vmatprep.mubr.msk.bf16.mxu0 %vm366_vm2, %v12758_v22  ;;  %v2170_v22 = vsel %vm366_vm2, %v12776_v24, 0 }
 0x821   :  { %10012 = vmatmul.mubr.msk.bf16.vlgmr.msra.gmra.mxu0 %vm366_vm2, %v12756_v47  ;;  %v2173_v47 = vsel %vm366_vm2, %v12778_v16, 0 }
 0x822   :  { %10078 = vmatpush3.bf16.xpose.msra.mxu0 %v2179_v38  ;;  %10015 = vmatprep.mubr.msk.bf16.mxu0 %vm366_vm2, %v12762_v34  ;;  %v2164_v34 = vsel %vm366_vm2, %v12780_v17, 0 }
 0x823   :  { %10899 = vmatprep.subr.msk.bf16.mxu0 %vm366_vm2, %v12772_v54 }
 0x829   :  { %10016 = vmatmul.mubr.msk.bf16.gmra.mxu0 %vm366_vm2, %v12760_v15  ;;  %v2167_v15 = vsel %vm366_vm2, %v12782_v29, 0 }
 0x82a   :  { %10080 = vmatpush3.bf16.xpose.msra.mxu0 %v2176_v10  ;;  %10019 = vmatprep.mubr.msk.bf16.mxu0 %vm366_vm2, %v12766_v49  ;;  %v2158_v49 = vsel %vm366_vm2, %v12784_v59, 0 }
 0x82b   :  { %10900 = vmatprep.subr.msk.bf16.mxu0 %vm366_vm2, %v12778_v16 }
 0x831   :  { %10020 = vmatmul.mubr.msk.bf16.gmra.mxu0 %vm366_vm2, %v12764_v40  ;;  %v2161_v40 = vsel %vm366_vm2, %v12786_v12, 0 }
 0x832   :  { %10082 = vmatpush3.bf16.xpose.msra.mxu0 %v2173_v47  ;;  %10023 = vmatprep.mubr.msk.bf16.mxu0 %vm366_vm2, %v12770_v19  ;;  %v13017_v47 = vld [vmem:[%s17331_s1 + $0x58] sm:$0xff] }
 0x833   :  { %10901 = vmatprep.subr.msk.bf16.mxu0 %vm366_vm2, %v12776_v24 }
 0x839   :  { %10024 = vmatmul.mubr.msk.bf16.gmra.mxu0 %vm366_vm2, %v12768_v6 }
 0x83a   :  { %10084 = vmatpush3.bf16.xpose.msra.mxu0 %v2170_v22  ;;  %10093 = vmatprep.mubr.msk.bf16.mxu0 %vm366_vm2, %v12790_v18 }
 0x83b   :  { %10902 = vmatprep.subr.msk.bf16.mxu0 %vm366_vm2, %v12782_v29 }
 0x842   :  { %10086 = vmatpush3.bf16.xpose.msra.mxu0 %v2167_v15 }
 0x843   :  { %10903 = vmatprep.subr.msk.bf16.mxu0 %vm366_vm2, %v12780_v17 }
 0x84a   :  { %10088 = vmatpush3.bf16.xpose.msra.mxu0 %v2164_v34  ;;  %v13026_v34 = vld [vmem:[%s17331_s1 + $0x40] sm:$0xff] }
 0x84b   :  { %10904 = vmatprep.subr.msk.bf16.mxu0 %vm366_vm2, %v12786_v12 }
 0x852   :  { %10090 = vmatpush3.bf16.xpose.msra.mxu0 %v2161_v40 }
 0x853   :  { %10905 = vmatprep.subr.msk.bf16.mxu0 %vm366_vm2, %v12784_v59 }
 0x85a   :  { %10092 = vmatpush3.bf16.xpose.msra.mxu0 %v2158_v49 }
 0x861   :  { %10094 = vmatmul.mubr.msk.bf16.vlgmr.msra.gmra.mxu0 %vm366_vm2, %v12788_v31 }
 0x862   :  { %10097 = vmatprep.mubr.msk.bf16.mxu0 %vm366_vm2, %v12794_v32 }
 0x869   :  { %10098 = vmatmul.mubr.msk.bf16.gmra.mxu0 %vm366_vm2, %v12792_v28 }
 0x86a   :  { %10101 = vmatprep.mubr.msk.bf16.mxu0 %vm366_vm2, %v12798_v63 }
 0x871   :  { %10102 = vmatmul.mubr.msk.bf16.gmra.mxu0 %vm366_vm2, %v12796_v46 }
 0x872   :  { %10105 = vmatprep.mubr.msk.bf16.mxu0 %vm366_vm2, %v12802_v35  ;;  %v12937_v35 = vld [vmem:[%s17331_s1 + $0x10] sm:$0xff] }
 0x879   :  { %10106 = vmatmul.mubr.msk.bf16.gmra.mxu0 %vm366_vm2, %v12800_v21 }
 0x891   :  { %v12902_v6 = vpop.f32.mrf.mxu0 }
 0x892   :  { %17415 = vst [vmem:[#allocation16_spill] sm:$0xff] %v12902_v6 }
 0x893   :  { %v12904_v19 = vpop.f32.mrf.mxu0 }
 0x894   :  { %17416 = vst [vmem:[#allocation17_spill] sm:$0xff] %v12904_v19 }
 0x895   :  { %v12906_v54 = vpop.f32.mrf.mxu0 }
 0x896   :  { %17417 = vst [vmem:[#allocation18_spill] sm:$0xff] %v12906_v54 }
 0x897   :  { %v12908_v13 = vpop.f32.mrf.mxu0 }
 0x898   :  { %17418 = vst [vmem:[#allocation19_spill] sm:$0xff] %v12908_v13 }
 0x8c9   :  { %v12910_v24 = vpop.f32.mrf.mxu0 }
 0x8ca   :  { %17419 = vst [vmem:[#allocation20_spill] sm:$0xff] %v12910_v24 }
 0x8cb   :  { %v12912_v16 = vpop.f32.mrf.mxu0 }
 0x8cc   :  { %17420 = vst [vmem:[#allocation21_spill] sm:$0xff] %v12912_v16 }
 0x8cd   :  { %v12914_v17 = vpop.f32.mrf.mxu0 }
 0x8ce   :  { %17421 = vst [vmem:[#allocation22_spill] sm:$0xff] %v12914_v17 }
 0x8cf   :  { %v12916_v29 = vpop.f32.mrf.mxu0 }
 0x8d0   :  { %17422 = vst [vmem:[#allocation23_spill] sm:$0xff] %v12916_v29 }
 0x8d1   :  { %v12918_v59 = vpop.f32.mrf.mxu0 }
 0x8d2   :  { %17423 = vst [vmem:[#allocation24_spill] sm:$0xff] %v12918_v59 }
 0x8d3   :  { %v12920_v12 = vpop.f32.mrf.mxu0 }
 0x8d4   :  { %17424 = vst [vmem:[#allocation25_spill] sm:$0xff] %v12920_v12 }
 0x8d5   :  { %v12922_v31 = vpop.f32.mrf.mxu0 }
 0x8d6   :  { %17425 = vst [vmem:[#allocation26_spill] sm:$0xff] %v12922_v31 }
 0x8d7   :  { %v12924_v18 = vpop.f32.mrf.mxu0 }
 0x8d8   :  { %17426 = vst [vmem:[#allocation27_spill] sm:$0xff] %v12924_v18 }
 0x8d9   :  { %v12926_v28 = vpop.f32.mrf.mxu0 }
 0x8da   :  { %17427 = vst [vmem:[#allocation28_spill] sm:$0xff] %v12926_v28 }
 0x8db   :  { %v12928_v32 = vpop.f32.mrf.mxu0 }
 0x8dc   :  { %17428 = vst [vmem:[#allocation29_spill] sm:$0xff] %v12928_v32 }
 0x8dd   :  { %v12930_v46 = vpop.f32.mrf.mxu0 }
 0x8de   :  { %17429 = vst [vmem:[#allocation30_spill] sm:$0xff] %v12930_v46 }
 0x8df   :  { %v12932_v63 = vpop.f32.mrf.mxu0 }
 0x8e0   :  { %17430 = vst [vmem:[#allocation31_spill] sm:$0xff] %v12932_v63 }
 0x8e1   :  { %v10013_v21 = vpop.f32.mrf.mxu0 }
 0x8e2   :  { %v12940_v27 = vadd.f32 %v12937_v35, %v10013_v21  ;;  %v13035_v21 = vld [vmem:[%s17331_s1 + $0x48] sm:$0xff] }
 0x8e3   :  { %v1616_v61 = vpop.f32.mrf.mxu0 }
 0x8e4   :  { %v12948_v4 = vadd.f32 %v12945_v55, %v1616_v61  ;;  %1683 = vmax.xlane.f32.xlu0 %v12940_v27 }
 0x8e5   :  { %v10014_v48 = vpop.f32.mrf.mxu0 }
 0x8e6   :  { %1679 = vmax.xlane.f32.xlu1 %v12948_v4  ;;  %v12958_v14 = vadd.f32 %v12955_v9, %v10014_v48  ;;  %v13044_v48 = vld [vmem:[%s17331_s1 + $0x70] sm:$0xff] }
 0x8e7   :  { %v1619_v58 = vpop.f32.mrf.mxu0 }
 0x8e8   :  { %v12966_v51 = vadd.f32 %v12963_v62, %v1619_v58 }
 0x8e9   :  { %v10017_v57 = vpop.f32.mrf.mxu0 }
 0x8ea   :  { %1681 = vmax.xlane.f32.xlu0 %v12966_v51  ;;  %1685 = vmax.xlane.f32.xlu1 %v12958_v14  ;;  %v12976_v30 = vadd.f32 %v12973_v0, %v10017_v57 }
 0x8eb   :  { %v1632_v2 = vpop.f32.mrf.mxu0 }
 0x8ec   :  { %v12993_v39 = vadd.f32 %v12990_v20, %v1632_v2  ;;  %v13054_v2 = vld [vmem:[%s17331_s1 + $0x60] sm:$0xff] }
 0x8ed   :  { %v10018_v50 = vpop.f32.mrf.mxu0 }
 0x8ee   :  { %v12984_v11 = vadd.f32 %v12981_v1, %v10018_v50  ;;  %1691 = vmax.xlane.f32.xlu0 %v12976_v30 }
 0x8ef   :  { %v1635_v36 = vpop.f32.mrf.mxu0 }
 0x8f0   :  { %1693 = vmax.xlane.f32.xlu1 %v12984_v11  ;;  %v13002_v8 = vadd.f32 %v12999_v26, %v1635_v36 }
 0x8f1   :  { %v10021_v37 = vpop.f32.mrf.mxu0 }
 0x8f2   :  { %1687 = vmax.xlane.f32.xlu0 %v12993_v39  ;;  %v13011_v38 = vadd.f32 %v13008_v7, %v10021_v37  ;;  %v13071_v37 = vld [vmem:[%s17331_s1 + $0x78] sm:$0xff] }
 0x8f3   :  { %v1648_v25 = vpop.f32.mrf.mxu0 }
 0x8f4   :  { %1689 = vmax.xlane.f32.xlu1 %v13002_v8  ;;  %v13029_v40 = vadd.f32 %v13026_v34, %v1648_v25 }
 0x8f5   :  { %v10022_v10 = vpop.f32.mrf.mxu0 }
 0x8f6   :  { %v13020_v22 = vadd.f32 %v13017_v47, %v10022_v10  ;;  %1699 = vmax.xlane.f32.xlu0 %v13011_v38 }
 0x8f7   :  { %v1651_v15 = vpop.f32.mrf.mxu0 }
 0x8f8   :  { %1701 = vmax.xlane.f32.xlu1 %v13020_v22  ;;  %v13038_v61 = vadd.f32 %v13035_v21, %v1651_v15  ;;  %v13080_v15 = vld [vmem:[%s17331_s1 + $0x68] sm:$0xff] }
 0x8f9   :  { %v10025_v49 = vpop.f32.mrf.mxu0 }
 0x8fa   :  { %1695 = vmax.xlane.f32.xlu0 %v13029_v40  ;;  %v13047_v58 = vadd.f32 %v13044_v48, %v10025_v49 }
 0x8fb   :  { %v1664_v57 = vpop.f32.mrf.mxu0 }
 0x8fc   :  { %1697 = vmax.xlane.f32.xlu1 %v13038_v61  ;;  %v13057_v50 = vadd.f32 %v13054_v2, %v1664_v57 }
 0x8fd   :  { %v10026_v36 = vpop.f32.mrf.mxu0 }
 0x8fe   :  { %1707 = vmax.xlane.f32.xlu0 %v13047_v58  ;;  %v13074_v25 = vadd.f32 %v13071_v37, %v10026_v36 }
 0x8ff   :  { %v1667_v10 = vpop.f32.mrf.mxu0 }
 0x900   :  { %v13083_v49 = vadd.f32 %v13080_v15, %v1667_v10 }
 0x902   :  { %1703 = vmax.xlane.f32.xlu0 %v13057_v50 }
 0x90d   :  { %1837 = vrot.lane.b32.xlu1 %v12166_v3, %s11970_s29 }
 0x918   :  { %1841 = vrot.lane.b32.xlu0 %v12144_v33, %s11970_s29 }
 0x91c   :  { %1839 = vrot.lane.b32.xlu0 %v12148_v42, %s11970_s29 }
 0x920   :  { %1833 = vrot.lane.b32.xlu0 %v12172_v5, %s11970_s29 }
 0x931   :  { %1709 = vmax.xlane.f32.xlu1 %v13074_v25 }
 0x935   :  { %1705 = vmax.xlane.f32.xlu1 %v13083_v49 }
 0x946   :  { %1835 = vrot.lane.b32.xlu1 %v12152_v52, %s11970_s29 }
 0x96d   :  { %v1684_v57 = vpop.xlane.xlu0 %1683 }
 0x96e   :  { %v1713_v36 = vsub.f32 %v12940_v27, %v1684_v57 }
 0x96f   :  { %v1680_v63 = vpop.xlane.xlu1 %1679 }
 0x970   :  { %v1731_v18 = vmul.f32 1.442695, %v1713_v36  ;;  %v1711_v29 = vsub.f32 %v12948_v4, %v1680_v63 }
 0x972   :  { %11120 = vpow2.f32 %v1731_v18  ;;  %v1727_v13 = vmul.f32 1.442695, %v1711_v29 }
 0x973   :  { %v1686_v46 = vpop.xlane.xlu1 %1685  ;;  %v1682_v32 = vpop.xlane.xlu0 %1681 }
 0x974   :  { %v1714_v28 = vsub.f32 %v12958_v14, %v1686_v46  ;;  %11122 = vpow2.f32 %v1727_v13  ;;  %v1712_v31 = vsub.f32 %v12966_v51, %v1682_v32 }
 0x976   :  { %v1733_v10 = vmul.f32 1.442695, %v1714_v28  ;;  %v1729_v27 = vmul.f32 1.442695, %v1712_v31 }
 0x977   :  { %v1692_v12 = vpop.xlane.xlu0 %1691 }
 0x978   :  { %v1717_v59 = vsub.f32 %v12976_v30, %v1692_v12  ;;  %11124 = vpow2.f32 %v1733_v10 }
 0x979   :  { %v1694_v17 = vpop.xlane.xlu1 %1693 }
 0x97a   :  { %v1739_v57 = vmul.f32 1.442695, %v1717_v59  ;;  %v1718_v18 = vsub.f32 %v12984_v11, %v1694_v17 }
 0x97b   :  { %v1688_v36 = vpop.xlane.xlu0 %1687 }
 0x97c   :  { %11126 = vpow2.f32 %v1739_v57  ;;  %v1715_v29 = vsub.f32 %v12993_v39, %v1688_v36  ;;  %v1741_v4 = vmul.f32 1.442695, %v1718_v18 }
 0x97d   :  { %v1690_v63 = vpop.xlane.xlu1 %1689  ;;  %11128 = vpow2.f32 %v1729_v27 }
 0x97e   :  { %v1735_v46 = vmul.f32 1.442695, %v1715_v29  ;;  %v1716_v13 = vsub.f32 %v13002_v8, %v1690_v63 }
 0x97f   :  { %v13096_v28 = vpop.eup %11120  ;;  %v1700_v32 = vpop.xlane.xlu0 %1699 }
 0x980   :  { %11130 = vpow2.f32 %v1735_v46  ;;  %v1737_v12 = vmul.f32 1.442695, %v1716_v13  ;;  %v1721_v31 = vsub.f32 %v13011_v38, %v1700_v32  ;;  %1763 = vadd.xlane.f32.xlu1 %v13096_v28 }
 0x981   :  { %v1702_v59 = vpop.xlane.xlu1 %1701  ;;  %v13100_v17 = vpop.eup %11122 }
 0x982   :  { %11132 = vpow2.f32 %v1737_v12  ;;  %v1747_v51 = vmul.f32 1.442695, %v1721_v31  ;;  %v1722_v38 = vsub.f32 %v13020_v22, %v1702_v59 }
 0x983   :  { %v1696_v14 = vpop.xlane.xlu0 %1695  ;;  %11134 = vpow2.f32 %v1741_v4 }
 0x984   :  { %v1719_v30 = vsub.f32 %v13029_v40, %v1696_v14  ;;  %1759 = vadd.xlane.f32.xlu1 %v13100_v17  ;;  %11136 = vpow2.f32 %v1747_v51  ;;  %v1749_v63 = vmul.f32 1.442695, %v1722_v38 }
 0x985   :  { %v1698_v11 = vpop.xlane.xlu1 %1697  ;;  %v13105_v8 = vpop.eup %11124 }
 0x986   :  { %v1720_v39 = vsub.f32 %v13038_v61, %v1698_v11  ;;  %v1743_v27 = vmul.f32 1.442695, %v1719_v30 }
 0x987   :  { %v1708_v10 = vpop.xlane.xlu0 %1707 }
 0x988   :  { %v1745_v57 = vmul.f32 1.442695, %v1720_v39  ;;  %v1725_v36 = vsub.f32 %v13047_v58, %v1708_v10  ;;  %1765 = vadd.xlane.f32.xlu1 %v13105_v8  ;;  %v10095_v39 = vpop.f32.mrf.mxu0 }
 0x989   :  { %v13110_v18 = vpop.eup %11126  ;;  %v1838_v31 = vpop.permute.xlu1 %1837 }
 0x98a   :  { %11138 = vpow2.f32 %v1745_v57  ;;  %v1755_v40 = vmul.f32 1.442695, %v1725_v36  ;;  %1771 = vadd.xlane.f32.xlu0 %v13110_v18  ;;  %v13113_v29 = vpop.eup %11128  ;;  %v2215_v38 = vpop.f32.mrf.mxu0 }
 0x98b   :  { %v1704_v61 = vpop.xlane.xlu0 %1703  ;;  %11140 = vpow2.f32 %v1743_v27 }
 0x98c   :  { %v1723_v22 = vsub.f32 %v13057_v50, %v1704_v61  ;;  %1761 = vadd.xlane.f32.xlu1 %v13113_v29  ;;  %11142 = vpow2.f32 %v1755_v40  ;;  %v10096_v10 = vpop.f32.mrf.mxu0 }
 0x98d   :  { %v13117_v46 = vpop.eup %11130  ;;  %11144 = vpow2.f32 %v1749_v63 }
 0x98e   :  { %v1751_v58 = vmul.f32 1.442695, %v1723_v22  ;;  %1767 = vadd.xlane.f32.xlu0 %v13117_v46  ;;  %v2218_v27 = vpop.f32.mrf.mxu0 }
 0x98f   :  { %v13120_v13 = vpop.eup %11132  ;;  %v1842_v32 = vpop.permute.xlu0 %1841 }
 0x990   :  { %1769 = vadd.xlane.f32.xlu1 %v13120_v13  ;;  %10031 = vmatprep.subr.bf16.mxu1 %v1842_v32  ;;  %v13123_v4 = vpop.eup %11134  ;;  %11146 = vpow2.f32 %v1751_v58  ;;  %v10099_v57 = vpop.f32.mrf.mxu0 }
 0x991   :  { %10032 = vmatpush3.bf16.msra.mxu1 %v1842_v32  ;;  %v13126_v12 = vpop.eup %11136 }
 0x992   :  { %1773 = vadd.xlane.f32.xlu0 %v13123_v4  ;;  %v2231_v36 = vpop.f32.mrf.mxu0 }
 0x993   :  { %v1840_v50 = vpop.permute.xlu0 %1839 }
 0x994   :  { %10033 = vmatprep.subr.bf16.mxu1 %v1840_v50  ;;  %v10100_v61 = vpop.f32.mrf.mxu0 }
 0x995   :  { %10034 = vmatpush3.bf16.msra.mxu1 %v1840_v50 }
 0x996   :  { %1779 = vadd.xlane.f32.xlu0 %v13126_v12  ;;  %10035 = vmatprep.subr.bf16.mxu1 %v1838_v31  ;;  %v2234_v32 = vpop.f32.mrf.mxu0 }
 0x997   :  { %v13129_v59 = vpop.eup %11138  ;;  %v1834_v54 = vpop.permute.xlu0 %1833 }
 0x998   :  { %1777 = vadd.xlane.f32.xlu1 %v13129_v59  ;;  %v13132_v14 = vpop.eup %11140  ;;  %v10103_v24 = vpop.f32.mrf.mxu0 }
 0x999   :  { %10036 = vmatpush3.bf16.msra.mxu1 %v1838_v31  ;;  %v13135_v51 = vpop.eup %11142 }
 0x99a   :  { %1775 = vadd.xlane.f32.xlu0 %v13132_v14  ;;  %v13138_v30 = vpop.eup %11144  ;;  %v2247_v19 = vpop.f32.mrf.mxu0 }
 0x99c   :  { %1787 = vadd.xlane.f32.xlu1 %v13135_v51  ;;  %v10104_v6 = vpop.f32.mrf.mxu0 }
 0x99d   :  { %v13141_v11 = vpop.eup %11146 }
 0x99e   :  { %1781 = vadd.xlane.f32.xlu0 %v13138_v30 }
 0x9a0   :  { %1783 = vadd.xlane.f32.xlu1 %v13141_v11 }
 0x9b1   :  { %1831 = vrot.lane.b32.xlu1 %v12140_v23, %s11970_s29  ;;  %v2250_v23 = vpop.f32.mrf.mxu0 }
 0x9ba   :  { %v1710_v40 = vpop.xlane.xlu1 %1709 }
 0x9bb   :  { %v1726_v22 = vsub.f32 %v13074_v25, %v1710_v40  ;;  %v13152_v25 = vadd.f32 %v12990_v20, %v2231_v36  ;;  %v10107_v40 = vpop.f32.mrf.mxu0  ;;  %v13167_v20 = vadd.f32 %v12963_v62, %v2218_v27  ;;  %v13171_v36 = vadd.f32 %v12937_v35, %v10095_v39 }
 0x9bc   :  { %v13185_v62 = vadd.f32 %v12973_v0, %v10099_v57  ;;  %v13191_v35 = vadd.f32 %v12981_v1, %v10100_v61 }
 0x9bd   :  { %v1757_v16 = vmul.f32 1.442695, %v1726_v22  ;;  %v2263_v0 = vpop.f32.mrf.mxu0 }
 0x9be   :  { %v1706_v63 = vpop.xlane.xlu1 %1705  ;;  %v13215_v1 = vadd.f32 %v13054_v2, %v2263_v0 }
 0x9bf   :  { %v1724_v58 = vsub.f32 %v13083_v49, %v1706_v63 }
 0x9c1   :  { %v1753_v50 = vmul.f32 1.442695, %v1724_v58 }
 0x9c2   :  { %v1836_v31 = vpop.permute.xlu1 %1835 }
 0x9c3   :  { %11148 = vpow2.f32 %v1753_v50  ;;  %10037 = vmatprep.subr.bf16.mxu1 %v1836_v31 }
 0x9c4   :  { %10038 = vmatpush3.bf16.msra.mxu1 %v1836_v31  ;;  %11150 = vpow2.f32 %v1757_v16  ;;  %v13159_v16 = vadd.f32 %v12945_v55, %v2215_v38  ;;  %v13175_v55 = vadd.f32 %v12955_v9, %v10096_v10  ;;  %v13197_v9 = vadd.f32 %v13026_v34, %v2247_v19  ;;  %v10108_v19 = vpop.f32.mrf.mxu0 }
 0x9c5   :  { %10039 = vmatprep.subr.bf16.mxu1 %v1834_v54 }
 0x9c8   :  { %10040 = vmatpush3.bf16.msra.mxu1 %v1834_v54  ;;  %v13162_v54 = vadd.f32 %v13044_v48, %v10107_v40  ;;  %v13179_v48 = vadd.f32 %v12999_v26, %v2234_v32  ;;  %v13223_v26 = vadd.f32 %v13071_v37, %v10108_v19 }
 0x9d0   :  { %v13148_v53 = vpop.eup %11148 }
 0x9d1   :  { %1785 = vadd.xlane.f32.xlu0 %v13148_v53  ;;  %v13154_v49 = vpop.eup %11150 }
 0x9d5   :  { %1789 = vadd.xlane.f32.xlu0 %v13154_v49  ;;  %2286 = vmax.xlane.f32.xlu1 %v13152_v25 }
 0x9d9   :  { %2278 = vmax.xlane.f32.xlu0 %v13159_v16  ;;  %2306 = vmax.xlane.f32.xlu1 %v13162_v54 }
 0x9dd   :  { %2280 = vmax.xlane.f32.xlu0 %v13167_v20 }
 0x9e1   :  { %2282 = vmax.xlane.f32.xlu0 %v13171_v36 }
 0x9e5   :  { %2284 = vmax.xlane.f32.xlu0 %v13175_v55 }
 0x9e9   :  { %2288 = vmax.xlane.f32.xlu0 %v13179_v48 }
 0x9ea   :  { %2444 = vrot.lane.b32.xlu1 %v12154_v56, %s11971_s27  ;;  %v13203_v56 = vadd.f32 %v13035_v21, %v2250_v23 }
 0x9ed   :  { %2290 = vmax.xlane.f32.xlu0 %v13185_v62 }
 0x9ee   :  { %2440 = vrot.lane.b32.xlu1 %v12144_v33, %s11971_s27  ;;  %v13207_v33 = vadd.f32 %v13008_v7, %v10103_v24 }
 0x9f1   :  { %2292 = vmax.xlane.f32.xlu0 %v13191_v35 }
 0x9f2   :  { %2438 = vrot.lane.b32.xlu1 %v12148_v42, %s11971_s27  ;;  %v13211_v42 = vadd.f32 %v13017_v47, %v10104_v6 }
 0x9f5   :  { %2294 = vmax.xlane.f32.xlu0 %v13197_v9 }
 0x9f6   :  { %2432 = vrot.lane.b32.xlu1 %v12172_v5, %s11971_s27  ;;  %v2266_v5 = vpop.f32.mrf.mxu0 }
 0x9f7   :  { %v13219_v23 = vadd.f32 %v13080_v15, %v2266_v5 }
 0x9f9   :  { %2296 = vmax.xlane.f32.xlu0 %v13203_v56 }
 0x9fd   :  { %2298 = vmax.xlane.f32.xlu0 %v13207_v33 }
 0xa01   :  { %2300 = vmax.xlane.f32.xlu0 %v13211_v42 }
 0xa05   :  { %2302 = vmax.xlane.f32.xlu0 %v13215_v1 }
 0xa09   :  { %v1764_v24 = vpop.xlane.xlu1 %1763  ;;  %2304 = vmax.xlane.f32.xlu0 %v13219_v23 }
 0xa0d   :  { %v1760_v6 = vpop.xlane.xlu1 %1759  ;;  %2308 = vmax.xlane.f32.xlu0 %v13223_v26 }
 0xa0e   :  { %11152 = vrcp.f32 %v1760_v6 }
 0xa11   :  { %v1766_v7 = vpop.xlane.xlu1 %1765 }
 0xa13   :  { %v1772_v47 = vpop.xlane.xlu0 %1771 }
 0xa15   :  { %v1762_v34 = vpop.xlane.xlu1 %1761 }
 0xa16   :  { %11154 = vrcp.f32 %v1762_v34 }
 0xa17   :  { %v1768_v21 = vpop.xlane.xlu0 %1767  ;;  %11156 = vrcp.f32 %v1766_v7 }
 0xa19   :  { %v1770_v2 = vpop.xlane.xlu1 %1769 }
 0xa1a   :  { %11158 = vrcp.f32 %v1770_v2 }
 0xa1b   :  { %v1774_v39 = vpop.xlane.xlu0 %1773  ;;  %11160 = vrcp.f32 %v1764_v24  ;;  %v11153_v38 = vpop.eup %11152 }
 0xa1c   :  { %11162 = vrcp.f32 %v1768_v21  ;;  %v1807_v57 = vmul.f32 %v11153_v38, %v13100_v17 }
 0xa1d   :  { %11164 = vrcp.f32 %v1774_v39 }
 0xa1f   :  { %v1780_v15 = vpop.xlane.xlu0 %1779 }
 0xa21   :  { %v1778_v10 = vpop.xlane.xlu1 %1777 }
 0xa23   :  { %v11155_v37 = vpop.eup %11154  ;;  %2442 = vrot.lane.b32.xlu0 %v12160_v60, %s11971_s27  ;;  %v1776_v27 = vpop.xlane.xlu0 %1775  ;;  %v180_v60 = vld [vmem:[%s17328_s2 + $0x60] sm:$0xff] }
 0xa24   :  { %v1808_v61 = vmul.f32 %v11155_v37, %v13113_v29  ;;  %11166 = vrcp.f32 %v1776_v27  ;;  %v11157_v58 = vpop.eup %11156  ;;  %v1960_v0 = vpack.c.bf16 %v180_v60, %v180_v60 }
 0xa25   :  { %v1788_v63 = vpop.xlane.xlu1 %1787  ;;  %11168 = vrcp.f32 %v1772_v47  ;;  %v1810_v40 = vmul.f32 %v11157_v58, %v13105_v8 }
 0xa26   :  { %v1823_v22 = vpack.c.bf16 %v1808_v61, %v1807_v57  ;;  %11170 = vrcp.f32 %v1778_v10 }
 0xa27   :  { %2436 = vrot.lane.b32.xlu0 %v12166_v3, %s11971_s27  ;;  %v1782_v32 = vpop.xlane.xlu0 %1781  ;;  %v11159_v31 = vpop.eup %11158 }
 0xa28   :  { %10043 = vmatprep.mubr.bf16.mxu1 %v1823_v22  ;;  %v11161_v17 = vpop.eup %11160  ;;  %11172 = vrcp.f32 %v1782_v32  ;;  %v1812_v3 = vmul.f32 %v11159_v31, %v13120_v13 }
 0xa29   :  { %v1784_v50 = vpop.xlane.xlu1 %1783  ;;  %v11163_v29 = vpop.eup %11162  ;;  %11174 = vrcp.f32 %v1780_v15  ;;  %v1809_v5 = vmul.f32 %v11161_v17, %v13096_v28 }
 0xa2a   :  { %v1811_v24 = vmul.f32 %v11163_v29, %v13117_v46  ;;  %v11165_v7 = vpop.eup %11164  ;;  %11176 = vrcp.f32 %v1784_v50 }
 0xa2b   :  { %2434 = vrot.lane.b32.xlu0 %v12152_v52, %s11971_s27  ;;  %v1824_v6 = vpack.c.bf16 %v1810_v40, %v1809_v5  ;;  %v1986_v52 = vsel %vm1277_vm3, %v1960_v0, 0  ;;  %v1814_v21 = vmul.f32 %v11165_v7, %v13123_v4 }
 0xa2c   :  { %v1825_v47 = vpack.c.bf16 %v1812_v3, %v1811_v24 }
 0xa2d   :  { %v1832_v19 = vpop.permute.xlu1 %1831 }
 0xa2e   :  { %10041 = vmatprep.subr.bf16.mxu1 %v1832_v19 }
 0xa2f   :  { %10042 = vmatpush3.bf16.msra.mxu1 %v1832_v19 }
 0xa30   :  { %10897 = vmatprep.subr.msk.bf16.mxu1 %vm1277_vm3, %v1960_v0 }
 0xa31   :  { %v11167_v34 = vpop.eup %11166 }
 0xa32   :  { %10044 = vmatmul.mubr.bf16.vlgmr.msra.gmra.mxu1 %v1824_v6  ;;  %v11169_v8 = vpop.eup %11168  ;;  %v1815_v28 = vmul.f32 %v11167_v34, %v13132_v14 }
 0xa33   :  { %10047 = vmatprep.mubr.bf16.mxu1 %v1825_v47  ;;  %10060 = vmatpush3.bf16.msra.mxu1 %v1986_v52  ;;  %v11171_v13 = vpop.eup %11170  ;;  %v1813_v2 = vmul.f32 %v11169_v8, %v13110_v18 }
 0xa34   :  { %v1816_v46 = vmul.f32 %v11171_v13, %v13129_v59 }
 0xa35   :  { %v1826_v39 = vpack.c.bf16 %v1814_v21, %v1813_v2  ;;  %v11173_v15 = vpop.eup %11172 }
 0xa36   :  { %v1827_v38 = vpack.c.bf16 %v1816_v46, %v1815_v28  ;;  %v11175_v10 = vpop.eup %11174  ;;  %v1818_v37 = vmul.f32 %v11173_v15, %v13138_v30 }
 0xa37   :  { %v1817_v27 = vmul.f32 %v11175_v10, %v13126_v12  ;;  %v11177_v22 = vpop.eup %11176 }
 0xa38   :  { %v1819_v12 = vmul.f32 %v11177_v22, %v13141_v11 }
 0xa39   :  { %v1828_v57 = vpack.c.bf16 %v1818_v37, %v1817_v27 }
 0xa3a   :  { %10048 = vmatmul.mubr.bf16.gmra.mxu1 %v1826_v39 }
 0xa3b   :  { %10051 = vmatprep.mubr.bf16.mxu1 %v1827_v38 }
 0xa42   :  { %10052 = vmatmul.mubr.bf16.gmra.mxu1 %v1828_v57 }
 0xa5a   :  { %v1786_v4 = vpop.xlane.xlu0 %1785 }
 0xa5b   :  { %11178 = vrcp.f32 %v1786_v4 }
 0xa5c   :  { %11180 = vrcp.f32 %v1788_v63 }
 0xa5e   :  { %v2287_v14 = vpop.xlane.xlu1 %2286  ;;  %v1790_v18 = vpop.xlane.xlu0 %1789 }
 0xa5f   :  { %11182 = vrcp.f32 %v1790_v18  ;;  %v2314_v52 = vsub.f32 %v13152_v25, %v2287_v14 }
 0xa61   :  { %v2334_v8 = vmul.f32 1.442695, %v2314_v52  ;;  %v17433_v52 = vld [vmem:[#allocation5_spill] sm:$0xff] }
 0xa62   :  { %v2307_v59 = vpop.xlane.xlu1 %2306  ;;  %v2279_v61 = vpop.xlane.xlu0 %2278 }
 0xa63   :  { %v2310_v63 = vsub.f32 %v13159_v16, %v2279_v61 }
 0xa65   :  { %v2326_v24 = vmul.f32 1.442695, %v2310_v63 }
 0xa66   :  { %v13249_v58 = vpop.permute.xlu1 %2444  ;;  %v2281_v32 = vpop.xlane.xlu0 %2280 }
 0xa67   :  { %10109 = vmatprep.subr.bf16.mxu1 %v13249_v58  ;;  %v2311_v6 = vsub.f32 %v13167_v20, %v2281_v32 }
 0xa68   :  { %v11179_v30 = vpop.eup %11178 }
 0xa69   :  { %v1820_v60 = vmul.f32 %v11179_v30, %v13148_v53  ;;  %v11181_v50 = vpop.eup %11180  ;;  %v2328_v7 = vmul.f32 1.442695, %v2311_v6  ;;  %v17432_v6 = vld [vmem:[#allocation4_spill] sm:$0xff] }
 0xa6a   :  { %v2283_v31 = vpop.xlane.xlu0 %2282  ;;  %v1821_v19 = vmul.f32 %v11181_v50, %v13135_v51 }
 0xa6b   :  { %v2312_v17 = vsub.f32 %v13171_v36, %v2283_v31  ;;  %v1829_v29 = vpack.c.bf16 %v1820_v60, %v1819_v12 }
 0xa6c   :  { %v11183_v40 = vpop.eup %11182 }
 0xa6d   :  { %v2330_v0 = vmul.f32 1.442695, %v2312_v17  ;;  %10055 = vmatprep.mubr.bf16.mxu1 %v1829_v29  ;;  %v1822_v3 = vmul.f32 %v11183_v40, %v13154_v49 }
 0xa6e   :  { %v2285_v5 = vpop.xlane.xlu0 %2284 }
 0xa6f   :  { %11184 = vpow2.f32 %v2330_v0  ;;  %v2313_v11 = vsub.f32 %v13175_v55, %v2285_v5  ;;  %v1830_v53 = vpack.c.bf16 %v1822_v3, %v1821_v19  ;;  %v2985_v19 = vsel %vm212_vm1, %v12083_v43, 0.0 }
 0xa70   :  { %11186 = vpow2.f32 %v2326_v24  ;;  %v2988_v3 = vsel %vm212_vm1, %v12085_v44, 0.0  ;;  %v2991_v5 = vsel %vm212_vm1, %v12087_v45, 0.0  ;;  %v2994_v24 = vsel %vm212_vm1, %v12081_v41, 0.0 }
 0xa71   :  { %10056 = vmatmul.mubr.bf16.gmra.mxu1 %v1830_v53  ;;  %v2332_v36 = vmul.f32 1.442695, %v2313_v11  ;;  %v13328_v11 = vpop.f32.mrf.mxu1  ;;  %v17431_v53 = vld [vmem:[#allocation15_spill] sm:$0xff] }
 0xa72   :  { %v2289_v16 = vpop.xlane.xlu0 %2288 }
 0xa73   :  { %11188 = vpow2.f32 %v2332_v36  ;;  %v2315_v51 = vsub.f32 %v13179_v48, %v2289_v16  ;;  %v2324_v48 = vsub.f32 %v13162_v54, %v2307_v59  ;;  %v2997_v16 = vsel %vm212_vm1, %v17432_v6, 0.0  ;;  %v13334_v36 = vpop.f32.mrf.mxu1 }
 0xa74   :  { %11190 = vpow2.f32 %v2328_v7  ;;  %v3000_v7 = vsel %vm212_vm1, %v17433_v52, 0.0 }
 0xa75   :  { %v2336_v13 = vmul.f32 1.442695, %v2315_v51  ;;  %v2354_v15 = vmul.f32 1.442695, %v2324_v48  ;;  %v17434_v51 = vld [vmem:[#allocation3_spill] sm:$0xff] }
 0xa76   :  { %v2291_v47 = vpop.xlane.xlu0 %2290 }
 0xa77   :  { %v2316_v49 = vsub.f32 %v13185_v62, %v2291_v47  ;;  %v13338_v47 = vpop.f32.mrf.mxu1 }
 0xa79   :  { %v2338_v34 = vmul.f32 1.442695, %v2316_v49  ;;  %v3006_v49 = vsel %vm212_vm1, %v17434_v51, 0.0 }
 0xa7a   :  { %v2293_v55 = vpop.xlane.xlu0 %2292 }
 0xa7b   :  { %11192 = vpow2.f32 %v2338_v34  ;;  %v2317_v20 = vsub.f32 %v13191_v35, %v2293_v55  ;;  %v13342_v34 = vpop.f32.mrf.mxu1  ;;  %v17435_v55 = vld [vmem:[#allocation9_spill] sm:$0xff] }
 0xa7c   :  { %v13264_v21 = vpop.eup %11184  ;;  %11194 = vpow2.f32 %v2334_v8 }
 0xa7d   :  { %2362 = vadd.xlane.f32.xlu0 %v13264_v21  ;;  %11196 = vpow2.f32 %v2336_v13  ;;  %v2340_v28 = vmul.f32 1.442695, %v2317_v20  ;;  %v13267_v2 = vpop.eup %11186  ;;  %v13344_v8 = vpop.f32.mrf.mxu1  ;;  %v3012_v13 = vsel %vm212_vm1, %v17435_v55, 0.0 }
 0xa7e   :  { %v2295_v25 = vpop.xlane.xlu0 %2294 }
 0xa7f   :  { %11198 = vpow2.f32 %v2340_v28  ;;  %v2318_v37 = vsub.f32 %v13197_v9, %v2295_v25  ;;  %v13348_v20 = vpop.f32.mrf.mxu1  ;;  %v17436_v25 = vld [vmem:[#allocation7_spill] sm:$0xff] }
 0xa80   :  { %v13272_v39 = vpop.eup %11188  ;;  %v3018_v28 = vsel %vm212_vm1, %v17436_v25, 0.0 }
 0xa81   :  { %2358 = vadd.xlane.f32.xlu0 %v13267_v2  ;;  %v13275_v10 = vpop.eup %11190  ;;  %v2342_v14 = vmul.f32 1.442695, %v2318_v37  ;;  %v13352_v48 = vpop.f32.mrf.mxu1  ;;  %v17438_v37 = vld [vmem:[#allocation8_spill] sm:$0xff] }
 0xa82   :  { %v2297_v62 = vpop.xlane.xlu0 %2296 }
 0xa83   :  { %v2319_v46 = vsub.f32 %v13203_v56, %v2297_v62  ;;  %v13354_v62 = vpop.f32.mrf.mxu1 }
 0xa85   :  { %v2344_v35 = vmul.f32 1.442695, %v2319_v46  ;;  %2364 = vadd.xlane.f32.xlu0 %v13272_v39  ;;  %v13356_v46 = vpop.f32.mrf.mxu1 }
 0xa86   :  { %v2299_v38 = vpop.xlane.xlu0 %2298 }
 0xa87   :  { %11200 = vpow2.f32 %v2344_v35  ;;  %v2320_v27 = vsub.f32 %v13207_v33, %v2299_v38  ;;  %v17437_v35 = vld [vmem:[#allocation6_spill] sm:$0xff]  ;;  %v13360_v38 = vpop.f32.mrf.mxu1 }
 0xa88   :  { %v13279_v57 = vpop.eup %11192  ;;  %11202 = vpow2.f32 %v2354_v15  ;;  %v3003_v15 = vsel %vm212_vm1, %v17437_v35, 0.0 }
 0xa89   :  { %v2346_v54 = vmul.f32 1.442695, %v2320_v27  ;;  %2360 = vadd.xlane.f32.xlu0 %v13275_v10  ;;  %2370 = vadd.xlane.f32.xlu1 %v13279_v57  ;;  %v13283_v4 = vpop.eup %11194  ;;  %v3009_v27 = vsel %vm212_vm1, %v17438_v37, 0.0 }
 0xa8a   :  { %v2301_v56 = vpop.xlane.xlu0 %2300  ;;  %v13286_v59 = vpop.eup %11196 }
 0xa8b   :  { %11204 = vpow2.f32 %v2346_v54  ;;  %v2321_v18 = vsub.f32 %v13211_v42, %v2301_v56  ;;  %v13364_v54 = vpop.f32.mrf.mxu1  ;;  %v17439_v56 = vld [vmem:[#allocation10_spill] sm:$0xff] }
 0xa8c   :  { %11206 = vpow2.f32 %v2342_v14  ;;  %v13291_v22 = vpop.eup %11198  ;;  %v3015_v14 = vsel %vm212_vm1, %v17439_v56, 0.0 }
 0xa8d   :  { %2368 = vadd.xlane.f32.xlu0 %v13286_v59  ;;  %2366 = vadd.xlane.f32.xlu1 %v13283_v4  ;;  %v2348_v33 = vmul.f32 1.442695, %v2321_v18  ;;  %v13368_v18 = vpop.f32.mrf.mxu1 }
 0xa8e   :  { %v2303_v9 = vpop.xlane.xlu0 %2302 }
 0xa8f   :  { %v2322_v61 = vsub.f32 %v13215_v1, %v2303_v9  ;;  %11208 = vpow2.f32 %v2348_v33  ;;  %v13370_v9 = vpop.f32.mrf.mxu1 }
 0xa91   :  { %2372 = vadd.xlane.f32.xlu1 %v13291_v22  ;;  %v2350_v32 = vmul.f32 1.442695, %v2322_v61  ;;  %v13372_v33 = vpop.f32.mrf.mxu1 }
 0xa92   :  { %v2305_v30 = vpop.xlane.xlu0 %2304 }
 0xa93   :  { %v2323_v42 = vsub.f32 %v13219_v23, %v2305_v30  ;;  %11210 = vpow2.f32 %v2350_v32  ;;  %v13374_v61 = vpop.f32.mrf.mxu1 }
 0xa94   :  { %v13295_v12 = vpop.eup %11200 }
 0xa95   :  { %v2352_v60 = vmul.f32 1.442695, %v2323_v42  ;;  %2376 = vadd.xlane.f32.xlu0 %v13295_v12  ;;  %v13298_v31 = vpop.eup %11202  ;;  %v13376_v32 = vpop.f32.mrf.mxu1 }
 0xa96   :  { %v2309_v50 = vpop.xlane.xlu0 %2308  ;;  %17440 = vst [vmem:[#allocation15_spill] sm:$0xff] %v13376_v32 }
 0xa97   :  { %11212 = vpow2.f32 %v2352_v60  ;;  %v2325_v1 = vsub.f32 %v13223_v26, %v2309_v50 }
 0xa98   :  { %v13301_v63 = vpop.eup %11204 }
 0xa99   :  { %v2356_v17 = vmul.f32 1.442695, %v2325_v1  ;;  %2386 = vadd.xlane.f32.xlu0 %v13298_v31  ;;  %2378 = vadd.xlane.f32.xlu1 %v13301_v63  ;;  %v13305_v23 = vpop.eup %11206 }
 0xa9a   :  { %v2443_v50 = vpop.permute.xlu0 %2442 }
 0xa9b   :  { %11214 = vpow2.f32 %v2356_v17 }
 0xa9c   :  { %v13308_v29 = vpop.eup %11208 }
 0xa9d   :  { %2374 = vadd.xlane.f32.xlu1 %v13305_v23 }
 0xaa0   :  { %v13311_v40 = vpop.eup %11210 }
 0xaa1   :  { %2380 = vadd.xlane.f32.xlu1 %v13308_v29 }
 0xaa4   :  { %v13313_v0 = vpop.eup %11212 }
 0xaa5   :  { %2382 = vadd.xlane.f32.xlu1 %v13311_v40  ;;  %2384 = vadd.xlane.f32.xlu0 %v13313_v0 }
 0xaa8   :  { %v13317_v26 = vpop.eup %11214 }
 0xaa9   :  { %2388 = vadd.xlane.f32.xlu1 %v13317_v26 }
 0xaad   :  { %2986 = vadd.xlane.f32.xlu1 %v2985_v19 }
 0xab1   :  { %2989 = vadd.xlane.f32.xlu1 %v2988_v3 }
 0xab5   :  { %2992 = vadd.xlane.f32.xlu1 %v2991_v5 }
 0xab9   :  { %2995 = vadd.xlane.f32.xlu1 %v2994_v24  ;;  %v2437_v24 = vpop.permute.xlu0 %2436 }
 0xabb   :  { %2430 = vrot.lane.b32.xlu0 %v17431_v53, %s11971_s27 }
 0xabd   :  { %2998 = vadd.xlane.f32.xlu1 %v2997_v16  ;;  %v2441_v16 = vpop.permute.xlu1 %2440 }
 0xac1   :  { %3001 = vadd.xlane.f32.xlu1 %v3000_v7 }
 0xac5   :  { %3007 = vadd.xlane.f32.xlu1 %v3006_v49 }
 0xac9   :  { %3013 = vadd.xlane.f32.xlu1 %v3012_v13 }
 0xacd   :  { %3019 = vadd.xlane.f32.xlu1 %v3018_v28 }
 0xada   :  { %3004 = vadd.xlane.f32.xlu0 %v3003_v15  ;;  %v2435_v15 = vpop.permute.xlu0 %2434 }
 0xade   :  { %3010 = vadd.xlane.f32.xlu0 %v3009_v27 }
 0xae2   :  { %3016 = vadd.xlane.f32.xlu0 %v3015_v14  ;;  %v2439_v14 = vpop.permute.xlu1 %2438 }
 0xaf2   :  { %v10045_v30 = vpop.f32.mrf.mxu1 }
 0xaf4   :  { %v1889_v42 = vpop.f32.mrf.mxu1 }
 0xaf6   :  { %v10046_v60 = vpop.f32.mrf.mxu1 }
 0xaf7   :  { %v1953_v19 = vpack.c.bf16 %v10046_v60, %v10045_v30 }
 0xaf8   :  { %v1892_v1 = vpop.f32.mrf.mxu1 }
 0xaf9   :  { %v1952_v17 = vpack.c.bf16 %v1892_v1, %v1889_v42 }
 0xafa   :  { %v10049_v3 = vpop.f32.mrf.mxu1 }
 0xafb   :  { %10061 = vmatprep.mubr.msk.bf16.mxu1 %vm366_vm2, %v1952_v17  ;;  %v2433_v17 = vpop.permute.xlu1 %2432 }
 0xafc   :  { %v1905_v5 = vpop.f32.mrf.mxu1  ;;  %10062 = vmatmul.mubr.msk.bf16.vlgmr.msra.gmra.mxu1 %vm366_vm2, %v1953_v19 }
 0xafd   :  { %10110 = vmatpush3.bf16.msra.mxu1 %v13249_v58 }
 0xafe   :  { %10111 = vmatprep.subr.bf16.mxu1 %v2443_v50  ;;  %v10050_v53 = vpop.f32.mrf.mxu1 }
 0xaff   :  { %v1955_v13 = vpack.c.bf16 %v10050_v53, %v10049_v3 }
 0xb00   :  { %v1908_v7 = vpop.f32.mrf.mxu1 }
 0xb01   :  { %v1954_v49 = vpack.c.bf16 %v1908_v7, %v1905_v5  ;;  %10112 = vmatpush3.bf16.msra.mxu1 %v2443_v50 }
 0xb02   :  { %10113 = vmatprep.subr.bf16.mxu1 %v2441_v16  ;;  %v10053_v28 = vpop.f32.mrf.mxu1 }
 0xb03   :  { %10065 = vmatprep.mubr.msk.bf16.mxu1 %vm366_vm2, %v1954_v49 }
 0xb04   :  { %v1921_v27 = vpop.f32.mrf.mxu1  ;;  %10066 = vmatmul.mubr.msk.bf16.gmra.mxu1 %vm366_vm2, %v1955_v13 }
 0xb05   :  { %10114 = vmatpush3.bf16.msra.mxu1 %v2441_v16 }
 0xb06   :  { %10115 = vmatprep.subr.bf16.mxu1 %v2439_v14  ;;  %v10054_v58 = vpop.f32.mrf.mxu1  ;;  %v2363_v30 = vpop.xlane.xlu0 %2362 }
 0xb07   :  { %v1957_v1 = vpack.c.bf16 %v10054_v58, %v10053_v28 }
 0xb08   :  { %v1924_v42 = vpop.f32.mrf.mxu1 }
 0xb09   :  { %v1956_v60 = vpack.c.bf16 %v1924_v42, %v1921_v27  ;;  %10116 = vmatpush3.bf16.msra.mxu1 %v2439_v14 }
 0xb0a   :  { %10117 = vmatprep.subr.bf16.mxu1 %v2437_v24  ;;  %v2359_v50 = vpop.xlane.xlu0 %2358 }
 0xb0b   :  { %10069 = vmatprep.mubr.msk.bf16.mxu1 %vm366_vm2, %v1956_v60 }
 0xb0c   :  { %10070 = vmatmul.mubr.msk.bf16.gmra.mxu1 %vm366_vm2, %v1957_v1 }
 0xb0d   :  { %10118 = vmatpush3.bf16.msra.mxu1 %v2437_v24 }
 0xb0e   :  { %10119 = vmatprep.subr.bf16.mxu1 %v2435_v15  ;;  %v2365_v19 = vpop.xlane.xlu0 %2364 }
 0xb11   :  { %10120 = vmatpush3.bf16.msra.mxu1 %v2435_v15 }
 0xb12   :  { %10121 = vmatprep.subr.bf16.mxu1 %v2433_v17  ;;  %v2371_v3 = vpop.xlane.xlu1 %2370  ;;  %v2361_v5 = vpop.xlane.xlu0 %2360 }
 0xb13   :  { %11216 = vrcp.f32 %v2361_v5 }
 0xb14   :  { %11218 = vrcp.f32 %v2359_v50 }
 0xb15   :  { %10122 = vmatpush3.bf16.msra.mxu1 %v2433_v17  ;;  %11220 = vrcp.f32 %v2365_v19 }
 0xb16   :  { %v2367_v53 = vpop.xlane.xlu1 %2366  ;;  %v2369_v16 = vpop.xlane.xlu0 %2368 }
 0xb17   :  { %11222 = vrcp.f32 %v2367_v53 }
 0xb18   :  { %11224 = vrcp.f32 %v2369_v16 }
 0xb19   :  { %11226 = vrcp.f32 %v2363_v30 }
 0xb1a   :  { %v2373_v7 = vpop.xlane.xlu1 %2372 }
 0xb1b   :  { %11228 = vrcp.f32 %v2373_v7 }
 0xb1e   :  { %v2377_v49 = vpop.xlane.xlu0 %2376 }
 0xb20   :  { %v11217_v58 = vpop.eup %11216 }
 0xb21   :  { %v11219_v1 = vpop.eup %11218  ;;  %v2407_v50 = vmul.f32 %v11217_v58, %v13275_v10 }
 0xb22   :  { %v2379_v13 = vpop.xlane.xlu1 %2378  ;;  %v2387_v28 = vpop.xlane.xlu0 %2386  ;;  %v2406_v53 = vmul.f32 %v11219_v1, %v13267_v2 }
 0xb23   :  { %v11221_v30 = vpop.eup %11220 }
 0xb24   :  { %v11223_v55 = vpop.eup %11222  ;;  %v2422_v32 = vpack.c.bf16 %v2407_v50, %v2406_v53  ;;  %v2409_v10 = vmul.f32 %v11221_v30, %v13272_v39 }
 0xb26   :  { %v2375_v24 = vpop.xlane.xlu1 %2374 }
 0xb27   :  { %11230 = vrcp.f32 %v2375_v24 }
 0xb28   :  { %11232 = vrcp.f32 %v2371_v3  ;;  %v2410_v3 = vmul.f32 %v11223_v55, %v13283_v4 }
 0xb29   :  { %11234 = vrcp.f32 %v2377_v49 }
 0xb2a   :  { %v2381_v60 = vpop.xlane.xlu1 %2380 }
 0xb2b   :  { %11236 = vrcp.f32 %v2381_v60 }
 0xb2e   :  { %v2385_v27 = vpop.xlane.xlu0 %2384  ;;  %v2383_v25 = vpop.xlane.xlu1 %2382 }
 0xb2f   :  { %11238 = vrcp.f32 %v2383_v25 }
 0xb30   :  { %11240 = vrcp.f32 %v2385_v27 }
 0xb31   :  { %v10057_v15 = vpop.f32.mrf.mxu1  ;;  %11242 = vrcp.f32 %v2379_v13 }
 0xb32   :  { %v2431_v14 = vpop.permute.xlu0 %2430  ;;  %v2389_v58 = vpop.xlane.xlu1 %2388 }
 0xb33   :  { %v1937_v42 = vpop.f32.mrf.mxu1  ;;  %10123 = vmatprep.subr.bf16.mxu1 %v2431_v14  ;;  %11244 = vrcp.f32 %v2389_v58 }
 0xb34   :  { %10124 = vmatpush3.bf16.msra.mxu1 %v2431_v14  ;;  %v11225_v14 = vpop.eup %11224  ;;  %11246 = vrcp.f32 %v2387_v28 }
 0xb35   :  { %v10058_v17 = vpop.f32.mrf.mxu1  ;;  %v11227_v7 = vpop.eup %11226  ;;  %v2411_v2 = vmul.f32 %v11225_v14, %v13286_v59 }
 0xb36   :  { %v1959_v16 = vpack.c.bf16 %v10058_v17, %v10057_v15  ;;  %v2408_v49 = vmul.f32 %v11227_v7, %v13264_v21  ;;  %v11229_v15 = vpop.eup %11228 }
 0xb37   :  { %v1940_v19 = vpop.f32.mrf.mxu1  ;;  %v11231_v1 = vpop.eup %11230  ;;  %v2413_v39 = vmul.f32 %v11229_v15, %v13291_v22 }
 0xb38   :  { %v1958_v5 = vpack.c.bf16 %v1940_v19, %v1937_v42  ;;  %v2423_v24 = vpack.c.bf16 %v2409_v10, %v2408_v49  ;;  %v2424_v42 = vpack.c.bf16 %v2411_v2, %v2410_v3  ;;  %v11233_v17 = vpop.eup %11232  ;;  %v2414_v25 = vmul.f32 %v11231_v1, %v13305_v23  ;;  %v17442_v3 = vld [vmem:[#allocation17_spill] sm:$0xff] }
 0xb39   :  { %v2412_v4 = vmul.f32 %v11233_v17, %v13279_v57  ;;  %v1440_v2 = vadd.f32 %v13334_v36, %v17442_v3  ;;  %v17444_v17 = vld [vmem:[#allocation20_spill] sm:$0xff] }
 0xb3a   :  { %10073 = vmatprep.mubr.msk.bf16.mxu1 %vm366_vm2, %v1958_v5 }
 0xb3b   :  { %10074 = vmatmul.mubr.msk.bf16.gmra.mxu1 %vm366_vm2, %v1959_v16  ;;  %v2425_v55 = vpack.c.bf16 %v2413_v39, %v2412_v4  ;;  %v17445_v39 = vld [vmem:[#allocation21_spill] sm:$0xff] }
 0xb3c   :  { %10125 = vmatprep.mubr.bf16.mxu1 %v2422_v32  ;;  %v11235_v32 = vpop.eup %11234  ;;  %v1456_v36 = vadd.f32 %v13348_v20, %v17445_v39 }
 0xb3d   :  { %v2415_v59 = vmul.f32 %v11235_v32, %v13295_v12  ;;  %v11237_v21 = vpop.eup %11236  ;;  %v181_v12 = vld [vmem:[%s17328_s2 + $0x68] sm:$0xff] }
 0xb3e   :  { %v11239_v13 = vpop.eup %11238  ;;  %v2417_v19 = vmul.f32 %v11237_v21, %v13308_v29  ;;  %v2559_v16 = vpack.c.bf16 %v181_v12, %v181_v12 }
 0xb3f   :  { %v2426_v27 = vpack.c.bf16 %v2415_v59, %v2414_v25  ;;  %v11241_v60 = vpop.eup %11240  ;;  %v2418_v5 = vmul.f32 %v11239_v13, %v13311_v40  ;;  %v17446_v59 = vld [vmem:[#allocation22_spill] sm:$0xff] }
 0xb40   :  { %v11243_v50 = vpop.eup %11242  ;;  %v2419_v22 = vmul.f32 %v11241_v60, %v13313_v0  ;;  %10906 = vmatprep.subr.msk.bf16.mxu1 %vm1277_vm3, %v2559_v16  ;;  %v2585_v29 = vsel %vm1277_vm3, %v2559_v16, 0  ;;  %v17441_v0 = vld [vmem:[#allocation16_spill] sm:$0xff] }
 0xb41   :  { %v2416_v23 = vmul.f32 %v11243_v50, %v13301_v63  ;;  %v11245_v57 = vpop.eup %11244  ;;  %v1448_v7 = vadd.f32 %v13328_v11, %v17441_v0  ;;  %v1464_v11 = vadd.f32 %v13344_v8, %v17444_v17  ;;  %v17447_v60 = vld [vmem:[#allocation24_spill] sm:$0xff] }
 0xb42   :  { %v2428_v53 = vpack.c.bf16 %v2419_v22, %v2418_v5  ;;  %v11247_v30 = vpop.eup %11246  ;;  %v2421_v14 = vmul.f32 %v11245_v57, %v13317_v26  ;;  %v17443_v26 = vld [vmem:[#allocation18_spill] sm:$0xff]  ;;  %v1480_v8 = vadd.f32 %v13356_v46, %v17447_v60 }
 0xb43   :  { %10126 = vmatmul.mubr.bf16.vlgmr.msra.gmra.mxu1 %v2423_v24  ;;  %v2427_v28 = vpack.c.bf16 %v2417_v19, %v2416_v23  ;;  %v2420_v40 = vmul.f32 %v11247_v30, %v13298_v31  ;;  %v1451_v15 = vadd.f32 %v13338_v47, %v17443_v26  ;;  %v1467_v47 = vadd.f32 %v13352_v48, %v17446_v59  ;;  %v17448_v19 = vld [vmem:[#allocation25_spill] sm:$0xff]  ;;  %v17449_v23 = vld [vmem:[#allocation26_spill] sm:$0xff]  ;;  %v17450_v30 = vld [vmem:[#allocation28_spill] sm:$0xff] }
 0xb44   :  { %10129 = vmatprep.mubr.bf16.mxu1 %v2424_v42  ;;  %10142 = vmatpush3.bf16.msra.mxu1 %v2585_v29  ;;  %v1472_v20 = vadd.f32 %v13360_v38, %v17448_v19  ;;  %v1483_v48 = vadd.f32 %v13364_v54, %v17449_v23  ;;  %v1496_v46 = vadd.f32 %v13370_v9, %v17450_v30  ;;  %v13476_v30 = vld [vmem:[%s17330_s3] sm:$0xff] }
 0xb45   :  { %v2429_v63 = vpack.c.bf16 %v2421_v14, %v2420_v40  ;;  %v17451_v14 = vld [vmem:[#allocation29_spill] sm:$0xff] }
 0xb46   :  { %v1488_v38 = vadd.f32 %v13372_v33, %v17451_v14 }
 0xb4b   :  { %10130 = vmatmul.mubr.bf16.gmra.mxu1 %v2425_v55 }
 0xb4c   :  { %10133 = vmatprep.mubr.bf16.mxu1 %v2426_v27 }
 0xb53   :  { %10134 = vmatmul.mubr.bf16.gmra.mxu1 %v2427_v28 }
 0xb54   :  { %10137 = vmatprep.mubr.bf16.mxu1 %v2428_v53 }
 0xb5b   :  { %10138 = vmatmul.mubr.bf16.gmra.mxu1 %v2429_v63  ;;  %v17452_v63 = vld [vmem:[#allocation30_spill] sm:$0xff] }
 0xb5c   :  { %v1499_v54 = vadd.f32 %v13374_v61, %v17452_v63 }
 0xbbc   :  { %v10063_v10 = vpop.f32.mrf.mxu1 }
 0xbbd   :  { %v13412_v49 = vadd.f32 %v10063_v10, %v1448_v7 }
 0xbbe   :  { %v2022_v24 = vpop.f32.mrf.mxu1 }
 0xbbf   :  { %v13416_v58 = vadd.f32 %v2022_v24, %v1440_v2 }
 0xbc0   :  { %v10064_v42 = vpop.f32.mrf.mxu1 }
 0xbc1   :  { %v13418_v31 = vadd.f32 %v10064_v42, %v1451_v15 }
 0xbc2   :  { %v13420_v1 = vpop.f32.mrf.mxu1 }
 0xbc4   :  { %v10067_v32 = vpop.f32.mrf.mxu1 }
 0xbc5   :  { %v13426_v25 = vadd.f32 %v10067_v32, %v1464_v11 }
 0xbc6   :  { %v2038_v4 = vpop.f32.mrf.mxu1 }
 0xbc7   :  { %v13430_v21 = vadd.f32 %v2038_v4, %v1456_v36 }
 0xbc8   :  { %v10068_v55 = vpop.f32.mrf.mxu1 }
 0xbc9   :  { %v13432_v13 = vadd.f32 %v10068_v55, %v1467_v47 }
 0xbca   :  { %v13434_v27 = vpop.f32.mrf.mxu1 }
 0xbcc   :  { %v10071_v50 = vpop.f32.mrf.mxu1 }
 0xbcd   :  { %v13440_v5 = vadd.f32 %v10071_v50, %v1480_v8 }
 0xbce   :  { %v2054_v22 = vpop.f32.mrf.mxu1 }
 0xbcf   :  { %v13444_v28 = vadd.f32 %v2054_v22, %v1472_v20 }
 0xbd0   :  { %v10072_v57 = vpop.f32.mrf.mxu1 }
 0xbd1   :  { %v13446_v53 = vadd.f32 %v10072_v57, %v1483_v48  ;;  %v17453_v48 = vld [vmem:[#allocation2_spill] sm:$0xff] }
 0xbd2   :  { %v13448_v12 = vpop.f32.mrf.mxu1  ;;  %v17364_v57 = vsub.s32 4, %v17453_v48 }
 0xbfb   :  { %v10075_v16 = vpop.f32.mrf.mxu1 }
 0xbfc   :  { %v13454_v29 = vadd.f32 %v10075_v16, %v1496_v46  ;;  %v13481_v46 = vrot.slane %v13476_v30, %v17364_v57 }
 0xbfd   :  { %v2070_v40 = vpop.f32.mrf.mxu1 }
 0xbfe   :  { %v13458_v0 = vadd.f32 %v2070_v40, %v1488_v38  ;;  %v17454_v40 = vld [vmem:[#allocation19_spill] sm:$0xff] }
 0xbff   :  { %v10076_v7 = vpop.f32.mrf.mxu1  ;;  %v1443_v63 = vadd.f32 %v13342_v34, %v17454_v40 }
 0xc00   :  { %v13460_v10 = vadd.f32 %v10076_v7, %v1499_v54 }
 0xc01   :  { %v13462_v3 = vpop.f32.mrf.mxu1 }
 0xc03   :  { %v10127_v2 = vpop.f32.mrf.mxu1 }
 0xc05   :  { %v2488_v24 = vpop.f32.mrf.mxu1 }
 0xc07   :  { %v10128_v9 = vpop.f32.mrf.mxu1 }
 0xc08   :  { %v2552_v42 = vpack.c.bf16 %v10128_v9, %v10127_v2 }
 0xc09   :  { %v2491_v26 = vpop.f32.mrf.mxu1 }
 0xc0a   :  { %v2551_v15 = vpack.c.bf16 %v2491_v26, %v2488_v24  ;;  %v2086_v24 = vadd.f32 %v13420_v1, %v1443_v63 }
 0xc0b   :  { %v10131_v33 = vpop.f32.mrf.mxu1 }
 0xc0c   :  { %10143 = vmatprep.mubr.msk.bf16.mxu1 %vm366_vm2, %v2551_v15 }
 0xc0d   :  { %v2504_v17 = vpop.f32.mrf.mxu1  ;;  %10144 = vmatmul.mubr.msk.bf16.vlgmr.msra.gmra.mxu1 %vm366_vm2, %v2552_v42 }
 0xc0f   :  { %v10132_v61 = vpop.f32.mrf.mxu1 }
 0xc10   :  { %v2554_v39 = vpack.c.bf16 %v10132_v61, %v10131_v33 }
 0xc11   :  { %v2507_v11 = vpop.f32.mrf.mxu1 }
 0xc12   :  { %v2553_v32 = vpack.c.bf16 %v2507_v11, %v2504_v17 }
 0xc13   :  { %v10135_v36 = vpop.f32.mrf.mxu1 }
 0xc14   :  { %10147 = vmatprep.mubr.msk.bf16.mxu1 %vm366_vm2, %v2553_v32 }
 0xc15   :  { %v2520_v4 = vpop.f32.mrf.mxu1  ;;  %10148 = vmatmul.mubr.msk.bf16.gmra.mxu1 %vm366_vm2, %v2554_v39 }
 0xc17   :  { %v10136_v59 = vpop.f32.mrf.mxu1 }
 0xc18   :  { %v2556_v60 = vpack.c.bf16 %v10136_v59, %v10135_v36 }
 0xc19   :  { %v2523_v47 = vpop.f32.mrf.mxu1 }
 0xc1a   :  { %v2555_v55 = vpack.c.bf16 %v2523_v47, %v2520_v4 }
 0xc1b   :  { %v10139_v8 = vpop.f32.mrf.mxu1 }
 0xc1c   :  { %10151 = vmatprep.mubr.msk.bf16.mxu1 %vm366_vm2, %v2555_v55 }
 0xc1d   :  { %v2536_v50 = vpop.f32.mrf.mxu1  ;;  %10152 = vmatmul.mubr.msk.bf16.gmra.mxu1 %vm366_vm2, %v2556_v60  ;;  %v17455_v60 = vld [vmem:[#allocation13_spill] sm:$0xff] }
 0xc1f   :  { %v10140_v19 = vpop.f32.mrf.mxu1 }
 0xc20   :  { %v2558_v23 = vpack.c.bf16 %v10140_v19, %v10139_v8  ;;  %v3024_v8 = vsel %vm212_vm1, %v17455_v60, 0.0 }
 0xc21   :  { %v2539_v20 = vpop.f32.mrf.mxu1 }
 0xc22   :  { %v2557_v22 = vpack.c.bf16 %v2539_v20, %v2536_v50  ;;  %v17456_v50 = vld [vmem:[#allocation12_spill] sm:$0xff] }
 0xc24   :  { %10155 = vmatprep.mubr.msk.bf16.mxu1 %vm366_vm2, %v2557_v22 }
 0xc25   :  { %10156 = vmatmul.mubr.msk.bf16.gmra.mxu1 %vm366_vm2, %v2558_v23 }
 0xccd   :  { %v10145_v16 = vpop.f32.mrf.mxu1 }
 0xcce   :  { %v2686_v14 = vadd.f32 %v10145_v16, %v13412_v49 }
 0xccf   :  { %v2621_v38 = vpop.f32.mrf.mxu1 }
 0xcd0   :  { %v2706_v54 = vadd.f32 %v13481_v46, %v2686_v14  ;;  %v2684_v7 = vadd.f32 %v2621_v38, %v13416_v58 }
 0xcd1   :  { %v10146_v2 = vpop.f32.mrf.mxu1 }
 0xcd2   :  { %v2704_v9 = vadd.f32 %v13481_v46, %v2684_v7  ;;  %v2687_v26 = vadd.f32 %v10146_v2, %v13418_v31  ;;  %v13492_v15 = vadd.f32 %v2706_v54, %v12087_v45  ;;  %v2987_v31 = vpop.xlane.xlu1 %2986 }
 0xcd3   :  { %v2624_v42 = vpop.f32.mrf.mxu1 }
 0xcd4   :  { %v2707_v49 = vadd.f32 %v13481_v46, %v2687_v26  ;;  %v2685_v33 = vadd.f32 %v2624_v42, %v2086_v24  ;;  %v2742_v34 = vsel %vm212_vm1, %v13492_v15, 0.0  ;;  %v13498_v17 = vadd.f32 %v2704_v9, %v12083_v43 }
 0xcd5   :  { %2743 = vadd.xlane.f32.xlu1 %v2742_v34  ;;  %v10149_v58 = vpop.f32.mrf.mxu1 }
 0xcd6   :  { %v13501_v1 = vadd.f32 %v2707_v49, %v12081_v41  ;;  %v2705_v11 = vadd.f32 %v13481_v46, %v2685_v33  ;;  %v2690_v32 = vadd.f32 %v10149_v58, %v13426_v25  ;;  %v2736_v39 = vsel %vm212_vm1, %v13498_v17, 0.0  ;;  %v13518_v22 = vpop.xlane.xlu1 %2989 }
 0xcd7   :  { %v2637_v61 = vpop.f32.mrf.mxu1  ;;  %v3021_v25 = vsel %vm212_vm1, %v17456_v50, 0.0 }
 0xcd8   :  { %v2745_v36 = vsel %vm212_vm1, %v13501_v1, 0.0  ;;  %v2688_v59 = vadd.f32 %v2637_v61, %v13430_v21  ;;  %v2710_v55 = vadd.f32 %v13481_v46, %v2690_v32  ;;  %v13516_v19 = vadd.f32 %v2705_v11, %v12085_v44  ;;  %v17457_v21 = vld [vmem:[#allocation23_spill] sm:$0xff] }
 0xcd9   :  { %2737 = vadd.xlane.f32.xlu1 %v2736_v39  ;;  %2746 = vadd.xlane.f32.xlu0 %v2745_v36  ;;  %v10150_v4 = vpop.f32.mrf.mxu1  ;;  %v1459_v16 = vadd.f32 %v13354_v62, %v17457_v21  ;;  %v17458_v11 = vld [vmem:[#allocation27_spill] sm:$0xff] }
 0xcda   :  { %v2708_v14 = vadd.f32 %v13481_v46, %v2688_v59  ;;  %v2691_v38 = vadd.f32 %v10150_v4, %v13432_v13  ;;  %v2739_v7 = vsel %vm212_vm1, %v13516_v19, 0.0  ;;  %v13530_v2 = vadd.f32 %v2710_v55, %v17437_v35  ;;  %v2993_v49 = vpop.xlane.xlu1 %2992 }
 0xcdb   :  { %v2640_v47 = vpop.f32.mrf.mxu1  ;;  %v1475_v32 = vadd.f32 %v13368_v18, %v17458_v11 }
 0xcdc   :  { %v2711_v13 = vadd.f32 %v13481_v46, %v2691_v38  ;;  %v2754_v33 = vsel %vm212_vm1, %v13530_v2, 0.0 }
 0xcdd   :  { %3025 = vadd.xlane.f32.xlu1 %v3024_v8  ;;  %3022 = vadd.xlane.f32.xlu0 %v3021_v25  ;;  %v10153_v20 = vpop.f32.mrf.mxu1  ;;  %v2094_v25 = vadd.f32 %v13448_v12, %v1475_v32 }
 0xcde   :  { %v2694_v23 = vadd.f32 %v10153_v20, %v13440_v5  ;;  %v2090_v5 = vadd.f32 %v13434_v27, %v1459_v16  ;;  %v13555_v59 = vadd.f32 %v2711_v13, %v17434_v51  ;;  %v2996_v18 = vpop.xlane.xlu1 %2995  ;;  %v3033_v16 = vmul.f32 0.03125, %v2987_v31  ;;  %v17461_v31 = vld [vmem:[#allocation15_spill] sm:$0xff] }
 0xcdf   :  { %v2653_v40 = vpop.f32.mrf.mxu1 }
 0xce0   :  { %v2714_v63 = vadd.f32 %v13481_v46, %v2694_v23  ;;  %v2692_v54 = vadd.f32 %v2653_v40, %v13444_v28  ;;  %v2689_v26 = vadd.f32 %v2640_v47, %v2090_v5  ;;  %v13539_v28 = vadd.f32 %v2708_v14, %v17432_v6  ;;  %v17459_v23 = vld [vmem:[#allocation14_spill] sm:$0xff] }
 0xce1   :  { %2740 = vadd.xlane.f32.xlu1 %v2739_v7  ;;  %v10154_v24 = vpop.f32.mrf.mxu1  ;;  %v13581_v5 = vsub.f32 %v12083_v43, %v3033_v16 }
 0xce2   :  { %v2712_v62 = vadd.f32 %v13481_v46, %v2692_v54  ;;  %v13535_v9 = vadd.f32 %v2714_v63, %v17439_v56  ;;  %v2709_v39 = vadd.f32 %v13481_v46, %v2689_v26  ;;  %v2748_v4 = vsel %vm212_vm1, %v13539_v28, 0.0  ;;  %v17460_v54 = vld [vmem:[#allocation31_spill] sm:$0xff]  ;;  %v2999_v13 = vpop.xlane.xlu1 %2998 }
 0xce3   :  { %v2656_v42 = vpop.f32.mrf.mxu1  ;;  %v2695_v47 = vadd.f32 %v10154_v24, %v13446_v53  ;;  %v2757_v53 = vsel %vm212_vm1, %v13555_v59, 0.0  ;;  %v1491_v7 = vadd.f32 %v17461_v31, %v17460_v54  ;;  %v3035_v24 = vmul.f32 0.03125, %v2993_v49 }
 0xce4   :  { %v2766_v27 = vsel %vm212_vm1, %v13535_v9, 0.0  ;;  %v13546_v34 = vadd.f32 %v2712_v62, %v17438_v37  ;;  %v13570_v14 = vadd.f32 %v2709_v39, %v17433_v52  ;;  %v2693_v38 = vadd.f32 %v2656_v42, %v2094_v25 }
 0xce5   :  { %2755 = vadd.xlane.f32.xlu1 %v2754_v33  ;;  %2767 = vadd.xlane.f32.xlu0 %v2766_v27  ;;  %v10157_v58 = vpop.f32.mrf.mxu1  ;;  %v17462_v27 = vld [vmem:[#allocation7_spill] sm:$0xff]  ;;  %v2098_v43 = vadd.f32 %v13462_v3, %v1491_v7  ;;  %v13594_v49 = vsub.f32 %v12087_v45, %v3035_v24  ;;  %v3037_v32 = vmul.f32 0.03125, %v2999_v13  ;;  %v3027_v39 = vsel %vm212_vm1, %v17459_v23, 0.0 }
 0xce6   :  { %v2698_v61 = vadd.f32 %v10157_v58, %v13454_v29  ;;  %v2760_v29 = vsel %vm212_vm1, %v13546_v34, 0.0  ;;  %v2751_v62 = vsel %vm212_vm1, %v13570_v14, 0.0  ;;  %v2713_v26 = vadd.f32 %v13481_v46, %v2693_v38 }
 0xce7   :  { %v2669_v36 = vpop.f32.mrf.mxu1  ;;  %v13607_v45 = vsub.f32 %v17432_v6, %v3037_v32  ;;  %v3067_v25 = vmul.f32 %v13594_v49, %v13594_v49  ;;  %v3034_v6 = vmul.f32 0.03125, %v13518_v22  ;;  %v3036_v13 = vmul.f32 0.03125, %v2996_v18 }
 0xce8   :  { %v2718_v55 = vadd.f32 %v13481_v46, %v2698_v61  ;;  %v2696_v8 = vadd.f32 %v2669_v36, %v13458_v0  ;;  %v2715_v0 = vadd.f32 %v13481_v46, %v2695_v47  ;;  %v3005_v61 = vpop.xlane.xlu0 %3004 }
 0xce9   :  { %2749 = vadd.xlane.f32.xlu1 %v2748_v4  ;;  %2761 = vadd.xlane.f32.xlu0 %v2760_v29  ;;  %v10158_v63 = vpop.f32.mrf.mxu1  ;;  %v3069_v54 = vmul.f32 %v13607_v45, %v13607_v45  ;;  %v13631_v22 = vsub.f32 %v12085_v44, %v3034_v6 }
 0xcea   :  { %v2716_v20 = vadd.f32 %v13481_v46, %v2696_v8  ;;  %v13565_v21 = vadd.f32 %v2718_v55, %v17459_v23  ;;  %v2699_v42 = vadd.f32 %v10158_v63, %v13460_v10  ;;  %v13590_v58 = vadd.f32 %v2715_v0, %v17462_v27  ;;  %v17463_v55 = vld [vmem:[#allocation9_spill] sm:$0xff]  ;;  %v17464_v0 = vld [vmem:[#allocation11_spill] sm:$0xff] }
 0xceb   :  { %v2672_v11 = vpop.f32.mrf.mxu1  ;;  %v3065_v10 = vmul.f32 %v13581_v5, %v13581_v5  ;;  %v13604_v8 = vadd.f32 %v2713_v26, %v17463_v55  ;;  %v3087_v63 = vsel %vm212_vm1, %v3067_v25, 0.0  ;;  %v3093_v26 = vsel %vm212_vm1, %v3069_v54, 0.0 }
 0xcec   :  { %v2778_v40 = vsel %vm212_vm1, %v13565_v21, 0.0  ;;  %v13576_v12 = vadd.f32 %v2716_v20, %v17456_v50  ;;  %v2719_v36 = vadd.f32 %v13481_v46, %v2699_v42  ;;  %v2697_v4 = vadd.f32 %v2672_v11, %v2098_v43  ;;  %v3011_v3 = vpop.xlane.xlu0 %3010 }
 0xced   :  { %2758 = vadd.xlane.f32.xlu1 %v2757_v53  ;;  %2779 = vadd.xlane.f32.xlu0 %v2778_v40  ;;  %v2769_v47 = vsel %vm212_vm1, %v13590_v58, 0.0  ;;  %v3081_v29 = vsel %vm212_vm1, %v3065_v10, 0.0  ;;  %v3039_v20 = vmul.f32 0.03125, %v3005_v61  ;;  %v2763_v53 = vsel %vm212_vm1, %v13604_v8, 0.0  ;;  %v3002_v40 = vpop.xlane.xlu1 %3001 }
 0xcee   :  { %v2772_v33 = vsel %vm212_vm1, %v13576_v12, 0.0  ;;  %v2717_v16 = vadd.f32 %v13481_v46, %v2697_v4  ;;  %v13616_v38 = vadd.f32 %v2719_v36, %v17464_v0  ;;  %v3041_v46 = vmul.f32 0.03125, %v3011_v3 }
 0xcef   :  { %v13623_v31 = vsub.f32 %v17437_v35, %v3039_v20  ;;  %v13642_v43 = vsub.f32 %v12081_v41, %v3036_v13  ;;  %v3030_v44 = vsel %vm212_vm1, %v17464_v0, 0.0  ;;  %v3038_v18 = vmul.f32 0.03125, %v3002_v40 }
 0xcf0   :  { %v2781_v7 = vsel %vm212_vm1, %v13616_v38, 0.0  ;;  %v13628_v24 = vadd.f32 %v2717_v16, %v17455_v60  ;;  %v13635_v42 = vsub.f32 %v17438_v37, %v3041_v46  ;;  %v3066_v37 = vmul.f32 %v13631_v22, %v13631_v22 }
 0xcf1   :  { %2752 = vadd.xlane.f32.xlu1 %v2751_v62  ;;  %2773 = vadd.xlane.f32.xlu0 %v2772_v33  ;;  %v3017_v62 = vpop.xlane.xlu0 %3016  ;;  %v3071_v61 = vmul.f32 %v13623_v31, %v13623_v31  ;;  %v3008_v11 = vpop.xlane.xlu1 %3007  ;;  %v3068_v4 = vmul.f32 %v13642_v43, %v13642_v43 }
 0xcf2   :  { %v3043_v35 = vmul.f32 0.03125, %v3017_v62  ;;  %v2775_v33 = vsel %vm212_vm1, %v13628_v24, 0.0  ;;  %v3073_v10 = vmul.f32 %v13635_v42, %v13635_v42  ;;  %v3084_v41 = vsel %vm212_vm1, %v3066_v37, 0.0 }
 0xcf3   :  { %v3040_v3 = vmul.f32 0.03125, %v3008_v11  ;;  %v3090_v25 = vsel %vm212_vm1, %v3068_v4, 0.0 }
 0xcf4   :  { %v13649_v32 = vsub.f32 %v17439_v56, %v3043_v35  ;;  %v3105_v56 = vsel %vm212_vm1, %v3073_v10, 0.0 }
 0xcf5   :  { %2770 = vadd.xlane.f32.xlu1 %v2769_v47  ;;  %3028 = vadd.xlane.f32.xlu0 %v3027_v39  ;;  %v3099_v39 = vsel %vm212_vm1, %v3071_v61, 0.0  ;;  %v3014_v36 = vpop.xlane.xlu1 %3013  ;;  %v13658_v47 = vsub.f32 %v17433_v52, %v3038_v18  ;;  %v13665_v20 = vsub.f32 %v17434_v51, %v3040_v3 }
 0xcf6   :  { %v3042_v16 = vmul.f32 0.03125, %v3014_v36 }
 0xcf7   :  { %v3070_v52 = vmul.f32 %v13658_v47, %v13658_v47  ;;  %v3072_v46 = vmul.f32 %v13665_v20, %v13665_v20 }
 0xcf8   :  { %v13671_v40 = vsub.f32 %v17463_v55, %v3042_v16 }
 0xcf9   :  { %2764 = vadd.xlane.f32.xlu1 %v2763_v53  ;;  %3082 = vadd.xlane.f32.xlu0 %v3081_v29  ;;  %v3075_v29 = vmul.f32 %v13649_v32, %v13649_v32  ;;  %v3020_v6 = vpop.xlane.xlu1 %3019  ;;  %v3096_v54 = vsel %vm212_vm1, %v3070_v52, 0.0 }
 0xcfa   :  { %v3074_v62 = vmul.f32 %v13671_v40, %v13671_v40 }
 0xcfb   :  { %v3111_v53 = vsel %vm212_vm1, %v3075_v29, 0.0 }
 0xcfc   :  { %v3108_v13 = vsel %vm212_vm1, %v3074_v62, 0.0 }
 0xcfd   :  { %3088 = vadd.xlane.f32.xlu0 %v3087_v63  ;;  %2782 = vadd.xlane.f32.xlu1 %v2781_v7  ;;  %v3044_v63 = vmul.f32 0.03125, %v3020_v6  ;;  %v3102_v7 = vsel %vm212_vm1, %v3072_v46, 0.0 }
 0xcff   :  { %v13677_v51 = vsub.f32 %v17462_v27, %v3044_v63 }
 0xd01   :  { %3094 = vadd.xlane.f32.xlu0 %v3093_v26  ;;  %2776 = vadd.xlane.f32.xlu1 %v2775_v33  ;;  %v3076_v55 = vmul.f32 %v13677_v51, %v13677_v51 }
 0xd03   :  { %v3114_v26 = vsel %vm212_vm1, %v3076_v55, 0.0 }
 0xd05   :  { %3031 = vadd.xlane.f32.xlu1 %v3030_v44  ;;  %3100 = vadd.xlane.f32.xlu0 %v3099_v39 }
 0xd09   :  { %3085 = vadd.xlane.f32.xlu1 %v3084_v41  ;;  %3106 = vadd.xlane.f32.xlu0 %v3105_v56 }
 0xd0d   :  { %3091 = vadd.xlane.f32.xlu1 %v3090_v25  ;;  %3112 = vadd.xlane.f32.xlu0 %v3111_v53 }
 0xd11   :  { %3097 = vadd.xlane.f32.xlu1 %v3096_v54 }
 0xd15   :  { %3103 = vadd.xlane.f32.xlu1 %v3102_v7 }
 0xd19   :  { %3109 = vadd.xlane.f32.xlu1 %v3108_v13 }
 0xd1d   :  { %3115 = vadd.xlane.f32.xlu1 %v3114_v26 }
 0xd5e   :  { %v2744_v35 = vpop.xlane.xlu1 %2743 }
 0xd5f   :  { %v2787_v27 = vmul.f32 0.03125, %v2744_v35 }
 0xd61   :  { %v13687_v10 = vsub.f32 %v13492_v15, %v2787_v27 }
 0xd62   :  { %v2738_v33 = vpop.xlane.xlu1 %2737  ;;  %v2747_v61 = vpop.xlane.xlu0 %2746 }
 0xd63   :  { %v2788_v11 = vmul.f32 0.03125, %v2747_v61  ;;  %v2785_v36 = vmul.f32 0.03125, %v2738_v33 }
 0xd65   :  { %v13690_v41 = vsub.f32 %v13501_v1, %v2788_v11  ;;  %v13703_v15 = vsub.f32 %v13498_v17, %v2785_v36  ;;  %v2819_v1 = vmul.f32 %v13687_v10, %v13687_v10 }
 0xd66   :  { %v3026_v44 = vpop.xlane.xlu1 %3025  ;;  %v3023_v37 = vpop.xlane.xlu0 %3022 }
 0xd67   :  { %v3046_v18 = vmul.f32 0.03125, %v3026_v44  ;;  %v3045_v39 = vmul.f32 0.03125, %v3023_v37  ;;  %v2820_v52 = vmul.f32 %v13690_v41, %v13690_v41  ;;  %v2817_v17 = vmul.f32 %v13703_v15, %v13703_v15 }
 0xd68   :  { %v2839_v7 = vsel %vm212_vm1, %v2819_v1, 0.0 }
 0xd69   :  { %v13693_v4 = vsub.f32 %v17455_v60, %v3046_v18  ;;  %v13696_v3 = vsub.f32 %v17456_v50, %v3045_v39  ;;  %v2833_v35 = vsel %vm212_vm1, %v2817_v17, 0.0 }
 0xd6a   :  { %v2741_v56 = vpop.xlane.xlu1 %2740 }
 0xd6b   :  { %v2786_v29 = vmul.f32 0.03125, %v2741_v56  ;;  %v3078_v25 = vmul.f32 %v13693_v4, %v13693_v4  ;;  %v3077_v16 = vmul.f32 %v13696_v3, %v13696_v3 }
 0xd6d   :  { %v13708_v60 = vsub.f32 %v13516_v19, %v2786_v29  ;;  %v3120_v50 = vsel %vm212_vm1, %v3078_v25, 0.0  ;;  %v3117_v53 = vsel %vm212_vm1, %v3077_v16, 0.0  ;;  %v2842_v19 = vsel %vm212_vm1, %v2820_v52, 0.0 }
 0xd6e   :  { %v2756_v6 = vpop.xlane.xlu1 %2755  ;;  %3121 = vadd.xlane.f32.xlu1 %v3120_v50  ;;  %3118 = vadd.xlane.f32.xlu0 %v3117_v53  ;;  %v2768_v63 = vpop.xlane.xlu0 %2767 }
 0xd6f   :  { %v2791_v54 = vmul.f32 0.03125, %v2756_v6  ;;  %v2818_v62 = vmul.f32 %v13708_v60, %v13708_v60  ;;  %v2795_v33 = vmul.f32 0.03125, %v2768_v63 }
 0xd71   :  { %v13717_v46 = vsub.f32 %v13530_v2, %v2791_v54  ;;  %v2836_v2 = vsel %vm212_vm1, %v2818_v62, 0.0  ;;  %v13731_v39 = vsub.f32 %v13535_v9, %v2795_v33 }
 0xd72   :  { %v2750_v13 = vpop.xlane.xlu1 %2749  ;;  %2843 = vadd.xlane.f32.xlu1 %v2842_v19  ;;  %2840 = vadd.xlane.f32.xlu0 %v2839_v7  ;;  %v2762_v55 = vpop.xlane.xlu0 %2761 }
 0xd73   :  { %v2789_v26 = vmul.f32 0.03125, %v2750_v13  ;;  %v2823_v27 = vmul.f32 %v13717_v46, %v13717_v46  ;;  %v2793_v18 = vmul.f32 0.03125, %v2762_v55  ;;  %v2827_v6 = vmul.f32 %v13731_v39, %v13731_v39 }
 0xd75   :  { %v13725_v61 = vsub.f32 %v13539_v28, %v2789_v26  ;;  %v2851_v28 = vsel %vm212_vm1, %v2823_v27, 0.0  ;;  %v13742_v1 = vsub.f32 %v13546_v34, %v2793_v18  ;;  %v2863_v13 = vsel %vm212_vm1, %v2827_v6, 0.0 }
 0xd76   :  { %v2759_v11 = vpop.xlane.xlu1 %2758  ;;  %2837 = vadd.xlane.f32.xlu1 %v2836_v2  ;;  %2834 = vadd.xlane.f32.xlu0 %v2833_v35  ;;  %v2780_v44 = vpop.xlane.xlu0 %2779 }
 0xd77   :  { %v2792_v37 = vmul.f32 0.03125, %v2759_v11  ;;  %v2821_v56 = vmul.f32 %v13725_v61, %v13725_v61  ;;  %v2799_v50 = vmul.f32 0.03125, %v2780_v44 }
 0xd79   :  { %v13734_v36 = vsub.f32 %v13555_v59, %v2792_v37  ;;  %v2845_v52 = vsel %vm212_vm1, %v2821_v56, 0.0  ;;  %v13754_v17 = vsub.f32 %v13565_v21, %v2799_v50 }
 0xd7a   :  { %v2753_v29 = vpop.xlane.xlu1 %2752  ;;  %2852 = vadd.xlane.f32.xlu0 %v2851_v28  ;;  %v2774_v9 = vpop.xlane.xlu0 %2773 }
 0xd7b   :  { %v2790_v25 = vmul.f32 0.03125, %v2753_v29  ;;  %v2824_v16 = vmul.f32 %v13734_v36, %v13734_v36  ;;  %v2797_v19 = vmul.f32 0.03125, %v2774_v9  ;;  %v2831_v2 = vmul.f32 %v13754_v17, %v13754_v17 }
 0xd7d   :  { %v13745_v53 = vsub.f32 %v13570_v14, %v2790_v25  ;;  %v2854_v59 = vsel %vm212_vm1, %v2824_v16, 0.0  ;;  %v2825_v14 = vmul.f32 %v13742_v1, %v13742_v1  ;;  %v2875_v56 = vsel %vm212_vm1, %v2831_v2, 0.0 }
 0xd7e   :  { %v2771_v63 = vpop.xlane.xlu1 %2770  ;;  %2855 = vadd.xlane.f32.xlu1 %v2854_v59  ;;  %2846 = vadd.xlane.f32.xlu0 %v2845_v52  ;;  %v3029_v55 = vpop.xlane.xlu0 %3028 }
 0xd7f   :  { %v2796_v54 = vmul.f32 0.03125, %v2771_v63  ;;  %v2822_v34 = vmul.f32 %v13745_v53, %v13745_v53  ;;  %v2857_v33 = vsel %vm212_vm1, %v2825_v14, 0.0  ;;  %v3047_v27 = vmul.f32 0.03125, %v3029_v55 }
 0xd81   :  { %v13759_v7 = vsub.f32 %v13590_v58, %v2796_v54  ;;  %v2848_v62 = vsel %vm212_vm1, %v2822_v34, 0.0  ;;  %v13769_v58 = vsub.f32 %v13576_v12, %v2797_v19  ;;  %v13779_v29 = vsub.f32 %v17459_v23, %v3047_v27 }
 0xd82   :  { %v2765_v26 = vpop.xlane.xlu1 %2764  ;;  %2849 = vadd.xlane.f32.xlu1 %v2848_v62  ;;  %2864 = vadd.xlane.f32.xlu0 %v2863_v13  ;;  %v3251_v62 = vld [vmem:[%s17328_s2 + $0x40] sm:$0xff]  ;;  %v3252_v13 = vld [vmem:[%s17328_s2 + $0x48] sm:$0xff] }
 0xd83   :  { %v2794_v35 = vmul.f32 0.03125, %v2765_v26  ;;  %v2828_v21 = vmul.f32 %v13759_v7, %v13759_v7  ;;  %v2829_v25 = vmul.f32 %v13769_v58, %v13769_v58  ;;  %v3079_v52 = vmul.f32 %v13779_v29, %v13779_v29  ;;  %v3249_v26 = vld [vmem:[%s17328_s2 + $0x30] sm:$0xff] }
 0xd84   :  { %v3266_v55 = vpack.c.bf16 %v3252_v13, %v3251_v62 }
 0xd85   :  { %v13772_v11 = vsub.f32 %v13604_v8, %v2794_v35  ;;  %v2866_v44 = vsel %vm212_vm1, %v2828_v21, 0.0  ;;  %v3123_v14 = vsel %vm212_vm1, %v3079_v52, 0.0  ;;  %v3250_v35 = vld [vmem:[%s17328_s2 + $0x38] sm:$0xff] }
 0xd86   :  { %v2783_v37 = vpop.xlane.xlu1 %2782  ;;  %2867 = vadd.xlane.f32.xlu1 %v2866_v44  ;;  %2858 = vadd.xlane.f32.xlu0 %v2857_v33  ;;  %v3265_v21 = vpack.c.bf16 %v3250_v35, %v3249_v26  ;;  %v3083_v33 = vpop.xlane.xlu0 %3082 }
 0xd87   :  { %v2800_v18 = vmul.f32 0.03125, %v2783_v37  ;;  %v2826_v28 = vmul.f32 %v13772_v11, %v13772_v11  ;;  %10159 = vmatprep.subr.bf16.mxu0 %v3266_v55 }
 0xd88   :  { %10160 = vmatpush3.bf16.msra.mxu0 %v3266_v55 }
 0xd89   :  { %v13782_v12 = vsub.f32 %v13616_v38, %v2800_v18  ;;  %v2860_v8 = vsel %vm212_vm1, %v2826_v28, 0.0  ;;  %v2869_v38 = vsel %vm212_vm1, %v2829_v25, 0.0  ;;  %10161 = vmatprep.subr.bf16.mxu0 %v3265_v21 }
 0xd8a   :  { %v2777_v16 = vpop.xlane.xlu1 %2776  ;;  %2861 = vadd.xlane.f32.xlu1 %v2860_v8  ;;  %2876 = vadd.xlane.f32.xlu0 %v2875_v56  ;;  %v3089_v27 = vpop.xlane.xlu0 %3088  ;;  %v3129_v8 = vmul.f32 0.03125, %v3083_v33 }
 0xd8b   :  { %v2798_v50 = vmul.f32 0.03125, %v2777_v16  ;;  %v2832_v9 = vmul.f32 %v13782_v12, %v13782_v12  ;;  %v3131_v25 = vmul.f32 0.03125, %v3089_v27 }
 0xd8c   :  { %10162 = vmatpush3.bf16.msra.mxu0 %v3265_v21 }
 0xd8d   :  { %v13790_v59 = vsub.f32 %v13628_v24, %v2798_v50  ;;  %v2878_v23 = vsel %vm212_vm1, %v2832_v9, 0.0 }
 0xd8e   :  { %v3032_v6 = vpop.xlane.xlu1 %3031  ;;  %2879 = vadd.xlane.f32.xlu1 %v2878_v23  ;;  %2870 = vadd.xlane.f32.xlu0 %v2869_v38  ;;  %v3095_v37 = vpop.xlane.xlu0 %3094  ;;  %v3145_v23 = vadd.f32 1e-05, %v3129_v8  ;;  %v3147_v38 = vadd.f32 1e-05, %v3131_v25 }
 0xd8f   :  { %v3048_v63 = vmul.f32 0.03125, %v3032_v6  ;;  %v2830_v54 = vmul.f32 %v13790_v59, %v13790_v59  ;;  %v3133_v9 = vmul.f32 0.03125, %v3095_v37 }
 0xd90   :  { %11248 = vrsqrt.f32 %v3145_v23 }
 0xd91   :  { %v13799_v34 = vsub.f32 %v17464_v0, %v3048_v63  ;;  %v2872_v24 = vsel %vm212_vm1, %v2830_v54, 0.0  ;;  %v3149_v6 = vadd.f32 1e-05, %v3133_v9  ;;  %11250 = vrsqrt.f32 %v3147_v38 }
 0xd92   :  { %2873 = vadd.xlane.f32.xlu1 %v2872_v24  ;;  %3124 = vadd.xlane.f32.xlu0 %v3123_v14  ;;  %v3086_v2 = vpop.xlane.xlu1 %3085  ;;  %v3101_v28 = vpop.xlane.xlu0 %3100 }
 0xd93   :  { %v3080_v19 = vmul.f32 %v13799_v34, %v13799_v34  ;;  %v3130_v52 = vmul.f32 0.03125, %v3086_v2  ;;  %11252 = vrsqrt.f32 %v3149_v6  ;;  %v3135_v37 = vmul.f32 0.03125, %v3101_v28 }
 0xd95   :  { %v3126_v0 = vsel %vm212_vm1, %v3080_v19, 0.0  ;;  %v3146_v14 = vadd.f32 1e-05, %v3130_v52 }
 0xd96   :  { %3127 = vadd.xlane.f32.xlu1 %v3126_v0  ;;  %v3092_v44 = vpop.xlane.xlu1 %3091  ;;  %v3107_v16 = vpop.xlane.xlu0 %3106 }
 0xd97   :  { %v3132_v63 = vmul.f32 0.03125, %v3092_v44  ;;  %11254 = vrsqrt.f32 %v3146_v14  ;;  %v17366_v44 = vsub.s32 1, %v17453_v48  ;;  %v3137_v23 = vmul.f32 0.03125, %v3107_v16 }
 0xd99   :  { %v3148_v19 = vadd.f32 1e-05, %v3132_v63  ;;  %v13827_v16 = vrot.slane %v13476_v30, %v17366_v44 }
 0xd9a   :  { %v3098_v18 = vpop.xlane.xlu1 %3097  ;;  %v3113_v54 = vpop.xlane.xlu0 %3112 }
 0xd9b   :  { %11256 = vrsqrt.f32 %v3148_v19  ;;  %v3134_v55 = vmul.f32 0.03125, %v3098_v18  ;;  %v17365_v18 = vsub.s32 2, %v17453_v48  ;;  %v3139_v63 = vmul.f32 0.03125, %v3113_v54 }
 0xd9d   :  { %v3150_v8 = vadd.f32 1e-05, %v3134_v55  ;;  %v11249_v6 = vpop.eup %11248  ;;  %v13832_v54 = vrot.slane %v13476_v30, %v17365_v18 }
 0xd9e   :  { %v3104_v56 = vpop.xlane.xlu1 %3103  ;;  %v11251_v14 = vpop.eup %11250 }
 0xd9f   :  { %v3136_v33 = vmul.f32 0.03125, %v3104_v56 }
 0xda0   :  { %v11253_v55 = vpop.eup %11252 }
 0xda1   :  { %v3152_v19 = vadd.f32 1e-05, %v3136_v33  ;;  %v3179_v33 = vmul.f32 %v11251_v14, %v13594_v49  ;;  %v17362_v49 = vsub.s32 6, %v17453_v48 }
 0xda2   :  { %v3110_v50 = vpop.xlane.xlu1 %3109 }
 0xda6   :  { %v3116_v24 = vpop.xlane.xlu1 %3115 }
 0xdf7   :  { %v13818_v62 = vpop.xlane.xlu1 %3121  ;;  %v13820_v13 = vpop.xlane.xlu0 %3118 }
 0xdfb   :  { %v2844_v0 = vpop.xlane.xlu1 %2843  ;;  %v2841_v26 = vpop.xlane.xlu0 %2840 }
 0xdfc   :  { %v2884_v35 = vmul.f32 0.03125, %v2844_v0  ;;  %v2883_v21 = vmul.f32 0.03125, %v2841_v26  ;;  %v3151_v26 = vadd.f32 1e-05, %v3135_v37  ;;  %v3155_v37 = vadd.f32 1e-05, %v3139_v63 }
 0xdfe   :  { %v2900_v2 = vadd.f32 1e-05, %v2884_v35  ;;  %v2899_v27 = vadd.f32 1e-05, %v2883_v21  ;;  %v3138_v35 = vmul.f32 0.03125, %v3110_v50  ;;  %v3177_v50 = vmul.f32 %v11249_v6, %v13581_v5 }
 0xdff   :  { %v2838_v25 = vpop.xlane.xlu1 %2837  ;;  %v2835_v9 = vpop.xlane.xlu0 %2834  ;;  %v3153_v21 = vadd.f32 1e-05, %v3137_v23  ;;  %v3140_v23 = vmul.f32 0.03125, %v3116_v24  ;;  %v3199_v5 = vmul.f32 %v13827_v16, %v3179_v33 }
 0xe00   :  { %11258 = vrsqrt.f32 %v2900_v2  ;;  %v2882_v38 = vmul.f32 0.03125, %v2838_v25  ;;  %v2881_v52 = vmul.f32 0.03125, %v2835_v9  ;;  %v3154_v9 = vadd.f32 1e-05, %v3138_v35 }
 0xe01   :  { %11260 = vrsqrt.f32 %v2899_v27  ;;  %v11255_v27 = vpop.eup %11254  ;;  %v3197_v63 = vmul.f32 %v13827_v16, %v3177_v50  ;;  %v3156_v35 = vadd.f32 1e-05, %v3140_v23  ;;  %v3142_v23 = vmul.f32 0.03125, %v13818_v62 }
 0xe02   :  { %v2898_v56 = vadd.f32 1e-05, %v2882_v38  ;;  %v2897_v0 = vadd.f32 1e-05, %v2881_v52  ;;  %11262 = vrsqrt.f32 %v3150_v8  ;;  %v17363_v8 = vsub.s32 5, %v17453_v48 }
 0xe03   :  { %v2853_v28 = vpop.xlane.xlu0 %2852  ;;  %v3178_v6 = vmul.f32 %v11255_v27, %v13631_v22  ;;  %v13852_v22 = vrot.slane %v13476_v30, %v17362_v49 }
 0xe04   :  { %11264 = vrsqrt.f32 %v2898_v56  ;;  %v2887_v2 = vmul.f32 0.03125, %v2853_v28  ;;  %v3181_v56 = vmul.f32 %v11253_v55, %v13607_v45  ;;  %v11257_v28 = vpop.eup %11256  ;;  %v13845_v24 = vrot.slane %v13476_v30, %v17363_v8 }
 0xe05   :  { %11266 = vrsqrt.f32 %v2897_v0 }
 0xe06   :  { %11268 = vrsqrt.f32 %v3152_v19  ;;  %v2903_v25 = vadd.f32 1e-05, %v2887_v2  ;;  %v3201_v2 = vmul.f32 %v13827_v16, %v3181_v56 }
 0xe07   :  { %11270 = vrsqrt.f32 %v3151_v26  ;;  %v2856_v38 = vpop.xlane.xlu1 %2855  ;;  %v2847_v52 = vpop.xlane.xlu0 %2846  ;;  %v3180_v26 = vmul.f32 %v11257_v28, %v13642_v43  ;;  %v3198_v43 = vmul.f32 %v13827_v16, %v3178_v6 }
 0xe08   :  { %11272 = vrsqrt.f32 %v3153_v21  ;;  %v2888_v14 = vmul.f32 0.03125, %v2856_v38  ;;  %v2885_v0 = vmul.f32 0.03125, %v2847_v52 }
 0xe09   :  { %11274 = vrsqrt.f32 %v2903_v25  ;;  %v13857_v25 = vadd.f32 %v13832_v54, %v3197_v63  ;;  %v3200_v56 = vmul.f32 %v13827_v16, %v3180_v26  ;;  %v3218_v26 = vadd.f32 %v13832_v54, %v3198_v43 }
 0xe0a   :  { %11276 = vrsqrt.f32 %v3155_v37  ;;  %v2904_v45 = vadd.f32 1e-05, %v2888_v14  ;;  %v2901_v19 = vadd.f32 1e-05, %v2885_v0  ;;  %v3219_v37 = vadd.f32 %v13832_v54, %v3199_v5 }
 0xe0b   :  { %11278 = vrsqrt.f32 %v3154_v9  ;;  %v2850_v55 = vpop.xlane.xlu1 %2849  ;;  %v2865_v21 = vpop.xlane.xlu0 %2864  ;;  %v13864_v5 = vadd.f32 %v13832_v54, %v3201_v2 }
 0xe0c   :  { %11280 = vrsqrt.f32 %v2904_v45  ;;  %v2886_v33 = vmul.f32 0.03125, %v2850_v55  ;;  %v2891_v50 = vmul.f32 0.03125, %v2865_v21 }
 0xe0d   :  { %v11259_v27 = vpop.eup %11258  ;;  %11282 = vrsqrt.f32 %v2901_v19 }
 0xe0e   :  { %v11261_v9 = vpop.eup %11260  ;;  %v2932_v38 = vmul.f32 %v11259_v27, %v13690_v41  ;;  %v2902_v52 = vadd.f32 1e-05, %v2886_v33  ;;  %v2907_v30 = vadd.f32 1e-05, %v2891_v50  ;;  %11284 = vrsqrt.f32 %v3156_v35 }
 0xe0f   :  { %v2931_v28 = vmul.f32 %v11261_v9, %v13687_v10  ;;  %v2868_v14 = vpop.xlane.xlu1 %2867  ;;  %v2859_v0 = vpop.xlane.xlu0 %2858  ;;  %v3141_v41 = vmul.f32 0.03125, %v13820_v13  ;;  %v3158_v35 = vadd.f32 1e-05, %v3142_v23  ;;  %v3220_v27 = vadd.f32 %v13832_v54, %v3200_v56 }
 0xe10   :  { %v11263_v6 = vpop.eup %11262  ;;  %v2952_v63 = vmul.f32 %v13845_v24, %v2932_v38  ;;  %11286 = vrsqrt.f32 %v2902_v52  ;;  %v2892_v45 = vmul.f32 0.03125, %v2868_v14  ;;  %v2889_v62 = vmul.f32 0.03125, %v2859_v0 }
 0xe11   :  { %v11265_v19 = vpop.eup %11264  ;;  %v2951_v55 = vmul.f32 %v13845_v24, %v2931_v28  ;;  %11288 = vrsqrt.f32 %v2907_v30  ;;  %v3182_v56 = vmul.f32 %v11263_v6, %v13658_v47 }
 0xe12   :  { %v11267_v10 = vpop.eup %11266  ;;  %v2908_v21 = vadd.f32 1e-05, %v2892_v45  ;;  %v2905_v33 = vadd.f32 1e-05, %v2889_v62  ;;  %v2930_v2 = vmul.f32 %v11265_v19, %v13708_v60  ;;  %v2972_v9 = vadd.f32 %v13852_v22, %v2952_v63 }
 0xe13   :  { %v11269_v50 = vpop.eup %11268  ;;  %v2971_v38 = vadd.f32 %v13852_v22, %v2951_v55  ;;  %v2862_v52 = vpop.xlane.xlu1 %2861  ;;  %v2929_v28 = vmul.f32 %v11267_v10, %v13703_v15  ;;  %v3157_v45 = vadd.f32 1e-05, %v3141_v41 }
 0xe14   :  { %v2877_v13 = vpop.xlane.xlu0 %2876  ;;  %v11271_v30 = vpop.eup %11270  ;;  %11290 = vrsqrt.f32 %v2908_v21  ;;  %v2890_v43 = vmul.f32 0.03125, %v2862_v52  ;;  %v2950_v23 = vmul.f32 %v13845_v24, %v2930_v2  ;;  %v3184_v15 = vmul.f32 %v11269_v50, %v13665_v20 }
 0xe15   :  { %v2895_v14 = vmul.f32 0.03125, %v2877_v13  ;;  %v11273_v0 = vpop.eup %11272  ;;  %11292 = vrsqrt.f32 %v2905_v33  ;;  %v2949_v60 = vmul.f32 %v13845_v24, %v2929_v28  ;;  %v13883_v41 = vadd.f32 %v3219_v37, %v2971_v38 }
 0xe16   :  { %v11275_v63 = vpop.eup %11274  ;;  %11294 = vrsqrt.f32 %v3158_v35  ;;  %v2906_v62 = vadd.f32 1e-05, %v2890_v43  ;;  %v2970_v19 = vadd.f32 %v13852_v22, %v2950_v23  ;;  %v13885_v33 = vadd.f32 %v3220_v27, %v2972_v9 }
 0xe17   :  { %v13880_v55 = vpop.eup %11276  ;;  %v2911_v10 = vadd.f32 1e-05, %v2895_v14  ;;  %v2880_v21 = vpop.xlane.xlu1 %2879  ;;  %v2969_v2 = vadd.f32 %v13852_v22, %v2949_v60  ;;  %17465 = vst [vmem:[#allocation4_spill] sm:$0xff] %v13883_v41  ;;  %v2935_v50 = vmul.f32 %v11275_v63, %v13717_v46  ;;  %v3183_v43 = vmul.f32 %v11271_v30, %v13623_v31 }
 0xe18   :  { %v2871_v52 = vpop.xlane.xlu0 %2870  ;;  %17466 = vst [vmem:[#allocation5_spill] sm:$0xff] %v13885_v33  ;;  %v11279_v13 = vpop.eup %11278  ;;  %11296 = vrsqrt.f32 %v2906_v62  ;;  %v2896_v47 = vmul.f32 0.03125, %v2880_v21  ;;  %v13887_v35 = vadd.f32 %v3218_v26, %v2970_v19  ;;  %v3202_v27 = vmul.f32 %v13827_v16, %v3182_v56 }
 0xe19   :  { %v2893_v6 = vmul.f32 0.03125, %v2871_v52  ;;  %v11281_v28 = vpop.eup %11280  ;;  %11298 = vrsqrt.f32 %v3157_v45  ;;  %v13890_v20 = vadd.f32 %v13857_v25, %v2969_v2  ;;  %v3258_v25 = vpack.c.bf16 %v13885_v33, %v13883_v41 }
 0xe1a   :  { %17467 = vst [vmem:[#allocation3_spill] sm:$0xff] %v13887_v35  ;;  %v11283_v14 = vpop.eup %11282  ;;  %v2912_v37 = vadd.f32 1e-05, %v2896_v47  ;;  %v2936_v9 = vmul.f32 %v11281_v28, %v13734_v36  ;;  %v3204_v46 = vmul.f32 %v13827_v16, %v3184_v15  ;;  %11300 = vrsqrt.f32 %v2911_v10 }
 0xe1b   :  { %17468 = vst [vmem:[#allocation6_spill] sm:$0xff] %v13890_v20  ;;  %v2909_v38 = vadd.f32 1e-05, %v2893_v6  ;;  %v2874_v23 = vpop.xlane.xlu1 %2873  ;;  %v3257_v26 = vpack.c.bf16 %v13887_v35, %v13890_v20  ;;  %v2933_v45 = vmul.f32 %v11283_v14, %v13725_v61  ;;  %v11285_v31 = vpop.eup %11284  ;;  %v2955_v19 = vmul.f32 %v13845_v24, %v2935_v50 }
 0xe1c   :  { %v3125_v60 = vpop.xlane.xlu0 %3124  ;;  %v2894_v30 = vmul.f32 0.03125, %v2874_v23  ;;  %v2956_v56 = vmul.f32 %v13845_v24, %v2936_v9  ;;  %v3203_v21 = vmul.f32 %v13827_v16, %v3183_v43  ;;  %v3222_v47 = vadd.f32 %v13832_v54, %v3202_v27 }
 0xe1d   :  { %v3143_v63 = vmul.f32 0.03125, %v3125_v60  ;;  %v11287_v62 = vpop.eup %11286  ;;  %11302 = vrsqrt.f32 %v2909_v38  ;;  %10163 = vmatprep.mubr.msk.bf16.mxu0 %vm212_vm1, %v3257_v26  ;;  %v2953_v36 = vmul.f32 %v13845_v24, %v2933_v45  ;;  %v3224_v28 = vadd.f32 %v13832_v54, %v3204_v46 }
 0xe1e   :  { %v11289_v52 = vpop.eup %11288  ;;  %11304 = vrsqrt.f32 %v2912_v37  ;;  %v2910_v61 = vadd.f32 1e-05, %v2894_v30  ;;  %10164 = vmatmul.mubr.msk.bf16.vlgmr.msra.gmra.mxu0 %vm212_vm1, %v3258_v25  ;;  %v2934_v10 = vmul.f32 %v11287_v62, %v13745_v53  ;;  %v2976_v6 = vadd.f32 %v13852_v22, %v2956_v56 }
 0xe1f   :  { %v3159_v15 = vadd.f32 1e-05, %v3143_v63  ;;  %v3128_v2 = vpop.xlane.xlu1 %3127  ;;  %v3185_v14 = vmul.f32 %v11273_v0, %v13635_v42  ;;  %v2973_v37 = vadd.f32 %v13852_v22, %v2953_v36  ;;  %v2975_v9 = vadd.f32 %v13852_v22, %v2955_v19 }
 0xe20   :  { %11306 = vrsqrt.f32 %v2910_v61  ;;  %v3144_v50 = vmul.f32 0.03125, %v3128_v2  ;;  %v2954_v43 = vmul.f32 %v13845_v24, %v2934_v10  ;;  %v2939_v53 = vmul.f32 %v11289_v52, %v13731_v39 }
 0xe21   :  { %v11291_v38 = vpop.eup %11290  ;;  %11308 = vrsqrt.f32 %v3159_v15  ;;  %v3188_v27 = vmul.f32 %v11285_v31, %v13677_v51  ;;  %v3186_v42 = vmul.f32 %v11279_v13, %v13671_v40  ;;  %v3223_v45 = vadd.f32 %v13832_v54, %v3203_v21 }
 0xe22   :  { %v11293_v23 = vpop.eup %11292  ;;  %v3160_v60 = vadd.f32 1e-05, %v3144_v50  ;;  %v2974_v26 = vadd.f32 %v13852_v22, %v2954_v43  ;;  %v2940_v0 = vmul.f32 %v11291_v38, %v13759_v7  ;;  %v13922_v46 = vadd.f32 %v3224_v28, %v2976_v6 }
 0xe23   :  { %v11295_v25 = vpop.eup %11294  ;;  %v2937_v30 = vmul.f32 %v11293_v23, %v13742_v1  ;;  %v3187_v39 = vmul.f32 %v13880_v55, %v13649_v32  ;;  %v13928_v51 = vadd.f32 %v13864_v5, %v2973_v37  ;;  %v13933_v7 = vadd.f32 %v3223_v45, %v2975_v9 }
 0xe24   :  { %17469 = vst [vmem:[#allocation8_spill] sm:$0xff] %v13922_v46  ;;  %11310 = vrsqrt.f32 %v3160_v60  ;;  %v13930_v31 = vadd.f32 %v3222_v47, %v2974_v26  ;;  %v2960_v40 = vmul.f32 %v13845_v24, %v2940_v0  ;;  %v2959_v56 = vmul.f32 %v13845_v24, %v2939_v53 }
 0xe25   :  { %17470 = vst [vmem:[#allocation10_spill] sm:$0xff] %v13928_v51  ;;  %v11297_v13 = vpop.eup %11296  ;;  %17472 = vst [vmem:[#allocation17_spill] sm:$0xff] %v13933_v7  ;;  %v2957_v63 = vmul.f32 %v13845_v24, %v2937_v30  ;;  %v3208_v1 = vmul.f32 %v13827_v16, %v3188_v27  ;;  %v3205_v55 = vmul.f32 %v13827_v16, %v3185_v14 }
 0xe26   :  { %17471 = vst [vmem:[#allocation16_spill] sm:$0xff] %v13930_v31  ;;  %v11299_v62 = vpop.eup %11298  ;;  %v3259_v32 = vpack.c.bf16 %v13930_v31, %v13928_v51  ;;  %v2938_v5 = vmul.f32 %v11297_v13, %v13772_v11  ;;  %v3206_v36 = vmul.f32 %v13827_v16, %v3186_v42  ;;  %v3260_v19 = vpack.c.bf16 %v13922_v46, %v13933_v7 }
 0xe27   :  { %v2980_v21 = vadd.f32 %v13852_v22, %v2960_v40  ;;  %v3207_v52 = vmul.f32 %v13827_v16, %v3187_v39  ;;  %v2977_v15 = vadd.f32 %v13852_v22, %v2957_v63  ;;  %v11301_v10 = vpop.eup %11300  ;;  %v2979_v11 = vadd.f32 %v13852_v22, %v2959_v56 }
 0xe28   :  { %10167 = vmatprep.mubr.msk.bf16.mxu0 %vm212_vm1, %v3259_v32  ;;  %v2958_v61 = vmul.f32 %v13845_v24, %v2938_v5  ;;  %v3228_v2 = vadd.f32 %v13832_v54, %v3208_v1  ;;  %v3189_v47 = vmul.f32 %v11299_v62, %v13696_v3  ;;  %v3190_v6 = vmul.f32 %v11295_v25, %v13693_v4 }
 0xe29   :  { %10168 = vmatmul.mubr.msk.bf16.gmra.mxu0 %vm212_vm1, %v3260_v19  ;;  %v3225_v50 = vadd.f32 %v13832_v54, %v3205_v55  ;;  %v3226_v43 = vadd.f32 %v13832_v54, %v3206_v36  ;;  %v3227_v38 = vadd.f32 %v13832_v54, %v3207_v52 }
 0xe2a   :  { %v11303_v28 = vpop.eup %11302  ;;  %v2978_v14 = vadd.f32 %v13852_v22, %v2958_v61  ;;  %v13959_v9 = vadd.f32 %v3228_v2, %v2980_v21  ;;  %v3209_v26 = vmul.f32 %v13827_v16, %v3189_v47  ;;  %v3210_v42 = vmul.f32 %v13827_v16, %v3190_v6 }
 0xe2b   :  { %v11305_v37 = vpop.eup %11304  ;;  %v2941_v53 = vmul.f32 %v11303_v28, %v13769_v58  ;;  %v13962_v27 = vadd.f32 %v3225_v50, %v2977_v15  ;;  %v13966_v4 = vadd.f32 %v3227_v38, %v2979_v11  ;;  %v2943_v58 = vmul.f32 %v11301_v10, %v13754_v17 }
 0xe2c   :  { %17473 = vst [vmem:[#allocation18_spill] sm:$0xff] %v13959_v9  ;;  %v13964_v23 = vadd.f32 %v3226_v43, %v2978_v14  ;;  %v2944_v30 = vmul.f32 %v11305_v37, %v13782_v12  ;;  %v3230_v17 = vadd.f32 %v13832_v54, %v3210_v42  ;;  %v3269_v11 = vsub.s32 7, %v17453_v48 }
 0xe2d   :  { %17474 = vst [vmem:[#allocation20_spill] sm:$0xff] %v13962_v27  ;;  %v11307_v3 = vpop.eup %11306  ;;  %17476 = vst [vmem:[#allocation22_spill] sm:$0xff] %v13966_v4  ;;  %v2961_v60 = vmul.f32 %v13845_v24, %v2941_v53  ;;  %v3262_v39 = vpack.c.bf16 %v13959_v9, %v13966_v4  ;;  %v2963_v62 = vmul.f32 %v13845_v24, %v2943_v58 }
 0xe2e   :  { %17475 = vst [vmem:[#allocation21_spill] sm:$0xff] %v13964_v23  ;;  %v11309_v0 = vpop.eup %11308  ;;  %v3261_v25 = vpack.c.bf16 %v13964_v23, %v13962_v27  ;;  %v2942_v45 = vmul.f32 %v11307_v3, %v13790_v59  ;;  %v3229_v59 = vadd.f32 %v13832_v54, %v3209_v26 }
 0xe2f   :  { %v3191_v40 = vmul.f32 %v11309_v0, %v13779_v29  ;;  %v2981_v63 = vadd.f32 %v13852_v22, %v2961_v60  ;;  %v2964_v29 = vmul.f32 %v13845_v24, %v2944_v30  ;;  %v2983_v52 = vadd.f32 %v13852_v22, %v2963_v62 }
 0xe30   :  { %10171 = vmatprep.mubr.msk.bf16.mxu0 %vm212_vm1, %v3261_v25  ;;  %v2962_v13 = vmul.f32 %v13845_v24, %v2942_v45 }
 0xe31   :  { %v11311_v56 = vpop.eup %11310  ;;  %10172 = vmatmul.mubr.msk.bf16.gmra.mxu0 %vm212_vm1, %v3262_v39  ;;  %v3211_v12 = vmul.f32 %v13827_v16, %v3191_v40  ;;  %v13990_v5 = vadd.f32 %v3229_v59, %v2981_v63  ;;  %v2984_v61 = vadd.f32 %v13852_v22, %v2964_v29 }
 0xe32   :  { %v2982_v1 = vadd.f32 %v13852_v22, %v2962_v13  ;;  %v3192_v32 = vmul.f32 %v11311_v56, %v13799_v34 }
 0xe33   :  { %17477 = vst [vmem:[#allocation24_spill] sm:$0xff] %v13990_v5  ;;  %v3231_v19 = vadd.f32 %v13832_v54, %v3211_v12 }
 0xe34   :  { %v13992_v55 = vadd.f32 %v3230_v17, %v2982_v1  ;;  %v3212_v36 = vmul.f32 %v13827_v16, %v3192_v32 }
 0xe35   :  { %v14002_v34 = vadd.f32 %v3231_v19, %v2983_v52 }
 0xe36   :  { %17478 = vst [vmem:[#allocation25_spill] sm:$0xff] %v13992_v55  ;;  %v3263_v21 = vpack.c.bf16 %v13992_v55, %v13990_v5  ;;  %v3232_v15 = vadd.f32 %v13832_v54, %v3212_v36  ;;  %v11911_v54 = vld [vmem:[%s17330_s3] sm:$0xff] }
 0xe37   :  { %17479 = vst [vmem:[#allocation26_spill] sm:$0xff] %v14002_v34  ;;  %v3270_v22 = vrot.slane %v11911_v54, %v3269_v11 }
 0xe38   :  { %10175 = vmatprep.mubr.msk.bf16.mxu0 %vm212_vm1, %v3263_v21  ;;  %v14004_v24 = vadd.f32 %v3232_v15, %v2984_v61 }
 0xe3a   :  { %17480 = vst [vmem:[#allocation28_spill] sm:$0xff] %v14004_v24  ;;  %v3264_v16 = vpack.c.bf16 %v14004_v24, %v14002_v34 }
 0xe3c   :  { %10176 = vmatmul.mubr.msk.bf16.gmra.mxu0 %vm212_vm1, %v3264_v16 }
 0xede   :  { %v10165_v10 = vpop.f32.mrf.mxu0 }
 0xedf   :  { %v3338_v16 = vadd.f32 %v10165_v10, %v3270_v22 }
 0xee0   :  { %v3329_v2 = vpop.f32.mrf.mxu0 }
 0xee1   :  { %v3330_v28 = vadd.f32 %v3329_v2, %v3270_v22 }
 0xee2   :  { %v10166_v47 = vpop.f32.mrf.mxu0 }
 0xee3   :  { %v3341_v61 = vadd.f32 %v10166_v47, %v3270_v22 }
 0xee4   :  { %v3332_v6 = vpop.f32.mrf.mxu0 }
 0xee5   :  { %v3333_v14 = vadd.f32 %v3332_v6, %v3270_v22  ;;  %v14041_v11 = vpack.c.bf16 %v3341_v61, %v3338_v16 }
 0xee7   :  { %v14013_v50 = vpack.c.bf16 %v3333_v14, %v3330_v28 }
 0xee9   :  { %10195 = vmatprep.mubr.msk.bf16.mxu1 %vm366_vm2, %v14013_v50  ;;  %v10169_v43 = vpop.f32.mrf.mxu0 }
 0xeea   :  { %v3354_v21 = vadd.f32 %v10169_v43, %v3270_v22 }
 0xeeb   :  { %v3345_v37 = vpop.f32.mrf.mxu0 }
 0xeec   :  { %v3346_v32 = vadd.f32 %v3345_v37, %v3270_v22 }
 0xeed   :  { %v10170_v38 = vpop.f32.mrf.mxu0 }
 0xeee   :  { %v3357_v36 = vadd.f32 %v10170_v38, %v3270_v22 }
 0xeef   :  { %v3348_v53 = vpop.f32.mrf.mxu0 }
 0xef0   :  { %v3349_v1 = vadd.f32 %v3348_v53, %v3270_v22  ;;  %v14035_v15 = vpack.c.bf16 %v3357_v36, %v3354_v21  ;;  %v14116_v21 = vld [vmem:[%s17331_s1 + $0x8] sm:$0xff] }
 0xef1   :  { %v10173_v3 = vpop.f32.mrf.mxu0 }
 0xef2   :  { %v3370_v62 = vadd.f32 %v10173_v3, %v3270_v22  ;;  %v14031_v52 = vpack.c.bf16 %v3349_v1, %v3346_v32  ;;  %v14108_v32 = vld [vmem:[%s17331_s1 + $0x18] sm:$0xff] }
 0xef3   :  { %v3361_v60 = vpop.f32.mrf.mxu0 }
 0xef4   :  { %v3362_v59 = vadd.f32 %v3361_v60, %v3270_v22 }
 0xef5   :  { %v10174_v26 = vpop.f32.mrf.mxu0 }
 0xef6   :  { %v3373_v17 = vadd.f32 %v10174_v26, %v3270_v22 }
 0xef7   :  { %v3364_v42 = vpop.f32.mrf.mxu0 }
 0xef8   :  { %v3365_v40 = vadd.f32 %v3364_v42, %v3270_v22  ;;  %v14027_v19 = vpack.c.bf16 %v3373_v17, %v3370_v62 }
 0xefa   :  { %v14023_v29 = vpack.c.bf16 %v3365_v40, %v3362_v59  ;;  %v14090_v40 = vld [vmem:[%s17331_s1 + $0x10] sm:$0xff]  ;;  %v14098_v59 = vld [vmem:[%s17331_s1] sm:$0xff] }
 0xefc   :  { %v10177_v0 = vpop.f32.mrf.mxu0 }
 0xefd   :  { %v3386_v58 = vadd.f32 %v10177_v0, %v3270_v22 }
 0xefe   :  { %v3377_v25 = vpop.f32.mrf.mxu0 }
 0xeff   :  { %v3378_v13 = vadd.f32 %v3377_v25, %v3270_v22 }
 0xf00   :  { %v10178_v45 = vpop.f32.mrf.mxu0 }
 0xf01   :  { %v3389_v30 = vadd.f32 %v10178_v45, %v3270_v22 }
 0xf02   :  { %v3380_v39 = vpop.f32.mrf.mxu0 }
 0xf03   :  { %v14017_v63 = vpack.c.bf16 %v3389_v30, %v3386_v58  ;;  %v3381_v56 = vadd.f32 %v3380_v39, %v3270_v22 }
 0xf05   :  { %v14019_v12 = vpack.c.bf16 %v3381_v56, %v3378_v13  ;;  %3422 = vrot.lane.b32.xlu0 %v14017_v63, %s11961_s8 }
 0xf07   :  { %3420 = vrot.lane.b32.xlu1 %v14019_v12, %s11961_s8 }
 0xf09   :  { %3416 = vrot.lane.b32.xlu0 %v14023_v29, %s11961_s8 }
 0xf0b   :  { %3418 = vrot.lane.b32.xlu1 %v14027_v19, %s11961_s8 }
 0xf0d   :  { %3412 = vrot.lane.b32.xlu0 %v14031_v52, %s11961_s8 }
 0xf0f   :  { %3414 = vrot.lane.b32.xlu1 %v14035_v15, %s11961_s8 }
 0xf11   :  { %3408 = vrot.lane.b32.xlu0 %v14013_v50, %s11961_s8 }
 0xf13   :  { %3410 = vrot.lane.b32.xlu1 %v14041_v11, %s11961_s8 }
 0xf15   :  { %3735 = vrot.lane.b32.xlu0 %v14017_v63, %s11962_s9 }
 0xf17   :  { %3733 = vrot.lane.b32.xlu1 %v14019_v12, %s11962_s9 }
 0xf19   :  { %3731 = vrot.lane.b32.xlu0 %v14027_v19, %s11962_s9 }
 0xf1d   :  { %3729 = vrot.lane.b32.xlu0 %v14023_v29, %s11962_s9 }
 0xf21   :  { %3727 = vrot.lane.b32.xlu0 %v14035_v15, %s11962_s9 }
 0xf77   :  { %v3423_v10 = vpop.permute.xlu0 %3422 }
 0xf78   :  { %10907 = vmatprep.subr.msk.bf16.mxu1 %vm366_vm2, %v3423_v10  ;;  %v3470_v2 = vsel %vm366_vm2, %v3423_v10, 0 }
 0xf79   :  { %10180 = vmatpush3.bf16.xpose.msra.mxu1 %v3470_v2  ;;  %v3421_v47 = vpop.permute.xlu1 %3420 }
 0xf7a   :  { %10908 = vmatprep.subr.msk.bf16.mxu1 %vm366_vm2, %v3421_v47  ;;  %v3467_v28 = vsel %vm366_vm2, %v3421_v47, 0 }
 0xf7b   :  { %v3417_v54 = vpop.permute.xlu0 %3416 }
 0xf7c   :  { %v3461_v42 = vsel %vm366_vm2, %v3417_v54, 0 }
 0xf7d   :  { %v3419_v22 = vpop.permute.xlu1 %3418 }
 0xf7e   :  { %v3464_v53 = vsel %vm366_vm2, %v3419_v22, 0 }
 0xf7f   :  { %v3413_v6 = vpop.permute.xlu0 %3412 }
 0xf80   :  { %v3455_v45 = vsel %vm366_vm2, %v3413_v6, 0 }
 0xf81   :  { %10182 = vmatpush3.bf16.xpose.msra.mxu1 %v3467_v28  ;;  %v3415_v14 = vpop.permute.xlu1 %3414  ;;  %v14138_v28 = vld [vmem:[%s17331_s1 + $0x38] sm:$0xff] }
 0xf82   :  { %10909 = vmatprep.subr.msk.bf16.mxu1 %vm366_vm2, %v3419_v22  ;;  %v3458_v25 = vsel %vm366_vm2, %v3415_v14, 0  ;;  %v14130_v22 = vld [vmem:[%s17331_s1 + $0x30] sm:$0xff] }
 0xf83   :  { %v3409_v43 = vpop.permute.xlu0 %3408 }
 0xf84   :  { %v3449_v30 = vsel %vm366_vm2, %v3409_v43, 0 }
 0xf85   :  { %v3411_v37 = vpop.permute.xlu1 %3410 }
 0xf86   :  { %v3452_v58 = vsel %vm366_vm2, %v3411_v37, 0 }
 0xf87   :  { %v3736_v38 = vpop.permute.xlu0 %3735 }
 0xf88   :  { %10211 = vmatprep.subr.bf16.mxu0 %v3736_v38 }
 0xf89   :  { %10184 = vmatpush3.bf16.xpose.msra.mxu1 %v3464_v53  ;;  %10212 = vmatpush3.bf16.msra.mxu0 %v3736_v38  ;;  %v3734_v3 = vpop.permute.xlu1 %3733  ;;  %v14156_v53 = vld [vmem:[%s17331_s1 + $0x28] sm:$0xff] }
 0xf8a   :  { %10910 = vmatprep.subr.msk.bf16.mxu1 %vm366_vm2, %v3417_v54  ;;  %10213 = vmatprep.subr.bf16.mxu0 %v3734_v3 }
 0xf8b   :  { %v3732_v60 = vpop.permute.xlu0 %3731 }
 0xf8d   :  { %10214 = vmatpush3.bf16.msra.mxu0 %v3734_v3 }
 0xf8e   :  { %10215 = vmatprep.subr.bf16.mxu0 %v3732_v60 }
 0xf8f   :  { %v3730_v26 = vpop.permute.xlu0 %3729 }
 0xf91   :  { %10186 = vmatpush3.bf16.xpose.msra.mxu1 %v3461_v42  ;;  %10216 = vmatpush3.bf16.msra.mxu0 %v3732_v60 }
 0xf92   :  { %10911 = vmatprep.subr.msk.bf16.mxu1 %vm366_vm2, %v3415_v14  ;;  %10217 = vmatprep.subr.bf16.mxu0 %v3730_v26 }
 0xf93   :  { %v3728_v0 = vpop.permute.xlu0 %3727 }
 0xf95   :  { %10218 = vmatpush3.bf16.msra.mxu0 %v3730_v26  ;;  %v14166_v26 = vld [vmem:[%s17331_s1 + $0x50] sm:$0xff] }
 0xf96   :  { %10219 = vmatprep.subr.bf16.mxu0 %v3728_v0 }
 0xf99   :  { %10188 = vmatpush3.bf16.xpose.msra.mxu1 %v3458_v25  ;;  %10220 = vmatpush3.bf16.msra.mxu0 %v3728_v0  ;;  %v14174_v0 = vld [vmem:[%s17331_s1 + $0x58] sm:$0xff] }
 0xf9a   :  { %10912 = vmatprep.subr.msk.bf16.mxu1 %vm366_vm2, %v3413_v6 }
 0xfa1   :  { %10190 = vmatpush3.bf16.xpose.msra.mxu1 %v3455_v45 }
 0xfa2   :  { %10913 = vmatprep.subr.msk.bf16.mxu1 %vm366_vm2, %v3411_v37  ;;  %v14148_v37 = vld [vmem:[%s17331_s1 + $0x20] sm:$0xff] }
 0xfa9   :  { %10192 = vmatpush3.bf16.xpose.msra.mxu1 %v3452_v58  ;;  %v14184_v58 = vld [vmem:[%s17331_s1 + $0x40] sm:$0xff] }
 0xfaa   :  { %10914 = vmatprep.subr.msk.bf16.mxu1 %vm366_vm2, %v3409_v43 }
 0xfb1   :  { %10194 = vmatpush3.bf16.xpose.msra.mxu1 %v3449_v30 }
 0xfb8   :  { %10196 = vmatmul.mubr.msk.bf16.vlgmr.msra.gmra.mxu1 %vm366_vm2, %v14041_v11 }
 0xfb9   :  { %10199 = vmatprep.mubr.msk.bf16.mxu1 %vm366_vm2, %v14031_v52 }
 0xfc0   :  { %10200 = vmatmul.mubr.msk.bf16.gmra.mxu1 %vm366_vm2, %v14035_v15 }
 0xfc1   :  { %10203 = vmatprep.mubr.msk.bf16.mxu1 %vm366_vm2, %v14023_v29 }
 0xfc8   :  { %10204 = vmatmul.mubr.msk.bf16.gmra.mxu1 %vm366_vm2, %v14027_v19 }
 0xfc9   :  { %10207 = vmatprep.mubr.msk.bf16.mxu1 %vm366_vm2, %v14019_v12 }
 0xfd0   :  { %10208 = vmatmul.mubr.msk.bf16.gmra.mxu1 %vm366_vm2, %v14017_v63 }
0x1078   :  { %v10197_v39 = vpop.f32.mrf.mxu1 }
0x1079   :  { %v14093_v13 = vadd.f32 %v14090_v40, %v10197_v39  ;;  %v14192_v39 = vld [vmem:[%s17331_s1 + $0x48] sm:$0xff] }
0x107a   :  { %v3506_v56 = vpop.f32.mrf.mxu1 }
0x107b   :  { %v14101_v17 = vadd.f32 %v14098_v59, %v3506_v56  ;;  %3573 = vmax.xlane.f32.xlu0 %v14093_v13 }
0x107c   :  { %v10198_v1 = vpop.f32.mrf.mxu1 }
0x107d   :  { %3569 = vmax.xlane.f32.xlu1 %v14101_v17  ;;  %v14111_v36 = vadd.f32 %v14108_v32, %v10198_v1 }
0x107e   :  { %v3509_v62 = vpop.f32.mrf.mxu1 }
0x107f   :  { %v14119_v61 = vadd.f32 %v14116_v21, %v3509_v62  ;;  %v14202_v62 = vld [vmem:[%s17331_s1 + $0x70] sm:$0xff] }
0x1080   :  { %v10201_v16 = vpop.f32.mrf.mxu1 }
0x1081   :  { %3571 = vmax.xlane.f32.xlu0 %v14119_v61  ;;  %3575 = vmax.xlane.f32.xlu1 %v14111_v36  ;;  %v14133_v6 = vadd.f32 %v14130_v22, %v10201_v16 }
0x1082   :  { %v3522_v10 = vpop.f32.mrf.mxu1 }
0x1083   :  { %v14151_v38 = vadd.f32 %v14148_v37, %v3522_v10 }
0x1084   :  { %v10202_v2 = vpop.f32.mrf.mxu1 }
0x1085   :  { %v14141_v14 = vadd.f32 %v14138_v28, %v10202_v2  ;;  %v14211_v2 = vld [vmem:[%s17331_s1 + $0x60] sm:$0xff] }
0x1086   :  { %v3525_v47 = vpop.f32.mrf.mxu1 }
0x1087   :  { %v14159_v3 = vadd.f32 %v14156_v53, %v3525_v47 }
0x1088   :  { %v10205_v54 = vpop.f32.mrf.mxu1 }
0x1089   :  { %v14169_v42 = vadd.f32 %v14166_v26, %v10205_v54 }
0x108a   :  { %v3538_v43 = vpop.f32.mrf.mxu1 }
0x108b   :  { %v14187_v30 = vadd.f32 %v14184_v58, %v3538_v43  ;;  %v14230_v43 = vld [vmem:[%s17331_s1 + $0x78] sm:$0xff] }
0x108c   :  { %v10206_v60 = vpop.f32.mrf.mxu1 }
0x108d   :  { %v14177_v25 = vadd.f32 %v14174_v0, %v10206_v60 }
0x108e   :  { %v3541_v45 = vpop.f32.mrf.mxu1 }
0x108f   :  { %v14195_v56 = vadd.f32 %v14192_v39, %v3541_v45 }
0x1090   :  { %v10209_v1 = vpop.f32.mrf.mxu1 }
0x1091   :  { %v14205_v16 = vadd.f32 %v14202_v62, %v10209_v1  ;;  %v14239_v1 = vld [vmem:[%s17331_s1 + $0x68] sm:$0xff] }
0x1092   :  { %3723 = vrot.lane.b32.xlu1 %v14041_v11, %s11962_s9  ;;  %v3554_v10 = vpop.f32.mrf.mxu1 }
0x1093   :  { %v14214_v47 = vadd.f32 %v14211_v2, %v3554_v10 }
0x1094   :  { %v10210_v54 = vpop.f32.mrf.mxu1 }
0x1095   :  { %v14233_v60 = vadd.f32 %v14230_v43, %v10210_v54 }
0x1096   :  { %v3557_v45 = vpop.f32.mrf.mxu1 }
0x1097   :  { %3725 = vrot.lane.b32.xlu0 %v14031_v52, %s11962_s9  ;;  %v14242_v10 = vadd.f32 %v14239_v1, %v3557_v45 }
0x10b6   :  { %3581 = vmax.xlane.f32.xlu0 %v14133_v6  ;;  %3583 = vmax.xlane.f32.xlu1 %v14141_v14 }
0x10ba   :  { %3577 = vmax.xlane.f32.xlu0 %v14151_v38  ;;  %3579 = vmax.xlane.f32.xlu1 %v14159_v3 }
0x10be   :  { %3589 = vmax.xlane.f32.xlu0 %v14169_v42  ;;  %3591 = vmax.xlane.f32.xlu1 %v14177_v25 }
0x10c2   :  { %3585 = vmax.xlane.f32.xlu0 %v14187_v30  ;;  %3587 = vmax.xlane.f32.xlu1 %v14195_v56 }
0x10c6   :  { %3597 = vmax.xlane.f32.xlu0 %v14205_v16 }
0x10ca   :  { %3593 = vmax.xlane.f32.xlu0 %v14214_v47 }
0x10d3   :  { %3881 = vrot.lane.b32.xlu1 %v14017_v63, %s11963_s18 }
0x10e0   :  { %3721 = vrot.lane.b32.xlu0 %v14013_v50, %s11962_s9 }
0x10e4   :  { %3879 = vrot.lane.b32.xlu0 %v14019_v12, %s11963_s18 }
0x10e8   :  { %3877 = vrot.lane.b32.xlu0 %v14027_v19, %s11963_s18 }
0x10ec   :  { %3873 = vrot.lane.b32.xlu0 %v14035_v15, %s11963_s18 }
0x10f7   :  { %3599 = vmax.xlane.f32.xlu1 %v14233_v60 }
0x10fb   :  { %3595 = vmax.xlane.f32.xlu1 %v14242_v10 }
0x1104   :  { %v3574_v49 = vpop.xlane.xlu0 %3573 }
0x1105   :  { %v3603_v8 = vsub.f32 %v14093_v13, %v3574_v49 }
0x1106   :  { %v3570_v57 = vpop.xlane.xlu1 %3569 }
0x1107   :  { %v3621_v18 = vmul.f32 1.442695, %v3603_v8  ;;  %v3601_v54 = vsub.f32 %v14101_v17, %v3570_v57 }
0x1109   :  { %11312 = vpow2.f32 %v3621_v18  ;;  %v3617_v44 = vmul.f32 1.442695, %v3601_v54 }
0x110a   :  { %v3572_v24 = vpop.xlane.xlu0 %3571  ;;  %v3576_v55 = vpop.xlane.xlu1 %3575 }
0x110b   :  { %v3604_v5 = vsub.f32 %v14111_v36, %v3576_v55  ;;  %11314 = vpow2.f32 %v3617_v44  ;;  %v3602_v23 = vsub.f32 %v14119_v61, %v3572_v24 }
0x110d   :  { %v3623_v45 = vmul.f32 1.442695, %v3604_v5  ;;  %v3619_v4 = vmul.f32 1.442695, %v3602_v23 }
0x110e   :  { %v3726_v9 = vpop.permute.xlu0 %3725  ;;  %v3724_v27 = vpop.permute.xlu1 %3723 }
0x110f   :  { %10221 = vmatprep.subr.bf16.mxu0 %v3726_v9  ;;  %11316 = vpow2.f32 %v3623_v45 }
0x1110   :  { %10222 = vmatpush3.bf16.msra.mxu0 %v3726_v9  ;;  %11318 = vpow2.f32 %v3619_v4 }
0x1111   :  { %10223 = vmatprep.subr.bf16.mxu0 %v3724_v27 }
0x1114   :  { %10224 = vmatpush3.bf16.msra.mxu0 %v3724_v27 }
0x1116   :  { %v14249_v57 = vpop.eup %11312 }
0x1117   :  { %3653 = vadd.xlane.f32.xlu1 %v14249_v57 }
0x1118   :  { %v14252_v18 = vpop.eup %11314 }
0x111b   :  { %3649 = vadd.xlane.f32.xlu1 %v14252_v18 }
0x111c   :  { %v14255_v44 = vpop.eup %11316 }
0x111d   :  { %v14258_v8 = vpop.eup %11318 }
0x111f   :  { %3655 = vadd.xlane.f32.xlu1 %v14255_v44 }
0x1123   :  { %3651 = vadd.xlane.f32.xlu1 %v14258_v8 }
0x1134   :  { %3875 = vrot.lane.b32.xlu1 %v14023_v29, %s11963_s18 }
0x113f   :  { %v3582_v49 = vpop.xlane.xlu0 %3581  ;;  %v3584_v9 = vpop.xlane.xlu1 %3583 }
0x1140   :  { %v3607_v27 = vsub.f32 %v14133_v6, %v3582_v49  ;;  %v3608_v13 = vsub.f32 %v14141_v14, %v3584_v9 }
0x1142   :  { %v3629_v23 = vmul.f32 1.442695, %v3607_v27  ;;  %v3631_v54 = vmul.f32 1.442695, %v3608_v13 }
0x1143   :  { %v3578_v4 = vpop.xlane.xlu0 %3577  ;;  %v3580_v5 = vpop.xlane.xlu1 %3579 }
0x1144   :  { %11320 = vpow2.f32 %v3629_v23  ;;  %v3605_v55 = vsub.f32 %v14151_v38, %v3578_v4  ;;  %v3606_v24 = vsub.f32 %v14159_v3, %v3580_v5 }
0x1146   :  { %v3625_v17 = vmul.f32 1.442695, %v3605_v55  ;;  %v3627_v36 = vmul.f32 1.442695, %v3606_v24 }
0x1147   :  { %v3590_v61 = vpop.xlane.xlu0 %3589  ;;  %v3592_v6 = vpop.xlane.xlu1 %3591 }
0x1148   :  { %11322 = vpow2.f32 %v3627_v36  ;;  %v3611_v45 = vsub.f32 %v14169_v42, %v3590_v61  ;;  %v3612_v14 = vsub.f32 %v14177_v25, %v3592_v6 }
0x1149   :  { %11324 = vpow2.f32 %v3625_v17 }
0x114a   :  { %11326 = vpow2.f32 %v3631_v54  ;;  %v3637_v49 = vmul.f32 1.442695, %v3611_v45 }
0x114b   :  { %v3586_v34 = vpop.xlane.xlu0 %3585  ;;  %v3588_v5 = vpop.xlane.xlu1 %3587 }
0x114c   :  { %v3609_v27 = vsub.f32 %v14187_v30, %v3586_v34  ;;  %11328 = vpow2.f32 %v3637_v49  ;;  %v3639_v34 = vmul.f32 1.442695, %v3612_v14  ;;  %v3610_v30 = vsub.f32 %v14195_v56, %v3588_v5 }
0x114e   :  { %v3633_v9 = vmul.f32 1.442695, %v3609_v27 }
0x114f   :  { %v3598_v23 = vpop.xlane.xlu0 %3597  ;;  %v14282_v17 = vpop.permute.xlu1 %3881 }
0x1150   :  { %v3615_v38 = vsub.f32 %v14205_v16, %v3598_v23 }
0x1151   :  { %v14270_v3 = vpop.eup %11320 }
0x1152   :  { %v3645_v4 = vmul.f32 1.442695, %v3615_v38  ;;  %3661 = vadd.xlane.f32.xlu0 %v14270_v3 }
0x1153   :  { %v3594_v42 = vpop.xlane.xlu0 %3593 }
0x1154   :  { %11330 = vpow2.f32 %v3645_v4  ;;  %v3613_v55 = vsub.f32 %v14214_v47, %v3594_v42  ;;  %v3635_v47 = vmul.f32 1.442695, %v3610_v30 }
0x1155   :  { %v14275_v24 = vpop.eup %11322  ;;  %11332 = vpow2.f32 %v3633_v9 }
0x1156   :  { %v3641_v16 = vmul.f32 1.442695, %v3613_v55  ;;  %v14278_v13 = vpop.eup %11324  ;;  %3659 = vadd.xlane.f32.xlu0 %v14275_v24 }
0x1157   :  { %v3722_v25 = vpop.permute.xlu0 %3721  ;;  %v14286_v36 = vpop.eup %11326 }
0x1158   :  { %11334 = vpow2.f32 %v3641_v16  ;;  %3657 = vadd.xlane.f32.xlu1 %v14278_v13  ;;  %10225 = vmatprep.subr.bf16.mxu0 %v3722_v25 }
0x1159   :  { %10226 = vmatpush3.bf16.msra.mxu0 %v3722_v25  ;;  %11336 = vpow2.f32 %v3639_v34  ;;  %v14289_v56 = vpop.eup %11328 }
0x115a   :  { %10915 = vmatprep.subr.msk.bf16.mxu0 %vm366_vm2, %v14282_v17  ;;  %11338 = vpow2.f32 %v3635_v47 }
0x115c   :  { %3663 = vadd.xlane.f32.xlu1 %v14286_v36 }
0x1160   :  { %3669 = vadd.xlane.f32.xlu1 %v14289_v56 }
0x1161   :  { %v14292_v61 = vpop.eup %11330 }
0x1162   :  { %3677 = vadd.xlane.f32.xlu0 %v14292_v61  ;;  %v14295_v54 = vpop.eup %11332 }
0x1164   :  { %3665 = vadd.xlane.f32.xlu1 %v14295_v54 }
0x1165   :  { %v14298_v45 = vpop.eup %11334 }
0x1166   :  { %3673 = vadd.xlane.f32.xlu0 %v14298_v45  ;;  %v14301_v6 = vpop.eup %11336 }
0x1167   :  { %v14304_v49 = vpop.eup %11338 }
0x1168   :  { %3671 = vadd.xlane.f32.xlu1 %v14301_v6 }
0x116c   :  { %3667 = vadd.xlane.f32.xlu1 %v14304_v49 }
0x1180   :  { %v3600_v27 = vpop.xlane.xlu1 %3599 }
0x1181   :  { %v3616_v23 = vsub.f32 %v14233_v60, %v3600_v27 }
0x1183   :  { %v3647_v38 = vmul.f32 1.442695, %v3616_v23 }
0x1184   :  { %v3596_v14 = vpop.xlane.xlu1 %3595 }
0x1185   :  { %11340 = vpow2.f32 %v3647_v38  ;;  %v3614_v9 = vsub.f32 %v14242_v10, %v3596_v14 }
0x1187   :  { %v3643_v4 = vmul.f32 1.442695, %v3614_v9 }
0x1189   :  { %11342 = vpow2.f32 %v3643_v4 }
0x1192   :  { %v14309_v5 = vpop.eup %11340 }
0x1193   :  { %3679 = vadd.xlane.f32.xlu0 %v14309_v5 }
0x1196   :  { %v14312_v42 = vpop.eup %11342 }
0x1197   :  { %3675 = vadd.xlane.f32.xlu1 %v14312_v42 }
0x11a0   :  { %v3654_v55 = vpop.xlane.xlu1 %3653 }
0x11a4   :  { %v3650_v34 = vpop.xlane.xlu1 %3649 }
0x11a8   :  { %3871 = vrot.lane.b32.xlu1 %v14031_v52, %s11963_s18  ;;  %v3656_v60 = vpop.xlane.xlu1 %3655 }
0x11a9   :  { %3869 = vrot.lane.b32.xlu0 %v14041_v11, %s11963_s18  ;;  %11344 = vrcp.f32 %v3656_v60 }
0x11aa   :  { %11346 = vrcp.f32 %v3650_v34  ;;  %v3880_v34 = vpop.permute.xlu0 %3879 }
0x11ab   :  { %11348 = vrcp.f32 %v3654_v55  ;;  %v3929_v55 = vsel %vm366_vm2, %v14282_v17, 0 }
0x11ac   :  { %3851 = vrot.lane.b32.xlu1 %v14013_v50, %s11964_s19  ;;  %v3652_v10 = vpop.xlane.xlu1 %3651 }
0x11ad   :  { %11350 = vrcp.f32 %v3652_v10  ;;  %3867 = vrot.lane.b32.xlu0 %v14013_v50, %s11963_s18 }
0x11b0   :  { %3855 = vrot.lane.b32.xlu1 %v14031_v52, %s11964_s19 }
0x11b1   :  { %3853 = vrot.lane.b32.xlu0 %v14041_v11, %s11964_s19 }
0x11b4   :  { %3859 = vrot.lane.b32.xlu1 %v14023_v29, %s11964_s19 }
0x11b5   :  { %3857 = vrot.lane.b32.xlu0 %v14035_v15, %s11964_s19 }
0x11b6   :  { %v11345_v30 = vpop.eup %11344 }
0x11b7   :  { %v11347_v16 = vpop.eup %11346  ;;  %v3700_v27 = vmul.f32 %v11345_v30, %v14255_v44  ;;  %v3878_v44 = vpop.permute.xlu0 %3877 }
0x11b8   :  { %3863 = vrot.lane.b32.xlu1 %v14019_v12, %s11964_s19  ;;  %v11349_v25 = vpop.eup %11348  ;;  %v3697_v23 = vmul.f32 %v11347_v16, %v14252_v18  ;;  %v3926_v18 = vsel %vm366_vm2, %v3880_v34, 0 }
0x11b9   :  { %3861 = vrot.lane.b32.xlu0 %v14027_v19, %s11964_s19  ;;  %v3699_v14 = vmul.f32 %v11349_v25, %v14249_v57  ;;  %v3923_v57 = vsel %vm366_vm2, %v3878_v44, 0 }
0x11ba   :  { %v11351_v47 = vpop.eup %11350 }
0x11bb   :  { %v3698_v38 = vmul.f32 %v11351_v47, %v14258_v8  ;;  %v3714_v4 = vpack.c.bf16 %v3700_v27, %v3699_v14  ;;  %v3876_v8 = vpop.permute.xlu1 %3875  ;;  %v3874_v60 = vpop.permute.xlu0 %3873 }
0x11bc   :  { %v3920_v10 = vsel %vm366_vm2, %v3876_v8, 0  ;;  %v3917_v16 = vsel %vm366_vm2, %v3874_v60, 0 }
0x11bd   :  { %3865 = vrot.lane.b32.xlu0 %v14017_v63, %s11964_s19  ;;  %v3713_v9 = vpack.c.bf16 %v3698_v38, %v3697_v23 }
0x11bf   :  { %10227 = vmatprep.mubr.bf16.mxu0 %v3713_v9 }
0x11c0   :  { %10228 = vmatmul.mubr.bf16.vlgmr.msra.gmra.mxu0 %v3714_v4 }
0x11c1   :  { %10244 = vmatpush3.bf16.xpose.msra.mxu0 %v3929_v55 }
0x11c2   :  { %10916 = vmatprep.subr.msk.bf16.mxu0 %vm366_vm2, %v3880_v34 }
0x11c9   :  { %10246 = vmatpush3.bf16.xpose.msra.mxu0 %v3926_v18 }
0x11ca   :  { %10917 = vmatprep.subr.msk.bf16.mxu0 %vm366_vm2, %v3878_v44 }
0x11d1   :  { %10248 = vmatpush3.bf16.xpose.msra.mxu0 %v3923_v57 }
0x11d2   :  { %10918 = vmatprep.subr.msk.bf16.mxu0 %vm366_vm2, %v3876_v8 }
0x11d9   :  { %10250 = vmatpush3.bf16.xpose.msra.mxu0 %v3920_v10 }
0x11da   :  { %10919 = vmatprep.subr.msk.bf16.mxu0 %vm366_vm2, %v3874_v60 }
0x11db   :  { %v3662_v17 = vpop.xlane.xlu0 %3661 }
0x11df   :  { %v3660_v30 = vpop.xlane.xlu0 %3659 }
0x11e0   :  { %11352 = vrcp.f32 %v3660_v30 }
0x11e1   :  { %10252 = vmatpush3.bf16.xpose.msra.mxu0 %v3917_v16  ;;  %v3658_v25 = vpop.xlane.xlu1 %3657 }
0x11e2   :  { %11354 = vrcp.f32 %v3658_v25 }
0x11e3   :  { %11356 = vrcp.f32 %v3662_v17 }
0x11e5   :  { %v3664_v47 = vpop.xlane.xlu1 %3663 }
0x11e6   :  { %11358 = vrcp.f32 %v3664_v47 }
0x11e9   :  { %v3670_v27 = vpop.xlane.xlu1 %3669 }
0x11ed   :  { %v3666_v23 = vpop.xlane.xlu1 %3665  ;;  %v11353_v38 = vpop.eup %11352 }
0x11ee   :  { %v3702_v4 = vmul.f32 %v11353_v38, %v14275_v24 }
0x11ef   :  { %v11355_v14 = vpop.eup %11354 }
0x11f0   :  { %v3701_v9 = vmul.f32 %v11355_v14, %v14278_v13  ;;  %v11357_v55 = vpop.eup %11356 }
0x11f1   :  { %v3672_v34 = vpop.xlane.xlu1 %3671  ;;  %v3703_v57 = vmul.f32 %v11357_v55, %v14270_v3 }
0x11f2   :  { %v3715_v18 = vpack.c.bf16 %v3702_v4, %v3701_v9  ;;  %11360 = vrcp.f32 %v3672_v34 }
0x11f3   :  { %v11359_v44 = vpop.eup %11358  ;;  %11362 = vrcp.f32 %v3666_v23 }
0x11f4   :  { %10231 = vmatprep.mubr.bf16.mxu0 %v3715_v18  ;;  %v3704_v8 = vmul.f32 %v11359_v44, %v14286_v36  ;;  %11364 = vrcp.f32 %v3670_v27  ;;  %v3678_v36 = vpop.xlane.xlu0 %3677 }
0x11f5   :  { %v3668_v60 = vpop.xlane.xlu1 %3667 }
0x11f6   :  { %11366 = vrcp.f32 %v3668_v60  ;;  %v3716_v10 = vpack.c.bf16 %v3704_v8, %v3703_v57 }
0x11f8   :  { %10232 = vmatmul.mubr.bf16.gmra.mxu0 %v3716_v10  ;;  %v3674_v27 = vpop.xlane.xlu0 %3673 }
0x11ff   :  { %v11361_v17 = vpop.eup %11360 }
0x1200   :  { %v11363_v13 = vpop.eup %11362  ;;  %v3708_v16 = vmul.f32 %v11361_v17, %v14301_v6  ;;  %v3253_v17 = vld [vmem:[%s17328_s2 + $0x70] sm:$0xff] }
0x1201   :  { %v11365_v30 = vpop.eup %11364  ;;  %v3705_v25 = vmul.f32 %v11363_v13, %v14295_v54 }
0x1202   :  { %v3707_v23 = vmul.f32 %v11365_v30, %v14289_v56 }
0x1203   :  { %v11367_v24 = vpop.eup %11366 }
0x1204   :  { %v3706_v47 = vmul.f32 %v11367_v24, %v14304_v49  ;;  %v3718_v38 = vpack.c.bf16 %v3708_v16, %v3707_v23  ;;  %v3850_v24 = vpack.c.bf16 %v3253_v17, %v3253_v17 }
0x1206   :  { %v3717_v3 = vpack.c.bf16 %v3706_v47, %v3705_v25 }
0x1208   :  { %10235 = vmatprep.mubr.bf16.mxu0 %v3717_v3 }
0x1209   :  { %10236 = vmatmul.mubr.bf16.gmra.mxu0 %v3718_v38 }
0x121c   :  { %v3680_v14 = vpop.xlane.xlu0 %3679 }
0x121d   :  { %11368 = vrcp.f32 %v3680_v14 }
0x121e   :  { %11370 = vrcp.f32 %v3674_v27 }
0x121f   :  { %11372 = vrcp.f32 %v3678_v36 }
0x1220   :  { %v3676_v9 = vpop.xlane.xlu1 %3675  ;;  %v3870_v6 = vpop.permute.xlu0 %3869 }
0x1221   :  { %11374 = vrcp.f32 %v3676_v9  ;;  %v3911_v34 = vsel %vm366_vm2, %v3870_v6, 0 }
0x1224   :  { %v3872_v4 = vpop.permute.xlu1 %3871  ;;  %v3868_v44 = vpop.permute.xlu0 %3867 }
0x1225   :  { %10920 = vmatprep.subr.msk.bf16.mxu0 %vm366_vm2, %v3872_v4  ;;  %v3914_v54 = vsel %vm366_vm2, %v3872_v4, 0 }
0x1226   :  { %10254 = vmatpush3.bf16.xpose.msra.mxu0 %v3914_v54 }
0x1227   :  { %10921 = vmatprep.subr.msk.bf16.mxu0 %vm366_vm2, %v3870_v6 }
0x1228   :  { %v3852_v16 = vpop.permute.xlu1 %3851 }
0x122a   :  { %v11369_v56 = vpop.eup %11368 }
0x122b   :  { %v11371_v49 = vpop.eup %11370  ;;  %v3712_v57 = vmul.f32 %v11369_v56, %v14309_v5  ;;  %v3908_v5 = vsel %vm366_vm2, %v3868_v44, 0 }
0x122c   :  { %v11373_v55 = vpop.eup %11372  ;;  %v3709_v8 = vmul.f32 %v11371_v49, %v14298_v45  ;;  %v4459_v45 = vsel %vm1277_vm3, %v3850_v24, 0 }
0x122d   :  { %v3711_v10 = vmul.f32 %v11373_v55, %v14292_v61  ;;  %v3854_v61 = vpop.permute.xlu0 %3853 }
0x122e   :  { %v11375_v18 = vpop.eup %11374  ;;  %10256 = vmatpush3.bf16.xpose.msra.mxu0 %v3911_v34 }
0x122f   :  { %10922 = vmatprep.subr.msk.bf16.mxu0 %vm366_vm2, %v3868_v44  ;;  %v3710_v60 = vmul.f32 %v11375_v18, %v14312_v42  ;;  %v3720_v30 = vpack.c.bf16 %v3712_v57, %v3711_v10  ;;  %v3856_v42 = vpop.permute.xlu1 %3855 }
0x1231   :  { %v3719_v13 = vpack.c.bf16 %v3710_v60, %v3709_v8  ;;  %v3858_v25 = vpop.permute.xlu0 %3857 }
0x1233   :  { %10239 = vmatprep.mubr.bf16.mxu0 %v3719_v13  ;;  %v3860_v47 = vpop.permute.xlu1 %3859 }
0x1234   :  { %10240 = vmatmul.mubr.bf16.gmra.mxu0 %v3720_v30 }
0x1235   :  { %10259 = vmatprep.mubr.msk.bf16.mxu0 %vm366_vm2, %v3852_v16  ;;  %v3862_v23 = vpop.permute.xlu0 %3861 }
0x1236   :  { %10258 = vmatpush3.bf16.xpose.msra.mxu0 %v3908_v5 }
0x1237   :  { %10924 = vmatprep.subr.msk.bf16.mxu0 %vm1277_vm3, %v3850_v24  ;;  %v3864_v3 = vpop.permute.xlu1 %3863 }
0x1239   :  { %v3866_v38 = vpop.permute.xlu0 %3865 }
0x123d   :  { %10260 = vmatmul.mubr.msk.bf16.vlgmr.msra.gmra.mxu0 %vm366_vm2, %v3854_v61 }
0x123e   :  { %10263 = vmatprep.mubr.msk.bf16.mxu0 %vm366_vm2, %v3856_v42  ;;  %10326 = vmatpush3.bf16.msra.mxu0 %v4459_v45 }
0x1245   :  { %10264 = vmatmul.mubr.msk.bf16.gmra.mxu0 %vm366_vm2, %v3858_v25 }
0x1246   :  { %10267 = vmatprep.mubr.msk.bf16.mxu0 %vm366_vm2, %v3860_v47 }
0x124d   :  { %10268 = vmatmul.mubr.msk.bf16.gmra.mxu0 %vm366_vm2, %v3862_v23 }
0x124e   :  { %10271 = vmatprep.mubr.msk.bf16.mxu0 %vm366_vm2, %v3864_v3 }
0x1255   :  { %10272 = vmatmul.mubr.msk.bf16.gmra.mxu0 %vm366_vm2, %v3866_v38 }
0x1280   :  { %v10229_v36 = vpop.f32.mrf.mxu0 }
0x1282   :  { %v3779_v27 = vpop.f32.mrf.mxu0 }
0x1284   :  { %v10230_v14 = vpop.f32.mrf.mxu0 }
0x1285   :  { %v3843_v54 = vpack.c.bf16 %v10230_v14, %v10229_v36 }
0x1286   :  { %v3782_v9 = vpop.f32.mrf.mxu0 }
0x1287   :  { %v3842_v4 = vpack.c.bf16 %v3782_v9, %v3779_v27 }
0x1289   :  { %10327 = vmatprep.mubr.msk.bf16.mxu0 %vm366_vm2, %v3842_v4 }
0x128a   :  { %10328 = vmatmul.mubr.msk.bf16.vlgmr.msra.gmra.mxu0 %vm366_vm2, %v3843_v54 }
0x12b8   :  { %v10233_v6 = vpop.f32.mrf.mxu0 }
0x12ba   :  { %v3795_v56 = vpop.f32.mrf.mxu0 }
0x12bc   :  { %v10234_v49 = vpop.f32.mrf.mxu0 }
0x12bd   :  { %v3845_v18 = vpack.c.bf16 %v10234_v49, %v10233_v6 }
0x12be   :  { %v3798_v55 = vpop.f32.mrf.mxu0 }
0x12bf   :  { %v3844_v34 = vpack.c.bf16 %v3798_v55, %v3795_v56 }
0x12c1   :  { %10331 = vmatprep.mubr.msk.bf16.mxu0 %vm366_vm2, %v3844_v34 }
0x12c2   :  { %10332 = vmatmul.mubr.msk.bf16.gmra.mxu0 %vm366_vm2, %v3845_v18 }
0x12c9   :  { %v10237_v44 = vpop.f32.mrf.mxu0 }
0x12cb   :  { %v3811_v57 = vpop.f32.mrf.mxu0 }
0x12cd   :  { %v10238_v8 = vpop.f32.mrf.mxu0 }
0x12ce   :  { %v3847_v17 = vpack.c.bf16 %v10238_v8, %v10237_v44 }
0x12cf   :  { %v3814_v60 = vpop.f32.mrf.mxu0 }
0x12d0   :  { %v3846_v10 = vpack.c.bf16 %v3814_v60, %v3811_v57 }
0x12d2   :  { %10335 = vmatprep.mubr.msk.bf16.mxu0 %vm366_vm2, %v3846_v10 }
0x12d3   :  { %10336 = vmatmul.mubr.msk.bf16.gmra.mxu0 %vm366_vm2, %v3847_v17 }
0x12f4   :  { %v10241_v13 = vpop.f32.mrf.mxu0 }
0x12f6   :  { %v3827_v30 = vpop.f32.mrf.mxu0 }
0x12f8   :  { %v10242_v24 = vpop.f32.mrf.mxu0 }
0x12f9   :  { %v3849_v45 = vpack.c.bf16 %v10242_v24, %v10241_v13 }
0x12fa   :  { %v3830_v16 = vpop.f32.mrf.mxu0 }
0x12fb   :  { %v3848_v5 = vpack.c.bf16 %v3830_v16, %v3827_v30 }
0x12fd   :  { %v10261_v61 = vpop.f32.mrf.mxu0  ;;  %10339 = vmatprep.mubr.msk.bf16.mxu0 %vm366_vm2, %v3848_v5 }
0x12fe   :  { %v3974_v42 = vadd.f32 %v14090_v40, %v10261_v61  ;;  %10340 = vmatmul.mubr.msk.bf16.gmra.mxu0 %vm366_vm2, %v3849_v45 }
0x12ff   :  { %v3965_v25 = vpop.f32.mrf.mxu0 }
0x1300   :  { %v3966_v47 = vadd.f32 %v14098_v59, %v3965_v25  ;;  %4032 = vmax.xlane.f32.xlu0 %v3974_v42 }
0x1301   :  { %v10262_v23 = vpop.f32.mrf.mxu0 }
0x1302   :  { %4028 = vmax.xlane.f32.xlu1 %v3966_v47  ;;  %v3977_v38 = vadd.f32 %v14108_v32, %v10262_v23 }
0x1303   :  { %v3968_v3 = vpop.f32.mrf.mxu0 }
0x1304   :  { %v14394_v36 = vadd.f32 %v14116_v21, %v3968_v3 }
0x1305   :  { %v10265_v40 = vpop.f32.mrf.mxu0 }
0x1306   :  { %4030 = vmax.xlane.f32.xlu0 %v14394_v36  ;;  %4034 = vmax.xlane.f32.xlu1 %v3977_v38  ;;  %v14402_v32 = vadd.f32 %v14130_v22, %v10265_v40 }
0x1307   :  { %v3981_v59 = vpop.f32.mrf.mxu0 }
0x1308   :  { %v14410_v56 = vadd.f32 %v14148_v37, %v3981_v59 }
0x1309   :  { %v10266_v27 = vpop.f32.mrf.mxu0 }
0x130a   :  { %v14405_v21 = vadd.f32 %v14138_v28, %v10266_v27 }
0x130b   :  { %v3984_v14 = vpop.f32.mrf.mxu0 }
0x130c   :  { %v14413_v49 = vadd.f32 %v14156_v53, %v3984_v14 }
0x130d   :  { %v10269_v9 = vpop.f32.mrf.mxu0 }
0x130e   :  { %v14418_v22 = vadd.f32 %v14166_v26, %v10269_v9 }
0x130f   :  { %v3997_v4 = vpop.f32.mrf.mxu0 }
0x1310   :  { %v14426_v37 = vadd.f32 %v14184_v58, %v3997_v4 }
0x1311   :  { %v10270_v54 = vpop.f32.mrf.mxu0 }
0x1312   :  { %v14421_v28 = vadd.f32 %v14174_v0, %v10270_v54 }
0x1313   :  { %v4000_v6 = vpop.f32.mrf.mxu0 }
0x1314   :  { %v14429_v53 = vadd.f32 %v14192_v39, %v4000_v6 }
0x1315   :  { %v10273_v55 = vpop.f32.mrf.mxu0 }
0x1316   :  { %v14434_v26 = vadd.f32 %v14202_v62, %v10273_v55 }
0x1317   :  { %4192 = vrot.lane.b32.xlu1 %v14019_v12, %s11965_s22  ;;  %v4013_v34 = vpop.f32.mrf.mxu0 }
0x1318   :  { %v14442_v58 = vadd.f32 %v14211_v2, %v4013_v34 }
0x1319   :  { %v10274_v18 = vpop.f32.mrf.mxu0 }
0x131a   :  { %v14437_v0 = vadd.f32 %v14230_v43, %v10274_v18 }
0x131b   :  { %v4016_v44 = vpop.f32.mrf.mxu0 }
0x131c   :  { %4194 = vrot.lane.b32.xlu0 %v14017_v63, %s11965_s22  ;;  %v14445_v39 = vadd.f32 %v14239_v1, %v4016_v44 }
0x133b   :  { %4040 = vmax.xlane.f32.xlu0 %v14402_v32  ;;  %4042 = vmax.xlane.f32.xlu1 %v14405_v21 }
0x133f   :  { %4038 = vmax.xlane.f32.xlu1 %v14413_v49  ;;  %4036 = vmax.xlane.f32.xlu0 %v14410_v56 }
0x1343   :  { %4048 = vmax.xlane.f32.xlu0 %v14418_v22  ;;  %4050 = vmax.xlane.f32.xlu1 %v14421_v28 }
0x1347   :  { %4046 = vmax.xlane.f32.xlu1 %v14429_v53  ;;  %4044 = vmax.xlane.f32.xlu0 %v14426_v37 }
0x134b   :  { %4056 = vmax.xlane.f32.xlu0 %v14434_v26  ;;  %4058 = vmax.xlane.f32.xlu1 %v14437_v0 }
0x134f   :  { %4054 = vmax.xlane.f32.xlu1 %v14445_v39  ;;  %4052 = vmax.xlane.f32.xlu0 %v14442_v58 }
0x1365   :  { %4190 = vrot.lane.b32.xlu0 %v14027_v19, %s11965_s22 }
0x1369   :  { %4188 = vrot.lane.b32.xlu0 %v14023_v29, %s11965_s22 }
0x136d   :  { %4186 = vrot.lane.b32.xlu0 %v14035_v15, %s11965_s22 }
0x1371   :  { %4184 = vrot.lane.b32.xlu0 %v14031_v52, %s11965_s22 }
0x1375   :  { %4180 = vrot.lane.b32.xlu0 %v14013_v50, %s11965_s22 }
0x1389   :  { %v4033_v62 = vpop.xlane.xlu0 %4032 }
0x138a   :  { %v4062_v2 = vsub.f32 %v3974_v42, %v4033_v62 }
0x138b   :  { %v4029_v43 = vpop.xlane.xlu1 %4028 }
0x138c   :  { %v4080_v1 = vmul.f32 1.442695, %v4062_v2  ;;  %v4060_v57 = vsub.f32 %v3966_v47, %v4029_v43 }
0x138e   :  { %11376 = vpow2.f32 %v4080_v1  ;;  %v4076_v8 = vmul.f32 1.442695, %v4060_v57 }
0x138f   :  { %v4031_v60 = vpop.xlane.xlu0 %4030  ;;  %v4035_v10 = vpop.xlane.xlu1 %4034 }
0x1390   :  { %v4063_v17 = vsub.f32 %v3977_v38, %v4035_v10  ;;  %11378 = vpow2.f32 %v4076_v8  ;;  %v4061_v13 = vsub.f32 %v14394_v36, %v4031_v60 }
0x1392   :  { %v4082_v30 = vmul.f32 1.442695, %v4063_v17  ;;  %v4078_v5 = vmul.f32 1.442695, %v4061_v13 }
0x1393   :  { %v4195_v24 = vpop.permute.xlu0 %4194  ;;  %v4193_v16 = vpop.permute.xlu1 %4192 }
0x1394   :  { %10275 = vmatprep.subr.bf16.mxu1 %v4195_v24  ;;  %11380 = vpow2.f32 %v4082_v30 }
0x1395   :  { %10276 = vmatpush3.bf16.msra.mxu1 %v4195_v24  ;;  %11382 = vpow2.f32 %v4078_v5 }
0x1396   :  { %10277 = vmatprep.subr.bf16.mxu1 %v4193_v16 }
0x1399   :  { %10278 = vmatpush3.bf16.msra.mxu1 %v4193_v16 }
0x139b   :  { %v14460_v45 = vpop.eup %11376 }
0x139c   :  { %4112 = vadd.xlane.f32.xlu1 %v14460_v45 }
0x139d   :  { %v14463_v61 = vpop.eup %11378 }
0x13a0   :  { %4108 = vadd.xlane.f32.xlu1 %v14463_v61 }
0x13a1   :  { %v14466_v42 = vpop.eup %11380 }
0x13a2   :  { %v14469_v25 = vpop.eup %11382 }
0x13a4   :  { %4114 = vadd.xlane.f32.xlu1 %v14466_v42 }
0x13a8   :  { %4110 = vadd.xlane.f32.xlu1 %v14469_v25 }
0x13b9   :  { %4182 = vrot.lane.b32.xlu1 %v14041_v11, %s11965_s22 }
0x13c4   :  { %v4041_v47 = vpop.xlane.xlu0 %4040  ;;  %v4043_v23 = vpop.xlane.xlu1 %4042 }
0x13c5   :  { %v4066_v40 = vsub.f32 %v14402_v32, %v4041_v47  ;;  %v4067_v27 = vsub.f32 %v14405_v21, %v4043_v23 }
0x13c7   :  { %v4088_v6 = vmul.f32 1.442695, %v4066_v40  ;;  %v4090_v55 = vmul.f32 1.442695, %v4067_v27 }
0x13c8   :  { %v4037_v3 = vpop.xlane.xlu0 %4036  ;;  %v4039_v36 = vpop.xlane.xlu1 %4038 }
0x13c9   :  { %v4064_v38 = vsub.f32 %v14410_v56, %v4037_v3  ;;  %v4065_v59 = vsub.f32 %v14413_v49, %v4039_v36 }
0x13cb   :  { %v4084_v14 = vmul.f32 1.442695, %v4064_v38  ;;  %v4086_v9 = vmul.f32 1.442695, %v4065_v59 }
0x13cc   :  { %v4049_v4 = vpop.xlane.xlu0 %4048  ;;  %v4051_v54 = vpop.xlane.xlu1 %4050 }
0x13cd   :  { %11384 = vpow2.f32 %v4086_v9  ;;  %v4070_v56 = vsub.f32 %v14418_v22, %v4049_v4  ;;  %v4071_v21 = vsub.f32 %v14421_v28, %v4051_v54 }
0x13ce   :  { %11386 = vpow2.f32 %v4084_v14 }
0x13cf   :  { %11388 = vpow2.f32 %v4088_v6  ;;  %v4096_v1 = vmul.f32 1.442695, %v4070_v56  ;;  %v4098_v57 = vmul.f32 1.442695, %v4071_v21 }
0x13d0   :  { %v4045_v34 = vpop.xlane.xlu0 %4044  ;;  %v4047_v44 = vpop.xlane.xlu1 %4046  ;;  %11390 = vpow2.f32 %v4090_v55 }
0x13d1   :  { %v4068_v18 = vsub.f32 %v14426_v37, %v4045_v34  ;;  %v4069_v32 = vsub.f32 %v14429_v53, %v4047_v44  ;;  %v3254_v34 = vld [vmem:[%s17328_s2 + $0x78] sm:$0xff] }
0x13d2   :  { %v4309_v44 = vpack.c.bf16 %v3254_v34, %v3254_v34 }
0x13d3   :  { %v4092_v49 = vmul.f32 1.442695, %v4068_v18  ;;  %v4094_v62 = vmul.f32 1.442695, %v4069_v32 }
0x13d4   :  { %v4057_v2 = vpop.xlane.xlu0 %4056  ;;  %v4059_v43 = vpop.xlane.xlu1 %4058 }
0x13d5   :  { %11392 = vpow2.f32 %v4092_v49  ;;  %v4074_v22 = vsub.f32 %v14434_v26, %v4057_v2  ;;  %v4075_v28 = vsub.f32 %v14437_v0, %v4059_v43 }
0x13d6   :  { %11394 = vpow2.f32 %v4094_v62 }
0x13d7   :  { %11396 = vpow2.f32 %v4096_v1 }
0x13d8   :  { %v4053_v8 = vpop.xlane.xlu0 %4052  ;;  %v4055_v60 = vpop.xlane.xlu1 %4054  ;;  %11398 = vpow2.f32 %v4098_v57 }
0x13d9   :  { %v4072_v37 = vsub.f32 %v14442_v58, %v4053_v8  ;;  %v4073_v53 = vsub.f32 %v14445_v39, %v4055_v60  ;;  %v4104_v58 = vmul.f32 1.442695, %v4074_v22  ;;  %v4106_v39 = vmul.f32 1.442695, %v4075_v28 }
0x13da   :  { %v14485_v10 = vpop.eup %11384 }
0x13db   :  { %v4100_v17 = vmul.f32 1.442695, %v4072_v37  ;;  %v14488_v13 = vpop.eup %11386  ;;  %v4102_v30 = vmul.f32 1.442695, %v4073_v53  ;;  %4118 = vadd.xlane.f32.xlu0 %v14485_v10  ;;  %v4335_v37 = vsel %vm1277_vm3, %v4309_v44, 0 }
0x13dc   :  { %v4191_v24 = vpop.permute.xlu0 %4190  ;;  %v14492_v26 = vpop.eup %11388 }
0x13dd   :  { %11400 = vpow2.f32 %v4100_v17  ;;  %4116 = vadd.xlane.f32.xlu1 %v14488_v13  ;;  %10279 = vmatprep.subr.bf16.mxu1 %v4191_v24  ;;  %v14494_v16 = vpop.eup %11390 }
0x13de   :  { %10280 = vmatpush3.bf16.msra.mxu1 %v4191_v24  ;;  %11402 = vpow2.f32 %v4102_v30 }
0x13df   :  { %4120 = vadd.xlane.f32.xlu0 %v14492_v26  ;;  %11404 = vpow2.f32 %v4104_v58 }
0x13e0   :  { %v4189_v0 = vpop.permute.xlu0 %4188  ;;  %11406 = vpow2.f32 %v4106_v39 }
0x13e1   :  { %10281 = vmatprep.subr.bf16.mxu1 %v4189_v0  ;;  %4122 = vadd.xlane.f32.xlu1 %v14494_v16 }
0x13e2   :  { %v14498_v5 = vpop.eup %11392  ;;  %10282 = vmatpush3.bf16.msra.mxu1 %v4189_v0 }
0x13e3   :  { %v14500_v47 = vpop.eup %11394  ;;  %4124 = vadd.xlane.f32.xlu0 %v14498_v5 }
0x13e4   :  { %v4187_v23 = vpop.permute.xlu0 %4186  ;;  %v14504_v3 = vpop.eup %11396 }
0x13e5   :  { %10283 = vmatprep.subr.bf16.mxu1 %v4187_v23  ;;  %4126 = vadd.xlane.f32.xlu1 %v14500_v47  ;;  %v14506_v38 = vpop.eup %11398 }
0x13e6   :  { %10284 = vmatpush3.bf16.msra.mxu1 %v4187_v23 }
0x13e7   :  { %4128 = vadd.xlane.f32.xlu0 %v14504_v3 }
0x13e8   :  { %v4185_v36 = vpop.permute.xlu0 %4184 }
0x13e9   :  { %10285 = vmatprep.subr.bf16.mxu1 %v4185_v36  ;;  %4130 = vadd.xlane.f32.xlu1 %v14506_v38 }
0x13ea   :  { %v14510_v40 = vpop.eup %11400  ;;  %10286 = vmatpush3.bf16.msra.mxu1 %v4185_v36 }
0x13eb   :  { %v14512_v59 = vpop.eup %11402  ;;  %4132 = vadd.xlane.f32.xlu0 %v14510_v40 }
0x13ec   :  { %v14516_v27 = vpop.eup %11404  ;;  %v4181_v18 = vpop.permute.xlu0 %4180 }
0x13ed   :  { %4134 = vadd.xlane.f32.xlu1 %v14512_v59  ;;  %v14518_v14 = vpop.eup %11406 }
0x13ef   :  { %4136 = vadd.xlane.f32.xlu0 %v14516_v27 }
0x13f1   :  { %4138 = vadd.xlane.f32.xlu1 %v14518_v14 }
0x1402   :  { %4586 = vrot.lane.b32.xlu1 %v14019_v12, %s11966_s23 }
0x1405   :  { %4588 = vrot.lane.b32.xlu0 %v14017_v63, %s11966_s23 }
0x1406   :  { %4584 = vrot.lane.b32.xlu1 %v14027_v19, %s11966_s23 }
0x1409   :  { %4582 = vrot.lane.b32.xlu0 %v14023_v29, %s11966_s23 }
0x140a   :  { %4580 = vrot.lane.b32.xlu1 %v14035_v15, %s11966_s23 }
0x140d   :  { %4578 = vrot.lane.b32.xlu0 %v14031_v52, %s11966_s23 }
0x140e   :  { %4576 = vrot.lane.b32.xlu1 %v14041_v11, %s11966_s23 }
0x1411   :  { %4574 = vrot.lane.b32.xlu0 %v14013_v50, %s11966_s23 }
0x1412   :  { %4558 = vrot.lane.b32.xlu1 %v14013_v50, %s11967_s24 }
0x1415   :  { %4560 = vrot.lane.b32.xlu0 %v14041_v11, %s11967_s24 }
0x1416   :  { %4562 = vrot.lane.b32.xlu1 %v14031_v52, %s11967_s24 }
0x1419   :  { %4564 = vrot.lane.b32.xlu0 %v14035_v15, %s11967_s24 }
0x141a   :  { %4566 = vrot.lane.b32.xlu1 %v14023_v29, %s11967_s24 }
0x141d   :  { %4568 = vrot.lane.b32.xlu0 %v14027_v19, %s11967_s24 }
0x141e   :  { %4570 = vrot.lane.b32.xlu1 %v14019_v12, %s11967_s24 }
0x1421   :  { %4572 = vrot.lane.b32.xlu0 %v14017_v63, %s11967_s24 }
0x1422   :  { %5187 = vrot.lane.b32.xlu1 %v14017_v63, %s11968_s25 }
0x1425   :  { %v4113_v9 = vpop.xlane.xlu1 %4112  ;;  %5185 = vrot.lane.b32.xlu0 %v14019_v12, %s11968_s25 }
0x1426   :  { %5183 = vrot.lane.b32.xlu1 %v14027_v19, %s11968_s25 }
0x1429   :  { %v4109_v4 = vpop.xlane.xlu1 %4108  ;;  %5181 = vrot.lane.b32.xlu0 %v14023_v29, %s11968_s25 }
0x142a   :  { %5179 = vrot.lane.b32.xlu1 %v14035_v15, %s11968_s25 }
0x142d   :  { %v4115_v54 = vpop.xlane.xlu1 %4114  ;;  %5177 = vrot.lane.b32.xlu0 %v14031_v52, %s11968_s25 }
0x142e   :  { %5175 = vrot.lane.b32.xlu1 %v14041_v11, %s11968_s25  ;;  %11408 = vrcp.f32 %v4115_v54 }
0x142f   :  { %11410 = vrcp.f32 %v4109_v4 }
0x1430   :  { %11412 = vrcp.f32 %v4113_v9 }
0x1431   :  { %v4111_v6 = vpop.xlane.xlu1 %4110  ;;  %5173 = vrot.lane.b32.xlu0 %v14013_v50, %s11968_s25 }
0x1432   :  { %11414 = vrcp.f32 %v4111_v6  ;;  %5157 = vrot.lane.b32.xlu1 %v14013_v50, %s11969_s26 }
0x1435   :  { %v4183_v55 = vpop.permute.xlu1 %4182  ;;  %5159 = vrot.lane.b32.xlu0 %v14041_v11, %s11969_s26 }
0x1436   :  { %5161 = vrot.lane.b32.xlu1 %v14031_v52, %s11969_s26  ;;  %10287 = vmatprep.subr.bf16.mxu1 %v4183_v55 }
0x1437   :  { %10288 = vmatpush3.bf16.msra.mxu1 %v4183_v55 }
0x1438   :  { %10289 = vmatprep.subr.bf16.mxu1 %v4181_v18 }
0x1439   :  { %5163 = vrot.lane.b32.xlu0 %v14035_v15, %s11969_s26 }
0x143a   :  { %5165 = vrot.lane.b32.xlu1 %v14023_v29, %s11969_s26 }
0x143b   :  { %v11409_v56 = vpop.eup %11408  ;;  %10290 = vmatpush3.bf16.msra.mxu1 %v4181_v18 }
0x143c   :  { %v11411_v32 = vpop.eup %11410  ;;  %10923 = vmatprep.subr.msk.bf16.mxu1 %vm1277_vm3, %v4309_v44  ;;  %v4159_v62 = vmul.f32 %v11409_v56, %v14466_v42 }
0x143d   :  { %v11413_v21 = vpop.eup %11412  ;;  %5167 = vrot.lane.b32.xlu0 %v14027_v19, %s11969_s26  ;;  %v4156_v2 = vmul.f32 %v11411_v32, %v14463_v61 }
0x143e   :  { %5169 = vrot.lane.b32.xlu1 %v14019_v12, %s11969_s26  ;;  %v4158_v1 = vmul.f32 %v11413_v21, %v14460_v45 }
0x143f   :  { %v11415_v49 = vpop.eup %11414 }
0x1440   :  { %v4157_v43 = vmul.f32 %v11415_v49, %v14469_v25  ;;  %v4173_v8 = vpack.c.bf16 %v4159_v62, %v4158_v1 }
0x1441   :  { %5171 = vrot.lane.b32.xlu0 %v14017_v63, %s11969_s26 }
0x1442   :  { %4899 = vrot.lane.b32.xlu1 %v14019_v12, %s11970_s29  ;;  %v4172_v57 = vpack.c.bf16 %v4157_v43, %v4156_v2 }
0x1444   :  { %10291 = vmatprep.mubr.bf16.mxu1 %v4172_v57 }
0x1445   :  { %10292 = vmatmul.mubr.bf16.vlgmr.msra.gmra.mxu1 %v4173_v8  ;;  %4901 = vrot.lane.b32.xlu0 %v14017_v63, %s11970_s29 }
0x1446   :  { %10308 = vmatpush3.bf16.msra.mxu1 %v4335_v37 }
0x1464   :  { %v4119_v61 = vpop.xlane.xlu0 %4118 }
0x1465   :  { %11416 = vrcp.f32 %v4119_v61 }
0x1466   :  { %v4117_v42 = vpop.xlane.xlu1 %4116 }
0x1467   :  { %11418 = vrcp.f32 %v4117_v42 }
0x1468   :  { %v4121_v45 = vpop.xlane.xlu0 %4120 }
0x1469   :  { %11420 = vrcp.f32 %v4121_v45 }
0x146a   :  { %v4123_v25 = vpop.xlane.xlu1 %4122 }
0x146b   :  { %11422 = vrcp.f32 %v4123_v25 }
0x146c   :  { %v4125_v60 = vpop.xlane.xlu0 %4124 }
0x146d   :  { %11424 = vrcp.f32 %v4125_v60 }
0x146e   :  { %v4127_v22 = vpop.xlane.xlu1 %4126 }
0x146f   :  { %11426 = vrcp.f32 %v4127_v22 }
0x1470   :  { %v4129_v53 = vpop.xlane.xlu0 %4128 }
0x1471   :  { %11428 = vrcp.f32 %v4129_v53 }
0x1472   :  { %v4131_v28 = vpop.xlane.xlu1 %4130  ;;  %v11417_v17 = vpop.eup %11416 }
0x1473   :  { %11430 = vrcp.f32 %v4131_v28  ;;  %v4161_v39 = vmul.f32 %v11417_v17, %v14485_v10 }
0x1474   :  { %v11419_v30 = vpop.eup %11418  ;;  %v4133_v24 = vpop.xlane.xlu0 %4132 }
0x1475   :  { %v4160_v58 = vmul.f32 %v11419_v30, %v14488_v13  ;;  %11432 = vrcp.f32 %v4133_v24 }
0x1476   :  { %v4135_v0 = vpop.xlane.xlu1 %4134  ;;  %v11421_v23 = vpop.eup %11420 }
0x1477   :  { %11434 = vrcp.f32 %v4135_v0  ;;  %v4174_v36 = vpack.c.bf16 %v4161_v39, %v4160_v58  ;;  %v4162_v54 = vmul.f32 %v11421_v23, %v14492_v26 }
0x1478   :  { %v11423_v9 = vpop.eup %11422  ;;  %v4137_v4 = vpop.xlane.xlu0 %4136 }
0x1479   :  { %10295 = vmatprep.mubr.bf16.mxu1 %v4174_v36  ;;  %v4163_v6 = vmul.f32 %v11423_v9, %v14494_v16  ;;  %11436 = vrcp.f32 %v4137_v4 }
0x147a   :  { %v4139_v55 = vpop.xlane.xlu1 %4138  ;;  %v11425_v34 = vpop.eup %11424 }
0x147b   :  { %11438 = vrcp.f32 %v4139_v55  ;;  %v4175_v18 = vpack.c.bf16 %v4163_v6, %v4162_v54  ;;  %v4164_v10 = vmul.f32 %v11425_v34, %v14498_v5 }
0x147c   :  { %v11427_v13 = vpop.eup %11426  ;;  %v14603_v44 = vpop.permute.xlu0 %4588 }
0x147d   :  { %10296 = vmatmul.mubr.bf16.gmra.mxu1 %v4175_v18  ;;  %v4165_v56 = vmul.f32 %v11427_v13, %v14500_v47  ;;  %10925 = vmatprep.subr.msk.bf16.mxu1 %vm366_vm2, %v14603_v44 }
0x147e   :  { %v14609_v32 = vpop.permute.xlu1 %4586  ;;  %v11429_v26 = vpop.eup %11428 }
0x147f   :  { %v4176_v16 = vpack.c.bf16 %v4165_v56, %v4164_v10  ;;  %v4166_v62 = vmul.f32 %v11429_v26, %v14504_v3 }
0x1480   :  { %v11431_v21 = vpop.eup %11430  ;;  %v14611_v49 = vpop.permute.xlu0 %4582 }
0x1481   :  { %10299 = vmatprep.mubr.bf16.mxu1 %v4176_v16  ;;  %v4167_v2 = vmul.f32 %v11431_v21, %v14506_v38 }
0x1482   :  { %v14615_v43 = vpop.permute.xlu1 %4584  ;;  %v11433_v5 = vpop.eup %11432 }
0x1483   :  { %v4177_v1 = vpack.c.bf16 %v4167_v2, %v4166_v62  ;;  %v4168_v8 = vmul.f32 %v11433_v5, %v14510_v40 }
0x1484   :  { %v11435_v47 = vpop.eup %11434  ;;  %v14617_v57 = vpop.permute.xlu0 %4578 }
0x1485   :  { %10300 = vmatmul.mubr.bf16.gmra.mxu1 %v4177_v1  ;;  %v4169_v37 = vmul.f32 %v11435_v47, %v14512_v59 }
0x1486   :  { %v4581_v61 = vpop.permute.xlu1 %4580  ;;  %v11437_v42 = vpop.eup %11436 }
0x1487   :  { %v4178_v45 = vpack.c.bf16 %v4169_v37, %v4168_v8  ;;  %v4170_v3 = vmul.f32 %v11437_v42, %v14516_v27  ;;  %v4636_v37 = vsel %vm366_vm2, %v14603_v44, 0  ;;  %v4633_v42 = vsel %vm366_vm2, %v14609_v32, 0 }
0x1488   :  { %v11439_v25 = vpop.eup %11438  ;;  %v14621_v60 = vpop.permute.xlu0 %4574  ;;  %v4627_v44 = vsel %vm366_vm2, %v14611_v49, 0 }
0x1489   :  { %10303 = vmatprep.mubr.bf16.mxu1 %v4178_v45  ;;  %v4171_v38 = vmul.f32 %v11439_v25, %v14518_v14  ;;  %v4630_v45 = vsel %vm366_vm2, %v14615_v43, 0  ;;  %v4624_v25 = vsel %vm366_vm2, %v4581_v61, 0 }
0x148a   :  { %v4577_v22 = vpop.permute.xlu1 %4576 }
0x148b   :  { %v4179_v53 = vpack.c.bf16 %v4171_v38, %v4170_v3  ;;  %v4618_v38 = vsel %vm366_vm2, %v4577_v22, 0 }
0x148c   :  { %v14625_v28 = vpop.permute.xlu0 %4560 }
0x148d   :  { %10304 = vmatmul.mubr.bf16.gmra.mxu1 %v4179_v53 }
0x148e   :  { %v14627_v17 = vpop.permute.xlu1 %4558 }
0x1490   :  { %v14629_v40 = vpop.permute.xlu0 %4564 }
0x1492   :  { %v14631_v59 = vpop.permute.xlu1 %4562 }
0x1494   :  { %v14633_v30 = vpop.permute.xlu0 %4568 }
0x1496   :  { %v14635_v24 = vpop.permute.xlu1 %4566 }
0x1498   :  { %v14637_v58 = vpop.permute.xlu0 %4572 }
0x149a   :  { %v14639_v27 = vpop.permute.xlu1 %4570 }
0x149c   :  { %v14641_v14 = vpop.permute.xlu0 %5185 }
0x149e   :  { %v14643_v39 = vpop.permute.xlu1 %5187 }
0x14a0   :  { %v14645_v0 = vpop.permute.xlu0 %5181 }
0x14a2   :  { %v14647_v23 = vpop.permute.xlu1 %5183 }
0x14a4   :  { %v14649_v36 = vpop.permute.xlu0 %5177 }
0x14a6   :  { %v14651_v9 = vpop.permute.xlu1 %5179 }
0x14a8   :  { %v14653_v4 = vpop.permute.xlu0 %5173 }
0x14aa   :  { %v14655_v54 = vpop.permute.xlu1 %5175 }
0x14ac   :  { %v14657_v6 = vpop.permute.xlu0 %5159 }
0x14ae   :  { %v14659_v55 = vpop.permute.xlu1 %5157 }
0x14b0   :  { %v14661_v34 = vpop.permute.xlu0 %5163 }
0x14b2   :  { %v14663_v18 = vpop.permute.xlu1 %5161 }
0x14b4   :  { %v14665_v13 = vpop.permute.xlu0 %5167 }
0x14b6   :  { %v14667_v10 = vpop.permute.xlu1 %5165 }
0x14b8   :  { %v14669_v56 = vpop.permute.xlu0 %5171 }
0x14ba   :  { %v14671_v26 = vpop.permute.xlu1 %5169 }
0x14bc   :  { %v4902_v16 = vpop.permute.xlu0 %4901 }
0x14bd   :  { %10375 = vmatprep.subr.bf16.mxu0 %v4902_v16 }
0x14be   :  { %v4900_v21 = vpop.permute.xlu1 %4899  ;;  %10376 = vmatpush3.bf16.msra.mxu0 %v4902_v16 }
0x14bf   :  { %10377 = vmatprep.subr.bf16.mxu0 %v4900_v21 }
0x14c2   :  { %10378 = vmatpush3.bf16.msra.mxu0 %v4900_v21 }
0x1505   :  { %v10293_v62 = vpop.f32.mrf.mxu1 }
0x1507   :  { %v4238_v2 = vpop.f32.mrf.mxu1 }
0x1509   :  { %v10294_v5 = vpop.f32.mrf.mxu1 }
0x150a   :  { %v4302_v8 = vpack.c.bf16 %v10294_v5, %v10293_v62 }
0x150b   :  { %v4241_v1 = vpop.f32.mrf.mxu1 }
0x150c   :  { %v4301_v47 = vpack.c.bf16 %v4241_v1, %v4238_v2 }
0x150e   :  { %10309 = vmatprep.mubr.msk.bf16.mxu1 %vm366_vm2, %v4301_v47 }
0x150f   :  { %10310 = vmatmul.mubr.msk.bf16.vlgmr.msra.gmra.mxu1 %vm366_vm2, %v4302_v8 }
0x1510   :  { %10344 = vmatpush3.bf16.xpose.msra.mxu1 %v4636_v37 }
0x1511   :  { %10926 = vmatprep.subr.msk.bf16.mxu1 %vm366_vm2, %v14609_v32  ;;  %v4621_v32 = vsel %vm366_vm2, %v14617_v57, 0 }
0x1518   :  { %10346 = vmatpush3.bf16.xpose.msra.mxu1 %v4633_v42 }
0x1519   :  { %10927 = vmatprep.subr.msk.bf16.mxu1 %vm366_vm2, %v14615_v43 }
0x1520   :  { %10348 = vmatpush3.bf16.xpose.msra.mxu1 %v4630_v45 }
0x1521   :  { %10928 = vmatprep.subr.msk.bf16.mxu1 %vm366_vm2, %v14611_v49 }
0x1528   :  { %10350 = vmatpush3.bf16.xpose.msra.mxu1 %v4627_v44 }
0x1529   :  { %10929 = vmatprep.subr.msk.bf16.mxu1 %vm366_vm2, %v4581_v61 }
0x1530   :  { %10352 = vmatpush3.bf16.xpose.msra.mxu1 %v4624_v25  ;;  %v5232_v25 = vsel %vm366_vm2, %v14641_v14, 0 }
0x1531   :  { %10930 = vmatprep.subr.msk.bf16.mxu1 %vm366_vm2, %v14617_v57  ;;  %v4615_v57 = vsel %vm366_vm2, %v14621_v60, 0 }
0x1538   :  { %10354 = vmatpush3.bf16.xpose.msra.mxu1 %v4621_v32 }
0x1539   :  { %10931 = vmatprep.subr.msk.bf16.mxu1 %vm366_vm2, %v4577_v22 }
0x153d   :  { %v10297_v43 = vpop.f32.mrf.mxu1 }
0x153f   :  { %v4254_v3 = vpop.f32.mrf.mxu1 }
0x1540   :  { %10356 = vmatpush3.bf16.xpose.msra.mxu1 %v4618_v38 }
0x1541   :  { %10932 = vmatprep.subr.msk.bf16.mxu1 %vm366_vm2, %v14621_v60  ;;  %v10298_v49 = vpop.f32.mrf.mxu1  ;;  %v5235_v60 = vsel %vm366_vm2, %v14643_v39, 0 }
0x1542   :  { %v4304_v16 = vpack.c.bf16 %v10298_v49, %v10297_v43 }
0x1543   :  { %v4257_v61 = vpop.f32.mrf.mxu1 }
0x1544   :  { %v4303_v53 = vpack.c.bf16 %v4257_v61, %v4254_v3  ;;  %v14814_v3 = vld [vmem:[%s17331_s1] sm:$0xff] }
0x1545   :  { %v10301_v21 = vpop.f32.mrf.mxu1 }
0x1546   :  { %10313 = vmatprep.mubr.msk.bf16.mxu1 %vm366_vm2, %v4303_v53  ;;  %v14824_v53 = vld [vmem:[%s17331_s1 + $0x18] sm:$0xff] }
0x1547   :  { %v4270_v62 = vpop.f32.mrf.mxu1  ;;  %10314 = vmatmul.mubr.msk.bf16.gmra.mxu1 %vm366_vm2, %v4304_v16 }
0x1548   :  { %10358 = vmatpush3.bf16.xpose.msra.mxu1 %v4615_v57 }
0x1549   :  { %10934 = vmatprep.subr.msk.bf16.mxu1 %vm366_vm2, %v14643_v39  ;;  %v10302_v22 = vpop.f32.mrf.mxu1 }
0x154a   :  { %v4306_v1 = vpack.c.bf16 %v10302_v22, %v10301_v21  ;;  %v14832_v21 = vld [vmem:[%s17331_s1 + $0x8] sm:$0xff] }
0x154b   :  { %v4273_v2 = vpop.f32.mrf.mxu1 }
0x154c   :  { %v4305_v5 = vpack.c.bf16 %v4273_v2, %v4270_v62  ;;  %v14842_v2 = vld [vmem:[%s17331_s1 + $0x30] sm:$0xff] }
0x154d   :  { %v10305_v47 = vpop.f32.mrf.mxu1 }
0x154e   :  { %10317 = vmatprep.mubr.msk.bf16.mxu1 %vm366_vm2, %v4305_v5 }
0x154f   :  { %v4286_v8 = vpop.f32.mrf.mxu1  ;;  %10318 = vmatmul.mubr.msk.bf16.gmra.mxu1 %vm366_vm2, %v4306_v1 }
0x1551   :  { %v10306_v37 = vpop.f32.mrf.mxu1 }
0x1552   :  { %v4308_v44 = vpack.c.bf16 %v10306_v37, %v10305_v47  ;;  %v14850_v47 = vld [vmem:[%s17331_s1 + $0x38] sm:$0xff] }
0x1553   :  { %v4289_v42 = vpop.f32.mrf.mxu1 }
0x1554   :  { %v4307_v45 = vpack.c.bf16 %v4289_v42, %v4286_v8  ;;  %v14859_v42 = vld [vmem:[%s17331_s1 + $0x20] sm:$0xff] }
0x1556   :  { %10321 = vmatprep.mubr.msk.bf16.mxu1 %vm366_vm2, %v4307_v45 }
0x1557   :  { %10322 = vmatmul.mubr.msk.bf16.gmra.mxu1 %vm366_vm2, %v4308_v44 }
0x1558   :  { %10359 = vmatprep.mubr.msk.bf16.mxu1 %vm366_vm2, %v14627_v17  ;;  %v5226_v17 = vsel %vm366_vm2, %v14645_v0, 0 }
0x155f   :  { %10360 = vmatmul.mubr.msk.bf16.vlgmr.msra.gmra.mxu1 %vm366_vm2, %v14625_v28  ;;  %v5229_v28 = vsel %vm366_vm2, %v14647_v23, 0 }
0x1560   :  { %10426 = vmatpush3.bf16.xpose.msra.mxu1 %v5235_v60  ;;  %10363 = vmatprep.mubr.msk.bf16.mxu1 %vm366_vm2, %v14631_v59  ;;  %v5220_v59 = vsel %vm366_vm2, %v14649_v36, 0  ;;  %v14868_v60 = vld [vmem:[%s17331_s1 + $0x28] sm:$0xff] }
0x1561   :  { %10935 = vmatprep.subr.msk.bf16.mxu1 %vm366_vm2, %v14641_v14 }
0x1567   :  { %10364 = vmatmul.mubr.msk.bf16.gmra.mxu1 %vm366_vm2, %v14629_v40  ;;  %v5223_v40 = vsel %vm366_vm2, %v14651_v9, 0 }
0x1568   :  { %10428 = vmatpush3.bf16.xpose.msra.mxu1 %v5232_v25  ;;  %10367 = vmatprep.mubr.msk.bf16.mxu1 %vm366_vm2, %v14635_v24  ;;  %v5214_v24 = vsel %vm366_vm2, %v14653_v4, 0 }
0x1569   :  { %10936 = vmatprep.subr.msk.bf16.mxu1 %vm366_vm2, %v14647_v23 }
0x156f   :  { %10368 = vmatmul.mubr.msk.bf16.gmra.mxu1 %vm366_vm2, %v14633_v30  ;;  %v5217_v30 = vsel %vm366_vm2, %v14655_v54, 0 }
0x1570   :  { %10430 = vmatpush3.bf16.xpose.msra.mxu1 %v5229_v28  ;;  %10371 = vmatprep.mubr.msk.bf16.mxu1 %vm366_vm2, %v14639_v27 }
0x1571   :  { %10937 = vmatprep.subr.msk.bf16.mxu1 %vm366_vm2, %v14645_v0 }
0x1577   :  { %10372 = vmatmul.mubr.msk.bf16.gmra.mxu1 %vm366_vm2, %v14637_v58 }
0x1578   :  { %10432 = vmatpush3.bf16.xpose.msra.mxu1 %v5226_v17  ;;  %10441 = vmatprep.mubr.msk.bf16.mxu1 %vm366_vm2, %v14659_v55  ;;  %v14877_v17 = vld [vmem:[%s17331_s1 + $0x50] sm:$0xff] }
0x1579   :  { %10938 = vmatprep.subr.msk.bf16.mxu1 %vm366_vm2, %v14651_v9 }
0x1580   :  { %10434 = vmatpush3.bf16.xpose.msra.mxu1 %v5223_v40 }
0x1581   :  { %10939 = vmatprep.subr.msk.bf16.mxu1 %vm366_vm2, %v14649_v36 }
0x1588   :  { %10436 = vmatpush3.bf16.xpose.msra.mxu1 %v5220_v59 }
0x1589   :  { %10940 = vmatprep.subr.msk.bf16.mxu1 %vm366_vm2, %v14655_v54 }
0x1590   :  { %10438 = vmatpush3.bf16.xpose.msra.mxu1 %v5217_v30  ;;  %v14886_v30 = vld [vmem:[%s17331_s1 + $0x58] sm:$0xff] }
0x1591   :  { %10941 = vmatprep.subr.msk.bf16.mxu1 %vm366_vm2, %v14653_v4 }
0x1598   :  { %10440 = vmatpush3.bf16.xpose.msra.mxu1 %v5214_v24 }
0x159f   :  { %10442 = vmatmul.mubr.msk.bf16.vlgmr.msra.gmra.mxu1 %vm366_vm2, %v14657_v6 }
0x15a0   :  { %10445 = vmatprep.mubr.msk.bf16.mxu1 %vm366_vm2, %v14663_v18 }
0x15a7   :  { %10446 = vmatmul.mubr.msk.bf16.gmra.mxu1 %vm366_vm2, %v14661_v34 }
0x15a8   :  { %10449 = vmatprep.mubr.msk.bf16.mxu1 %vm366_vm2, %v14667_v10 }
0x15af   :  { %10450 = vmatmul.mubr.msk.bf16.gmra.mxu1 %vm366_vm2, %v14665_v13 }
0x15b0   :  { %10453 = vmatprep.mubr.msk.bf16.mxu1 %vm366_vm2, %v14671_v26  ;;  %v14806_v26 = vld [vmem:[%s17331_s1 + $0x10] sm:$0xff] }
0x15b7   :  { %10454 = vmatmul.mubr.msk.bf16.gmra.mxu1 %vm366_vm2, %v14669_v56 }
0x15cf   :  { %v14771_v58 = vpop.f32.mrf.mxu1 }
0x15d1   :  { %v14773_v27 = vpop.f32.mrf.mxu1 }
0x15d3   :  { %v14775_v14 = vpop.f32.mrf.mxu1 }
0x15d5   :  { %v14777_v39 = vpop.f32.mrf.mxu1 }
0x15d6   :  { %17481 = vst [vmem:[#allocation29_spill] sm:$0xff] %v14777_v39 }
0x1607   :  { %v14779_v0 = vpop.f32.mrf.mxu1 }
0x1608   :  { %17482 = vst [vmem:[#allocation30_spill] sm:$0xff] %v14779_v0 }
0x1609   :  { %v14781_v23 = vpop.f32.mrf.mxu1 }
0x160a   :  { %17483 = vst [vmem:[#allocation19_spill] sm:$0xff] %v14781_v23 }
0x160b   :  { %v14783_v36 = vpop.f32.mrf.mxu1 }
0x160c   :  { %17484 = vst [vmem:[#allocation13_spill] sm:$0xff] %v14783_v36 }
0x160d   :  { %v14785_v9 = vpop.f32.mrf.mxu1 }
0x160e   :  { %17485 = vst [vmem:[#allocation12_spill] sm:$0xff] %v14785_v9 }
0x160f   :  { %v14787_v4 = vpop.f32.mrf.mxu1 }
0x1610   :  { %17486 = vst [vmem:[#allocation23_spill] sm:$0xff] %v14787_v4 }
0x1611   :  { %v14789_v54 = vpop.f32.mrf.mxu1 }
0x1612   :  { %17487 = vst [vmem:[#allocation27_spill] sm:$0xff] %v14789_v54 }
0x1613   :  { %v14791_v6 = vpop.f32.mrf.mxu1 }
0x1614   :  { %17488 = vst [vmem:[#allocation14_spill] sm:$0xff] %v14791_v6 }
0x1615   :  { %v14793_v55 = vpop.f32.mrf.mxu1 }
0x1616   :  { %17489 = vst [vmem:[#allocation31_spill] sm:$0xff] %v14793_v55  ;;  %v14949_v55 = vld [vmem:[%s17331_s1 + $0x68] sm:$0xff] }
0x1617   :  { %v14795_v34 = vpop.f32.mrf.mxu1 }
0x1618   :  { %17490 = vst [vmem:[#allocation15_spill] sm:$0xff] %v14795_v34 }
0x1619   :  { %v14797_v18 = vpop.f32.mrf.mxu1 }
0x161a   :  { %17491 = vst [vmem:[#allocation7_spill] sm:$0xff] %v14797_v18 }
0x161b   :  { %v14799_v13 = vpop.f32.mrf.mxu1 }
0x161c   :  { %17492 = vst [vmem:[#allocation9_spill] sm:$0xff] %v14799_v13 }
0x161d   :  { %v14801_v10 = vpop.f32.mrf.mxu1 }
0x161e   :  { %17493 = vst [vmem:[#allocation11_spill] sm:$0xff] %v14801_v10 }
0x161f   :  { %v10361_v56 = vpop.f32.mrf.mxu1 }
0x1620   :  { %v14809_v32 = vadd.f32 %v14806_v26, %v10361_v56 }
0x1621   :  { %v4672_v43 = vpop.f32.mrf.mxu1 }
0x1622   :  { %v14817_v38 = vadd.f32 %v14814_v3, %v4672_v43  ;;  %4739 = vmax.xlane.f32.xlu0 %v14809_v32  ;;  %v14895_v43 = vld [vmem:[%s17331_s1 + $0x40] sm:$0xff] }
0x1623   :  { %v10362_v49 = vpop.f32.mrf.mxu1 }
0x1624   :  { %4735 = vmax.xlane.f32.xlu1 %v14817_v38  ;;  %v14827_v16 = vadd.f32 %v14824_v53, %v10362_v49 }
0x1625   :  { %v4675_v61 = vpop.f32.mrf.mxu1 }
0x1626   :  { %v14835_v62 = vadd.f32 %v14832_v21, %v4675_v61 }
0x1627   :  { %v10365_v57 = vpop.f32.mrf.mxu1 }
0x1628   :  { %4737 = vmax.xlane.f32.xlu0 %v14835_v62  ;;  %4741 = vmax.xlane.f32.xlu1 %v14827_v16  ;;  %v14845_v5 = vadd.f32 %v14842_v2, %v10365_v57  ;;  %v14904_v57 = vld [vmem:[%s17331_s1 + $0x48] sm:$0xff] }
0x1629   :  { %v4688_v22 = vpop.f32.mrf.mxu1 }
0x162a   :  { %v14862_v45 = vadd.f32 %v14859_v42, %v4688_v22 }
0x162b   :  { %v10366_v1 = vpop.f32.mrf.mxu1 }
0x162c   :  { %v14853_v8 = vadd.f32 %v14850_v47, %v10366_v1  ;;  %4747 = vmax.xlane.f32.xlu0 %v14845_v5  ;;  %v14913_v1 = vld [vmem:[%s17331_s1 + $0x70] sm:$0xff] }
0x162d   :  { %v4691_v37 = vpop.f32.mrf.mxu1 }
0x162e   :  { %4749 = vmax.xlane.f32.xlu1 %v14853_v8  ;;  %v14871_v25 = vadd.f32 %v14868_v60, %v4691_v37 }
0x162f   :  { %v10369_v44 = vpop.f32.mrf.mxu1 }
0x1630   :  { %4743 = vmax.xlane.f32.xlu0 %v14862_v45  ;;  %v14880_v40 = vadd.f32 %v14877_v17, %v10369_v44 }
0x1631   :  { %v4704_v28 = vpop.f32.mrf.mxu1 }
0x1632   :  { %4745 = vmax.xlane.f32.xlu1 %v14871_v25  ;;  %v14898_v49 = vadd.f32 %v14895_v43, %v4704_v28  ;;  %v14923_v28 = vld [vmem:[%s17331_s1 + $0x60] sm:$0xff] }
0x1633   :  { %v10370_v59 = vpop.f32.mrf.mxu1 }
0x1634   :  { %v14889_v24 = vadd.f32 %v14886_v30, %v10370_v59  ;;  %4755 = vmax.xlane.f32.xlu0 %v14880_v40 }
0x1635   :  { %v4707_v56 = vpop.f32.mrf.mxu1 }
0x1636   :  { %4757 = vmax.xlane.f32.xlu1 %v14889_v24  ;;  %v14907_v22 = vadd.f32 %v14904_v57, %v4707_v56 }
0x1637   :  { %v10373_v61 = vpop.f32.mrf.mxu1 }
0x1638   :  { %4751 = vmax.xlane.f32.xlu0 %v14898_v49  ;;  %v14916_v37 = vadd.f32 %v14913_v1, %v10373_v61  ;;  %v14940_v61 = vld [vmem:[%s17331_s1 + $0x78] sm:$0xff] }
0x1639   :  { %v4720_v44 = vpop.f32.mrf.mxu1 }
0x163a   :  { %4753 = vmax.xlane.f32.xlu1 %v14907_v22  ;;  %v14926_v59 = vadd.f32 %v14923_v28, %v4720_v44 }
0x163b   :  { %v10374_v56 = vpop.f32.mrf.mxu1 }
0x163c   :  { %4763 = vmax.xlane.f32.xlu0 %v14916_v37  ;;  %v14943_v44 = vadd.f32 %v14940_v61, %v10374_v56 }
0x163d   :  { %v4723_v10 = vpop.f32.mrf.mxu1 }
0x163e   :  { %v14952_v46 = vadd.f32 %v14949_v55, %v4723_v10 }
0x1640   :  { %4759 = vmax.xlane.f32.xlu0 %v14926_v59 }
0x164b   :  { %4893 = vrot.lane.b32.xlu1 %v14035_v15, %s11970_s29 }
0x1656   :  { %4897 = vrot.lane.b32.xlu0 %v14027_v19, %s11970_s29 }
0x165a   :  { %4895 = vrot.lane.b32.xlu0 %v14023_v29, %s11970_s29 }
0x165e   :  { %4889 = vrot.lane.b32.xlu0 %v14041_v11, %s11970_s29 }
0x166f   :  { %4765 = vmax.xlane.f32.xlu1 %v14943_v44 }
0x1673   :  { %4761 = vmax.xlane.f32.xlu1 %v14952_v46 }
0x1684   :  { %4891 = vrot.lane.b32.xlu1 %v14031_v52, %s11970_s29 }
0x16ab   :  { %v4740_v7 = vpop.xlane.xlu0 %4739 }
0x16ac   :  { %v4769_v56 = vsub.f32 %v14809_v32, %v4740_v7 }
0x16ad   :  { %v4736_v51 = vpop.xlane.xlu1 %4735 }
0x16ae   :  { %v4787_v31 = vmul.f32 1.442695, %v4769_v56  ;;  %v4767_v35 = vsub.f32 %v14817_v38, %v4736_v51 }
0x16b0   :  { %11440 = vpow2.f32 %v4787_v31  ;;  %v4783_v33 = vmul.f32 1.442695, %v4767_v35 }
0x16b1   :  { %v4738_v9 = vpop.xlane.xlu0 %4737  ;;  %v4742_v20 = vpop.xlane.xlu1 %4741 }
0x16b2   :  { %v4770_v41 = vsub.f32 %v14827_v16, %v4742_v20  ;;  %11442 = vpow2.f32 %v4783_v33  ;;  %v4768_v10 = vsub.f32 %v14835_v62, %v4738_v9 }
0x16b4   :  { %v4789_v39 = vmul.f32 1.442695, %v4770_v41  ;;  %v4785_v34 = vmul.f32 1.442695, %v4768_v10 }
0x16b5   :  { %v4748_v48 = vpop.xlane.xlu0 %4747 }
0x16b6   :  { %v4773_v13 = vsub.f32 %v14845_v5, %v4748_v48  ;;  %11444 = vpow2.f32 %v4789_v39 }
0x16b7   :  { %v4750_v18 = vpop.xlane.xlu1 %4749 }
0x16b8   :  { %v4795_v7 = vmul.f32 1.442695, %v4773_v13  ;;  %v4774_v51 = vsub.f32 %v14853_v8, %v4750_v18 }
0x16b9   :  { %v4744_v32 = vpop.xlane.xlu0 %4743 }
0x16ba   :  { %11446 = vpow2.f32 %v4795_v7  ;;  %v4771_v35 = vsub.f32 %v14862_v45, %v4744_v32  ;;  %v4797_v38 = vmul.f32 1.442695, %v4774_v51 }
0x16bb   :  { %v4746_v31 = vpop.xlane.xlu1 %4745  ;;  %11448 = vpow2.f32 %v4785_v34 }
0x16bc   :  { %v4791_v20 = vmul.f32 1.442695, %v4771_v35  ;;  %v4772_v33 = vsub.f32 %v14871_v25, %v4746_v31 }
0x16bd   :  { %v14965_v9 = vpop.eup %11440  ;;  %v4756_v41 = vpop.xlane.xlu0 %4755 }
0x16be   :  { %11450 = vpow2.f32 %v4791_v20  ;;  %v4793_v48 = vmul.f32 1.442695, %v4772_v33  ;;  %v4777_v39 = vsub.f32 %v14880_v40, %v4756_v41  ;;  %4819 = vadd.xlane.f32.xlu1 %v14965_v9 }
0x16bf   :  { %v4758_v13 = vpop.xlane.xlu1 %4757  ;;  %v14969_v18 = vpop.eup %11442 }
0x16c0   :  { %11452 = vpow2.f32 %v4793_v48  ;;  %v4803_v34 = vmul.f32 1.442695, %v4777_v39  ;;  %v4778_v25 = vsub.f32 %v14889_v24, %v4758_v13 }
0x16c1   :  { %v4752_v16 = vpop.xlane.xlu0 %4751  ;;  %11454 = vpow2.f32 %v4797_v38 }
0x16c2   :  { %v4775_v62 = vsub.f32 %v14898_v49, %v4752_v16  ;;  %4815 = vadd.xlane.f32.xlu1 %v14969_v18  ;;  %11456 = vpow2.f32 %v4803_v34  ;;  %v4805_v35 = vmul.f32 1.442695, %v4778_v25 }
0x16c3   :  { %v4754_v5 = vpop.xlane.xlu1 %4753  ;;  %v14974_v45 = vpop.eup %11444 }
0x16c4   :  { %v4776_v8 = vsub.f32 %v14907_v22, %v4754_v5  ;;  %v4799_v56 = vmul.f32 1.442695, %v4775_v62  ;;  %v10443_v5 = vpop.f32.mrf.mxu1 }
0x16c5   :  { %v4764_v40 = vpop.xlane.xlu0 %4763 }
0x16c6   :  { %v4801_v10 = vmul.f32 1.442695, %v4776_v8  ;;  %v4781_v7 = vsub.f32 %v14916_v37, %v4764_v40  ;;  %4821 = vadd.xlane.f32.xlu1 %v14974_v45  ;;  %v5271_v8 = vpop.f32.mrf.mxu1 }
0x16c7   :  { %v14979_v32 = vpop.eup %11446  ;;  %v4894_v48 = vpop.permute.xlu1 %4893 }
0x16c8   :  { %11458 = vpow2.f32 %v4801_v10  ;;  %v4811_v49 = vmul.f32 1.442695, %v4781_v7  ;;  %4827 = vadd.xlane.f32.xlu0 %v14979_v32  ;;  %v14982_v51 = vpop.eup %11448  ;;  %v10444_v25 = vpop.f32.mrf.mxu1 }
0x16c9   :  { %v4760_v22 = vpop.xlane.xlu0 %4759  ;;  %11460 = vpow2.f32 %v4799_v56 }
0x16ca   :  { %v4779_v24 = vsub.f32 %v14926_v59, %v4760_v22  ;;  %4817 = vadd.xlane.f32.xlu1 %v14982_v51  ;;  %11462 = vpow2.f32 %v4811_v49  ;;  %v5274_v40 = vpop.f32.mrf.mxu1 }
0x16cb   :  { %v14986_v31 = vpop.eup %11450  ;;  %11464 = vpow2.f32 %v4805_v35 }
0x16cc   :  { %v4807_v37 = vmul.f32 1.442695, %v4779_v24  ;;  %4823 = vadd.xlane.f32.xlu0 %v14986_v31  ;;  %v10447_v56 = vpop.f32.mrf.mxu1 }
0x16cd   :  { %v14989_v20 = vpop.eup %11452  ;;  %v4898_v33 = vpop.permute.xlu0 %4897 }
0x16ce   :  { %10379 = vmatprep.subr.bf16.mxu0 %v4898_v33  ;;  %4825 = vadd.xlane.f32.xlu1 %v14989_v20  ;;  %v14992_v41 = vpop.eup %11454  ;;  %11466 = vpow2.f32 %v4807_v37  ;;  %v5287_v10 = vpop.f32.mrf.mxu1 }
0x16cf   :  { %10380 = vmatpush3.bf16.msra.mxu0 %v4898_v33  ;;  %v14995_v38 = vpop.eup %11456 }
0x16d0   :  { %4829 = vadd.xlane.f32.xlu0 %v14992_v41  ;;  %v10448_v49 = vpop.f32.mrf.mxu1 }
0x16d1   :  { %v4896_v59 = vpop.permute.xlu0 %4895 }
0x16d2   :  { %10381 = vmatprep.subr.bf16.mxu0 %v4896_v59  ;;  %v5290_v37 = vpop.f32.mrf.mxu1 }
0x16d3   :  { %10382 = vmatpush3.bf16.msra.mxu0 %v4896_v59 }
0x16d4   :  { %4835 = vadd.xlane.f32.xlu0 %v14995_v38  ;;  %10383 = vmatprep.subr.bf16.mxu0 %v4894_v48  ;;  %v10451_v6 = vpop.f32.mrf.mxu1 }
0x16d5   :  { %v14998_v39 = vpop.eup %11458  ;;  %v4890_v54 = vpop.permute.xlu0 %4889 }
0x16d6   :  { %4833 = vadd.xlane.f32.xlu1 %v14998_v39  ;;  %v15001_v13 = vpop.eup %11460  ;;  %v5303_v4 = vpop.f32.mrf.mxu1 }
0x16d7   :  { %10384 = vmatpush3.bf16.msra.mxu0 %v4894_v48  ;;  %v15004_v16 = vpop.eup %11462 }
0x16d8   :  { %4831 = vadd.xlane.f32.xlu0 %v15001_v13  ;;  %v15007_v34 = vpop.eup %11464  ;;  %v10452_v36 = vpop.f32.mrf.mxu1 }
0x16da   :  { %4843 = vadd.xlane.f32.xlu1 %v15004_v16  ;;  %v5306_v0 = vpop.f32.mrf.mxu1 }
0x16db   :  { %v15010_v62 = vpop.eup %11466 }
0x16dc   :  { %4837 = vadd.xlane.f32.xlu0 %v15007_v34 }
0x16de   :  { %4839 = vadd.xlane.f32.xlu1 %v15010_v62 }
0x16ef   :  { %4887 = vrot.lane.b32.xlu1 %v14013_v50, %s11970_s29 }
0x16f8   :  { %v4766_v7 = vpop.xlane.xlu1 %4765 }
0x16f9   :  { %v4782_v35 = vsub.f32 %v14943_v44, %v4766_v7  ;;  %v10455_v7 = vpop.f32.mrf.mxu1 }
0x16fb   :  { %v4813_v48 = vmul.f32 1.442695, %v4782_v35 }
0x16fc   :  { %v4762_v22 = vpop.xlane.xlu1 %4761 }
0x16fd   :  { %v4780_v24 = vsub.f32 %v14952_v46, %v4762_v22  ;;  %v15021_v46 = vadd.f32 %v14859_v42, %v5287_v10  ;;  %v15028_v22 = vadd.f32 %v14814_v3, %v5271_v8  ;;  %v15036_v42 = vadd.f32 %v14832_v21, %v5274_v40 }
0x16fe   :  { %v15040_v10 = vadd.f32 %v14806_v26, %v10443_v5  ;;  %v15044_v3 = vadd.f32 %v14824_v53, %v10444_v25  ;;  %v15054_v21 = vadd.f32 %v14842_v2, %v10447_v56  ;;  %v15060_v26 = vadd.f32 %v14850_v47, %v10448_v49  ;;  %v5319_v2 = vpop.f32.mrf.mxu1 }
0x16ff   :  { %v4809_v33 = vmul.f32 1.442695, %v4780_v24  ;;  %v15066_v53 = vadd.f32 %v14895_v43, %v5303_v4  ;;  %v15084_v47 = vadd.f32 %v14923_v28, %v5319_v2 }
0x1700   :  { %v4892_v59 = vpop.permute.xlu1 %4891  ;;  %v10456_v4 = vpop.f32.mrf.mxu1 }
0x1701   :  { %11468 = vpow2.f32 %v4809_v33  ;;  %10385 = vmatprep.subr.bf16.mxu0 %v4892_v59 }
0x1702   :  { %10386 = vmatpush3.bf16.msra.mxu0 %v4892_v59  ;;  %11470 = vpow2.f32 %v4813_v48 }
0x1703   :  { %10387 = vmatprep.subr.bf16.mxu0 %v4890_v54 }
0x1706   :  { %10388 = vmatpush3.bf16.msra.mxu0 %v4890_v54  ;;  %v15031_v54 = vadd.f32 %v14913_v1, %v10455_v7  ;;  %v15048_v1 = vadd.f32 %v14868_v60, %v5290_v37  ;;  %v15092_v60 = vadd.f32 %v14940_v61, %v10456_v4 }
0x170e   :  { %v15017_v23 = vpop.eup %11468 }
0x170f   :  { %4841 = vadd.xlane.f32.xlu0 %v15017_v23  ;;  %v15023_v44 = vpop.eup %11470 }
0x1713   :  { %5342 = vmax.xlane.f32.xlu1 %v15021_v46  ;;  %4845 = vadd.xlane.f32.xlu0 %v15023_v44 }
0x1717   :  { %5362 = vmax.xlane.f32.xlu1 %v15031_v54  ;;  %5334 = vmax.xlane.f32.xlu0 %v15028_v22 }
0x171b   :  { %5336 = vmax.xlane.f32.xlu0 %v15036_v42 }
0x171f   :  { %5338 = vmax.xlane.f32.xlu0 %v15040_v10 }
0x1723   :  { %5340 = vmax.xlane.f32.xlu0 %v15044_v3 }
0x1727   :  { %5344 = vmax.xlane.f32.xlu0 %v15048_v1 }
0x1728   :  { %5500 = vrot.lane.b32.xlu1 %v14017_v63, %s11971_s27  ;;  %v15072_v63 = vadd.f32 %v14904_v57, %v5306_v0 }
0x172b   :  { %5346 = vmax.xlane.f32.xlu0 %v15054_v21 }
0x172c   :  { %5496 = vrot.lane.b32.xlu1 %v14027_v19, %s11971_s27  ;;  %v15076_v19 = vadd.f32 %v14877_v17, %v10451_v6 }
0x172f   :  { %5348 = vmax.xlane.f32.xlu0 %v15060_v26 }
0x1730   :  { %5494 = vrot.lane.b32.xlu1 %v14023_v29, %s11971_s27  ;;  %v15080_v29 = vadd.f32 %v14886_v30, %v10452_v36 }
0x1733   :  { %5350 = vmax.xlane.f32.xlu0 %v15066_v53 }
0x1734   :  { %5488 = vrot.lane.b32.xlu1 %v14041_v11, %s11971_s27  ;;  %v5322_v11 = vpop.f32.mrf.mxu1 }
0x1735   :  { %v15088_v0 = vadd.f32 %v14949_v55, %v5322_v11 }
0x1737   :  { %5352 = vmax.xlane.f32.xlu0 %v15072_v63 }
0x173b   :  { %5354 = vmax.xlane.f32.xlu0 %v15076_v19 }
0x173f   :  { %5356 = vmax.xlane.f32.xlu0 %v15080_v29 }
0x1743   :  { %5358 = vmax.xlane.f32.xlu0 %v15084_v47 }
0x1747   :  { %5360 = vmax.xlane.f32.xlu0 %v15088_v0  ;;  %v4820_v6 = vpop.xlane.xlu1 %4819 }
0x174b   :  { %5364 = vmax.xlane.f32.xlu0 %v15092_v60  ;;  %v4816_v36 = vpop.xlane.xlu1 %4815 }
0x174c   :  { %11472 = vrcp.f32 %v4816_v36 }
0x174f   :  { %v4822_v17 = vpop.xlane.xlu1 %4821 }
0x1751   :  { %v4828_v30 = vpop.xlane.xlu0 %4827 }
0x1753   :  { %v4818_v43 = vpop.xlane.xlu1 %4817 }
0x1754   :  { %11474 = vrcp.f32 %v4818_v43 }
0x1755   :  { %v4824_v57 = vpop.xlane.xlu0 %4823  ;;  %11476 = vrcp.f32 %v4822_v17 }
0x1757   :  { %v4826_v28 = vpop.xlane.xlu1 %4825 }
0x1758   :  { %11478 = vrcp.f32 %v4826_v28 }
0x1759   :  { %v4830_v5 = vpop.xlane.xlu0 %4829  ;;  %11480 = vrcp.f32 %v4820_v6  ;;  %v11473_v8 = vpop.eup %11472 }
0x175a   :  { %11482 = vrcp.f32 %v4824_v57  ;;  %v4863_v56 = vmul.f32 %v11473_v8, %v14969_v18 }
0x175b   :  { %11484 = vrcp.f32 %v4830_v5 }
0x175d   :  { %v4836_v55 = vpop.xlane.xlu0 %4835 }
0x175f   :  { %v4834_v25 = vpop.xlane.xlu1 %4833 }
0x1761   :  { %v11475_v61 = vpop.eup %11474  ;;  %v4832_v40 = vpop.xlane.xlu0 %4831  ;;  %5498 = vrot.lane.b32.xlu0 %v14019_v12, %s11971_s27  ;;  %v3255_v12 = vld [vmem:[%s17328_s2 + $0x80] sm:$0xff] }
0x1762   :  { %v4864_v49 = vmul.f32 %v11475_v61, %v14982_v51  ;;  %11486 = vrcp.f32 %v4832_v40  ;;  %v11477_v37 = vpop.eup %11476  ;;  %v5016_v2 = vpack.c.bf16 %v3255_v12, %v3255_v12 }
0x1763   :  { %v4844_v35 = vpop.xlane.xlu1 %4843  ;;  %11488 = vrcp.f32 %v4828_v30  ;;  %v4866_v7 = vmul.f32 %v11477_v37, %v14974_v45 }
0x1764   :  { %v4879_v24 = vpack.c.bf16 %v4864_v49, %v4863_v56  ;;  %11490 = vrcp.f32 %v4834_v25 }
0x1765   :  { %5492 = vrot.lane.b32.xlu0 %v14035_v15, %s11971_s27  ;;  %v4838_v33 = vpop.xlane.xlu0 %4837  ;;  %v11479_v48 = vpop.eup %11478 }
0x1766   :  { %10391 = vmatprep.mubr.bf16.mxu0 %v4879_v24  ;;  %v11481_v18 = vpop.eup %11480  ;;  %11492 = vrcp.f32 %v4838_v33  ;;  %v4868_v15 = vmul.f32 %v11479_v48, %v14989_v20 }
0x1767   :  { %v4840_v59 = vpop.xlane.xlu1 %4839  ;;  %v11483_v51 = vpop.eup %11482  ;;  %v4865_v11 = vmul.f32 %v11481_v18, %v14965_v9  ;;  %11494 = vrcp.f32 %v4836_v55 }
0x1768   :  { %v4867_v6 = vmul.f32 %v11483_v51, %v14986_v31  ;;  %v11485_v17 = vpop.eup %11484  ;;  %11496 = vrcp.f32 %v4840_v59 }
0x1769   :  { %5490 = vrot.lane.b32.xlu0 %v14031_v52, %s11971_s27  ;;  %v4880_v36 = vpack.c.bf16 %v4866_v7, %v4865_v11  ;;  %v5042_v52 = vsel %vm1277_vm3, %v5016_v2, 0  ;;  %v4870_v9 = vmul.f32 %v11485_v17, %v14992_v41 }
0x176a   :  { %v4881_v30 = vpack.c.bf16 %v4868_v15, %v4867_v6 }
0x176b   :  { %v4888_v4 = vpop.permute.xlu1 %4887 }
0x176c   :  { %10389 = vmatprep.subr.bf16.mxu0 %v4888_v4 }
0x176d   :  { %10390 = vmatpush3.bf16.msra.mxu0 %v4888_v4 }
0x176e   :  { %10933 = vmatprep.subr.msk.bf16.mxu0 %vm1277_vm3, %v5016_v2 }
0x176f   :  { %v11487_v45 = vpop.eup %11486 }
0x1770   :  { %10392 = vmatmul.mubr.bf16.vlgmr.msra.gmra.mxu0 %v4880_v36  ;;  %v11489_v43 = vpop.eup %11488  ;;  %v4871_v57 = vmul.f32 %v11487_v45, %v15001_v13 }
0x1771   :  { %10395 = vmatprep.mubr.bf16.mxu0 %v4881_v30  ;;  %10408 = vmatpush3.bf16.msra.mxu0 %v5042_v52  ;;  %v11491_v20 = vpop.eup %11490  ;;  %v4869_v28 = vmul.f32 %v11489_v43, %v14979_v32 }
0x1772   :  { %v4872_v31 = vmul.f32 %v11491_v20, %v14998_v39 }
0x1773   :  { %v4882_v5 = vpack.c.bf16 %v4870_v9, %v4869_v28  ;;  %v11493_v55 = vpop.eup %11492 }
0x1774   :  { %v4883_v8 = vpack.c.bf16 %v4872_v31, %v4871_v57  ;;  %v11495_v25 = vpop.eup %11494  ;;  %v4874_v61 = vmul.f32 %v11493_v55, %v15007_v34 }
0x1775   :  { %v4873_v40 = vmul.f32 %v11495_v25, %v14995_v38  ;;  %v11497_v24 = vpop.eup %11496 }
0x1776   :  { %v4875_v38 = vmul.f32 %v11497_v24, %v15010_v62 }
0x1777   :  { %v4884_v56 = vpack.c.bf16 %v4874_v61, %v4873_v40 }
0x1778   :  { %10396 = vmatmul.mubr.bf16.gmra.mxu0 %v4882_v5 }
0x1779   :  { %10399 = vmatprep.mubr.bf16.mxu0 %v4883_v8 }
0x1780   :  { %10400 = vmatmul.mubr.bf16.gmra.mxu0 %v4884_v56 }
0x1798   :  { %v4842_v41 = vpop.xlane.xlu0 %4841 }
0x1799   :  { %11498 = vrcp.f32 %v4842_v41 }
0x179a   :  { %11500 = vrcp.f32 %v4844_v35 }
0x179c   :  { %v4846_v13 = vpop.xlane.xlu0 %4845  ;;  %v5343_v32 = vpop.xlane.xlu1 %5342 }
0x179d   :  { %11502 = vrcp.f32 %v4846_v13  ;;  %v5370_v52 = vsub.f32 %v15021_v46, %v5343_v32 }
0x179f   :  { %v5390_v43 = vmul.f32 1.442695, %v5370_v52 }
0x17a0   :  { %v5335_v39 = vpop.xlane.xlu0 %5334  ;;  %v5363_v49 = vpop.xlane.xlu1 %5362 }
0x17a1   :  { %v5366_v35 = vsub.f32 %v15028_v22, %v5335_v39 }
0x17a3   :  { %v5382_v6 = vmul.f32 1.442695, %v5366_v35 }
0x17a4   :  { %v5337_v37 = vpop.xlane.xlu0 %5336  ;;  %v15118_v33 = vpop.permute.xlu1 %5500 }
0x17a5   :  { %10457 = vmatprep.subr.bf16.mxu0 %v15118_v33  ;;  %v5367_v36 = vsub.f32 %v15036_v42, %v5337_v37 }
0x17a6   :  { %v11499_v34 = vpop.eup %11498 }
0x17a7   :  { %v4876_v12 = vmul.f32 %v11499_v34, %v15017_v23  ;;  %v11501_v59 = vpop.eup %11500  ;;  %v5384_v17 = vmul.f32 1.442695, %v5367_v36 }
0x17a8   :  { %v5339_v48 = vpop.xlane.xlu0 %5338  ;;  %v4877_v4 = vmul.f32 %v11501_v59, %v15004_v16 }
0x17a9   :  { %v5368_v18 = vsub.f32 %v15040_v10, %v5339_v48  ;;  %v4885_v51 = vpack.c.bf16 %v4876_v12, %v4875_v38 }
0x17aa   :  { %v11503_v7 = vpop.eup %11502 }
0x17ab   :  { %v5386_v2 = vmul.f32 1.442695, %v5368_v18  ;;  %10403 = vmatprep.mubr.bf16.mxu0 %v4885_v51  ;;  %v4878_v15 = vmul.f32 %v11503_v7, %v15023_v44 }
0x17ac   :  { %v5341_v11 = vpop.xlane.xlu0 %5340 }
0x17ad   :  { %11504 = vpow2.f32 %v5386_v2  ;;  %v5369_v62 = vsub.f32 %v15044_v3, %v5341_v11  ;;  %v4886_v23 = vpack.c.bf16 %v4878_v15, %v4877_v4  ;;  %v15189_v4 = vpop.f32.mrf.mxu0 }
0x17ae   :  { %11506 = vpow2.f32 %v5382_v6 }
0x17af   :  { %10404 = vmatmul.mubr.bf16.gmra.mxu0 %v4886_v23  ;;  %v5388_v10 = vmul.f32 1.442695, %v5369_v62  ;;  %v15193_v15 = vpop.f32.mrf.mxu0 }
0x17b0   :  { %v5345_v22 = vpop.xlane.xlu0 %5344 }
0x17b1   :  { %11508 = vpow2.f32 %v5388_v10  ;;  %v5371_v16 = vsub.f32 %v15048_v1, %v5345_v22  ;;  %v5380_v1 = vsub.f32 %v15031_v54, %v5363_v49  ;;  %v15195_v11 = vpop.f32.mrf.mxu0 }
0x17b2   :  { %11510 = vpow2.f32 %v5384_v17 }
0x17b3   :  { %v5392_v20 = vmul.f32 1.442695, %v5371_v16  ;;  %v5410_v55 = vmul.f32 1.442695, %v5380_v1  ;;  %v15197_v6 = vpop.f32.mrf.mxu0 }
0x17b4   :  { %v5347_v30 = vpop.xlane.xlu0 %5346 }
0x17b5   :  { %v5372_v44 = vsub.f32 %v15054_v21, %v5347_v30  ;;  %v15199_v62 = vpop.f32.mrf.mxu0 }
0x17b7   :  { %v5394_v45 = vmul.f32 1.442695, %v5372_v44  ;;  %v15201_v23 = vpop.f32.mrf.mxu0 }
0x17b8   :  { %v5349_v3 = vpop.xlane.xlu0 %5348 }
0x17b9   :  { %11512 = vpow2.f32 %v5394_v45  ;;  %v5373_v42 = vsub.f32 %v15060_v26, %v5349_v3  ;;  %v15203_v36 = vpop.f32.mrf.mxu0 }
0x17ba   :  { %v15133_v9 = vpop.eup %11504  ;;  %11514 = vpow2.f32 %v5390_v43 }
0x17bb   :  { %5418 = vadd.xlane.f32.xlu0 %v15133_v9  ;;  %11516 = vpow2.f32 %v5392_v20  ;;  %v5396_v57 = vmul.f32 1.442695, %v5373_v42  ;;  %v15136_v28 = vpop.eup %11506  ;;  %v15205_v22 = vpop.f32.mrf.mxu0 }
0x17bc   :  { %v5351_v46 = vpop.xlane.xlu0 %5350 }
0x17bd   :  { %11518 = vpow2.f32 %v5396_v57  ;;  %v5374_v61 = vsub.f32 %v15066_v53, %v5351_v46  ;;  %v15207_v10 = vpop.f32.mrf.mxu0 }
0x17be   :  { %v15141_v5 = vpop.eup %11508 }
0x17bf   :  { %5414 = vadd.xlane.f32.xlu0 %v15136_v28  ;;  %v15144_v25 = vpop.eup %11510  ;;  %v5398_v13 = vmul.f32 1.442695, %v5374_v61  ;;  %v15209_v52 = vpop.f32.mrf.mxu0 }
0x17c0   :  { %v5353_v21 = vpop.xlane.xlu0 %5352 }
0x17c1   :  { %v5375_v31 = vsub.f32 %v15072_v63, %v5353_v21  ;;  %v15211_v17 = vpop.f32.mrf.mxu0 }
0x17c3   :  { %v5400_v26 = vmul.f32 1.442695, %v5375_v31  ;;  %5420 = vadd.xlane.f32.xlu0 %v15141_v5 }
0x17c4   :  { %v5355_v8 = vpop.xlane.xlu0 %5354 }
0x17c5   :  { %11520 = vpow2.f32 %v5400_v26  ;;  %v5376_v40 = vsub.f32 %v15076_v19, %v5355_v8  ;;  %v5497_v8 = vpop.permute.xlu1 %5496 }
0x17c6   :  { %v15148_v56 = vpop.eup %11512  ;;  %11522 = vpow2.f32 %v5410_v55 }
0x17c7   :  { %v5402_v54 = vmul.f32 1.442695, %v5376_v40  ;;  %5416 = vadd.xlane.f32.xlu0 %v15144_v25  ;;  %5426 = vadd.xlane.f32.xlu1 %v15148_v56  ;;  %v15152_v41 = vpop.eup %11514 }
0x17c8   :  { %v5357_v63 = vpop.xlane.xlu0 %5356  ;;  %v15155_v39 = vpop.eup %11516 }
0x17c9   :  { %11524 = vpow2.f32 %v5402_v54  ;;  %v5377_v32 = vsub.f32 %v15080_v29, %v5357_v63 }
0x17ca   :  { %11526 = vpow2.f32 %v5398_v13  ;;  %v15160_v24 = vpop.eup %11518 }
0x17cb   :  { %5424 = vadd.xlane.f32.xlu0 %v15155_v39  ;;  %5422 = vadd.xlane.f32.xlu1 %v15152_v41  ;;  %v5404_v19 = vmul.f32 1.442695, %v5377_v32 }
0x17cc   :  { %v5359_v53 = vpop.xlane.xlu0 %5358 }
0x17cd   :  { %v5378_v49 = vsub.f32 %v15084_v47, %v5359_v53  ;;  %11528 = vpow2.f32 %v5404_v19  ;;  %v5495_v53 = vpop.permute.xlu1 %5494 }
0x17cf   :  { %5428 = vadd.xlane.f32.xlu1 %v15160_v24  ;;  %v5406_v37 = vmul.f32 1.442695, %v5378_v49 }
0x17d0   :  { %v5361_v34 = vpop.xlane.xlu0 %5360 }
0x17d1   :  { %v5379_v29 = vsub.f32 %v15088_v0, %v5361_v34  ;;  %11530 = vpow2.f32 %v5406_v37 }
0x17d2   :  { %v15164_v38 = vpop.eup %11520 }
0x17d3   :  { %v5408_v12 = vmul.f32 1.442695, %v5379_v29  ;;  %5432 = vadd.xlane.f32.xlu0 %v15164_v38  ;;  %v15167_v48 = vpop.eup %11522 }
0x17d4   :  { %v5365_v59 = vpop.xlane.xlu0 %5364 }
0x17d5   :  { %11532 = vpow2.f32 %v5408_v12  ;;  %v5381_v47 = vsub.f32 %v15092_v60, %v5365_v59  ;;  %v5489_v12 = vpop.permute.xlu1 %5488 }
0x17d6   :  { %v15170_v35 = vpop.eup %11524 }
0x17d7   :  { %v5412_v18 = vmul.f32 1.442695, %v5381_v47  ;;  %5434 = vadd.xlane.f32.xlu1 %v15170_v35  ;;  %5442 = vadd.xlane.f32.xlu0 %v15167_v48  ;;  %v15174_v0 = vpop.eup %11526 }
0x17d8   :  { %v5499_v42 = vpop.permute.xlu0 %5498 }
0x17d9   :  { %11534 = vpow2.f32 %v5412_v18 }
0x17da   :  { %v15177_v51 = vpop.eup %11528 }
0x17db   :  { %5430 = vadd.xlane.f32.xlu1 %v15174_v0 }
0x17dc   :  { %v5493_v26 = vpop.permute.xlu0 %5492 }
0x17de   :  { %v15180_v7 = vpop.eup %11530 }
0x17df   :  { %5436 = vadd.xlane.f32.xlu1 %v15177_v51 }
0x17e0   :  { %v5491_v13 = vpop.permute.xlu0 %5490 }
0x17e2   :  { %v15182_v2 = vpop.eup %11532 }
0x17e3   :  { %5438 = vadd.xlane.f32.xlu1 %v15180_v7  ;;  %5440 = vadd.xlane.f32.xlu0 %v15182_v2 }
0x17e6   :  { %v15186_v60 = vpop.eup %11534 }
0x17e7   :  { %5444 = vadd.xlane.f32.xlu1 %v15186_v60 }
0x17f9   :  { %5486 = vrot.lane.b32.xlu0 %v14013_v50, %s11971_s27  ;;  %v15213_v50 = vpop.f32.mrf.mxu0 }
0x17fb   :  { %v15215_v30 = vpop.f32.mrf.mxu0 }
0x17fd   :  { %v15217_v16 = vpop.f32.mrf.mxu0 }
0x17ff   :  { %v15219_v44 = vpop.f32.mrf.mxu0 }
0x1801   :  { %v15221_v45 = vpop.f32.mrf.mxu0 }
0x1830   :  { %v10393_v43 = vpop.f32.mrf.mxu0 }
0x1832   :  { %v4945_v3 = vpop.f32.mrf.mxu0 }
0x1834   :  { %v10394_v20 = vpop.f32.mrf.mxu0 }
0x1835   :  { %v5009_v1 = vpack.c.bf16 %v10394_v20, %v10393_v43 }
0x1836   :  { %v4948_v46 = vpop.f32.mrf.mxu0 }
0x1837   :  { %v5008_v57 = vpack.c.bf16 %v4948_v46, %v4945_v3 }
0x1838   :  { %v10397_v21 = vpop.f32.mrf.mxu0 }
0x1839   :  { %10409 = vmatprep.mubr.msk.bf16.mxu0 %vm366_vm2, %v5008_v57 }
0x183a   :  { %v4961_v31 = vpop.f32.mrf.mxu0  ;;  %10410 = vmatmul.mubr.msk.bf16.vlgmr.msra.gmra.mxu0 %vm366_vm2, %v5009_v1 }
0x183b   :  { %10458 = vmatpush3.bf16.msra.mxu0 %v15118_v33 }
0x183c   :  { %10459 = vmatprep.subr.bf16.mxu0 %v5499_v42  ;;  %v10398_v55 = vpop.f32.mrf.mxu0 }
0x183d   :  { %v5011_v54 = vpack.c.bf16 %v10398_v55, %v10397_v21 }
0x183e   :  { %v4964_v61 = vpop.f32.mrf.mxu0 }
0x183f   :  { %v5010_v40 = vpack.c.bf16 %v4964_v61, %v4961_v31  ;;  %10460 = vmatpush3.bf16.msra.mxu0 %v5499_v42 }
0x1840   :  { %10461 = vmatprep.subr.bf16.mxu0 %v5497_v8  ;;  %v10401_v63 = vpop.f32.mrf.mxu0 }
0x1841   :  { %10413 = vmatprep.mubr.msk.bf16.mxu0 %vm366_vm2, %v5010_v40 }
0x1842   :  { %v4977_v32 = vpop.f32.mrf.mxu0  ;;  %10414 = vmatmul.mubr.msk.bf16.gmra.mxu0 %vm366_vm2, %v5011_v54 }
0x1843   :  { %10462 = vmatpush3.bf16.msra.mxu0 %v5497_v8 }
0x1844   :  { %10463 = vmatprep.subr.bf16.mxu0 %v5495_v53  ;;  %v10402_v33 = vpop.f32.mrf.mxu0  ;;  %v5419_v19 = vpop.xlane.xlu0 %5418 }
0x1845   :  { %v5013_v34 = vpack.c.bf16 %v10402_v33, %v10401_v63 }
0x1846   :  { %v4980_v49 = vpop.f32.mrf.mxu0 }
0x1847   :  { %v5012_v37 = vpack.c.bf16 %v4980_v49, %v4977_v32  ;;  %10464 = vmatpush3.bf16.msra.mxu0 %v5495_v53 }
0x1848   :  { %10465 = vmatprep.subr.bf16.mxu0 %v5493_v26  ;;  %v5415_v29 = vpop.xlane.xlu0 %5414 }
0x1849   :  { %10417 = vmatprep.mubr.msk.bf16.mxu0 %vm366_vm2, %v5012_v37 }
0x184a   :  { %10418 = vmatmul.mubr.msk.bf16.gmra.mxu0 %vm366_vm2, %v5013_v34 }
0x184b   :  { %10466 = vmatpush3.bf16.msra.mxu0 %v5493_v26 }
0x184c   :  { %10467 = vmatprep.subr.bf16.mxu0 %v5491_v13  ;;  %v5421_v59 = vpop.xlane.xlu0 %5420 }
0x184f   :  { %10468 = vmatpush3.bf16.msra.mxu0 %v5491_v13 }
0x1850   :  { %10469 = vmatprep.subr.bf16.mxu0 %v5489_v12  ;;  %v5427_v47 = vpop.xlane.xlu1 %5426  ;;  %v5417_v18 = vpop.xlane.xlu0 %5416 }
0x1851   :  { %11536 = vrcp.f32 %v5417_v18 }
0x1852   :  { %11538 = vrcp.f32 %v5415_v29 }
0x1853   :  { %10470 = vmatpush3.bf16.msra.mxu0 %v5489_v12  ;;  %11540 = vrcp.f32 %v5421_v59 }
0x1854   :  { %v5423_v43 = vpop.xlane.xlu1 %5422  ;;  %v5425_v3 = vpop.xlane.xlu0 %5424 }
0x1855   :  { %11542 = vrcp.f32 %v5425_v3 }
0x1856   :  { %11544 = vrcp.f32 %v5423_v43 }
0x1857   :  { %11546 = vrcp.f32 %v5419_v19 }
0x1858   :  { %v5429_v42 = vpop.xlane.xlu1 %5428 }
0x1859   :  { %11548 = vrcp.f32 %v5429_v42 }
0x185c   :  { %v5433_v20 = vpop.xlane.xlu0 %5432 }
0x185e   :  { %v11537_v55 = vpop.eup %11536 }
0x185f   :  { %v11539_v61 = vpop.eup %11538  ;;  %v5463_v63 = vmul.f32 %v11537_v55, %v15144_v25 }
0x1860   :  { %v5435_v46 = vpop.xlane.xlu1 %5434  ;;  %v5443_v57 = vpop.xlane.xlu0 %5442  ;;  %v5462_v53 = vmul.f32 %v11539_v61, %v15136_v28 }
0x1861   :  { %v11541_v33 = vpop.eup %11540 }
0x1862   :  { %v11543_v49 = vpop.eup %11542  ;;  %v5478_v37 = vpack.c.bf16 %v5463_v63, %v5462_v53  ;;  %v5465_v25 = vmul.f32 %v11541_v33, %v15141_v5 }
0x1863   :  { %v11545_v34 = vpop.eup %11544  ;;  %v5467_v28 = vmul.f32 %v11543_v49, %v15155_v39 }
0x1864   :  { %v5431_v21 = vpop.xlane.xlu1 %5430  ;;  %v11547_v12 = vpop.eup %11546  ;;  %v5466_v59 = vmul.f32 %v11545_v34, %v15152_v41 }
0x1865   :  { %11550 = vrcp.f32 %v5431_v21 }
0x1866   :  { %11552 = vrcp.f32 %v5427_v47  ;;  %v5464_v47 = vmul.f32 %v11547_v12, %v15133_v9  ;;  %v11549_v43 = vpop.eup %11548 }
0x1867   :  { %11554 = vrcp.f32 %v5433_v20  ;;  %v5480_v20 = vpack.c.bf16 %v5467_v28, %v5466_v59  ;;  %v5469_v5 = vmul.f32 %v11549_v43, %v15160_v24  ;;  %v17495_v59 = vld [vmem:[#allocation19_spill] sm:$0xff] }
0x1868   :  { %v5437_v40 = vpop.xlane.xlu1 %5436  ;;  %v5479_v18 = vpack.c.bf16 %v5465_v25, %v5464_v47  ;;  %v17494_v25 = vld [vmem:[#allocation30_spill] sm:$0xff]  ;;  %v17496_v47 = vld [vmem:[#allocation13_spill] sm:$0xff] }
0x1869   :  { %11556 = vrcp.f32 %v5437_v40 }
0x186c   :  { %v5441_v1 = vpop.xlane.xlu0 %5440  ;;  %v5439_v29 = vpop.xlane.xlu1 %5438 }
0x186d   :  { %11558 = vrcp.f32 %v5441_v1 }
0x186e   :  { %11560 = vrcp.f32 %v5439_v29 }
0x186f   :  { %v10405_v31 = vpop.f32.mrf.mxu0  ;;  %11562 = vrcp.f32 %v5435_v46 }
0x1870   :  { %v5487_v26 = vpop.permute.xlu0 %5486  ;;  %v5445_v3 = vpop.xlane.xlu1 %5444 }
0x1871   :  { %v4993_v8 = vpop.f32.mrf.mxu0  ;;  %10471 = vmatprep.subr.bf16.mxu0 %v5487_v26  ;;  %11564 = vrcp.f32 %v5445_v3 }
0x1872   :  { %10472 = vmatpush3.bf16.msra.mxu0 %v5487_v26  ;;  %v11551_v42 = vpop.eup %11550  ;;  %11566 = vrcp.f32 %v5443_v57 }
0x1873   :  { %v10406_v54 = vpop.f32.mrf.mxu0  ;;  %v11553_v21 = vpop.eup %11552  ;;  %v5470_v1 = vmul.f32 %v11551_v42, %v15174_v0 }
0x1874   :  { %v5015_v19 = vpack.c.bf16 %v10406_v54, %v10405_v31  ;;  %v11555_v31 = vpop.eup %11554  ;;  %v5468_v41 = vmul.f32 %v11553_v21, %v15148_v56  ;;  %v17498_v21 = vld [vmem:[#allocation27_spill] sm:$0xff] }
0x1875   :  { %v4996_v13 = vpop.f32.mrf.mxu0  ;;  %v5471_v9 = vmul.f32 %v11555_v31, %v15164_v38  ;;  %v3256_v38 = vld [vmem:[%s17328_s2 + $0x88] sm:$0xff] }
0x1876   :  { %v5014_v32 = vpack.c.bf16 %v4996_v13, %v4993_v8  ;;  %v11557_v39 = vpop.eup %11556  ;;  %v5481_v46 = vpack.c.bf16 %v5469_v5, %v5468_v41 }
0x1877   :  { %v5482_v55 = vpack.c.bf16 %v5471_v9, %v5470_v1  ;;  %v5473_v40 = vmul.f32 %v11557_v39, %v15177_v51  ;;  %v17499_v1 = vld [vmem:[#allocation14_spill] sm:$0xff] }
0x1878   :  { %10421 = vmatprep.mubr.msk.bf16.mxu0 %vm366_vm2, %v5014_v32  ;;  %v5615_v32 = vpack.c.bf16 %v3256_v38, %v3256_v38 }
0x1879   :  { %10422 = vmatmul.mubr.msk.bf16.gmra.mxu0 %vm366_vm2, %v5015_v19  ;;  %v4496_v19 = vadd.f32 %v15193_v15, %v14773_v27  ;;  %v4512_v27 = vadd.f32 %v15201_v23, %v17495_v59  ;;  %v4528_v23 = vadd.f32 %v15209_v52, %v17498_v21 }
0x187a   :  { %10473 = vmatprep.mubr.bf16.mxu0 %v5478_v37  ;;  %v11559_v26 = vpop.eup %11558  ;;  %10942 = vmatprep.subr.msk.bf16.mxu0 %vm1277_vm3, %v5615_v32  ;;  %v5641_v51 = vsel %vm1277_vm3, %v5615_v32, 0 }
0x187b   :  { %v11561_v8 = vpop.eup %11560  ;;  %v5475_v24 = vmul.f32 %v11559_v26, %v15182_v2  ;;  %v4504_v2 = vadd.f32 %v15189_v4, %v14771_v58  ;;  %v4520_v58 = vadd.f32 %v15199_v62, %v17494_v25  ;;  %v17500_v26 = vld [vmem:[#allocation15_spill] sm:$0xff] }
0x187c   :  { %v11563_v61 = vpop.eup %11562  ;;  %v5474_v54 = vmul.f32 %v11561_v8, %v15180_v7  ;;  %v17501_v8 = vld [vmem:[#allocation7_spill] sm:$0xff] }
0x187d   :  { %v5472_v0 = vmul.f32 %v11563_v61, %v15170_v35  ;;  %v4544_v52 = vadd.f32 %v15217_v16, %v17501_v8 }
0x187e   :  { %v11565_v56 = vpop.eup %11564  ;;  %v5484_v63 = vpack.c.bf16 %v5475_v24, %v5474_v54  ;;  %v17502_v54 = vld [vmem:[#allocation9_spill] sm:$0xff] }
0x187f   :  { %v5483_v57 = vpack.c.bf16 %v5473_v40, %v5472_v0  ;;  %v11567_v13 = vpop.eup %11566  ;;  %v5477_v53 = vmul.f32 %v11565_v56, %v15186_v60  ;;  %v4507_v60 = vadd.f32 %v15195_v11, %v14775_v14  ;;  %v4523_v14 = vadd.f32 %v15203_v36, %v17496_v47 }
0x1880   :  { %v5476_v7 = vmul.f32 %v11567_v13, %v15167_v48  ;;  %v4539_v36 = vadd.f32 %v15211_v17, %v17499_v1  ;;  %v4555_v17 = vadd.f32 %v15219_v44, %v17502_v54 }
0x1881   :  { %10474 = vmatmul.mubr.bf16.vlgmr.msra.gmra.mxu0 %v5479_v18 }
0x1882   :  { %10477 = vmatprep.mubr.bf16.mxu0 %v5480_v20  ;;  %10490 = vmatpush3.bf16.msra.mxu0 %v5641_v51  ;;  %v5485_v35 = vpack.c.bf16 %v5477_v53, %v5476_v7  ;;  %v17497_v20 = vld [vmem:[#allocation23_spill] sm:$0xff] }
0x1883   :  { %v4536_v62 = vadd.f32 %v15207_v10, %v17497_v20  ;;  %v4552_v10 = vadd.f32 %v15215_v30, %v17500_v26 }
0x1889   :  { %10478 = vmatmul.mubr.bf16.gmra.mxu0 %v5481_v46 }
0x188a   :  { %10481 = vmatprep.mubr.bf16.mxu0 %v5482_v55 }
0x1891   :  { %10482 = vmatmul.mubr.bf16.gmra.mxu0 %v5483_v57 }
0x1892   :  { %10485 = vmatprep.mubr.bf16.mxu0 %v5484_v63 }
0x1899   :  { %10486 = vmatmul.mubr.bf16.gmra.mxu0 %v5485_v35 }
0x18fa   :  { %v10411_v33 = vpop.f32.mrf.mxu0 }
0x18fb   :  { %v15257_v49 = vadd.f32 %v10411_v33, %v4504_v2 }
0x18fc   :  { %v5078_v37 = vpop.f32.mrf.mxu0 }
0x18fd   :  { %v15261_v34 = vadd.f32 %v5078_v37, %v4496_v19 }
0x18fe   :  { %v10412_v29 = vpop.f32.mrf.mxu0 }
0x18ff   :  { %v15263_v48 = vadd.f32 %v10412_v29, %v4507_v60 }
0x1900   :  { %v15265_v12 = vpop.f32.mrf.mxu0 }
0x1902   :  { %v10415_v4 = vpop.f32.mrf.mxu0 }
0x1903   :  { %v15271_v15 = vadd.f32 %v10415_v4, %v4520_v58 }
0x1904   :  { %v5094_v28 = vpop.f32.mrf.mxu0 }
0x1905   :  { %v15275_v11 = vadd.f32 %v5094_v28, %v4512_v27 }
0x1906   :  { %v10416_v18 = vpop.f32.mrf.mxu0 }
0x1907   :  { %v15277_v43 = vadd.f32 %v10416_v18, %v4523_v14  ;;  %v15320_v14 = vld [vmem:[%s17330_s3 + $0x8] sm:$0xff]  ;;  %v17503_v18 = vld [vmem:[#allocation2_spill] sm:$0xff] }
0x1908   :  { %v15279_v3 = vpop.f32.mrf.mxu0  ;;  %v17504_v20 = vsub.s32 0, %v17503_v18 }
0x190a   :  { %v10419_v42 = vpop.f32.mrf.mxu0 }
0x190b   :  { %v15285_v31 = vadd.f32 %v10419_v42, %v4536_v62  ;;  %v15325_v62 = vrot.slane %v15320_v14, %v17504_v20 }
0x190c   :  { %v5110_v5 = vpop.f32.mrf.mxu0 }
0x190d   :  { %v15289_v41 = vadd.f32 %v5110_v5, %v4528_v23  ;;  %v17505_v5 = vld [vmem:[#allocation29_spill] sm:$0xff] }
0x190e   :  { %v10420_v9 = vpop.f32.mrf.mxu0  ;;  %v4499_v1 = vadd.f32 %v15197_v6, %v17505_v5 }
0x190f   :  { %v15291_v39 = vadd.f32 %v10420_v9, %v4539_v36 }
0x1910   :  { %v15293_v46 = vpop.f32.mrf.mxu0 }
0x1939   :  { %v10423_v55 = vpop.f32.mrf.mxu0 }
0x193a   :  { %v15299_v61 = vadd.f32 %v10423_v55, %v4552_v10  ;;  %v5142_v10 = vadd.f32 %v15265_v12, %v4499_v1  ;;  %v17508_v12 = vld [vmem:[#allocation12_spill] sm:$0xff] }
0x193b   :  { %v5126_v40 = vpop.f32.mrf.mxu0 }
0x193c   :  { %v15303_v24 = vadd.f32 %v5126_v40, %v4544_v52  ;;  %v17506_v52 = vld [vmem:[#allocation4_spill] sm:$0xff] }
0x193d   :  { %v10424_v0 = vpop.f32.mrf.mxu0 }
0x193e   :  { %v15305_v57 = vadd.f32 %v10424_v0, %v4555_v17  ;;  %v17507_v0 = vld [vmem:[#allocation6_spill] sm:$0xff] }
0x193f   :  { %v15307_v56 = vpop.f32.mrf.mxu0 }
0x1941   :  { %v10475_v63 = vpop.f32.mrf.mxu0 }
0x1943   :  { %v5544_v38 = vpop.f32.mrf.mxu0 }
0x1945   :  { %v10476_v30 = vpop.f32.mrf.mxu0 }
0x1946   :  { %v5608_v53 = vpack.c.bf16 %v10476_v30, %v10475_v63 }
0x1947   :  { %v5547_v13 = vpop.f32.mrf.mxu0 }
0x1948   :  { %v5607_v32 = vpack.c.bf16 %v5547_v13, %v5544_v38  ;;  %v4515_v38 = vadd.f32 %v15205_v22, %v17508_v12 }
0x1949   :  { %v10479_v16 = vpop.f32.mrf.mxu0 }
0x194a   :  { %10491 = vmatprep.mubr.msk.bf16.mxu0 %vm366_vm2, %v5607_v32 }
0x194b   :  { %v5560_v51 = vpop.f32.mrf.mxu0  ;;  %10492 = vmatmul.mubr.msk.bf16.vlgmr.msra.gmra.mxu0 %vm366_vm2, %v5608_v53  ;;  %v17509_v53 = vld [vmem:[#allocation5_spill] sm:$0xff] }
0x194d   :  { %v10480_v44 = vpop.f32.mrf.mxu0 }
0x194e   :  { %v5610_v2 = vpack.c.bf16 %v10480_v44, %v10479_v16  ;;  %v5146_v44 = vadd.f32 %v15279_v3, %v4515_v38 }
0x194f   :  { %v5563_v7 = vpop.f32.mrf.mxu0 }
0x1950   :  { %v5609_v35 = vpack.c.bf16 %v5563_v7, %v5560_v51 }
0x1951   :  { %v10483_v33 = vpop.f32.mrf.mxu0 }
0x1952   :  { %10495 = vmatprep.mubr.msk.bf16.mxu0 %vm366_vm2, %v5609_v35 }
0x1953   :  { %v5576_v19 = vpop.f32.mrf.mxu0  ;;  %10496 = vmatmul.mubr.msk.bf16.gmra.mxu0 %vm366_vm2, %v5610_v2 }
0x1955   :  { %v10484_v37 = vpop.f32.mrf.mxu0 }
0x1956   :  { %v5612_v25 = vpack.c.bf16 %v10484_v37, %v10483_v33 }
0x1957   :  { %v5579_v60 = vpop.f32.mrf.mxu0 }
0x1958   :  { %v5611_v29 = vpack.c.bf16 %v5579_v60, %v5576_v19 }
0x1959   :  { %v10487_v58 = vpop.f32.mrf.mxu0 }
0x195a   :  { %10499 = vmatprep.mubr.msk.bf16.mxu0 %vm366_vm2, %v5611_v29 }
0x195b   :  { %v5592_v4 = vpop.f32.mrf.mxu0  ;;  %10500 = vmatmul.mubr.msk.bf16.gmra.mxu0 %vm366_vm2, %v5612_v25 }
0x195d   :  { %v10488_v59 = vpop.f32.mrf.mxu0 }
0x195e   :  { %v5614_v47 = vpack.c.bf16 %v10488_v59, %v10487_v58  ;;  %v17511_v58 = vld [vmem:[#allocation16_spill] sm:$0xff]  ;;  %v17512_v59 = vld [vmem:[#allocation10_spill] sm:$0xff] }
0x195f   :  { %v5595_v27 = vpop.f32.mrf.mxu0 }
0x1960   :  { %v5613_v28 = vpack.c.bf16 %v5595_v27, %v5592_v4 }
0x1962   :  { %10503 = vmatprep.mubr.msk.bf16.mxu0 %vm366_vm2, %v5613_v28 }
0x1963   :  { %10504 = vmatmul.mubr.msk.bf16.gmra.mxu0 %vm366_vm2, %v5614_v47 }
0x1a0b   :  { %v10493_v42 = vpop.f32.mrf.mxu0 }
0x1a0c   :  { %v5742_v21 = vadd.f32 %v10493_v42, %v15257_v49 }
0x1a0d   :  { %v5677_v23 = vpop.f32.mrf.mxu0 }
0x1a0e   :  { %v5762_v36 = vadd.f32 %v15325_v62, %v5742_v21  ;;  %v5740_v9 = vadd.f32 %v5677_v23, %v15261_v34  ;;  %v17513_v23 = vld [vmem:[#allocation17_spill] sm:$0xff] }
0x1a0f   :  { %v10494_v26 = vpop.f32.mrf.mxu0 }
0x1a10   :  { %v5760_v55 = vadd.f32 %v15325_v62, %v5740_v9  ;;  %v5743_v8 = vadd.f32 %v10494_v26, %v15263_v48  ;;  %v15336_v40 = vadd.f32 %v5762_v36, %v17506_v52  ;;  %v17514_v9 = vld [vmem:[#allocation8_spill] sm:$0xff]  ;;  %v17515_v52 = vld [vmem:[#allocation26_spill] sm:$0xff] }
0x1a11   :  { %v5680_v54 = vpop.f32.mrf.mxu0 }
0x1a12   :  { %v5763_v49 = vadd.f32 %v15325_v62, %v5743_v8  ;;  %v5741_v17 = vadd.f32 %v5680_v54, %v5142_v10  ;;  %v5798_v6 = vsel %vm212_vm1, %v15336_v40, 0.0  ;;  %v15342_v63 = vadd.f32 %v5760_v55, %v17507_v0 }
0x1a13   :  { %5799 = vadd.xlane.f32.xlu1 %v5798_v6  ;;  %v10497_v34 = vpop.f32.mrf.mxu0 }
0x1a14   :  { %v5761_v48 = vadd.f32 %v15325_v62, %v5741_v17  ;;  %v5792_v32 = vsel %vm212_vm1, %v15342_v63, 0.0  ;;  %v15351_v16 = vadd.f32 %v5763_v49, %v17509_v53  ;;  %v5746_v7 = vadd.f32 %v10497_v34, %v15271_v15  ;;  %v17516_v49 = vld [vmem:[#allocation31_spill] sm:$0xff]  ;;  %v17517_v34 = vld [vmem:[#allocation22_spill] sm:$0xff] }
0x1a15   :  { %v5693_v30 = vpop.f32.mrf.mxu0  ;;  %v4531_v17 = vadd.f32 %v15213_v50, %v17516_v49 }
0x1a16   :  { %v5744_v13 = vadd.f32 %v5693_v30, %v15275_v11  ;;  %v5801_v33 = vsel %vm212_vm1, %v15351_v16, 0.0  ;;  %v17510_v11 = vld [vmem:[#allocation3_spill] sm:$0xff]  ;;  %v5766_v3 = vadd.f32 %v15325_v62, %v5746_v7 }
0x1a17   :  { %5793 = vadd.xlane.f32.xlu1 %v5792_v32  ;;  %v10498_v51 = vpop.f32.mrf.mxu0  ;;  %v15359_v19 = vadd.f32 %v5761_v48, %v17510_v11  ;;  %v5150_v30 = vadd.f32 %v15293_v46, %v4531_v17  ;;  %v17518_v32 = vld [vmem:[#allocation20_spill] sm:$0xff] }
0x1a18   :  { %v5764_v22 = vadd.f32 %v15325_v62, %v5744_v13  ;;  %v5747_v29 = vadd.f32 %v10498_v51, %v15277_v43  ;;  %v15379_v5 = vadd.f32 %v5766_v3, %v17513_v23  ;;  %v17519_v51 = vld [vmem:[#allocation11_spill] sm:$0xff] }
0x1a19   :  { %v5696_v35 = vpop.f32.mrf.mxu0  ;;  %v5795_v15 = vsel %vm212_vm1, %v15359_v19, 0.0 }
0x1a1a   :  { %v5745_v2 = vadd.f32 %v5696_v35, %v5146_v44  ;;  %v15370_v27 = vadd.f32 %v5764_v22, %v17512_v59  ;;  %v5767_v20 = vadd.f32 %v15325_v62, %v5747_v29  ;;  %v4547_v44 = vadd.f32 %v15221_v45, %v17519_v51  ;;  %v17520_v22 = vld [vmem:[#allocation18_spill] sm:$0xff]  ;;  %v17521_v29 = vld [vmem:[#allocation21_spill] sm:$0xff] }
0x1a1b   :  { %5802 = vadd.xlane.f32.xlu1 %v5801_v33  ;;  %v10501_v37 = vpop.f32.mrf.mxu0 }
0x1a1c   :  { %v5765_v60 = vadd.f32 %v15325_v62, %v5745_v2  ;;  %v5750_v42 = vadd.f32 %v10501_v37, %v15285_v31  ;;  %v5804_v21 = vsel %vm212_vm1, %v15370_v27, 0.0  ;;  %v15383_v26 = vadd.f32 %v5767_v20, %v17514_v9 }
0x1a1d   :  { %v5709_v25 = vpop.f32.mrf.mxu0  ;;  %v5810_v31 = vsel %vm212_vm1, %v15379_v5, 0.0  ;;  %v5154_v11 = vadd.f32 %v15307_v56, %v4547_v44 }
0x1a1e   :  { %v15367_v4 = vadd.f32 %v5765_v60, %v17511_v58  ;;  %v5770_v10 = vadd.f32 %v15325_v62, %v5750_v42  ;;  %v5748_v55 = vadd.f32 %v5709_v25, %v15289_v41  ;;  %v17522_v58 = vld [vmem:[#allocation24_spill] sm:$0xff] }
0x1a1f   :  { %5796 = vadd.xlane.f32.xlu1 %v5795_v15  ;;  %v10502_v28 = vpop.f32.mrf.mxu0 }
0x1a20   :  { %v5807_v47 = vsel %vm212_vm1, %v15367_v4, 0.0  ;;  %v5768_v6 = vadd.f32 %v15325_v62, %v5748_v55  ;;  %v5751_v0 = vadd.f32 %v10502_v28, %v15291_v39  ;;  %v15402_v12 = vadd.f32 %v5770_v10, %v17517_v34 }
0x1a21   :  { %5808 = vadd.xlane.f32.xlu0 %v5807_v47  ;;  %v5712_v43 = vpop.f32.mrf.mxu0  ;;  %v17523_v47 = vld [vmem:[#allocation25_spill] sm:$0xff] }
0x1a22   :  { %v5771_v50 = vadd.f32 %v15325_v62, %v5751_v0  ;;  %v5749_v48 = vadd.f32 %v5712_v43, %v5150_v30  ;;  %v5822_v13 = vsel %vm212_vm1, %v15402_v12, 0.0  ;;  %v15409_v53 = vadd.f32 %v5768_v6, %v17518_v32  ;;  %v17524_v43 = vld [vmem:[#allocation28_spill] sm:$0xff] }
0x1a23   :  { %5805 = vadd.xlane.f32.xlu1 %v5804_v21  ;;  %v10505_v1 = vpop.f32.mrf.mxu0 }
0x1a24   :  { %v5754_v36 = vadd.f32 %v10505_v1, %v15299_v61  ;;  %v5813_v61 = vsel %vm212_vm1, %v15383_v26, 0.0  ;;  %v5769_v7 = vadd.f32 %v15325_v62, %v5749_v48  ;;  %v5816_v46 = vsel %vm212_vm1, %v15409_v53, 0.0 }
0x1a25   :  { %v5725_v38 = vpop.f32.mrf.mxu0  ;;  %v15418_v2 = vadd.f32 %v5771_v50, %v17520_v22 }
0x1a26   :  { %v5774_v8 = vadd.f32 %v15325_v62, %v5754_v36  ;;  %v5752_v35 = vadd.f32 %v5725_v38, %v15303_v24  ;;  %v15425_v25 = vadd.f32 %v5769_v7, %v17521_v29 }
0x1a27   :  { %5811 = vadd.xlane.f32.xlu1 %v5810_v31  ;;  %v10506_v39 = vpop.f32.mrf.mxu0  ;;  %v5825_v45 = vsel %vm212_vm1, %v15418_v2, 0.0 }
0x1a28   :  { %v15391_v54 = vadd.f32 %v5774_v8, %v17515_v52  ;;  %v5772_v37 = vadd.f32 %v15325_v62, %v5752_v35  ;;  %v5755_v24 = vadd.f32 %v10506_v39, %v15305_v57  ;;  %v5819_v15 = vsel %vm212_vm1, %v15425_v25, 0.0 }
0x1a29   :  { %v5728_v33 = vpop.f32.mrf.mxu0 }
0x1a2a   :  { %v5834_v41 = vsel %vm212_vm1, %v15391_v54, 0.0  ;;  %v5753_v60 = vadd.f32 %v5728_v33, %v5154_v11  ;;  %v15432_v59 = vadd.f32 %v5772_v37, %v17522_v58  ;;  %v5775_v56 = vadd.f32 %v15325_v62, %v5755_v24 }
0x1a2b   :  { %5814 = vadd.xlane.f32.xlu1 %v5813_v61  ;;  %5835 = vadd.xlane.f32.xlu0 %v5834_v41 }
0x1a2c   :  { %v5773_v3 = vadd.f32 %v15325_v62, %v5753_v60  ;;  %v5828_v28 = vsel %vm212_vm1, %v15432_v59, 0.0  ;;  %v15443_v42 = vadd.f32 %v5775_v56, %v17524_v43 }
0x1a2e   :  { %v15438_v20 = vadd.f32 %v5773_v3, %v17523_v47  ;;  %v5837_v21 = vsel %vm212_vm1, %v15443_v42, 0.0 }
0x1a2f   :  { %5823 = vadd.xlane.f32.xlu1 %v5822_v13 }
0x1a30   :  { %v5831_v57 = vsel %vm212_vm1, %v15438_v20, 0.0 }
0x1a33   :  { %5817 = vadd.xlane.f32.xlu1 %v5816_v46 }
0x1a37   :  { %5826 = vadd.xlane.f32.xlu1 %v5825_v45 }
0x1a3b   :  { %5820 = vadd.xlane.f32.xlu1 %v5819_v15 }
0x1a3f   :  { %5829 = vadd.xlane.f32.xlu1 %v5828_v28 }
0x1a43   :  { %5832 = vadd.xlane.f32.xlu1 %v5831_v57 }
0x1a47   :  { %5838 = vadd.xlane.f32.xlu1 %v5837_v21 }
0x1a9c   :  { %v5800_v23 = vpop.xlane.xlu1 %5799 }
0x1a9d   :  { %v5842_v62 = vmul.f32 0.03125, %v5800_v23 }
0x1a9f   :  { %v15448_v9 = vsub.f32 %v15336_v40, %v5842_v62 }
0x1aa0   :  { %v5794_v1 = vpop.xlane.xlu1 %5793 }
0x1aa1   :  { %v5840_v36 = vmul.f32 0.03125, %v5794_v1  ;;  %v5874_v49 = vmul.f32 %v15448_v9, %v15448_v9 }
0x1aa3   :  { %v15451_v10 = vsub.f32 %v15342_v63, %v5840_v36  ;;  %v5894_v41 = vsel %vm212_vm1, %v5874_v49, 0.0 }
0x1aa4   :  { %v5803_v55 = vpop.xlane.xlu1 %5802 }
0x1aa5   :  { %v5872_v8 = vmul.f32 %v15451_v10, %v15451_v10  ;;  %v5843_v31 = vmul.f32 0.03125, %v5803_v55 }
0x1aa7   :  { %v5888_v52 = vsel %vm212_vm1, %v5872_v8, 0.0  ;;  %v15459_v40 = vsub.f32 %v15351_v16, %v5843_v31 }
0x1aa8   :  { %v5797_v17 = vpop.xlane.xlu1 %5796  ;;  %5889 = vadd.xlane.f32.xlu0 %v5888_v52 }
0x1aa9   :  { %v5841_v61 = vmul.f32 0.03125, %v5797_v17 }
0x1aaa   :  { %v5809_v6 = vpop.xlane.xlu0 %5808 }
0x1aab   :  { %v15462_v63 = vsub.f32 %v15359_v19, %v5841_v61  ;;  %v5845_v0 = vmul.f32 0.03125, %v5809_v6  ;;  %v5875_v19 = vmul.f32 %v15459_v40, %v15459_v40 }
0x1aac   :  { %v5806_v34 = vpop.xlane.xlu1 %5805  ;;  %5895 = vadd.xlane.f32.xlu0 %v5894_v41 }
0x1aad   :  { %v5844_v38 = vmul.f32 0.03125, %v5806_v34  ;;  %v5873_v30 = vmul.f32 %v15462_v63, %v15462_v63  ;;  %v15468_v50 = vsub.f32 %v15367_v4, %v5845_v0  ;;  %v5897_v44 = vsel %vm212_vm1, %v5875_v19, 0.0  ;;  %v6040_v19 = vld [vmem:[%s17328_s2 + $0x90] sm:$0xff] }
0x1aaf   :  { %v15471_v48 = vsub.f32 %v15370_v27, %v5844_v38  ;;  %v5891_v16 = vsel %vm212_vm1, %v5873_v30, 0.0  ;;  %v5877_v27 = vmul.f32 %v15468_v50, %v15468_v50 }
0x1ab0   :  { %v5812_v13 = vpop.xlane.xlu1 %5811  ;;  %5892 = vadd.xlane.f32.xlu1 %v5891_v16 }
0x1ab1   :  { %v5846_v32 = vmul.f32 0.03125, %v5812_v13  ;;  %v5876_v39 = vmul.f32 %v15471_v48, %v15471_v48  ;;  %v5903_v33 = vsel %vm212_vm1, %v5877_v27, 0.0 }
0x1ab3   :  { %v15479_v51 = vsub.f32 %v15379_v5, %v5846_v32  ;;  %v5900_v4 = vsel %vm212_vm1, %v5876_v39, 0.0 }
0x1ab4   :  { %v5815_v7 = vpop.xlane.xlu1 %5814  ;;  %5901 = vadd.xlane.f32.xlu0 %v5900_v4  ;;  %5898 = vadd.xlane.f32.xlu1 %v5897_v44  ;;  %v5836_v56 = vpop.xlane.xlu0 %5835 }
0x1ab5   :  { %v5847_v35 = vmul.f32 0.03125, %v5815_v7  ;;  %v5878_v46 = vmul.f32 %v15479_v51, %v15479_v51  ;;  %v5854_v23 = vmul.f32 0.03125, %v5836_v56 }
0x1ab7   :  { %v15488_v22 = vsub.f32 %v15383_v26, %v5847_v35  ;;  %v5906_v5 = vsel %vm212_vm1, %v5878_v46, 0.0  ;;  %v15516_v8 = vsub.f32 %v15391_v54, %v5854_v23  ;;  %v6042_v54 = vld [vmem:[%s17328_s2 + $0xa0] sm:$0xff] }
0x1ab8   :  { %v5824_v11 = vpop.xlane.xlu1 %5823  ;;  %5907 = vadd.xlane.f32.xlu0 %v5906_v5  ;;  %5904 = vadd.xlane.f32.xlu1 %v5903_v33 }
0x1ab9   :  { %v5879_v37 = vmul.f32 %v15488_v22, %v15488_v22  ;;  %v5850_v60 = vmul.f32 0.03125, %v5824_v11  ;;  %v5886_v61 = vmul.f32 %v15516_v8, %v15516_v8 }
0x1abb   :  { %v5909_v45 = vsel %vm212_vm1, %v5879_v37, 0.0  ;;  %v15496_v3 = vsub.f32 %v15402_v12, %v5850_v60  ;;  %v5930_v32 = vsel %vm212_vm1, %v5886_v61, 0.0  ;;  %v17526_v61 = vsub.s32 2, %v17503_v18 }
0x1abc   :  { %v5818_v29 = vpop.xlane.xlu1 %5817  ;;  %5910 = vadd.xlane.f32.xlu1 %v5909_v45 }
0x1abd   :  { %v5848_v24 = vmul.f32 0.03125, %v5818_v29  ;;  %v5882_v57 = vmul.f32 %v15496_v3, %v15496_v3 }
0x1abf   :  { %v15499_v26 = vsub.f32 %v15409_v53, %v5848_v24  ;;  %v5918_v62 = vsel %vm212_vm1, %v5882_v57, 0.0 }
0x1ac0   :  { %v5827_v15 = vpop.xlane.xlu1 %5826 }
0x1ac1   :  { %v5880_v58 = vmul.f32 %v15499_v26, %v15499_v26  ;;  %v5851_v28 = vmul.f32 0.03125, %v5827_v15 }
0x1ac3   :  { %v5912_v47 = vsel %vm212_vm1, %v5880_v58, 0.0  ;;  %v15507_v12 = vsub.f32 %v15418_v2, %v5851_v28 }
0x1ac4   :  { %v5821_v43 = vpop.xlane.xlu1 %5820  ;;  %5913 = vadd.xlane.f32.xlu0 %v5912_v47 }
0x1ac5   :  { %v5849_v21 = vmul.f32 0.03125, %v5821_v43 }
0x1ac7   :  { %v15510_v53 = vsub.f32 %v15425_v25, %v5849_v21  ;;  %v5883_v25 = vmul.f32 %v15507_v12, %v15507_v12 }
0x1ac8   :  { %5919 = vadd.xlane.f32.xlu0 %v5918_v62  ;;  %v5830_v1 = vpop.xlane.xlu1 %5829 }
0x1ac9   :  { %v5852_v36 = vmul.f32 0.03125, %v5830_v1  ;;  %v5881_v55 = vmul.f32 %v15510_v53, %v15510_v53  ;;  %v5921_v41 = vsel %vm212_vm1, %v5883_v25, 0.0 }
0x1acb   :  { %v15519_v31 = vsub.f32 %v15432_v59, %v5852_v36  ;;  %v5915_v2 = vsel %vm212_vm1, %v5881_v55, 0.0  ;;  %v6043_v59 = vld [vmem:[%s17328_s2 + $0xa8] sm:$0xff]  ;;  %v17525_v55 = vsub.s32 1, %v17503_v18 }
0x1acc   :  { %5916 = vadd.xlane.f32.xlu1 %v5915_v2  ;;  %v5833_v52 = vpop.xlane.xlu1 %5832  ;;  %v6073_v34 = vpack.c.bf16 %v6043_v59, %v6042_v54  ;;  %v15564_v54 = vrot.slane %v15320_v14, %v17526_v61 }
0x1acd   :  { %v5853_v49 = vmul.f32 0.03125, %v5833_v52  ;;  %v5884_v17 = vmul.f32 %v15519_v31, %v15519_v31  ;;  %v15558_v2 = vrot.slane %v15320_v14, %v17525_v55 }
0x1ace   :  { %10507 = vmatprep.subr.bf16.mxu1 %v6073_v34 }
0x1acf   :  { %v15535_v6 = vsub.f32 %v15438_v20, %v5853_v49  ;;  %v5924_v0 = vsel %vm212_vm1, %v5884_v17, 0.0  ;;  %10508 = vmatpush3.bf16.msra.mxu1 %v6073_v34  ;;  %v6041_v20 = vld [vmem:[%s17328_s2 + $0x98] sm:$0xff] }
0x1ad0   :  { %5925 = vadd.xlane.f32.xlu0 %v5924_v0  ;;  %5922 = vadd.xlane.f32.xlu1 %v5921_v41  ;;  %v5839_v38 = vpop.xlane.xlu1 %5838  ;;  %v6072_v4 = vpack.c.bf16 %v6041_v20, %v6040_v19 }
0x1ad1   :  { %v5855_v30 = vmul.f32 0.03125, %v5839_v38  ;;  %v5885_v16 = vmul.f32 %v15535_v6, %v15535_v6 }
0x1ad2   :  { %10509 = vmatprep.subr.bf16.mxu1 %v6072_v4 }
0x1ad3   :  { %v15548_v13 = vsub.f32 %v15443_v42, %v5855_v30  ;;  %v5927_v39 = vsel %vm212_vm1, %v5885_v16, 0.0  ;;  %10510 = vmatpush3.bf16.msra.mxu1 %v6072_v4 }
0x1ad4   :  { %5931 = vadd.xlane.f32.xlu0 %v5930_v32  ;;  %5928 = vadd.xlane.f32.xlu1 %v5927_v39 }
0x1ad5   :  { %v5887_v44 = vmul.f32 %v15548_v13, %v15548_v13 }
0x1ad7   :  { %v5933_v27 = vsel %vm212_vm1, %v5887_v44, 0.0 }
0x1ad8   :  { %5934 = vadd.xlane.f32.xlu1 %v5933_v27 }
0x1b31   :  { %v5890_v7 = vpop.xlane.xlu0 %5889 }
0x1b32   :  { %v5936_v35 = vmul.f32 0.03125, %v5890_v7 }
0x1b34   :  { %v5952_v46 = vadd.f32 1e-05, %v5936_v35 }
0x1b35   :  { %v5896_v42 = vpop.xlane.xlu0 %5895 }
0x1b36   :  { %v5938_v5 = vmul.f32 0.03125, %v5896_v42  ;;  %11568 = vrsqrt.f32 %v5952_v46 }
0x1b38   :  { %v5954_v33 = vadd.f32 1e-05, %v5938_v5 }
0x1b39   :  { %v5893_v11 = vpop.xlane.xlu1 %5892 }
0x1b3a   :  { %v5937_v37 = vmul.f32 0.03125, %v5893_v11  ;;  %11570 = vrsqrt.f32 %v5954_v33 }
0x1b3c   :  { %v5953_v60 = vadd.f32 1e-05, %v5937_v37 }
0x1b3d   :  { %v5902_v45 = vpop.xlane.xlu0 %5901  ;;  %v5899_v29 = vpop.xlane.xlu1 %5898 }
0x1b3e   :  { %11572 = vrsqrt.f32 %v5953_v60  ;;  %v5940_v24 = vmul.f32 0.03125, %v5902_v45  ;;  %v5939_v15 = vmul.f32 0.03125, %v5899_v29 }
0x1b40   :  { %v5956_v58 = vadd.f32 1e-05, %v5940_v24  ;;  %v5955_v56 = vadd.f32 1e-05, %v5939_v15 }
0x1b41   :  { %v5908_v28 = vpop.xlane.xlu0 %5907  ;;  %v5905_v47 = vpop.xlane.xlu1 %5904 }
0x1b42   :  { %11574 = vrsqrt.f32 %v5956_v58  ;;  %v5942_v57 = vmul.f32 0.03125, %v5908_v28  ;;  %v5941_v43 = vmul.f32 0.03125, %v5905_v47 }
0x1b43   :  { %11576 = vrsqrt.f32 %v5955_v56  ;;  %v11569_v62 = vpop.eup %11568 }
0x1b44   :  { %v5958_v21 = vadd.f32 1e-05, %v5942_v57  ;;  %v5957_v23 = vadd.f32 1e-05, %v5941_v43  ;;  %v5984_v52 = vmul.f32 %v11569_v62, %v15451_v10 }
0x1b45   :  { %v5911_v1 = vpop.xlane.xlu1 %5910 }
0x1b46   :  { %11578 = vrsqrt.f32 %v5958_v21  ;;  %v5943_v36 = vmul.f32 0.03125, %v5911_v1  ;;  %v6004_v41 = vmul.f32 %v15558_v2, %v5984_v52 }
0x1b47   :  { %11580 = vrsqrt.f32 %v5957_v23  ;;  %v11571_v49 = vpop.eup %11570 }
0x1b48   :  { %v5959_v25 = vadd.f32 1e-05, %v5943_v36  ;;  %v5986_v59 = vmul.f32 %v11571_v49, %v15448_v9  ;;  %v15572_v32 = vadd.f32 %v15564_v54, %v6004_v41 }
0x1b4a   :  { %11582 = vrsqrt.f32 %v5959_v25  ;;  %v6006_v19 = vmul.f32 %v15558_v2, %v5986_v59  ;;  %17527 = vst [vmem:[#allocation30_spill] sm:$0xff] %v15572_v32 }
0x1b4b   :  { %v11573_v17 = vpop.eup %11572 }
0x1b4c   :  { %v5985_v0 = vmul.f32 %v11573_v17, %v15462_v63  ;;  %v15583_v42 = vadd.f32 %v15564_v54, %v6006_v19 }
0x1b4d   :  { %v5914_v34 = vpop.xlane.xlu0 %5913 }
0x1b4e   :  { %v5944_v38 = vmul.f32 0.03125, %v5914_v34  ;;  %v6005_v30 = vmul.f32 %v15558_v2, %v5985_v0  ;;  %17529 = vst [vmem:[#allocation13_spill] sm:$0xff] %v15583_v42 }
0x1b4f   :  { %v11575_v16 = vpop.eup %11574 }
0x1b50   :  { %v11577_v10 = vpop.eup %11576  ;;  %v5960_v20 = vadd.f32 1e-05, %v5944_v38  ;;  %v15575_v39 = vadd.f32 %v15564_v54, %v6005_v30  ;;  %v5988_v4 = vmul.f32 %v11575_v16, %v15471_v48 }
0x1b51   :  { %v5987_v9 = vmul.f32 %v11577_v10, %v15459_v40  ;;  %v5920_v63 = vpop.xlane.xlu0 %5919 }
0x1b52   :  { %17528 = vst [vmem:[#allocation19_spill] sm:$0xff] %v15575_v39  ;;  %v5946_v44 = vmul.f32 0.03125, %v5920_v63  ;;  %v6064_v27 = vpack.c.bf16 %v15575_v39, %v15572_v32  ;;  %11584 = vrsqrt.f32 %v5960_v20  ;;  %v6008_v37 = vmul.f32 %v15558_v2, %v5988_v4 }
0x1b53   :  { %v11579_v7 = vpop.eup %11578  ;;  %v6007_v35 = vmul.f32 %v15558_v2, %v5987_v9 }
0x1b54   :  { %v11581_v46 = vpop.eup %11580  ;;  %v5990_v5 = vmul.f32 %v11579_v7, %v15479_v51  ;;  %10511 = vmatprep.mubr.msk.bf16.mxu1 %vm212_vm1, %v6064_v27  ;;  %v5962_v48 = vadd.f32 1e-05, %v5946_v44 }
0x1b55   :  { %v15588_v40 = vadd.f32 %v15564_v54, %v6007_v35  ;;  %v5917_v33 = vpop.xlane.xlu1 %5916  ;;  %v5989_v11 = vmul.f32 %v11581_v46, %v15468_v50  ;;  %v15599_v50 = vadd.f32 %v15564_v54, %v6008_v37 }
0x1b56   :  { %v5945_v60 = vmul.f32 0.03125, %v5917_v33  ;;  %v6010_v58 = vmul.f32 %v15558_v2, %v5990_v5  ;;  %11586 = vrsqrt.f32 %v5962_v48 }
0x1b57   :  { %17530 = vst [vmem:[#allocation23_spill] sm:$0xff] %v15588_v40  ;;  %v11583_v45 = vpop.eup %11582  ;;  %v6065_v29 = vpack.c.bf16 %v15588_v40, %v15583_v42  ;;  %v6009_v24 = vmul.f32 %v15558_v2, %v5989_v11  ;;  %17531 = vst [vmem:[#allocation27_spill] sm:$0xff] %v15599_v50 }
0x1b58   :  { %v5991_v51 = vmul.f32 %v11583_v45, %v15488_v22  ;;  %v5961_v15 = vadd.f32 1e-05, %v5945_v60  ;;  %v15608_v1 = vadd.f32 %v15564_v54, %v6010_v58 }
0x1b59   :  { %10512 = vmatmul.mubr.msk.bf16.vlgmr.msra.gmra.mxu1 %vm212_vm1, %v6065_v29  ;;  %v5926_v56 = vpop.xlane.xlu0 %5925  ;;  %v5923_v28 = vpop.xlane.xlu1 %5922  ;;  %v15602_v47 = vadd.f32 %v15564_v54, %v6009_v24 }
0x1b5a   :  { %11588 = vrsqrt.f32 %v5961_v15  ;;  %v5948_v57 = vmul.f32 0.03125, %v5926_v56  ;;  %v5947_v43 = vmul.f32 0.03125, %v5923_v28  ;;  %v6011_v21 = vmul.f32 %v15558_v2, %v5991_v51  ;;  %17533 = vst [vmem:[#allocation15_spill] sm:$0xff] %v15608_v1 }
0x1b5b   :  { %17532 = vst [vmem:[#allocation14_spill] sm:$0xff] %v15602_v47  ;;  %v6066_v22 = vpack.c.bf16 %v15602_v47, %v15599_v50 }
0x1b5c   :  { %v5964_v23 = vadd.f32 1e-05, %v5948_v57  ;;  %v5963_v62 = vadd.f32 1e-05, %v5947_v43  ;;  %v15611_v36 = vadd.f32 %v15564_v54, %v6011_v21 }
0x1b5d   :  { %10515 = vmatprep.mubr.msk.bf16.mxu1 %vm212_vm1, %v6066_v22  ;;  %v5932_v55 = vpop.xlane.xlu0 %5931  ;;  %v5929_v25 = vpop.xlane.xlu1 %5928 }
0x1b5e   :  { %17534 = vst [vmem:[#allocation7_spill] sm:$0xff] %v15611_v36  ;;  %11590 = vrsqrt.f32 %v5964_v23  ;;  %v5950_v52 = vmul.f32 0.03125, %v5932_v55  ;;  %v5949_v49 = vmul.f32 0.03125, %v5929_v25  ;;  %v6067_v17 = vpack.c.bf16 %v15611_v36, %v15608_v1  ;;  %v16608_v1 = vld [vmem:[%s17331_s1 + $0xe8] sm:$0xff] }
0x1b5f   :  { %11592 = vrsqrt.f32 %v5963_v62  ;;  %v11585_v0 = vpop.eup %11584 }
0x1b60   :  { %v5966_v61 = vadd.f32 1e-05, %v5950_v52  ;;  %v5965_v59 = vadd.f32 1e-05, %v5949_v49  ;;  %v5992_v30 = vmul.f32 %v11585_v0, %v15499_v26 }
0x1b61   :  { %10516 = vmatmul.mubr.msk.bf16.gmra.mxu1 %vm212_vm1, %v6067_v17  ;;  %v5935_v41 = vpop.xlane.xlu1 %5934 }
0x1b62   :  { %11594 = vrsqrt.f32 %v5966_v61  ;;  %v5951_v34 = vmul.f32 0.03125, %v5935_v41  ;;  %v6012_v20 = vmul.f32 %v15558_v2, %v5992_v30 }
0x1b63   :  { %11596 = vrsqrt.f32 %v5965_v59  ;;  %v11587_v16 = vpop.eup %11586 }
0x1b64   :  { %v5967_v38 = vadd.f32 1e-05, %v5951_v34  ;;  %v5994_v9 = vmul.f32 %v11587_v16, %v15496_v3  ;;  %v15623_v27 = vadd.f32 %v15564_v54, %v6012_v20 }
0x1b66   :  { %11598 = vrsqrt.f32 %v5967_v38  ;;  %17535 = vst [vmem:[#allocation9_spill] sm:$0xff] %v15623_v27  ;;  %v6014_v35 = vmul.f32 %v15558_v2, %v5994_v9 }
0x1b67   :  { %v11589_v10 = vpop.eup %11588 }
0x1b68   :  { %v5993_v19 = vmul.f32 %v11589_v10, %v15510_v53  ;;  %v15637_v11 = vadd.f32 %v15564_v54, %v6014_v35 }
0x1b6a   :  { %v6013_v63 = vmul.f32 %v15558_v2, %v5993_v19  ;;  %17537 = vst [vmem:[#allocation4_spill] sm:$0xff] %v15637_v11 }
0x1b6b   :  { %v11591_v4 = vpop.eup %11590 }
0x1b6c   :  { %v11593_v44 = vpop.eup %11592  ;;  %v15626_v7 = vadd.f32 %v15564_v54, %v6013_v63  ;;  %v5996_v53 = vmul.f32 %v11591_v4, %v15519_v31 }
0x1b6d   :  { %v5995_v26 = vmul.f32 %v11593_v44, %v15507_v12 }
0x1b6e   :  { %17536 = vst [vmem:[#allocation29_spill] sm:$0xff] %v15626_v7  ;;  %v6068_v46 = vpack.c.bf16 %v15626_v7, %v15623_v27  ;;  %v6016_v31 = vmul.f32 %v15558_v2, %v5996_v53 }
0x1b6f   :  { %v11595_v3 = vpop.eup %11594  ;;  %v6015_v5 = vmul.f32 %v15558_v2, %v5995_v26 }
0x1b70   :  { %v11597_v48 = vpop.eup %11596  ;;  %v5998_v33 = vmul.f32 %v11595_v3, %v15516_v8  ;;  %10519 = vmatprep.mubr.msk.bf16.mxu1 %vm212_vm1, %v6068_v46  ;;  %v15651_v51 = vadd.f32 %v15564_v54, %v6016_v31 }
0x1b71   :  { %v15640_v12 = vadd.f32 %v15564_v54, %v6015_v5  ;;  %v5997_v37 = vmul.f32 %v11597_v48, %v15535_v6 }
0x1b72   :  { %v6018_v24 = vmul.f32 %v15558_v2, %v5998_v33  ;;  %17539 = vst [vmem:[#allocation12_spill] sm:$0xff] %v15651_v51 }
0x1b73   :  { %17538 = vst [vmem:[#allocation6_spill] sm:$0xff] %v15640_v12  ;;  %v11599_v60 = vpop.eup %11598  ;;  %v6069_v45 = vpack.c.bf16 %v15640_v12, %v15637_v11  ;;  %v6017_v29 = vmul.f32 %v15558_v2, %v5997_v37 }
0x1b74   :  { %v5999_v8 = vmul.f32 %v11599_v60, %v15548_v13  ;;  %v15660_v56 = vadd.f32 %v15564_v54, %v6018_v24 }
0x1b75   :  { %10520 = vmatmul.mubr.msk.bf16.gmra.mxu1 %vm212_vm1, %v6069_v45  ;;  %v15654_v15 = vadd.f32 %v15564_v54, %v6017_v29 }
0x1b76   :  { %v6019_v6 = vmul.f32 %v15558_v2, %v5999_v8  ;;  %17541 = vst [vmem:[#allocation3_spill] sm:$0xff] %v15660_v56  ;;  %v17543_v2 = vsub.s32 3, %v17503_v18 }
0x1b77   :  { %17540 = vst [vmem:[#allocation5_spill] sm:$0xff] %v15654_v15  ;;  %v6070_v58 = vpack.c.bf16 %v15654_v15, %v15651_v51 }
0x1b78   :  { %v15663_v13 = vadd.f32 %v15564_v54, %v6019_v6  ;;  %v6077_v22 = vrot.slane %v15320_v14, %v17543_v2 }
0x1b79   :  { %10523 = vmatprep.mubr.msk.bf16.mxu1 %vm212_vm1, %v6070_v58 }
0x1b7a   :  { %17542 = vst [vmem:[#allocation16_spill] sm:$0xff] %v15663_v13  ;;  %v6071_v28 = vpack.c.bf16 %v15663_v13, %v15660_v56 }
0x1b7d   :  { %10524 = vmatmul.mubr.msk.bf16.gmra.mxu1 %vm212_vm1, %v6071_v28 }
0x1c19   :  { %v10513_v57 = vpop.f32.mrf.mxu1 }
0x1c1a   :  { %v6145_v45 = vadd.f32 %v10513_v57, %v6077_v22 }
0x1c1b   :  { %v6136_v43 = vpop.f32.mrf.mxu1 }
0x1c1c   :  { %v6137_v62 = vadd.f32 %v6136_v43, %v6077_v22 }
0x1c1d   :  { %v10514_v21 = vpop.f32.mrf.mxu1 }
0x1c1e   :  { %v6148_v31 = vadd.f32 %v10514_v21, %v6077_v22 }
0x1c1f   :  { %v6139_v23 = vpop.f32.mrf.mxu1 }
0x1c20   :  { %v6140_v55 = vadd.f32 %v6139_v23, %v6077_v22  ;;  %v15700_v29 = vpack.c.bf16 %v6148_v31, %v6145_v45  ;;  %v15789_v31 = vld [vmem:[%s17331_s1 + $0xb0] sm:$0xff]  ;;  %v15794_v45 = vld [vmem:[%s17331_s1 + $0xb8] sm:$0xff] }
0x1c21   :  { %v10517_v54 = vpop.f32.mrf.mxu1 }
0x1c22   :  { %v15672_v25 = vpack.c.bf16 %v6140_v55, %v6137_v62  ;;  %v6161_v33 = vadd.f32 %v10517_v54, %v6077_v22 }
0x1c23   :  { %v6152_v52 = vpop.f32.mrf.mxu1 }
0x1c24   :  { %10543 = vmatprep.mubr.msk.bf16.mxu0 %vm366_vm2, %v15672_v25  ;;  %v6153_v3 = vadd.f32 %v6152_v52, %v6077_v22 }
0x1c25   :  { %v10518_v49 = vpop.f32.mrf.mxu1 }
0x1c26   :  { %v6164_v5 = vadd.f32 %v10518_v49, %v6077_v22 }
0x1c27   :  { %v6155_v17 = vpop.f32.mrf.mxu1 }
0x1c28   :  { %v6156_v35 = vadd.f32 %v6155_v17, %v6077_v22  ;;  %v15694_v60 = vpack.c.bf16 %v6164_v5, %v6161_v33 }
0x1c2a   :  { %v15690_v37 = vpack.c.bf16 %v6156_v35, %v6153_v3 }
0x1c35   :  { %v10521_v61 = vpop.f32.mrf.mxu1 }
0x1c36   :  { %v6177_v53 = vadd.f32 %v10521_v61, %v6077_v22 }
0x1c37   :  { %v6168_v59 = vpop.f32.mrf.mxu1 }
0x1c38   :  { %v6169_v4 = vadd.f32 %v6168_v59, %v6077_v22 }
0x1c39   :  { %v10522_v0 = vpop.f32.mrf.mxu1 }
0x1c3a   :  { %v6180_v44 = vadd.f32 %v10522_v0, %v6077_v22 }
0x1c3b   :  { %v6171_v41 = vpop.f32.mrf.mxu1 }
0x1c3c   :  { %v6172_v19 = vadd.f32 %v6171_v41, %v6077_v22  ;;  %v15686_v48 = vpack.c.bf16 %v6180_v44, %v6177_v53 }
0x1c3d   :  { %v10525_v34 = vpop.f32.mrf.mxu1 }
0x1c3e   :  { %v6193_v14 = vadd.f32 %v10525_v34, %v6077_v22  ;;  %v15682_v46 = vpack.c.bf16 %v6172_v19, %v6169_v4  ;;  %v15749_v34 = vld [vmem:[%s17331_s1 + $0x90] sm:$0xff]  ;;  %v15766_v19 = vld [vmem:[%s17331_s1 + $0x98] sm:$0xff] }
0x1c3f   :  { %v6184_v38 = vpop.f32.mrf.mxu1 }
0x1c40   :  { %v6185_v20 = vadd.f32 %v6184_v38, %v6077_v22 }
0x1c41   :  { %v10526_v30 = vpop.f32.mrf.mxu1 }
0x1c42   :  { %v6196_v16 = vadd.f32 %v10526_v30, %v6077_v22  ;;  %v15754_v30 = vld [vmem:[%s17331_s1 + $0x80] sm:$0xff] }
0x1c43   :  { %v6187_v10 = vpop.f32.mrf.mxu1 }
0x1c44   :  { %v15676_v9 = vpack.c.bf16 %v6196_v16, %v6193_v14  ;;  %v6188_v63 = vadd.f32 %v6187_v10, %v6077_v22 }
0x1c46   :  { %v15678_v26 = vpack.c.bf16 %v6188_v63, %v6185_v20  ;;  %6229 = vrot.lane.b32.xlu0 %v15676_v9, %s11961_s8  ;;  %v15771_v63 = vld [vmem:[%s17331_s1 + $0x88] sm:$0xff] }
0x1c48   :  { %6227 = vrot.lane.b32.xlu1 %v15678_v26, %s11961_s8 }
0x1c4a   :  { %6223 = vrot.lane.b32.xlu0 %v15682_v46, %s11961_s8 }
0x1c4c   :  { %6225 = vrot.lane.b32.xlu1 %v15686_v48, %s11961_s8 }
0x1c4e   :  { %6219 = vrot.lane.b32.xlu0 %v15690_v37, %s11961_s8 }
0x1c50   :  { %6221 = vrot.lane.b32.xlu1 %v15694_v60, %s11961_s8 }
0x1c52   :  { %6215 = vrot.lane.b32.xlu0 %v15672_v25, %s11961_s8 }
0x1c54   :  { %6217 = vrot.lane.b32.xlu1 %v15700_v29, %s11961_s8 }
0x1c56   :  { %6542 = vrot.lane.b32.xlu0 %v15676_v9, %s11962_s9 }
0x1c58   :  { %6540 = vrot.lane.b32.xlu1 %v15678_v26, %s11962_s9 }
0x1c5a   :  { %6538 = vrot.lane.b32.xlu0 %v15686_v48, %s11962_s9 }
0x1c5e   :  { %6536 = vrot.lane.b32.xlu0 %v15682_v46, %s11962_s9 }
0x1c62   :  { %6534 = vrot.lane.b32.xlu0 %v15694_v60, %s11962_s9 }
0x1cb8   :  { %v6230_v8 = vpop.permute.xlu0 %6229 }
0x1cb9   :  { %10943 = vmatprep.subr.msk.bf16.mxu0 %vm366_vm2, %v6230_v8  ;;  %v6277_v24 = vsel %vm366_vm2, %v6230_v8, 0 }
0x1cba   :  { %10528 = vmatpush3.bf16.xpose.msra.mxu0 %v6277_v24  ;;  %v6228_v6 = vpop.permute.xlu1 %6227 }
0x1cbb   :  { %10944 = vmatprep.subr.msk.bf16.mxu0 %vm366_vm2, %v6228_v6  ;;  %v6274_v43 = vsel %vm366_vm2, %v6228_v6, 0 }
0x1cbc   :  { %v6224_v58 = vpop.permute.xlu0 %6223 }
0x1cbd   :  { %v6268_v49 = vsel %vm366_vm2, %v6224_v58, 0 }
0x1cbe   :  { %v6226_v28 = vpop.permute.xlu1 %6225 }
0x1cbf   :  { %v6271_v62 = vsel %vm366_vm2, %v6226_v28, 0 }
0x1cc0   :  { %v6220_v57 = vpop.permute.xlu0 %6219 }
0x1cc1   :  { %v6262_v59 = vsel %vm366_vm2, %v6220_v57, 0 }
0x1cc2   :  { %10530 = vmatpush3.bf16.xpose.msra.mxu0 %v6274_v43  ;;  %v6222_v21 = vpop.permute.xlu1 %6221 }
0x1cc3   :  { %10945 = vmatprep.subr.msk.bf16.mxu0 %vm366_vm2, %v6226_v28  ;;  %v6265_v61 = vsel %vm366_vm2, %v6222_v21, 0  ;;  %v15810_v28 = vld [vmem:[%s17331_s1 + $0xa8] sm:$0xff] }
0x1cc4   :  { %v6216_v2 = vpop.permute.xlu0 %6215 }
0x1cc5   :  { %v6256_v41 = vsel %vm366_vm2, %v6216_v2, 0 }
0x1cc6   :  { %v6218_v22 = vpop.permute.xlu1 %6217 }
0x1cc7   :  { %v6259_v0 = vsel %vm366_vm2, %v6218_v22, 0 }
0x1cc8   :  { %v6543_v23 = vpop.permute.xlu0 %6542 }
0x1cc9   :  { %10559 = vmatprep.subr.bf16.mxu1 %v6543_v23 }
0x1cca   :  { %10532 = vmatpush3.bf16.xpose.msra.mxu0 %v6271_v62  ;;  %10560 = vmatpush3.bf16.msra.mxu1 %v6543_v23  ;;  %v6541_v55 = vpop.permute.xlu1 %6540 }
0x1ccb   :  { %10946 = vmatprep.subr.msk.bf16.mxu0 %vm366_vm2, %v6224_v58  ;;  %10561 = vmatprep.subr.bf16.mxu1 %v6541_v55  ;;  %v15805_v58 = vld [vmem:[%s17331_s1 + $0xa0] sm:$0xff] }
0x1ccc   :  { %v6539_v54 = vpop.permute.xlu0 %6538 }
0x1cce   :  { %10562 = vmatpush3.bf16.msra.mxu1 %v6541_v55 }
0x1ccf   :  { %10563 = vmatprep.subr.bf16.mxu1 %v6539_v54 }
0x1cd0   :  { %v6537_v52 = vpop.permute.xlu0 %6536 }
0x1cd2   :  { %10534 = vmatpush3.bf16.xpose.msra.mxu0 %v6268_v49  ;;  %10564 = vmatpush3.bf16.msra.mxu1 %v6539_v54  ;;  %v15841_v54 = vld [vmem:[%s17331_s1 + $0xc0] sm:$0xff]  ;;  %v15846_v49 = vld [vmem:[%s17331_s1 + $0xc8] sm:$0xff] }
0x1cd3   :  { %10947 = vmatprep.subr.msk.bf16.mxu0 %vm366_vm2, %v6222_v21  ;;  %10565 = vmatprep.subr.bf16.mxu1 %v6537_v52 }
0x1cd4   :  { %v6535_v17 = vpop.permute.xlu0 %6534 }
0x1cd6   :  { %10566 = vmatpush3.bf16.msra.mxu1 %v6537_v52 }
0x1cd7   :  { %10567 = vmatprep.subr.bf16.mxu1 %v6535_v17 }
0x1cda   :  { %10536 = vmatpush3.bf16.xpose.msra.mxu0 %v6265_v61  ;;  %10568 = vmatpush3.bf16.msra.mxu1 %v6535_v17 }
0x1cdb   :  { %10948 = vmatprep.subr.msk.bf16.mxu0 %vm366_vm2, %v6220_v57 }
0x1ce2   :  { %10538 = vmatpush3.bf16.xpose.msra.mxu0 %v6262_v59  ;;  %v15859_v59 = vld [vmem:[%s17331_s1 + $0xf0] sm:$0xff] }
0x1ce3   :  { %10949 = vmatprep.subr.msk.bf16.mxu0 %vm366_vm2, %v6218_v22  ;;  %v15828_v22 = vld [vmem:[%s17331_s1 + $0xd8] sm:$0xff] }
0x1cea   :  { %10540 = vmatpush3.bf16.xpose.msra.mxu0 %v6259_v0 }
0x1ceb   :  { %10950 = vmatprep.subr.msk.bf16.mxu0 %vm366_vm2, %v6216_v2  ;;  %v15823_v2 = vld [vmem:[%s17331_s1 + $0xd0] sm:$0xff] }
0x1cf2   :  { %10542 = vmatpush3.bf16.xpose.msra.mxu0 %v6256_v41 }
0x1cf9   :  { %10544 = vmatmul.mubr.msk.bf16.vlgmr.msra.gmra.mxu0 %vm366_vm2, %v15700_v29 }
0x1cfa   :  { %10547 = vmatprep.mubr.msk.bf16.mxu0 %vm366_vm2, %v15690_v37 }
0x1d01   :  { %10548 = vmatmul.mubr.msk.bf16.gmra.mxu0 %vm366_vm2, %v15694_v60 }
0x1d02   :  { %10551 = vmatprep.mubr.msk.bf16.mxu0 %vm366_vm2, %v15682_v46 }
0x1d09   :  { %10552 = vmatmul.mubr.msk.bf16.gmra.mxu0 %vm366_vm2, %v15686_v48 }
0x1d0a   :  { %10555 = vmatprep.mubr.msk.bf16.mxu0 %vm366_vm2, %v15678_v26 }
0x1d11   :  { %10556 = vmatmul.mubr.msk.bf16.gmra.mxu0 %vm366_vm2, %v15676_v9 }
0x1db9   :  { %v10545_v38 = vpop.f32.mrf.mxu0 }
0x1dba   :  { %v15757_v14 = vadd.f32 %v10545_v38, %v15749_v34 }
0x1dbb   :  { %v6313_v16 = vpop.f32.mrf.mxu0 }
0x1dbc   :  { %v15760_v10 = vadd.f32 %v6313_v16, %v15754_v30  ;;  %6380 = vmax.xlane.f32.xlu0 %v15757_v14  ;;  %v15869_v16 = vld [vmem:[%s17331_s1 + $0xe0] sm:$0xff] }
0x1dbd   :  { %v10546_v20 = vpop.f32.mrf.mxu0 }
0x1dbe   :  { %6376 = vmax.xlane.f32.xlu1 %v15760_v10  ;;  %v15775_v44 = vadd.f32 %v10546_v20, %v15766_v19 }
0x1dbf   :  { %v6316_v4 = vpop.f32.mrf.mxu0 }
0x1dc0   :  { %v15778_v35 = vadd.f32 %v6316_v4, %v15771_v63  ;;  %v15889_v4 = vld [vmem:[%s17331_s1 + $0xf8] sm:$0xff] }
0x1dc1   :  { %v10549_v53 = vpop.f32.mrf.mxu0 }
0x1dc2   :  { %6378 = vmax.xlane.f32.xlu0 %v15778_v35  ;;  %6382 = vmax.xlane.f32.xlu1 %v15775_v44  ;;  %v15797_v24 = vadd.f32 %v10549_v53, %v15789_v31 }
0x1dc3   :  { %v6329_v3 = vpop.f32.mrf.mxu0 }
0x1dc4   :  { %v15815_v43 = vadd.f32 %v6329_v3, %v15805_v58 }
0x1dc5   :  { %v10550_v5 = vpop.f32.mrf.mxu0 }
0x1dc6   :  { %v15800_v6 = vadd.f32 %v10550_v5, %v15794_v45 }
0x1dc7   :  { %v6332_v33 = vpop.f32.mrf.mxu0 }
0x1dc8   :  { %v15818_v21 = vadd.f32 %v6332_v33, %v15810_v28  ;;  %v15897_v33 = vld [vmem:[%s17331_s1 + $0xe8] sm:$0xff] }
0x1dc9   :  { %v10553_v8 = vpop.f32.mrf.mxu0 }
0x1dca   :  { %v15833_v62 = vadd.f32 %v10553_v8, %v15823_v2 }
0x1dcb   :  { %v6345_v57 = vpop.f32.mrf.mxu0 }
0x1dcc   :  { %v15851_v17 = vadd.f32 %v6345_v57, %v15841_v54 }
0x1dcd   :  { %v10554_v23 = vpop.f32.mrf.mxu0 }
0x1dce   :  { %v15836_v55 = vadd.f32 %v10554_v23, %v15828_v22 }
0x1dcf   :  { %v6348_v52 = vpop.f32.mrf.mxu0 }
0x1dd0   :  { %v15854_v61 = vadd.f32 %v6348_v52, %v15846_v49 }
0x1dd1   :  { %v10557_v0 = vpop.f32.mrf.mxu0 }
0x1dd2   :  { %v15864_v41 = vadd.f32 %v10557_v0, %v15859_v59 }
0x1dd3   :  { %6530 = vrot.lane.b32.xlu1 %v15700_v29, %s11962_s9  ;;  %v6361_v38 = vpop.f32.mrf.mxu0 }
0x1dd4   :  { %v15873_v20 = vadd.f32 %v6361_v38, %v15869_v16 }
0x1dd5   :  { %v10558_v53 = vpop.f32.mrf.mxu0 }
0x1dd6   :  { %v15892_v3 = vadd.f32 %v10558_v53, %v15889_v4 }
0x1dd7   :  { %v6364_v5 = vpop.f32.mrf.mxu0 }
0x1dd8   :  { %6532 = vrot.lane.b32.xlu0 %v15690_v37, %s11962_s9  ;;  %v15901_v8 = vadd.f32 %v6364_v5, %v15897_v33 }
0x1df7   :  { %6388 = vmax.xlane.f32.xlu0 %v15797_v24  ;;  %6390 = vmax.xlane.f32.xlu1 %v15800_v6 }
0x1dfb   :  { %6384 = vmax.xlane.f32.xlu0 %v15815_v43  ;;  %6386 = vmax.xlane.f32.xlu1 %v15818_v21 }
0x1dff   :  { %6396 = vmax.xlane.f32.xlu0 %v15833_v62  ;;  %6398 = vmax.xlane.f32.xlu1 %v15836_v55 }
0x1e03   :  { %6392 = vmax.xlane.f32.xlu0 %v15851_v17  ;;  %6394 = vmax.xlane.f32.xlu1 %v15854_v61 }
0x1e07   :  { %6404 = vmax.xlane.f32.xlu0 %v15864_v41 }
0x1e0b   :  { %6400 = vmax.xlane.f32.xlu0 %v15873_v20 }
0x1e14   :  { %6688 = vrot.lane.b32.xlu1 %v15676_v9, %s11963_s18 }
0x1e21   :  { %6528 = vrot.lane.b32.xlu0 %v15672_v25, %s11962_s9 }
0x1e25   :  { %6686 = vrot.lane.b32.xlu0 %v15678_v26, %s11963_s18 }
0x1e29   :  { %6684 = vrot.lane.b32.xlu0 %v15686_v48, %s11963_s18 }
0x1e2d   :  { %6680 = vrot.lane.b32.xlu0 %v15694_v60, %s11963_s18 }
0x1e38   :  { %6406 = vmax.xlane.f32.xlu1 %v15892_v3 }
0x1e3c   :  { %6402 = vmax.xlane.f32.xlu1 %v15901_v8 }
0x1e45   :  { %v6381_v57 = vpop.xlane.xlu0 %6380 }
0x1e46   :  { %v6410_v23 = vsub.f32 %v15757_v14, %v6381_v57 }
0x1e47   :  { %v6377_v52 = vpop.xlane.xlu1 %6376 }
0x1e48   :  { %v6428_v0 = vmul.f32 1.442695, %v6410_v23  ;;  %v6408_v38 = vsub.f32 %v15760_v10, %v6377_v52 }
0x1e4a   :  { %11600 = vpow2.f32 %v6428_v0  ;;  %v6424_v53 = vmul.f32 1.442695, %v6408_v38 }
0x1e4b   :  { %v6379_v13 = vpop.xlane.xlu0 %6378  ;;  %v6383_v15 = vpop.xlane.xlu1 %6382 }
0x1e4c   :  { %v6411_v51 = vsub.f32 %v15775_v44, %v6383_v15  ;;  %11602 = vpow2.f32 %v6424_v53  ;;  %v6409_v7 = vsub.f32 %v15778_v35, %v6379_v13 }
0x1e4e   :  { %v6430_v5 = vmul.f32 1.442695, %v6411_v51  ;;  %v6426_v11 = vmul.f32 1.442695, %v6409_v7 }
0x1e4f   :  { %v6533_v12 = vpop.permute.xlu0 %6532  ;;  %v6531_v27 = vpop.permute.xlu1 %6530 }
0x1e50   :  { %10569 = vmatprep.subr.bf16.mxu1 %v6533_v12  ;;  %11604 = vpow2.f32 %v6430_v5 }
0x1e51   :  { %10570 = vmatpush3.bf16.msra.mxu1 %v6533_v12  ;;  %11606 = vpow2.f32 %v6426_v11 }
0x1e52   :  { %10571 = vmatprep.subr.bf16.mxu1 %v6531_v27 }
0x1e55   :  { %10572 = vmatpush3.bf16.msra.mxu1 %v6531_v27 }
0x1e57   :  { %v15908_v14 = vpop.eup %11600 }
0x1e58   :  { %6460 = vadd.xlane.f32.xlu1 %v15908_v14 }
0x1e59   :  { %v15911_v10 = vpop.eup %11602 }
0x1e5c   :  { %6456 = vadd.xlane.f32.xlu1 %v15911_v10 }
0x1e5d   :  { %v15914_v15 = vpop.eup %11604 }
0x1e5e   :  { %v15917_v51 = vpop.eup %11606 }
0x1e60   :  { %6462 = vadd.xlane.f32.xlu1 %v15914_v15 }
0x1e64   :  { %6458 = vadd.xlane.f32.xlu1 %v15917_v51 }
0x1e75   :  { %6682 = vrot.lane.b32.xlu1 %v15682_v46, %s11963_s18 }
0x1e80   :  { %v6389_v27 = vpop.xlane.xlu0 %6388  ;;  %v6391_v7 = vpop.xlane.xlu1 %6390 }
0x1e81   :  { %v6414_v11 = vsub.f32 %v15797_v24, %v6389_v27  ;;  %v6415_v23 = vsub.f32 %v15800_v6, %v6391_v7 }
0x1e83   :  { %v6436_v12 = vmul.f32 1.442695, %v6414_v11  ;;  %v6438_v53 = vmul.f32 1.442695, %v6415_v23 }
0x1e84   :  { %v6385_v13 = vpop.xlane.xlu0 %6384  ;;  %v6387_v44 = vpop.xlane.xlu1 %6386 }
0x1e85   :  { %11608 = vpow2.f32 %v6436_v12  ;;  %v6412_v35 = vsub.f32 %v15815_v43, %v6385_v13  ;;  %v6413_v57 = vsub.f32 %v15818_v21, %v6387_v44 }
0x1e87   :  { %v6432_v52 = vmul.f32 1.442695, %v6412_v35  ;;  %v6434_v0 = vmul.f32 1.442695, %v6413_v57 }
0x1e88   :  { %v6397_v38 = vpop.xlane.xlu0 %6396  ;;  %v6399_v24 = vpop.xlane.xlu1 %6398 }
0x1e89   :  { %11610 = vpow2.f32 %v6434_v0  ;;  %v6418_v5 = vsub.f32 %v15833_v62, %v6397_v38  ;;  %v6419_v6 = vsub.f32 %v15836_v55, %v6399_v24 }
0x1e8a   :  { %11612 = vpow2.f32 %v6432_v52 }
0x1e8b   :  { %11614 = vpow2.f32 %v6438_v53  ;;  %v6444_v27 = vmul.f32 1.442695, %v6418_v5 }
0x1e8c   :  { %v6393_v56 = vpop.xlane.xlu0 %6392  ;;  %v6395_v44 = vpop.xlane.xlu1 %6394 }
0x1e8d   :  { %v6416_v11 = vsub.f32 %v15851_v17, %v6393_v56  ;;  %11616 = vpow2.f32 %v6444_v27  ;;  %v6446_v56 = vmul.f32 1.442695, %v6419_v6  ;;  %v6417_v17 = vsub.f32 %v15854_v61, %v6395_v44 }
0x1e8f   :  { %v6440_v7 = vmul.f32 1.442695, %v6416_v11 }
0x1e90   :  { %v6405_v12 = vpop.xlane.xlu0 %6404  ;;  %v15941_v52 = vpop.permute.xlu1 %6688 }
0x1e91   :  { %v6422_v43 = vsub.f32 %v15864_v41, %v6405_v12 }
0x1e92   :  { %v15929_v21 = vpop.eup %11608 }
0x1e93   :  { %v6452_v13 = vmul.f32 1.442695, %v6422_v43  ;;  %6468 = vadd.xlane.f32.xlu0 %v15929_v21 }
0x1e94   :  { %v6401_v62 = vpop.xlane.xlu0 %6400 }
0x1e95   :  { %11618 = vpow2.f32 %v6452_v13  ;;  %v6420_v35 = vsub.f32 %v15873_v20, %v6401_v62  ;;  %v6442_v20 = vmul.f32 1.442695, %v6417_v17 }
0x1e96   :  { %v15934_v57 = vpop.eup %11610  ;;  %11620 = vpow2.f32 %v6440_v7 }
0x1e97   :  { %v6448_v41 = vmul.f32 1.442695, %v6420_v35  ;;  %v15937_v23 = vpop.eup %11612  ;;  %6466 = vadd.xlane.f32.xlu0 %v15934_v57 }
0x1e98   :  { %v6529_v55 = vpop.permute.xlu0 %6528  ;;  %v15945_v0 = vpop.eup %11614 }
0x1e99   :  { %11622 = vpow2.f32 %v6448_v41  ;;  %6464 = vadd.xlane.f32.xlu1 %v15937_v23  ;;  %10573 = vmatprep.subr.bf16.mxu1 %v6529_v55 }
0x1e9a   :  { %10574 = vmatpush3.bf16.msra.mxu1 %v6529_v55  ;;  %11624 = vpow2.f32 %v6446_v56  ;;  %v15948_v61 = vpop.eup %11616 }
0x1e9b   :  { %10951 = vmatprep.subr.msk.bf16.mxu1 %vm366_vm2, %v15941_v52  ;;  %11626 = vpow2.f32 %v6442_v20 }
0x1e9d   :  { %6470 = vadd.xlane.f32.xlu1 %v15945_v0 }
0x1ea1   :  { %6476 = vadd.xlane.f32.xlu1 %v15948_v61 }
0x1ea2   :  { %v15951_v38 = vpop.eup %11618 }
0x1ea3   :  { %6484 = vadd.xlane.f32.xlu0 %v15951_v38  ;;  %v15954_v53 = vpop.eup %11620 }
0x1ea5   :  { %6472 = vadd.xlane.f32.xlu1 %v15954_v53 }
0x1ea6   :  { %v15957_v5 = vpop.eup %11622 }
0x1ea7   :  { %6480 = vadd.xlane.f32.xlu0 %v15957_v5  ;;  %v15960_v24 = vpop.eup %11624 }
0x1ea8   :  { %v15963_v27 = vpop.eup %11626 }
0x1ea9   :  { %6478 = vadd.xlane.f32.xlu1 %v15960_v24 }
0x1ead   :  { %6474 = vadd.xlane.f32.xlu1 %v15963_v27 }
0x1ec1   :  { %v6407_v11 = vpop.xlane.xlu1 %6406 }
0x1ec2   :  { %v6423_v12 = vsub.f32 %v15892_v3, %v6407_v11 }
0x1ec4   :  { %v6454_v43 = vmul.f32 1.442695, %v6423_v12 }
0x1ec5   :  { %v6403_v6 = vpop.xlane.xlu1 %6402 }
0x1ec6   :  { %11628 = vpow2.f32 %v6454_v43  ;;  %v6421_v7 = vsub.f32 %v15901_v8, %v6403_v6 }
0x1ec8   :  { %v6450_v13 = vmul.f32 1.442695, %v6421_v7 }
0x1eca   :  { %11630 = vpow2.f32 %v6450_v13 }
0x1ed3   :  { %v15968_v44 = vpop.eup %11628 }
0x1ed4   :  { %6486 = vadd.xlane.f32.xlu0 %v15968_v44 }
0x1ed7   :  { %v15971_v62 = vpop.eup %11630 }
0x1ed8   :  { %6482 = vadd.xlane.f32.xlu1 %v15971_v62 }
0x1ee1   :  { %v6461_v35 = vpop.xlane.xlu1 %6460 }
0x1ee5   :  { %v6457_v56 = vpop.xlane.xlu1 %6456 }
0x1ee9   :  { %6678 = vrot.lane.b32.xlu1 %v15690_v37, %s11963_s18  ;;  %v6463_v3 = vpop.xlane.xlu1 %6462 }
0x1eea   :  { %6676 = vrot.lane.b32.xlu0 %v15700_v29, %s11963_s18  ;;  %11632 = vrcp.f32 %v6463_v3 }
0x1eeb   :  { %11634 = vrcp.f32 %v6457_v56  ;;  %v6687_v56 = vpop.permute.xlu0 %6686 }
0x1eec   :  { %11636 = vrcp.f32 %v6461_v35  ;;  %v6736_v35 = vsel %vm366_vm2, %v15941_v52, 0 }
0x1eed   :  { %6658 = vrot.lane.b32.xlu1 %v15672_v25, %s11964_s19  ;;  %v6459_v8 = vpop.xlane.xlu1 %6458 }
0x1eee   :  { %11638 = vrcp.f32 %v6459_v8  ;;  %6674 = vrot.lane.b32.xlu0 %v15672_v25, %s11963_s18 }
0x1ef1   :  { %6662 = vrot.lane.b32.xlu1 %v15690_v37, %s11964_s19 }
0x1ef2   :  { %6660 = vrot.lane.b32.xlu0 %v15700_v29, %s11964_s19 }
0x1ef5   :  { %6666 = vrot.lane.b32.xlu1 %v15682_v46, %s11964_s19 }
0x1ef6   :  { %6664 = vrot.lane.b32.xlu0 %v15694_v60, %s11964_s19 }
0x1ef7   :  { %v11633_v17 = vpop.eup %11632 }
0x1ef8   :  { %v11635_v41 = vpop.eup %11634  ;;  %v6507_v11 = vmul.f32 %v11633_v17, %v15914_v15  ;;  %v6685_v15 = vpop.permute.xlu0 %6684 }
0x1ef9   :  { %6670 = vrot.lane.b32.xlu1 %v15678_v26, %s11964_s19  ;;  %v11637_v55 = vpop.eup %11636  ;;  %v6504_v12 = vmul.f32 %v11635_v41, %v15911_v10  ;;  %v6733_v10 = vsel %vm366_vm2, %v6687_v56, 0 }
0x1efa   :  { %6668 = vrot.lane.b32.xlu0 %v15686_v48, %s11964_s19  ;;  %v6506_v6 = vmul.f32 %v11637_v55, %v15908_v14  ;;  %v6730_v14 = vsel %vm366_vm2, %v6685_v15, 0 }
0x1efb   :  { %v11639_v20 = vpop.eup %11638 }
0x1efc   :  { %v6505_v43 = vmul.f32 %v11639_v20, %v15917_v51  ;;  %v6521_v13 = vpack.c.bf16 %v6507_v11, %v6506_v6  ;;  %v6683_v51 = vpop.permute.xlu1 %6682  ;;  %v6681_v3 = vpop.permute.xlu0 %6680 }
0x1efd   :  { %v6727_v8 = vsel %vm366_vm2, %v6683_v51, 0  ;;  %v6724_v41 = vsel %vm366_vm2, %v6681_v3, 0 }
0x1efe   :  { %6672 = vrot.lane.b32.xlu0 %v15676_v9, %s11964_s19  ;;  %v6520_v7 = vpack.c.bf16 %v6505_v43, %v6504_v12 }
0x1f00   :  { %10575 = vmatprep.mubr.bf16.mxu1 %v6520_v7 }
0x1f01   :  { %10576 = vmatmul.mubr.bf16.vlgmr.msra.gmra.mxu1 %v6521_v13 }
0x1f02   :  { %10592 = vmatpush3.bf16.xpose.msra.mxu1 %v6736_v35 }
0x1f03   :  { %10952 = vmatprep.subr.msk.bf16.mxu1 %vm366_vm2, %v6687_v56 }
0x1f0a   :  { %10594 = vmatpush3.bf16.xpose.msra.mxu1 %v6733_v10 }
0x1f0b   :  { %10953 = vmatprep.subr.msk.bf16.mxu1 %vm366_vm2, %v6685_v15 }
0x1f12   :  { %10596 = vmatpush3.bf16.xpose.msra.mxu1 %v6730_v14 }
0x1f13   :  { %10954 = vmatprep.subr.msk.bf16.mxu1 %vm366_vm2, %v6683_v51 }
0x1f1a   :  { %10598 = vmatpush3.bf16.xpose.msra.mxu1 %v6727_v8 }
0x1f1b   :  { %10955 = vmatprep.subr.msk.bf16.mxu1 %vm366_vm2, %v6681_v3 }
0x1f1c   :  { %v6469_v52 = vpop.xlane.xlu0 %6468 }
0x1f20   :  { %v6467_v17 = vpop.xlane.xlu0 %6466 }
0x1f21   :  { %11640 = vrcp.f32 %v6467_v17 }
0x1f22   :  { %10600 = vmatpush3.bf16.xpose.msra.mxu1 %v6724_v41  ;;  %v6465_v55 = vpop.xlane.xlu1 %6464 }
0x1f23   :  { %11642 = vrcp.f32 %v6465_v55 }
0x1f24   :  { %11644 = vrcp.f32 %v6469_v52 }
0x1f26   :  { %v6471_v20 = vpop.xlane.xlu1 %6470 }
0x1f27   :  { %11646 = vrcp.f32 %v6471_v20 }
0x1f2a   :  { %v6477_v11 = vpop.xlane.xlu1 %6476 }
0x1f2e   :  { %v6473_v12 = vpop.xlane.xlu1 %6472  ;;  %v11641_v43 = vpop.eup %11640 }
0x1f2f   :  { %v6509_v13 = vmul.f32 %v11641_v43, %v15934_v57 }
0x1f30   :  { %v11643_v6 = vpop.eup %11642 }
0x1f31   :  { %v6508_v7 = vmul.f32 %v11643_v6, %v15937_v23  ;;  %v11645_v35 = vpop.eup %11644 }
0x1f32   :  { %v6479_v56 = vpop.xlane.xlu1 %6478  ;;  %v6510_v14 = vmul.f32 %v11645_v35, %v15929_v21 }
0x1f33   :  { %v6522_v10 = vpack.c.bf16 %v6509_v13, %v6508_v7  ;;  %11648 = vrcp.f32 %v6479_v56 }
0x1f34   :  { %v11647_v15 = vpop.eup %11646  ;;  %11650 = vrcp.f32 %v6473_v12 }
0x1f35   :  { %10579 = vmatprep.mubr.bf16.mxu1 %v6522_v10  ;;  %v6511_v51 = vmul.f32 %v11647_v15, %v15945_v0  ;;  %11652 = vrcp.f32 %v6477_v11  ;;  %v6485_v0 = vpop.xlane.xlu0 %6484 }
0x1f36   :  { %v6475_v3 = vpop.xlane.xlu1 %6474 }
0x1f37   :  { %11654 = vrcp.f32 %v6475_v3  ;;  %v6523_v8 = vpack.c.bf16 %v6511_v51, %v6510_v14 }
0x1f39   :  { %10580 = vmatmul.mubr.bf16.gmra.mxu1 %v6523_v8  ;;  %v6481_v11 = vpop.xlane.xlu0 %6480 }
0x1f40   :  { %v11649_v52 = vpop.eup %11648 }
0x1f41   :  { %v11651_v23 = vpop.eup %11650  ;;  %v6515_v41 = vmul.f32 %v11649_v52, %v15960_v24  ;;  %v6044_v52 = vld [vmem:[%s17328_s2 + $0xb0] sm:$0xff] }
0x1f42   :  { %v11653_v17 = vpop.eup %11652  ;;  %v6512_v55 = vmul.f32 %v11651_v23, %v15954_v53 }
0x1f43   :  { %v6514_v12 = vmul.f32 %v11653_v17, %v15948_v61 }
0x1f44   :  { %v11655_v57 = vpop.eup %11654 }
0x1f45   :  { %v6513_v20 = vmul.f32 %v11655_v57, %v15963_v27  ;;  %v6525_v43 = vpack.c.bf16 %v6515_v41, %v6514_v12  ;;  %v6657_v57 = vpack.c.bf16 %v6044_v52, %v6044_v52 }
0x1f47   :  { %v6524_v21 = vpack.c.bf16 %v6513_v20, %v6512_v55 }
0x1f49   :  { %10583 = vmatprep.mubr.bf16.mxu1 %v6524_v21 }
0x1f4a   :  { %10584 = vmatmul.mubr.bf16.gmra.mxu1 %v6525_v43 }
0x1f5d   :  { %v6487_v6 = vpop.xlane.xlu0 %6486 }
0x1f5e   :  { %11656 = vrcp.f32 %v6487_v6 }
0x1f5f   :  { %11658 = vrcp.f32 %v6481_v11 }
0x1f60   :  { %11660 = vrcp.f32 %v6485_v0 }
0x1f61   :  { %v6483_v7 = vpop.xlane.xlu1 %6482  ;;  %v6677_v24 = vpop.permute.xlu0 %6676 }
0x1f62   :  { %11662 = vrcp.f32 %v6483_v7  ;;  %v6718_v56 = vsel %vm366_vm2, %v6677_v24, 0 }
0x1f65   :  { %v6679_v13 = vpop.permute.xlu1 %6678  ;;  %v6675_v15 = vpop.permute.xlu0 %6674 }
0x1f66   :  { %10956 = vmatprep.subr.msk.bf16.mxu1 %vm366_vm2, %v6679_v13  ;;  %v6721_v53 = vsel %vm366_vm2, %v6679_v13, 0 }
0x1f67   :  { %10602 = vmatpush3.bf16.xpose.msra.mxu1 %v6721_v53 }
0x1f68   :  { %10957 = vmatprep.subr.msk.bf16.mxu1 %vm366_vm2, %v6677_v24 }
0x1f69   :  { %v6659_v41 = vpop.permute.xlu1 %6658 }
0x1f6b   :  { %v11657_v61 = vpop.eup %11656 }
0x1f6c   :  { %v11659_v27 = vpop.eup %11658  ;;  %v6519_v14 = vmul.f32 %v11657_v61, %v15968_v44  ;;  %v6715_v44 = vsel %vm366_vm2, %v6675_v15, 0 }
0x1f6d   :  { %v11661_v35 = vpop.eup %11660  ;;  %v6516_v51 = vmul.f32 %v11659_v27, %v15957_v5  ;;  %v7266_v5 = vsel %vm1277_vm3, %v6657_v57, 0 }
0x1f6e   :  { %v6518_v8 = vmul.f32 %v11661_v35, %v15951_v38  ;;  %v6661_v38 = vpop.permute.xlu0 %6660 }
0x1f6f   :  { %v11663_v10 = vpop.eup %11662  ;;  %10604 = vmatpush3.bf16.xpose.msra.mxu1 %v6718_v56 }
0x1f70   :  { %10958 = vmatprep.subr.msk.bf16.mxu1 %vm366_vm2, %v6675_v15  ;;  %v6517_v3 = vmul.f32 %v11663_v10, %v15971_v62  ;;  %v6527_v17 = vpack.c.bf16 %v6519_v14, %v6518_v8  ;;  %v6663_v62 = vpop.permute.xlu1 %6662 }
0x1f72   :  { %v6526_v23 = vpack.c.bf16 %v6517_v3, %v6516_v51  ;;  %v6665_v55 = vpop.permute.xlu0 %6664 }
0x1f74   :  { %10587 = vmatprep.mubr.bf16.mxu1 %v6526_v23  ;;  %v6667_v20 = vpop.permute.xlu1 %6666 }
0x1f75   :  { %10588 = vmatmul.mubr.bf16.gmra.mxu1 %v6527_v17 }
0x1f76   :  { %10607 = vmatprep.mubr.msk.bf16.mxu1 %vm366_vm2, %v6659_v41  ;;  %v6669_v12 = vpop.permute.xlu0 %6668 }
0x1f77   :  { %10606 = vmatpush3.bf16.xpose.msra.mxu1 %v6715_v44 }
0x1f78   :  { %10960 = vmatprep.subr.msk.bf16.mxu1 %vm1277_vm3, %v6657_v57  ;;  %v6671_v21 = vpop.permute.xlu1 %6670 }
0x1f7a   :  { %v6673_v43 = vpop.permute.xlu0 %6672 }
0x1f7e   :  { %10608 = vmatmul.mubr.msk.bf16.vlgmr.msra.gmra.mxu1 %vm366_vm2, %v6661_v38 }
0x1f7f   :  { %10611 = vmatprep.mubr.msk.bf16.mxu1 %vm366_vm2, %v6663_v62  ;;  %10674 = vmatpush3.bf16.msra.mxu1 %v7266_v5 }
0x1f86   :  { %10612 = vmatmul.mubr.msk.bf16.gmra.mxu1 %vm366_vm2, %v6665_v55 }
0x1f87   :  { %10615 = vmatprep.mubr.msk.bf16.mxu1 %vm366_vm2, %v6667_v20 }
0x1f8e   :  { %10616 = vmatmul.mubr.msk.bf16.gmra.mxu1 %vm366_vm2, %v6669_v12 }
0x1f8f   :  { %10619 = vmatprep.mubr.msk.bf16.mxu1 %vm366_vm2, %v6671_v21 }
0x1f96   :  { %10620 = vmatmul.mubr.msk.bf16.gmra.mxu1 %vm366_vm2, %v6673_v43 }
0x1fc1   :  { %v10577_v0 = vpop.f32.mrf.mxu1 }
0x1fc3   :  { %v6586_v11 = vpop.f32.mrf.mxu1 }
0x1fc5   :  { %v10578_v6 = vpop.f32.mrf.mxu1 }
0x1fc6   :  { %v6650_v53 = vpack.c.bf16 %v10578_v6, %v10577_v0 }
0x1fc7   :  { %v6589_v7 = vpop.f32.mrf.mxu1 }
0x1fc8   :  { %v6649_v13 = vpack.c.bf16 %v6589_v7, %v6586_v11 }
0x1fca   :  { %10675 = vmatprep.mubr.msk.bf16.mxu1 %vm366_vm2, %v6649_v13 }
0x1fcb   :  { %10676 = vmatmul.mubr.msk.bf16.vlgmr.msra.gmra.mxu1 %vm366_vm2, %v6650_v53 }
0x1ff9   :  { %v10581_v24 = vpop.f32.mrf.mxu1 }
0x1ffb   :  { %v6602_v61 = vpop.f32.mrf.mxu1 }
0x1ffd   :  { %v10582_v27 = vpop.f32.mrf.mxu1 }
0x1ffe   :  { %v6652_v10 = vpack.c.bf16 %v10582_v27, %v10581_v24 }
0x1fff   :  { %v6605_v35 = vpop.f32.mrf.mxu1 }
0x2000   :  { %v6651_v56 = vpack.c.bf16 %v6605_v35, %v6602_v61 }
0x2002   :  { %10679 = vmatprep.mubr.msk.bf16.mxu1 %vm366_vm2, %v6651_v56 }
0x2003   :  { %10680 = vmatmul.mubr.msk.bf16.gmra.mxu1 %vm366_vm2, %v6652_v10 }
0x200a   :  { %v10585_v15 = vpop.f32.mrf.mxu1 }
0x200c   :  { %v6618_v14 = vpop.f32.mrf.mxu1 }
0x200e   :  { %v10586_v51 = vpop.f32.mrf.mxu1 }
0x200f   :  { %v6654_v52 = vpack.c.bf16 %v10586_v51, %v10585_v15 }
0x2010   :  { %v6621_v3 = vpop.f32.mrf.mxu1 }
0x2011   :  { %v6653_v8 = vpack.c.bf16 %v6621_v3, %v6618_v14 }
0x2013   :  { %10683 = vmatprep.mubr.msk.bf16.mxu1 %vm366_vm2, %v6653_v8 }
0x2014   :  { %10684 = vmatmul.mubr.msk.bf16.gmra.mxu1 %vm366_vm2, %v6654_v52 }
0x2035   :  { %v10589_v23 = vpop.f32.mrf.mxu1 }
0x2037   :  { %v6634_v17 = vpop.f32.mrf.mxu1 }
0x2039   :  { %v10590_v57 = vpop.f32.mrf.mxu1 }
0x203a   :  { %v6656_v5 = vpack.c.bf16 %v10590_v57, %v10589_v23 }
0x203b   :  { %v6637_v41 = vpop.f32.mrf.mxu1 }
0x203c   :  { %v6655_v44 = vpack.c.bf16 %v6637_v41, %v6634_v17 }
0x203e   :  { %v10609_v38 = vpop.f32.mrf.mxu1  ;;  %10687 = vmatprep.mubr.msk.bf16.mxu1 %vm366_vm2, %v6655_v44 }
0x203f   :  { %v6781_v62 = vadd.f32 %v10609_v38, %v15749_v34  ;;  %10688 = vmatmul.mubr.msk.bf16.gmra.mxu1 %vm366_vm2, %v6656_v5 }
0x2040   :  { %v6772_v55 = vpop.f32.mrf.mxu1 }
0x2041   :  { %v6773_v20 = vadd.f32 %v6772_v55, %v15754_v30  ;;  %6839 = vmax.xlane.f32.xlu0 %v6781_v62 }
0x2042   :  { %v10610_v12 = vpop.f32.mrf.mxu1 }
0x2043   :  { %6835 = vmax.xlane.f32.xlu1 %v6773_v20  ;;  %v6784_v43 = vadd.f32 %v10610_v12, %v15766_v19 }
0x2044   :  { %v6775_v21 = vpop.f32.mrf.mxu1 }
0x2045   :  { %v16053_v0 = vadd.f32 %v6775_v21, %v15771_v63 }
0x2046   :  { %v10613_v34 = vpop.f32.mrf.mxu1 }
0x2047   :  { %6837 = vmax.xlane.f32.xlu0 %v16053_v0  ;;  %6841 = vmax.xlane.f32.xlu1 %v6784_v43  ;;  %v16061_v19 = vadd.f32 %v10613_v34, %v15789_v31 }
0x2048   :  { %v6788_v30 = vpop.f32.mrf.mxu1 }
0x2049   :  { %v16069_v61 = vadd.f32 %v6788_v30, %v15805_v58 }
0x204a   :  { %v10614_v11 = vpop.f32.mrf.mxu1 }
0x204b   :  { %v16064_v63 = vadd.f32 %v10614_v11, %v15794_v45 }
0x204c   :  { %v6791_v6 = vpop.f32.mrf.mxu1 }
0x204d   :  { %v16072_v27 = vadd.f32 %v6791_v6, %v15810_v28 }
0x204e   :  { %v10617_v7 = vpop.f32.mrf.mxu1 }
0x204f   :  { %v16077_v31 = vadd.f32 %v10617_v7, %v15823_v2 }
0x2050   :  { %v6804_v13 = vpop.f32.mrf.mxu1 }
0x2051   :  { %v16085_v58 = vadd.f32 %v6804_v13, %v15841_v54 }
0x2052   :  { %v10618_v53 = vpop.f32.mrf.mxu1 }
0x2053   :  { %v16080_v45 = vadd.f32 %v10618_v53, %v15828_v22 }
0x2054   :  { %v6807_v24 = vpop.f32.mrf.mxu1 }
0x2055   :  { %v16088_v28 = vadd.f32 %v6807_v24, %v15846_v49 }
0x2056   :  { %v10621_v35 = vpop.f32.mrf.mxu1 }
0x2057   :  { %v16093_v2 = vadd.f32 %v10621_v35, %v15859_v59 }
0x2058   :  { %6999 = vrot.lane.b32.xlu1 %v15678_v26, %s11965_s22  ;;  %v6820_v56 = vpop.f32.mrf.mxu1 }
0x2059   :  { %v16101_v54 = vadd.f32 %v6820_v56, %v15869_v16 }
0x205a   :  { %v10622_v10 = vpop.f32.mrf.mxu1 }
0x205b   :  { %v16096_v22 = vadd.f32 %v10622_v10, %v15889_v4 }
0x205c   :  { %v6823_v15 = vpop.f32.mrf.mxu1 }
0x205d   :  { %7001 = vrot.lane.b32.xlu0 %v15676_v9, %s11965_s22  ;;  %v16104_v49 = vadd.f32 %v6823_v15, %v15897_v33 }
0x207c   :  { %6847 = vmax.xlane.f32.xlu0 %v16061_v19  ;;  %6849 = vmax.xlane.f32.xlu1 %v16064_v63 }
0x2080   :  { %6845 = vmax.xlane.f32.xlu1 %v16072_v27  ;;  %6843 = vmax.xlane.f32.xlu0 %v16069_v61 }
0x2084   :  { %6855 = vmax.xlane.f32.xlu0 %v16077_v31  ;;  %6857 = vmax.xlane.f32.xlu1 %v16080_v45 }
0x2088   :  { %6853 = vmax.xlane.f32.xlu1 %v16088_v28  ;;  %6851 = vmax.xlane.f32.xlu0 %v16085_v58 }
0x208c   :  { %6863 = vmax.xlane.f32.xlu0 %v16093_v2  ;;  %6865 = vmax.xlane.f32.xlu1 %v16096_v22 }
0x2090   :  { %6861 = vmax.xlane.f32.xlu1 %v16104_v49  ;;  %6859 = vmax.xlane.f32.xlu0 %v16101_v54 }
0x20a6   :  { %6997 = vrot.lane.b32.xlu0 %v15686_v48, %s11965_s22 }
0x20aa   :  { %6995 = vrot.lane.b32.xlu0 %v15682_v46, %s11965_s22 }
0x20ae   :  { %6993 = vrot.lane.b32.xlu0 %v15694_v60, %s11965_s22 }
0x20b2   :  { %6991 = vrot.lane.b32.xlu0 %v15690_v37, %s11965_s22 }
0x20b6   :  { %6987 = vrot.lane.b32.xlu0 %v15672_v25, %s11965_s22 }
0x20ca   :  { %v6840_v59 = vpop.xlane.xlu0 %6839 }
0x20cb   :  { %v6869_v16 = vsub.f32 %v6781_v62, %v6840_v59 }
0x20cc   :  { %v6836_v4 = vpop.xlane.xlu1 %6835 }
0x20cd   :  { %v6887_v33 = vmul.f32 1.442695, %v6869_v16  ;;  %v6867_v14 = vsub.f32 %v6773_v20, %v6836_v4 }
0x20cf   :  { %11664 = vpow2.f32 %v6887_v33  ;;  %v6883_v51 = vmul.f32 1.442695, %v6867_v14 }
0x20d0   :  { %v6838_v3 = vpop.xlane.xlu0 %6837  ;;  %v6842_v8 = vpop.xlane.xlu1 %6841 }
0x20d1   :  { %v6870_v52 = vsub.f32 %v6784_v43, %v6842_v8  ;;  %11666 = vpow2.f32 %v6883_v51  ;;  %v6868_v23 = vsub.f32 %v16053_v0, %v6838_v3 }
0x20d3   :  { %v6889_v17 = vmul.f32 1.442695, %v6870_v52  ;;  %v6885_v44 = vmul.f32 1.442695, %v6868_v23 }
0x20d4   :  { %v7002_v57 = vpop.permute.xlu0 %7001  ;;  %v7000_v41 = vpop.permute.xlu1 %6999 }
0x20d5   :  { %10623 = vmatprep.subr.bf16.mxu0 %v7002_v57  ;;  %11668 = vpow2.f32 %v6889_v17 }
0x20d6   :  { %10624 = vmatpush3.bf16.msra.mxu0 %v7002_v57  ;;  %11670 = vpow2.f32 %v6885_v44 }
0x20d7   :  { %10625 = vmatprep.subr.bf16.mxu0 %v7000_v41 }
0x20da   :  { %10626 = vmatpush3.bf16.msra.mxu0 %v7000_v41 }
0x20dc   :  { %v16119_v5 = vpop.eup %11664 }
0x20dd   :  { %6919 = vadd.xlane.f32.xlu1 %v16119_v5 }
0x20de   :  { %v16122_v38 = vpop.eup %11666 }
0x20e1   :  { %6915 = vadd.xlane.f32.xlu1 %v16122_v38 }
0x20e2   :  { %v16125_v62 = vpop.eup %11668 }
0x20e3   :  { %v16128_v55 = vpop.eup %11670 }
0x20e5   :  { %6921 = vadd.xlane.f32.xlu1 %v16125_v62 }
0x20e9   :  { %6917 = vadd.xlane.f32.xlu1 %v16128_v55 }
0x20fa   :  { %6989 = vrot.lane.b32.xlu1 %v15700_v29, %s11965_s22 }
0x2105   :  { %v6848_v20 = vpop.xlane.xlu0 %6847  ;;  %v6850_v12 = vpop.xlane.xlu1 %6849 }
0x2106   :  { %v6873_v34 = vsub.f32 %v16061_v19, %v6848_v20  ;;  %v6874_v11 = vsub.f32 %v16064_v63, %v6850_v12 }
0x2108   :  { %v6895_v24 = vmul.f32 1.442695, %v6873_v34  ;;  %v6897_v35 = vmul.f32 1.442695, %v6874_v11 }
0x2109   :  { %v6844_v21 = vpop.xlane.xlu0 %6843  ;;  %v6846_v0 = vpop.xlane.xlu1 %6845 }
0x210a   :  { %v6871_v43 = vsub.f32 %v16069_v61, %v6844_v21  ;;  %v6872_v30 = vsub.f32 %v16072_v27, %v6846_v0 }
0x210c   :  { %v6891_v6 = vmul.f32 1.442695, %v6871_v43  ;;  %v6893_v7 = vmul.f32 1.442695, %v6872_v30 }
0x210d   :  { %v6856_v13 = vpop.xlane.xlu0 %6855  ;;  %v6858_v53 = vpop.xlane.xlu1 %6857 }
0x210e   :  { %11672 = vpow2.f32 %v6893_v7  ;;  %v6877_v61 = vsub.f32 %v16077_v31, %v6856_v13  ;;  %v6878_v63 = vsub.f32 %v16080_v45, %v6858_v53 }
0x210f   :  { %11674 = vpow2.f32 %v6891_v6 }
0x2110   :  { %11676 = vpow2.f32 %v6895_v24  ;;  %v6903_v33 = vmul.f32 1.442695, %v6877_v61  ;;  %v6905_v14 = vmul.f32 1.442695, %v6878_v63 }
0x2111   :  { %v6852_v56 = vpop.xlane.xlu0 %6851  ;;  %v6854_v15 = vpop.xlane.xlu1 %6853  ;;  %11678 = vpow2.f32 %v6897_v35 }
0x2112   :  { %v6875_v10 = vsub.f32 %v16085_v58, %v6852_v56  ;;  %v6876_v19 = vsub.f32 %v16088_v28, %v6854_v15  ;;  %v6045_v56 = vld [vmem:[%s17328_s2 + $0xb8] sm:$0xff] }
0x2113   :  { %v7116_v15 = vpack.c.bf16 %v6045_v56, %v6045_v56 }
0x2114   :  { %v6899_v27 = vmul.f32 1.442695, %v6875_v10  ;;  %v6901_v59 = vmul.f32 1.442695, %v6876_v19 }
0x2115   :  { %v6864_v16 = vpop.xlane.xlu0 %6863  ;;  %v6866_v4 = vpop.xlane.xlu1 %6865 }
0x2116   :  { %11680 = vpow2.f32 %v6899_v27  ;;  %v6881_v31 = vsub.f32 %v16093_v2, %v6864_v16  ;;  %v6882_v45 = vsub.f32 %v16096_v22, %v6866_v4 }
0x2117   :  { %11682 = vpow2.f32 %v6901_v59 }
0x2118   :  { %11684 = vpow2.f32 %v6903_v33 }
0x2119   :  { %v6860_v51 = vpop.xlane.xlu0 %6859  ;;  %v6862_v3 = vpop.xlane.xlu1 %6861  ;;  %11686 = vpow2.f32 %v6905_v14 }
0x211a   :  { %v6879_v58 = vsub.f32 %v16101_v54, %v6860_v51  ;;  %v6880_v28 = vsub.f32 %v16104_v49, %v6862_v3  ;;  %v6911_v54 = vmul.f32 1.442695, %v6881_v31  ;;  %v6913_v49 = vmul.f32 1.442695, %v6882_v45 }
0x211b   :  { %v16144_v8 = vpop.eup %11672 }
0x211c   :  { %v6907_v52 = vmul.f32 1.442695, %v6879_v58  ;;  %v16147_v23 = vpop.eup %11674  ;;  %v6909_v17 = vmul.f32 1.442695, %v6880_v28  ;;  %6925 = vadd.xlane.f32.xlu0 %v16144_v8  ;;  %v7142_v58 = vsel %vm1277_vm3, %v7116_v15, 0 }
0x211d   :  { %v6998_v57 = vpop.permute.xlu0 %6997  ;;  %v16151_v2 = vpop.eup %11676 }
0x211e   :  { %11688 = vpow2.f32 %v6907_v52  ;;  %6923 = vadd.xlane.f32.xlu1 %v16147_v23  ;;  %10627 = vmatprep.subr.bf16.mxu0 %v6998_v57  ;;  %v16153_v41 = vpop.eup %11678 }
0x211f   :  { %10628 = vmatpush3.bf16.msra.mxu0 %v6998_v57  ;;  %11690 = vpow2.f32 %v6909_v17 }
0x2120   :  { %6927 = vadd.xlane.f32.xlu0 %v16151_v2  ;;  %11692 = vpow2.f32 %v6911_v54 }
0x2121   :  { %v6996_v22 = vpop.permute.xlu0 %6995  ;;  %11694 = vpow2.f32 %v6913_v49 }
0x2122   :  { %10629 = vmatprep.subr.bf16.mxu0 %v6996_v22  ;;  %6929 = vadd.xlane.f32.xlu1 %v16153_v41 }
0x2123   :  { %v16157_v44 = vpop.eup %11680  ;;  %10630 = vmatpush3.bf16.msra.mxu0 %v6996_v22 }
0x2124   :  { %v16159_v20 = vpop.eup %11682  ;;  %6931 = vadd.xlane.f32.xlu0 %v16157_v44 }
0x2125   :  { %v6994_v12 = vpop.permute.xlu0 %6993  ;;  %v16163_v21 = vpop.eup %11684 }
0x2126   :  { %10631 = vmatprep.subr.bf16.mxu0 %v6994_v12  ;;  %6933 = vadd.xlane.f32.xlu1 %v16159_v20  ;;  %v16165_v43 = vpop.eup %11686 }
0x2127   :  { %10632 = vmatpush3.bf16.msra.mxu0 %v6994_v12 }
0x2128   :  { %6935 = vadd.xlane.f32.xlu0 %v16163_v21 }
0x2129   :  { %v6992_v0 = vpop.permute.xlu0 %6991 }
0x212a   :  { %10633 = vmatprep.subr.bf16.mxu0 %v6992_v0  ;;  %6937 = vadd.xlane.f32.xlu1 %v16165_v43 }
0x212b   :  { %v16169_v34 = vpop.eup %11688  ;;  %10634 = vmatpush3.bf16.msra.mxu0 %v6992_v0 }
0x212c   :  { %v16171_v30 = vpop.eup %11690  ;;  %6939 = vadd.xlane.f32.xlu0 %v16169_v34 }
0x212d   :  { %v16175_v11 = vpop.eup %11692  ;;  %v6988_v10 = vpop.permute.xlu0 %6987 }
0x212e   :  { %6941 = vadd.xlane.f32.xlu1 %v16171_v30  ;;  %v16177_v6 = vpop.eup %11694 }
0x2130   :  { %6943 = vadd.xlane.f32.xlu0 %v16175_v11 }
0x2132   :  { %6945 = vadd.xlane.f32.xlu1 %v16177_v6 }
0x2143   :  { %7393 = vrot.lane.b32.xlu1 %v15678_v26, %s11966_s23 }
0x2146   :  { %7395 = vrot.lane.b32.xlu0 %v15676_v9, %s11966_s23 }
0x2147   :  { %7391 = vrot.lane.b32.xlu1 %v15686_v48, %s11966_s23 }
0x214a   :  { %7389 = vrot.lane.b32.xlu0 %v15682_v46, %s11966_s23 }
0x214b   :  { %7387 = vrot.lane.b32.xlu1 %v15694_v60, %s11966_s23 }
0x214e   :  { %7385 = vrot.lane.b32.xlu0 %v15690_v37, %s11966_s23 }
0x214f   :  { %7383 = vrot.lane.b32.xlu1 %v15700_v29, %s11966_s23 }
0x2152   :  { %7381 = vrot.lane.b32.xlu0 %v15672_v25, %s11966_s23 }
0x2153   :  { %7365 = vrot.lane.b32.xlu1 %v15672_v25, %s11967_s24 }
0x2156   :  { %7367 = vrot.lane.b32.xlu0 %v15700_v29, %s11967_s24 }
0x2157   :  { %7369 = vrot.lane.b32.xlu1 %v15690_v37, %s11967_s24 }
0x215a   :  { %7371 = vrot.lane.b32.xlu0 %v15694_v60, %s11967_s24 }
0x215b   :  { %7373 = vrot.lane.b32.xlu1 %v15682_v46, %s11967_s24 }
0x215e   :  { %7375 = vrot.lane.b32.xlu0 %v15686_v48, %s11967_s24 }
0x215f   :  { %7377 = vrot.lane.b32.xlu1 %v15678_v26, %s11967_s24 }
0x2162   :  { %7379 = vrot.lane.b32.xlu0 %v15676_v9, %s11967_s24 }
0x2163   :  { %7994 = vrot.lane.b32.xlu1 %v15676_v9, %s11968_s25 }
0x2166   :  { %v6920_v7 = vpop.xlane.xlu1 %6919  ;;  %7992 = vrot.lane.b32.xlu0 %v15678_v26, %s11968_s25 }
0x2167   :  { %7990 = vrot.lane.b32.xlu1 %v15686_v48, %s11968_s25 }
0x216a   :  { %v6916_v13 = vpop.xlane.xlu1 %6915  ;;  %7988 = vrot.lane.b32.xlu0 %v15682_v46, %s11968_s25 }
0x216b   :  { %7986 = vrot.lane.b32.xlu1 %v15694_v60, %s11968_s25 }
0x216e   :  { %v6922_v53 = vpop.xlane.xlu1 %6921  ;;  %7984 = vrot.lane.b32.xlu0 %v15690_v37, %s11968_s25 }
0x216f   :  { %7982 = vrot.lane.b32.xlu1 %v15700_v29, %s11968_s25  ;;  %11696 = vrcp.f32 %v6922_v53 }
0x2170   :  { %11698 = vrcp.f32 %v6916_v13 }
0x2171   :  { %11700 = vrcp.f32 %v6920_v7 }
0x2172   :  { %v6918_v24 = vpop.xlane.xlu1 %6917  ;;  %7980 = vrot.lane.b32.xlu0 %v15672_v25, %s11968_s25 }
0x2173   :  { %11702 = vrcp.f32 %v6918_v24  ;;  %7964 = vrot.lane.b32.xlu1 %v15672_v25, %s11969_s26 }
0x2176   :  { %v6990_v35 = vpop.permute.xlu1 %6989  ;;  %7966 = vrot.lane.b32.xlu0 %v15700_v29, %s11969_s26 }
0x2177   :  { %7968 = vrot.lane.b32.xlu1 %v15690_v37, %s11969_s26  ;;  %10635 = vmatprep.subr.bf16.mxu0 %v6990_v35 }
0x2178   :  { %10636 = vmatpush3.bf16.msra.mxu0 %v6990_v35 }
0x2179   :  { %10637 = vmatprep.subr.bf16.mxu0 %v6988_v10 }
0x217a   :  { %7970 = vrot.lane.b32.xlu0 %v15694_v60, %s11969_s26 }
0x217b   :  { %7972 = vrot.lane.b32.xlu1 %v15682_v46, %s11969_s26 }
0x217c   :  { %v11697_v61 = vpop.eup %11696  ;;  %10638 = vmatpush3.bf16.msra.mxu0 %v6988_v10 }
0x217d   :  { %v11699_v19 = vpop.eup %11698  ;;  %10959 = vmatprep.subr.msk.bf16.mxu0 %vm1277_vm3, %v7116_v15  ;;  %v6966_v59 = vmul.f32 %v11697_v61, %v16125_v62 }
0x217e   :  { %v11701_v63 = vpop.eup %11700  ;;  %7974 = vrot.lane.b32.xlu0 %v15686_v48, %s11969_s26  ;;  %v6963_v16 = vmul.f32 %v11699_v19, %v16122_v38 }
0x217f   :  { %7976 = vrot.lane.b32.xlu1 %v15678_v26, %s11969_s26  ;;  %v6965_v33 = vmul.f32 %v11701_v63, %v16119_v5 }
0x2180   :  { %v11703_v27 = vpop.eup %11702 }
0x2181   :  { %v6964_v4 = vmul.f32 %v11703_v27, %v16128_v55  ;;  %v6980_v51 = vpack.c.bf16 %v6966_v59, %v6965_v33 }
0x2182   :  { %7978 = vrot.lane.b32.xlu0 %v15676_v9, %s11969_s26 }
0x2183   :  { %7706 = vrot.lane.b32.xlu1 %v15678_v26, %s11970_s29  ;;  %v6979_v14 = vpack.c.bf16 %v6964_v4, %v6963_v16 }
0x2185   :  { %10639 = vmatprep.mubr.bf16.mxu0 %v6979_v14 }
0x2186   :  { %10640 = vmatmul.mubr.bf16.vlgmr.msra.gmra.mxu0 %v6980_v51  ;;  %7708 = vrot.lane.b32.xlu0 %v15676_v9, %s11970_s29 }
0x2187   :  { %10656 = vmatpush3.bf16.msra.mxu0 %v7142_v58 }
0x21a5   :  { %v6926_v38 = vpop.xlane.xlu0 %6925 }
0x21a6   :  { %11704 = vrcp.f32 %v6926_v38 }
0x21a7   :  { %v6924_v62 = vpop.xlane.xlu1 %6923 }
0x21a8   :  { %11706 = vrcp.f32 %v6924_v62 }
0x21a9   :  { %v6928_v5 = vpop.xlane.xlu0 %6927 }
0x21aa   :  { %11708 = vrcp.f32 %v6928_v5 }
0x21ab   :  { %v6930_v55 = vpop.xlane.xlu1 %6929 }
0x21ac   :  { %11710 = vrcp.f32 %v6930_v55 }
0x21ad   :  { %v6932_v3 = vpop.xlane.xlu0 %6931 }
0x21ae   :  { %11712 = vrcp.f32 %v6932_v3 }
0x21af   :  { %v6934_v31 = vpop.xlane.xlu1 %6933 }
0x21b0   :  { %11714 = vrcp.f32 %v6934_v31 }
0x21b1   :  { %v6936_v28 = vpop.xlane.xlu0 %6935 }
0x21b2   :  { %11716 = vrcp.f32 %v6936_v28 }
0x21b3   :  { %v6938_v45 = vpop.xlane.xlu1 %6937  ;;  %v11705_v52 = vpop.eup %11704 }
0x21b4   :  { %11718 = vrcp.f32 %v6938_v45  ;;  %v6968_v49 = vmul.f32 %v11705_v52, %v16144_v8 }
0x21b5   :  { %v11707_v17 = vpop.eup %11706  ;;  %v6940_v57 = vpop.xlane.xlu0 %6939 }
0x21b6   :  { %v6967_v54 = vmul.f32 %v11707_v17, %v16147_v23  ;;  %11720 = vrcp.f32 %v6940_v57 }
0x21b7   :  { %v6942_v22 = vpop.xlane.xlu1 %6941  ;;  %v11709_v12 = vpop.eup %11708 }
0x21b8   :  { %11722 = vrcp.f32 %v6942_v22  ;;  %v6981_v0 = vpack.c.bf16 %v6968_v49, %v6967_v54  ;;  %v6969_v53 = vmul.f32 %v11709_v12, %v16151_v2 }
0x21b9   :  { %v11711_v7 = vpop.eup %11710  ;;  %v6944_v13 = vpop.xlane.xlu0 %6943 }
0x21ba   :  { %10643 = vmatprep.mubr.bf16.mxu0 %v6981_v0  ;;  %v6970_v24 = vmul.f32 %v11711_v7, %v16153_v41  ;;  %11724 = vrcp.f32 %v6944_v13 }
0x21bb   :  { %v6946_v35 = vpop.xlane.xlu1 %6945  ;;  %v11713_v56 = vpop.eup %11712 }
0x21bc   :  { %11726 = vrcp.f32 %v6946_v35  ;;  %v6982_v10 = vpack.c.bf16 %v6970_v24, %v6969_v53  ;;  %v6971_v8 = vmul.f32 %v11713_v56, %v16157_v44 }
0x21bd   :  { %v11715_v23 = vpop.eup %11714  ;;  %v16262_v15 = vpop.permute.xlu0 %7395 }
0x21be   :  { %10644 = vmatmul.mubr.bf16.gmra.mxu0 %v6982_v10  ;;  %v6972_v61 = vmul.f32 %v11715_v23, %v16159_v20  ;;  %10961 = vmatprep.subr.msk.bf16.mxu0 %vm366_vm2, %v16262_v15 }
0x21bf   :  { %v16268_v19 = vpop.permute.xlu1 %7393  ;;  %v11717_v2 = vpop.eup %11716 }
0x21c0   :  { %v6983_v41 = vpack.c.bf16 %v6972_v61, %v6971_v8  ;;  %v6973_v59 = vmul.f32 %v11717_v2, %v16163_v21 }
0x21c1   :  { %v11719_v63 = vpop.eup %11718  ;;  %v16270_v27 = vpop.permute.xlu0 %7389 }
0x21c2   :  { %10647 = vmatprep.mubr.bf16.mxu0 %v6983_v41  ;;  %v6974_v16 = vmul.f32 %v11719_v63, %v16165_v43 }
0x21c3   :  { %v16274_v4 = vpop.permute.xlu1 %7391  ;;  %v11721_v44 = vpop.eup %11720 }
0x21c4   :  { %v6984_v33 = vpack.c.bf16 %v6974_v16, %v6973_v59  ;;  %v6975_v51 = vmul.f32 %v11721_v44, %v16169_v34 }
0x21c5   :  { %v11723_v20 = vpop.eup %11722  ;;  %v16276_v14 = vpop.permute.xlu0 %7385 }
0x21c6   :  { %10648 = vmatmul.mubr.bf16.gmra.mxu0 %v6984_v33  ;;  %v6976_v58 = vmul.f32 %v11723_v20, %v16171_v30 }
0x21c7   :  { %v7388_v38 = vpop.permute.xlu1 %7387  ;;  %v11725_v62 = vpop.eup %11724 }
0x21c8   :  { %v6985_v5 = vpack.c.bf16 %v6976_v58, %v6975_v51  ;;  %v6977_v21 = vmul.f32 %v11725_v62, %v16175_v11  ;;  %v7443_v58 = vsel %vm366_vm2, %v16262_v15, 0  ;;  %v7440_v62 = vsel %vm366_vm2, %v16268_v19, 0 }
0x21c9   :  { %v11727_v55 = vpop.eup %11726  ;;  %v16280_v3 = vpop.permute.xlu0 %7381  ;;  %v7434_v15 = vsel %vm366_vm2, %v16270_v27, 0 }
0x21ca   :  { %10651 = vmatprep.mubr.bf16.mxu0 %v6985_v5  ;;  %v6978_v43 = vmul.f32 %v11727_v55, %v16177_v6  ;;  %v7437_v5 = vsel %vm366_vm2, %v16274_v4, 0  ;;  %v7431_v55 = vsel %vm366_vm2, %v7388_v38, 0 }
0x21cb   :  { %v7384_v31 = vpop.permute.xlu1 %7383 }
0x21cc   :  { %v6986_v28 = vpack.c.bf16 %v6978_v43, %v6977_v21  ;;  %v7425_v43 = vsel %vm366_vm2, %v7384_v31, 0 }
0x21cd   :  { %v16284_v45 = vpop.permute.xlu0 %7367 }
0x21ce   :  { %10652 = vmatmul.mubr.bf16.gmra.mxu0 %v6986_v28 }
0x21cf   :  { %v16286_v52 = vpop.permute.xlu1 %7365 }
0x21d1   :  { %v16288_v34 = vpop.permute.xlu0 %7371 }
0x21d3   :  { %v16290_v30 = vpop.permute.xlu1 %7369 }
0x21d5   :  { %v16292_v17 = vpop.permute.xlu0 %7375 }
0x21d7   :  { %v16294_v57 = vpop.permute.xlu1 %7373 }
0x21d9   :  { %v16296_v54 = vpop.permute.xlu0 %7379 }
0x21db   :  { %v16298_v11 = vpop.permute.xlu1 %7377 }
0x21dd   :  { %v16300_v6 = vpop.permute.xlu0 %7992 }
0x21df   :  { %v16302_v49 = vpop.permute.xlu1 %7994 }
0x21e1   :  { %v16304_v22 = vpop.permute.xlu0 %7988 }
0x21e3   :  { %v16306_v12 = vpop.permute.xlu1 %7990 }
0x21e5   :  { %v16308_v0 = vpop.permute.xlu0 %7984 }
0x21e7   :  { %v16310_v7 = vpop.permute.xlu1 %7986 }
0x21e9   :  { %v16312_v13 = vpop.permute.xlu0 %7980 }
0x21eb   :  { %v16314_v53 = vpop.permute.xlu1 %7982 }
0x21ed   :  { %v16316_v24 = vpop.permute.xlu0 %7966 }
0x21ef   :  { %v16318_v35 = vpop.permute.xlu1 %7964 }
0x21f1   :  { %v16320_v56 = vpop.permute.xlu0 %7970 }
0x21f3   :  { %v16322_v10 = vpop.permute.xlu1 %7968 }
0x21f5   :  { %v16324_v23 = vpop.permute.xlu0 %7974 }
0x21f7   :  { %v16326_v8 = vpop.permute.xlu1 %7972 }
0x21f9   :  { %v16328_v61 = vpop.permute.xlu0 %7978 }
0x21fb   :  { %v16330_v2 = vpop.permute.xlu1 %7976 }
0x21fd   :  { %v7709_v41 = vpop.permute.xlu0 %7708 }
0x21fe   :  { %10723 = vmatprep.subr.bf16.mxu1 %v7709_v41 }
0x21ff   :  { %v7707_v63 = vpop.permute.xlu1 %7706  ;;  %10724 = vmatpush3.bf16.msra.mxu1 %v7709_v41 }
0x2200   :  { %10725 = vmatprep.subr.bf16.mxu1 %v7707_v63 }
0x2203   :  { %10726 = vmatpush3.bf16.msra.mxu1 %v7707_v63 }
0x2246   :  { %v10641_v59 = vpop.f32.mrf.mxu0 }
0x2248   :  { %v7045_v16 = vpop.f32.mrf.mxu0 }
0x224a   :  { %v10642_v44 = vpop.f32.mrf.mxu0 }
0x224b   :  { %v7109_v51 = vpack.c.bf16 %v10642_v44, %v10641_v59 }
0x224c   :  { %v7048_v33 = vpop.f32.mrf.mxu0 }
0x224d   :  { %v7108_v20 = vpack.c.bf16 %v7048_v33, %v7045_v16 }
0x224f   :  { %10657 = vmatprep.mubr.msk.bf16.mxu0 %vm366_vm2, %v7108_v20 }
0x2250   :  { %10658 = vmatmul.mubr.msk.bf16.vlgmr.msra.gmra.mxu0 %vm366_vm2, %v7109_v51 }
0x2251   :  { %10692 = vmatpush3.bf16.xpose.msra.mxu0 %v7443_v58 }
0x2252   :  { %10962 = vmatprep.subr.msk.bf16.mxu0 %vm366_vm2, %v16268_v19  ;;  %v7428_v19 = vsel %vm366_vm2, %v16276_v14, 0 }
0x2259   :  { %10694 = vmatpush3.bf16.xpose.msra.mxu0 %v7440_v62 }
0x225a   :  { %10963 = vmatprep.subr.msk.bf16.mxu0 %vm366_vm2, %v16274_v4 }
0x2261   :  { %10696 = vmatpush3.bf16.xpose.msra.mxu0 %v7437_v5 }
0x2262   :  { %10964 = vmatprep.subr.msk.bf16.mxu0 %vm366_vm2, %v16270_v27 }
0x2269   :  { %10698 = vmatpush3.bf16.xpose.msra.mxu0 %v7434_v15 }
0x226a   :  { %10965 = vmatprep.subr.msk.bf16.mxu0 %vm366_vm2, %v7388_v38 }
0x2271   :  { %10700 = vmatpush3.bf16.xpose.msra.mxu0 %v7431_v55  ;;  %v8039_v55 = vsel %vm366_vm2, %v16300_v6, 0 }
0x2272   :  { %10966 = vmatprep.subr.msk.bf16.mxu0 %vm366_vm2, %v16276_v14  ;;  %v7422_v14 = vsel %vm366_vm2, %v16280_v3, 0 }
0x2279   :  { %10702 = vmatpush3.bf16.xpose.msra.mxu0 %v7428_v19 }
0x227a   :  { %10967 = vmatprep.subr.msk.bf16.mxu0 %vm366_vm2, %v7384_v31 }
0x227e   :  { %v10645_v4 = vpop.f32.mrf.mxu0 }
0x2280   :  { %v7061_v21 = vpop.f32.mrf.mxu0 }
0x2281   :  { %10704 = vmatpush3.bf16.xpose.msra.mxu0 %v7425_v43 }
0x2282   :  { %10968 = vmatprep.subr.msk.bf16.mxu0 %vm366_vm2, %v16280_v3  ;;  %v10646_v27 = vpop.f32.mrf.mxu0  ;;  %v8042_v3 = vsel %vm366_vm2, %v16302_v49, 0 }
0x2283   :  { %v7111_v41 = vpack.c.bf16 %v10646_v27, %v10645_v4 }
0x2284   :  { %v7064_v38 = vpop.f32.mrf.mxu0 }
0x2285   :  { %v7110_v28 = vpack.c.bf16 %v7064_v38, %v7061_v21  ;;  %v16473_v21 = vld [vmem:[%s17331_s1 + $0x80] sm:$0xff] }
0x2286   :  { %v10649_v63 = vpop.f32.mrf.mxu0 }
0x2287   :  { %10661 = vmatprep.mubr.msk.bf16.mxu0 %vm366_vm2, %v7110_v28  ;;  %v16483_v28 = vld [vmem:[%s17331_s1 + $0x98] sm:$0xff] }
0x2288   :  { %v7077_v59 = vpop.f32.mrf.mxu0  ;;  %10662 = vmatmul.mubr.msk.bf16.gmra.mxu0 %vm366_vm2, %v7111_v41 }
0x2289   :  { %10706 = vmatpush3.bf16.xpose.msra.mxu0 %v7422_v14 }
0x228a   :  { %10970 = vmatprep.subr.msk.bf16.mxu0 %vm366_vm2, %v16302_v49  ;;  %v10650_v31 = vpop.f32.mrf.mxu0 }
0x228b   :  { %v7113_v33 = vpack.c.bf16 %v10650_v31, %v10649_v63  ;;  %v16491_v63 = vld [vmem:[%s17331_s1 + $0x88] sm:$0xff] }
0x228c   :  { %v7080_v16 = vpop.f32.mrf.mxu0 }
0x228d   :  { %v7112_v44 = vpack.c.bf16 %v7080_v16, %v7077_v59  ;;  %v16501_v16 = vld [vmem:[%s17331_s1 + $0xb0] sm:$0xff] }
0x228e   :  { %v10653_v20 = vpop.f32.mrf.mxu0 }
0x228f   :  { %10665 = vmatprep.mubr.msk.bf16.mxu0 %vm366_vm2, %v7112_v44 }
0x2290   :  { %v7093_v51 = vpop.f32.mrf.mxu0  ;;  %10666 = vmatmul.mubr.msk.bf16.gmra.mxu0 %vm366_vm2, %v7113_v33 }
0x2292   :  { %v10654_v58 = vpop.f32.mrf.mxu0 }
0x2293   :  { %v7115_v15 = vpack.c.bf16 %v10654_v58, %v10653_v20  ;;  %v16509_v20 = vld [vmem:[%s17331_s1 + $0xb8] sm:$0xff] }
0x2294   :  { %v7096_v62 = vpop.f32.mrf.mxu0 }
0x2295   :  { %v7114_v5 = vpack.c.bf16 %v7096_v62, %v7093_v51  ;;  %v16518_v62 = vld [vmem:[%s17331_s1 + $0xa0] sm:$0xff] }
0x2297   :  { %10669 = vmatprep.mubr.msk.bf16.mxu0 %vm366_vm2, %v7114_v5 }
0x2298   :  { %10670 = vmatmul.mubr.msk.bf16.gmra.mxu0 %vm366_vm2, %v7115_v15 }
0x2299   :  { %10707 = vmatprep.mubr.msk.bf16.mxu0 %vm366_vm2, %v16286_v52  ;;  %v8033_v52 = vsel %vm366_vm2, %v16304_v22, 0 }
0x22a0   :  { %10708 = vmatmul.mubr.msk.bf16.vlgmr.msra.gmra.mxu0 %vm366_vm2, %v16284_v45  ;;  %v8036_v45 = vsel %vm366_vm2, %v16306_v12, 0 }
0x22a1   :  { %10774 = vmatpush3.bf16.xpose.msra.mxu0 %v8042_v3  ;;  %10711 = vmatprep.mubr.msk.bf16.mxu0 %vm366_vm2, %v16290_v30  ;;  %v8027_v30 = vsel %vm366_vm2, %v16308_v0, 0  ;;  %v16527_v3 = vld [vmem:[%s17331_s1 + $0xa8] sm:$0xff] }
0x22a2   :  { %10971 = vmatprep.subr.msk.bf16.mxu0 %vm366_vm2, %v16300_v6 }
0x22a8   :  { %10712 = vmatmul.mubr.msk.bf16.gmra.mxu0 %vm366_vm2, %v16288_v34  ;;  %v8030_v34 = vsel %vm366_vm2, %v16310_v7, 0 }
0x22a9   :  { %10776 = vmatpush3.bf16.xpose.msra.mxu0 %v8039_v55  ;;  %10715 = vmatprep.mubr.msk.bf16.mxu0 %vm366_vm2, %v16294_v57  ;;  %v8021_v57 = vsel %vm366_vm2, %v16312_v13, 0 }
0x22aa   :  { %10972 = vmatprep.subr.msk.bf16.mxu0 %vm366_vm2, %v16306_v12 }
0x22b0   :  { %10716 = vmatmul.mubr.msk.bf16.gmra.mxu0 %vm366_vm2, %v16292_v17  ;;  %v8024_v17 = vsel %vm366_vm2, %v16314_v53, 0 }
0x22b1   :  { %10778 = vmatpush3.bf16.xpose.msra.mxu0 %v8036_v45  ;;  %10719 = vmatprep.mubr.msk.bf16.mxu0 %vm366_vm2, %v16298_v11 }
0x22b2   :  { %10973 = vmatprep.subr.msk.bf16.mxu0 %vm366_vm2, %v16304_v22 }
0x22b8   :  { %10720 = vmatmul.mubr.msk.bf16.gmra.mxu0 %vm366_vm2, %v16296_v54 }
0x22b9   :  { %10780 = vmatpush3.bf16.xpose.msra.mxu0 %v8033_v52  ;;  %10789 = vmatprep.mubr.msk.bf16.mxu0 %vm366_vm2, %v16318_v35  ;;  %v16536_v52 = vld [vmem:[%s17331_s1 + $0xd0] sm:$0xff] }
0x22ba   :  { %10974 = vmatprep.subr.msk.bf16.mxu0 %vm366_vm2, %v16310_v7 }
0x22c1   :  { %10782 = vmatpush3.bf16.xpose.msra.mxu0 %v8030_v34 }
0x22c2   :  { %10975 = vmatprep.subr.msk.bf16.mxu0 %vm366_vm2, %v16308_v0 }
0x22c9   :  { %10784 = vmatpush3.bf16.xpose.msra.mxu0 %v8027_v30 }
0x22ca   :  { %10976 = vmatprep.subr.msk.bf16.mxu0 %vm366_vm2, %v16314_v53 }
0x22d1   :  { %10786 = vmatpush3.bf16.xpose.msra.mxu0 %v8024_v17  ;;  %v16545_v17 = vld [vmem:[%s17331_s1 + $0xd8] sm:$0xff] }
0x22d2   :  { %10977 = vmatprep.subr.msk.bf16.mxu0 %vm366_vm2, %v16312_v13 }
0x22d9   :  { %10788 = vmatpush3.bf16.xpose.msra.mxu0 %v8021_v57 }
0x22e0   :  { %10790 = vmatmul.mubr.msk.bf16.vlgmr.msra.gmra.mxu0 %vm366_vm2, %v16316_v24 }
0x22e1   :  { %10793 = vmatprep.mubr.msk.bf16.mxu0 %vm366_vm2, %v16322_v10 }
0x22e8   :  { %10794 = vmatmul.mubr.msk.bf16.gmra.mxu0 %vm366_vm2, %v16320_v56 }
0x22e9   :  { %10797 = vmatprep.mubr.msk.bf16.mxu0 %vm366_vm2, %v16326_v8 }
0x22f0   :  { %10798 = vmatmul.mubr.msk.bf16.gmra.mxu0 %vm366_vm2, %v16324_v23 }
0x22f1   :  { %10801 = vmatprep.mubr.msk.bf16.mxu0 %vm366_vm2, %v16330_v2  ;;  %v16465_v2 = vld [vmem:[%s17331_s1 + $0x90] sm:$0xff] }
0x22f8   :  { %10802 = vmatmul.mubr.msk.bf16.gmra.mxu0 %vm366_vm2, %v16328_v61 }
0x2310   :  { %v16430_v54 = vpop.f32.mrf.mxu0 }
0x2312   :  { %v16432_v11 = vpop.f32.mrf.mxu0 }
0x2314   :  { %v16434_v6 = vpop.f32.mrf.mxu0 }
0x2316   :  { %v16436_v49 = vpop.f32.mrf.mxu0 }
0x2317   :  { %17544 = vst [vmem:[#allocation10_spill] sm:$0xff] %v16436_v49 }
0x2348   :  { %v16438_v22 = vpop.f32.mrf.mxu0 }
0x2349   :  { %17545 = vst [vmem:[#allocation17_spill] sm:$0xff] %v16438_v22 }
0x234a   :  { %v16440_v12 = vpop.f32.mrf.mxu0 }
0x234b   :  { %17546 = vst [vmem:[#allocation8_spill] sm:$0xff] %v16440_v12 }
0x234c   :  { %v16442_v0 = vpop.f32.mrf.mxu0 }
0x234d   :  { %17547 = vst [vmem:[#allocation26_spill] sm:$0xff] %v16442_v0 }
0x234e   :  { %v16444_v7 = vpop.f32.mrf.mxu0 }
0x234f   :  { %17548 = vst [vmem:[#allocation31_spill] sm:$0xff] %v16444_v7 }
0x2350   :  { %v16446_v13 = vpop.f32.mrf.mxu0 }
0x2351   :  { %17549 = vst [vmem:[#allocation22_spill] sm:$0xff] %v16446_v13 }
0x2352   :  { %v16448_v53 = vpop.f32.mrf.mxu0 }
0x2353   :  { %17550 = vst [vmem:[#allocation20_spill] sm:$0xff] %v16448_v53 }
0x2354   :  { %v16450_v24 = vpop.f32.mrf.mxu0 }
0x2355   :  { %17551 = vst [vmem:[#allocation11_spill] sm:$0xff] %v16450_v24 }
0x2356   :  { %v16452_v35 = vpop.f32.mrf.mxu0 }
0x2357   :  { %17552 = vst [vmem:[#allocation18_spill] sm:$0xff] %v16452_v35 }
0x2358   :  { %v16454_v56 = vpop.f32.mrf.mxu0 }
0x2359   :  { %17553 = vst [vmem:[#allocation21_spill] sm:$0xff] %v16454_v56 }
0x235a   :  { %v16456_v10 = vpop.f32.mrf.mxu0 }
0x235b   :  { %17554 = vst [vmem:[#allocation24_spill] sm:$0xff] %v16456_v10 }
0x235c   :  { %v16458_v23 = vpop.f32.mrf.mxu0 }
0x235d   :  { %17555 = vst [vmem:[#allocation25_spill] sm:$0xff] %v16458_v23 }
0x235e   :  { %v16460_v8 = vpop.f32.mrf.mxu0 }
0x235f   :  { %17556 = vst [vmem:[#allocation28_spill] sm:$0xff] %v16460_v8 }
0x2360   :  { %v10709_v61 = vpop.f32.mrf.mxu0 }
0x2361   :  { %v16468_v19 = vadd.f32 %v16465_v2, %v10709_v61 }
0x2362   :  { %v7479_v4 = vpop.f32.mrf.mxu0 }
0x2363   :  { %v16476_v43 = vadd.f32 %v16473_v21, %v7479_v4  ;;  %7546 = vmax.xlane.f32.xlu0 %v16468_v19  ;;  %v16554_v4 = vld [vmem:[%s17331_s1 + $0xc0] sm:$0xff] }
0x2364   :  { %v10710_v27 = vpop.f32.mrf.mxu0 }
0x2365   :  { %7542 = vmax.xlane.f32.xlu1 %v16476_v43  ;;  %v16486_v41 = vadd.f32 %v16483_v28, %v10710_v27 }
0x2366   :  { %v7482_v38 = vpop.f32.mrf.mxu0 }
0x2367   :  { %v16494_v59 = vadd.f32 %v16491_v63, %v7482_v38 }
0x2368   :  { %v10713_v14 = vpop.f32.mrf.mxu0 }
0x2369   :  { %7544 = vmax.xlane.f32.xlu0 %v16494_v59  ;;  %7548 = vmax.xlane.f32.xlu1 %v16486_v41  ;;  %v16504_v44 = vadd.f32 %v16501_v16, %v10713_v14  ;;  %v16563_v14 = vld [vmem:[%s17331_s1 + $0xc8] sm:$0xff] }
0x236a   :  { %v7495_v31 = vpop.f32.mrf.mxu0 }
0x236b   :  { %v16521_v5 = vadd.f32 %v16518_v62, %v7495_v31 }
0x236c   :  { %v10714_v33 = vpop.f32.mrf.mxu0 }
0x236d   :  { %v16512_v51 = vadd.f32 %v16509_v20, %v10714_v33  ;;  %7554 = vmax.xlane.f32.xlu0 %v16504_v44  ;;  %v16572_v33 = vld [vmem:[%s17331_s1 + $0xf0] sm:$0xff] }
0x236e   :  { %v7498_v58 = vpop.f32.mrf.mxu0 }
0x236f   :  { %7556 = vmax.xlane.f32.xlu1 %v16512_v51  ;;  %v16530_v55 = vadd.f32 %v16527_v3, %v7498_v58 }
0x2370   :  { %v10717_v15 = vpop.f32.mrf.mxu0 }
0x2371   :  { %7550 = vmax.xlane.f32.xlu0 %v16521_v5  ;;  %v16539_v34 = vadd.f32 %v16536_v52, %v10717_v15 }
0x2372   :  { %v7511_v45 = vpop.f32.mrf.mxu0 }
0x2373   :  { %7552 = vmax.xlane.f32.xlu1 %v16530_v55  ;;  %v16557_v27 = vadd.f32 %v16554_v4, %v7511_v45  ;;  %v16582_v45 = vld [vmem:[%s17331_s1 + $0xe0] sm:$0xff] }
0x2374   :  { %v10718_v30 = vpop.f32.mrf.mxu0 }
0x2375   :  { %v16548_v57 = vadd.f32 %v16545_v17, %v10718_v30  ;;  %7562 = vmax.xlane.f32.xlu0 %v16539_v34 }
0x2376   :  { %v7514_v61 = vpop.f32.mrf.mxu0 }
0x2377   :  { %7564 = vmax.xlane.f32.xlu1 %v16548_v57  ;;  %v16566_v31 = vadd.f32 %v16563_v14, %v7514_v61 }
0x2378   :  { %v10721_v38 = vpop.f32.mrf.mxu0 }
0x2379   :  { %7558 = vmax.xlane.f32.xlu0 %v16557_v27  ;;  %v16575_v58 = vadd.f32 %v16572_v33, %v10721_v38  ;;  %v16599_v38 = vld [vmem:[%s17331_s1 + $0xf8] sm:$0xff] }
0x237a   :  { %v7527_v15 = vpop.f32.mrf.mxu0 }
0x237b   :  { %7560 = vmax.xlane.f32.xlu1 %v16566_v31  ;;  %v16585_v30 = vadd.f32 %v16582_v45, %v7527_v15 }
0x237c   :  { %v10722_v61 = vpop.f32.mrf.mxu0 }
0x237d   :  { %7570 = vmax.xlane.f32.xlu0 %v16575_v58  ;;  %v16602_v15 = vadd.f32 %v16599_v38, %v10722_v61 }
0x237e   :  { %v7530_v36 = vpop.f32.mrf.mxu0 }
0x237f   :  { %v16611_v50 = vadd.f32 %v16608_v1, %v7530_v36 }
0x2381   :  { %7566 = vmax.xlane.f32.xlu0 %v16585_v30 }
0x238c   :  { %7700 = vrot.lane.b32.xlu1 %v15694_v60, %s11970_s29 }
0x2397   :  { %7704 = vrot.lane.b32.xlu0 %v15686_v48, %s11970_s29 }
0x239b   :  { %7702 = vrot.lane.b32.xlu0 %v15682_v46, %s11970_s29 }
0x239f   :  { %7696 = vrot.lane.b32.xlu0 %v15700_v29, %s11970_s29 }
0x23b0   :  { %7572 = vmax.xlane.f32.xlu1 %v16602_v15 }
0x23b4   :  { %7568 = vmax.xlane.f32.xlu1 %v16611_v50 }
0x23c5   :  { %7698 = vrot.lane.b32.xlu1 %v15690_v37, %s11970_s29 }
0x23ec   :  { %v7547_v47 = vpop.xlane.xlu0 %7546 }
0x23ed   :  { %v7576_v61 = vsub.f32 %v16468_v19, %v7547_v47 }
0x23ee   :  { %v7543_v39 = vpop.xlane.xlu1 %7542 }
0x23ef   :  { %v7594_v40 = vmul.f32 1.442695, %v7576_v61  ;;  %v7574_v32 = vsub.f32 %v16476_v43, %v7543_v39 }
0x23f1   :  { %11728 = vpow2.f32 %v7594_v40  ;;  %v7590_v42 = vmul.f32 1.442695, %v7574_v32 }
0x23f2   :  { %v7545_v18 = vpop.xlane.xlu0 %7544  ;;  %v7549_v8 = vpop.xlane.xlu1 %7548 }
0x23f3   :  { %v7577_v23 = vsub.f32 %v16486_v41, %v7549_v8  ;;  %11730 = vpow2.f32 %v7590_v42  ;;  %v7575_v36 = vsub.f32 %v16494_v59, %v7545_v18 }
0x23f5   :  { %v7596_v10 = vmul.f32 1.442695, %v7577_v23  ;;  %v7592_v53 = vmul.f32 1.442695, %v7575_v36 }
0x23f6   :  { %v7555_v56 = vpop.xlane.xlu0 %7554 }
0x23f7   :  { %v7580_v35 = vsub.f32 %v16504_v44, %v7555_v56  ;;  %11732 = vpow2.f32 %v7596_v10 }
0x23f8   :  { %v7557_v24 = vpop.xlane.xlu1 %7556 }
0x23f9   :  { %v7602_v47 = vmul.f32 1.442695, %v7580_v35  ;;  %v7581_v39 = vsub.f32 %v16512_v51, %v7557_v24 }
0x23fa   :  { %v7551_v19 = vpop.xlane.xlu0 %7550 }
0x23fb   :  { %11734 = vpow2.f32 %v7602_v47  ;;  %v7578_v32 = vsub.f32 %v16521_v5, %v7551_v19  ;;  %v7604_v43 = vmul.f32 1.442695, %v7581_v39 }
0x23fc   :  { %v7553_v40 = vpop.xlane.xlu1 %7552  ;;  %11736 = vpow2.f32 %v7592_v53 }
0x23fd   :  { %v7598_v8 = vmul.f32 1.442695, %v7578_v32  ;;  %v7579_v42 = vsub.f32 %v16530_v55, %v7553_v40 }
0x23fe   :  { %v16624_v18 = vpop.eup %11728  ;;  %v7563_v23 = vpop.xlane.xlu0 %7562 }
0x23ff   :  { %11738 = vpow2.f32 %v7598_v8  ;;  %v7600_v56 = vmul.f32 1.442695, %v7579_v42  ;;  %v7584_v10 = vsub.f32 %v16539_v34, %v7563_v23  ;;  %7626 = vadd.xlane.f32.xlu1 %v16624_v18 }
0x2400   :  { %v7565_v35 = vpop.xlane.xlu1 %7564  ;;  %v16628_v24 = vpop.eup %11730 }
0x2401   :  { %11740 = vpow2.f32 %v7600_v56  ;;  %v7610_v53 = vmul.f32 1.442695, %v7584_v10  ;;  %v7585_v55 = vsub.f32 %v16548_v57, %v7565_v35 }
0x2402   :  { %v7559_v41 = vpop.xlane.xlu0 %7558  ;;  %11742 = vpow2.f32 %v7604_v43 }
0x2403   :  { %v7582_v59 = vsub.f32 %v16557_v27, %v7559_v41  ;;  %7622 = vadd.xlane.f32.xlu1 %v16628_v24  ;;  %11744 = vpow2.f32 %v7610_v53  ;;  %v7612_v32 = vmul.f32 1.442695, %v7585_v55 }
0x2404   :  { %v7561_v44 = vpop.xlane.xlu1 %7560  ;;  %v16633_v5 = vpop.eup %11732 }
0x2405   :  { %v7583_v51 = vsub.f32 %v16566_v31, %v7561_v44  ;;  %v7606_v61 = vmul.f32 1.442695, %v7582_v59  ;;  %v10791_v44 = vpop.f32.mrf.mxu0 }
0x2406   :  { %v7571_v34 = vpop.xlane.xlu0 %7570 }
0x2407   :  { %v7608_v36 = vmul.f32 1.442695, %v7583_v51  ;;  %v7588_v47 = vsub.f32 %v16575_v58, %v7571_v34  ;;  %7628 = vadd.xlane.f32.xlu1 %v16633_v5  ;;  %v8078_v51 = vpop.f32.mrf.mxu0 }
0x2408   :  { %v16638_v19 = vpop.eup %11734  ;;  %v7701_v56 = vpop.permute.xlu1 %7700 }
0x2409   :  { %11746 = vpow2.f32 %v7608_v36  ;;  %v7618_v27 = vmul.f32 1.442695, %v7588_v47  ;;  %7634 = vadd.xlane.f32.xlu0 %v16638_v19  ;;  %v16641_v39 = vpop.eup %11736  ;;  %v10792_v55 = vpop.f32.mrf.mxu0 }
0x240a   :  { %v7567_v31 = vpop.xlane.xlu0 %7566  ;;  %11748 = vpow2.f32 %v7606_v61 }
0x240b   :  { %v7586_v57 = vsub.f32 %v16585_v30, %v7567_v31  ;;  %7624 = vadd.xlane.f32.xlu1 %v16641_v39  ;;  %11750 = vpow2.f32 %v7618_v27  ;;  %v8081_v34 = vpop.f32.mrf.mxu0 }
0x240c   :  { %v16645_v40 = vpop.eup %11738  ;;  %11752 = vpow2.f32 %v7612_v32 }
0x240d   :  { %v7614_v58 = vmul.f32 1.442695, %v7586_v57  ;;  %7630 = vadd.xlane.f32.xlu0 %v16645_v40  ;;  %v10795_v61 = vpop.f32.mrf.mxu0 }
0x240e   :  { %v16648_v8 = vpop.eup %11740  ;;  %v7705_v42 = vpop.permute.xlu0 %7704 }
0x240f   :  { %10727 = vmatprep.subr.bf16.mxu1 %v7705_v42  ;;  %7632 = vadd.xlane.f32.xlu1 %v16648_v8  ;;  %v16651_v23 = vpop.eup %11742  ;;  %11754 = vpow2.f32 %v7614_v58  ;;  %v8094_v36 = vpop.f32.mrf.mxu0 }
0x2410   :  { %10728 = vmatpush3.bf16.msra.mxu1 %v7705_v42  ;;  %v16654_v43 = vpop.eup %11744 }
0x2411   :  { %7636 = vadd.xlane.f32.xlu0 %v16651_v23  ;;  %v10796_v27 = vpop.f32.mrf.mxu0 }
0x2412   :  { %v7703_v30 = vpop.permute.xlu0 %7702 }
0x2413   :  { %10729 = vmatprep.subr.bf16.mxu1 %v7703_v30  ;;  %v8097_v58 = vpop.f32.mrf.mxu0 }
0x2414   :  { %10730 = vmatpush3.bf16.msra.mxu1 %v7703_v30 }
0x2415   :  { %7642 = vadd.xlane.f32.xlu0 %v16654_v43  ;;  %10731 = vmatprep.subr.bf16.mxu1 %v7701_v56  ;;  %v10799_v13 = vpop.f32.mrf.mxu0 }
0x2416   :  { %v16657_v10 = vpop.eup %11746  ;;  %v7697_v7 = vpop.permute.xlu0 %7696 }
0x2417   :  { %7640 = vadd.xlane.f32.xlu1 %v16657_v10  ;;  %v16660_v35 = vpop.eup %11748  ;;  %v8110_v0 = vpop.f32.mrf.mxu0 }
0x2418   :  { %10732 = vmatpush3.bf16.msra.mxu1 %v7701_v56  ;;  %v16663_v41 = vpop.eup %11750 }
0x2419   :  { %7638 = vadd.xlane.f32.xlu0 %v16660_v35  ;;  %v16666_v53 = vpop.eup %11752  ;;  %v10800_v12 = vpop.f32.mrf.mxu0 }
0x241b   :  { %7650 = vadd.xlane.f32.xlu1 %v16663_v41  ;;  %v8113_v49 = vpop.f32.mrf.mxu0 }
0x241c   :  { %v16669_v59 = vpop.eup %11754 }
0x241d   :  { %7644 = vadd.xlane.f32.xlu0 %v16666_v53 }
0x241f   :  { %7646 = vadd.xlane.f32.xlu1 %v16669_v59 }
0x2430   :  { %7694 = vrot.lane.b32.xlu1 %v15672_v25, %s11970_s29 }
0x2439   :  { %v7573_v47 = vpop.xlane.xlu1 %7572 }
0x243a   :  { %v7589_v32 = vsub.f32 %v16602_v15, %v7573_v47  ;;  %v10803_v47 = vpop.f32.mrf.mxu0 }
0x243c   :  { %v7620_v56 = vmul.f32 1.442695, %v7589_v32 }
0x243d   :  { %v7569_v31 = vpop.xlane.xlu1 %7568 }
0x243e   :  { %v7587_v57 = vsub.f32 %v16611_v50, %v7569_v31  ;;  %v16680_v50 = vadd.f32 %v16518_v62, %v8094_v36  ;;  %v16687_v31 = vadd.f32 %v16473_v21, %v8078_v51  ;;  %v16695_v62 = vadd.f32 %v16491_v63, %v8081_v34 }
0x243f   :  { %v16699_v36 = vadd.f32 %v16465_v2, %v10791_v44  ;;  %v16703_v21 = vadd.f32 %v16483_v28, %v10792_v55  ;;  %v16713_v63 = vadd.f32 %v16501_v16, %v10795_v61  ;;  %v16719_v2 = vadd.f32 %v16509_v20, %v10796_v27  ;;  %v8126_v16 = vpop.f32.mrf.mxu0 }
0x2440   :  { %v7616_v42 = vmul.f32 1.442695, %v7587_v57  ;;  %v16725_v28 = vadd.f32 %v16554_v4, %v8110_v0  ;;  %v16743_v20 = vadd.f32 %v16582_v45, %v8126_v16 }
0x2441   :  { %v7699_v30 = vpop.permute.xlu1 %7698  ;;  %v10804_v0 = vpop.f32.mrf.mxu0 }
0x2442   :  { %11756 = vpow2.f32 %v7616_v42  ;;  %10733 = vmatprep.subr.bf16.mxu1 %v7699_v30 }
0x2443   :  { %10734 = vmatpush3.bf16.msra.mxu1 %v7699_v30  ;;  %11758 = vpow2.f32 %v7620_v56 }
0x2444   :  { %10735 = vmatprep.subr.bf16.mxu1 %v7697_v7 }
0x2447   :  { %10736 = vmatpush3.bf16.msra.mxu1 %v7697_v7  ;;  %v16690_v7 = vadd.f32 %v16572_v33, %v10803_v47  ;;  %v16707_v33 = vadd.f32 %v16527_v3, %v8097_v58  ;;  %v16751_v3 = vadd.f32 %v16599_v38, %v10804_v0 }
0x244f   :  { %v16676_v22 = vpop.eup %11756 }
0x2450   :  { %7648 = vadd.xlane.f32.xlu0 %v16676_v22  ;;  %v16682_v15 = vpop.eup %11758 }
0x2454   :  { %8149 = vmax.xlane.f32.xlu1 %v16680_v50  ;;  %7652 = vadd.xlane.f32.xlu0 %v16682_v15 }
0x2458   :  { %8169 = vmax.xlane.f32.xlu1 %v16690_v7  ;;  %8141 = vmax.xlane.f32.xlu0 %v16687_v31 }
0x245c   :  { %8143 = vmax.xlane.f32.xlu0 %v16695_v62 }
0x2460   :  { %8145 = vmax.xlane.f32.xlu0 %v16699_v36 }
0x2464   :  { %8147 = vmax.xlane.f32.xlu0 %v16703_v21 }
0x2468   :  { %8151 = vmax.xlane.f32.xlu0 %v16707_v33 }
0x2469   :  { %8307 = vrot.lane.b32.xlu1 %v15676_v9, %s11971_s27  ;;  %v16731_v9 = vadd.f32 %v16563_v14, %v8113_v49 }
0x246c   :  { %8153 = vmax.xlane.f32.xlu0 %v16713_v63 }
0x246d   :  { %8303 = vrot.lane.b32.xlu1 %v15686_v48, %s11971_s27  ;;  %v16735_v48 = vadd.f32 %v16536_v52, %v10799_v13 }
0x2470   :  { %8155 = vmax.xlane.f32.xlu0 %v16719_v2 }
0x2471   :  { %8301 = vrot.lane.b32.xlu1 %v15682_v46, %s11971_s27  ;;  %v16739_v46 = vadd.f32 %v16545_v17, %v10800_v12 }
0x2474   :  { %8157 = vmax.xlane.f32.xlu0 %v16725_v28 }
0x2475   :  { %8295 = vrot.lane.b32.xlu1 %v15700_v29, %s11971_s27  ;;  %v8129_v29 = vpop.f32.mrf.mxu0 }
0x2476   :  { %v16747_v49 = vadd.f32 %v16608_v1, %v8129_v29 }
0x2478   :  { %8159 = vmax.xlane.f32.xlu0 %v16731_v9 }
0x247c   :  { %8161 = vmax.xlane.f32.xlu0 %v16735_v48 }
0x2480   :  { %8163 = vmax.xlane.f32.xlu0 %v16739_v46 }
0x2484   :  { %8165 = vmax.xlane.f32.xlu0 %v16743_v20 }
0x2488   :  { %8167 = vmax.xlane.f32.xlu0 %v16747_v49  ;;  %v7627_v13 = vpop.xlane.xlu1 %7626 }
0x248c   :  { %8171 = vmax.xlane.f32.xlu0 %v16751_v3  ;;  %v7623_v12 = vpop.xlane.xlu1 %7622 }
0x248d   :  { %11760 = vrcp.f32 %v7623_v12 }
0x2490   :  { %v7629_v52 = vpop.xlane.xlu1 %7628 }
0x2492   :  { %v7635_v17 = vpop.xlane.xlu0 %7634 }
0x2494   :  { %v7625_v4 = vpop.xlane.xlu1 %7624 }
0x2495   :  { %11762 = vrcp.f32 %v7625_v4 }
0x2496   :  { %v7631_v14 = vpop.xlane.xlu0 %7630  ;;  %11764 = vrcp.f32 %v7629_v52 }
0x2498   :  { %v7633_v45 = vpop.xlane.xlu1 %7632 }
0x2499   :  { %11766 = vrcp.f32 %v7633_v45 }
0x249a   :  { %v7637_v44 = vpop.xlane.xlu0 %7636  ;;  %11768 = vrcp.f32 %v7627_v13  ;;  %v11761_v51 = vpop.eup %11760 }
0x249b   :  { %11770 = vrcp.f32 %v7631_v14  ;;  %v7670_v61 = vmul.f32 %v11761_v51, %v16628_v24 }
0x249c   :  { %11772 = vrcp.f32 %v7637_v44 }
0x249e   :  { %v7643_v1 = vpop.xlane.xlu0 %7642 }
0x24a0   :  { %v7641_v55 = vpop.xlane.xlu1 %7640 }
0x24a2   :  { %v11763_v38 = vpop.eup %11762  ;;  %v7639_v34 = vpop.xlane.xlu0 %7638  ;;  %8305 = vrot.lane.b32.xlu0 %v15678_v26, %s11971_s27  ;;  %v6046_v26 = vld [vmem:[%s17328_s2 + $0xc0] sm:$0xff] }
0x24a3   :  { %v7671_v27 = vmul.f32 %v11763_v38, %v16641_v39  ;;  %11774 = vrcp.f32 %v7639_v34  ;;  %v11765_v58 = vpop.eup %11764  ;;  %v7823_v16 = vpack.c.bf16 %v6046_v26, %v6046_v26 }
0x24a4   :  { %v7651_v32 = vpop.xlane.xlu1 %7650  ;;  %11776 = vrcp.f32 %v7635_v17  ;;  %v7673_v47 = vmul.f32 %v11765_v58, %v16633_v5 }
0x24a5   :  { %v7686_v57 = vpack.c.bf16 %v7671_v27, %v7670_v61  ;;  %11778 = vrcp.f32 %v7641_v55 }
0x24a6   :  { %8299 = vrot.lane.b32.xlu0 %v15694_v60, %s11971_s27  ;;  %v7645_v42 = vpop.xlane.xlu0 %7644  ;;  %v11767_v56 = vpop.eup %11766 }
0x24a7   :  { %10739 = vmatprep.mubr.bf16.mxu1 %v7686_v57  ;;  %v11769_v24 = vpop.eup %11768  ;;  %11780 = vrcp.f32 %v7645_v42  ;;  %v7675_v60 = vmul.f32 %v11767_v56, %v16648_v8 }
0x24a8   :  { %v7647_v30 = vpop.xlane.xlu1 %7646  ;;  %v11771_v39 = vpop.eup %11770  ;;  %v7672_v29 = vmul.f32 %v11769_v24, %v16624_v18  ;;  %11782 = vrcp.f32 %v7643_v1 }
0x24a9   :  { %v7674_v13 = vmul.f32 %v11771_v39, %v16645_v40  ;;  %v11773_v52 = vpop.eup %11772  ;;  %11784 = vrcp.f32 %v7647_v30 }
0x24aa   :  { %8297 = vrot.lane.b32.xlu0 %v15690_v37, %s11971_s27  ;;  %v7687_v12 = vpack.c.bf16 %v7673_v47, %v7672_v29  ;;  %v7849_v37 = vsel %vm1277_vm3, %v7823_v16, 0  ;;  %v7677_v18 = vmul.f32 %v11773_v52, %v16651_v23 }
0x24ab   :  { %v7688_v17 = vpack.c.bf16 %v7675_v60, %v7674_v13 }
0x24ac   :  { %v7695_v0 = vpop.permute.xlu1 %7694 }
0x24ad   :  { %10737 = vmatprep.subr.bf16.mxu1 %v7695_v0 }
0x24ae   :  { %10738 = vmatpush3.bf16.msra.mxu1 %v7695_v0 }
0x24af   :  { %10969 = vmatprep.subr.msk.bf16.mxu1 %vm1277_vm3, %v7823_v16 }
0x24b0   :  { %v11775_v5 = vpop.eup %11774 }
0x24b1   :  { %10740 = vmatmul.mubr.bf16.vlgmr.msra.gmra.mxu1 %v7687_v12  ;;  %v11777_v4 = vpop.eup %11776  ;;  %v7678_v14 = vmul.f32 %v11775_v5, %v16660_v35 }
0x24b2   :  { %10743 = vmatprep.mubr.bf16.mxu1 %v7688_v17  ;;  %10756 = vmatpush3.bf16.msra.mxu1 %v7849_v37  ;;  %v11779_v8 = vpop.eup %11778  ;;  %v7676_v45 = vmul.f32 %v11777_v4, %v16638_v19 }
0x24b3   :  { %v7679_v40 = vmul.f32 %v11779_v8, %v16657_v10 }
0x24b4   :  { %v7689_v44 = vpack.c.bf16 %v7677_v18, %v7676_v45  ;;  %v11781_v1 = vpop.eup %11780 }
0x24b5   :  { %v7690_v51 = vpack.c.bf16 %v7679_v40, %v7678_v14  ;;  %v11783_v55 = vpop.eup %11782  ;;  %v7681_v38 = vmul.f32 %v11781_v1, %v16666_v53 }
0x24b6   :  { %v7680_v34 = vmul.f32 %v11783_v55, %v16654_v43  ;;  %v11785_v57 = vpop.eup %11784 }
0x24b7   :  { %v7682_v43 = vmul.f32 %v11785_v57, %v16669_v59 }
0x24b8   :  { %v7691_v61 = vpack.c.bf16 %v7681_v38, %v7680_v34 }
0x24b9   :  { %10744 = vmatmul.mubr.bf16.gmra.mxu1 %v7689_v44 }
0x24ba   :  { %10747 = vmatprep.mubr.bf16.mxu1 %v7690_v51 }
0x24c1   :  { %10748 = vmatmul.mubr.bf16.gmra.mxu1 %v7691_v61 }
0x24d9   :  { %v7649_v23 = vpop.xlane.xlu0 %7648 }
0x24da   :  { %11786 = vrcp.f32 %v7649_v23 }
0x24db   :  { %11788 = vrcp.f32 %v7651_v32 }
0x24dd   :  { %v7653_v35 = vpop.xlane.xlu0 %7652  ;;  %v8150_v19 = vpop.xlane.xlu1 %8149 }
0x24de   :  { %11790 = vrcp.f32 %v7653_v35  ;;  %v8177_v37 = vsub.f32 %v16680_v50, %v8150_v19 }
0x24e0   :  { %v8197_v4 = vmul.f32 1.442695, %v8177_v37 }
0x24e1   :  { %v8142_v10 = vpop.xlane.xlu0 %8141  ;;  %v8170_v27 = vpop.xlane.xlu1 %8169 }
0x24e2   :  { %v8173_v32 = vsub.f32 %v16687_v31, %v8142_v10 }
0x24e4   :  { %v8189_v13 = vmul.f32 1.442695, %v8173_v32 }
0x24e5   :  { %v8144_v58 = vpop.xlane.xlu0 %8143  ;;  %v16777_v42 = vpop.permute.xlu1 %8307 }
0x24e6   :  { %10805 = vmatprep.subr.bf16.mxu1 %v16777_v42  ;;  %v8174_v12 = vsub.f32 %v16695_v62, %v8144_v58 }
0x24e7   :  { %v11787_v53 = vpop.eup %11786 }
0x24e8   :  { %v7683_v26 = vmul.f32 %v11787_v53, %v16676_v22  ;;  %v11789_v30 = vpop.eup %11788  ;;  %v8191_v52 = vmul.f32 1.442695, %v8174_v12 }
0x24e9   :  { %v8146_v56 = vpop.xlane.xlu0 %8145  ;;  %v7684_v0 = vmul.f32 %v11789_v30, %v16663_v41 }
0x24ea   :  { %v8175_v24 = vsub.f32 %v16699_v36, %v8146_v56  ;;  %v7692_v39 = vpack.c.bf16 %v7683_v26, %v7682_v43 }
0x24eb   :  { %v11791_v47 = vpop.eup %11790 }
0x24ec   :  { %v8193_v16 = vmul.f32 1.442695, %v8175_v24  ;;  %10751 = vmatprep.mubr.bf16.mxu1 %v7692_v39  ;;  %v7685_v60 = vmul.f32 %v11791_v47, %v16682_v15 }
0x24ed   :  { %v8148_v29 = vpop.xlane.xlu0 %8147 }
0x24ee   :  { %11792 = vpow2.f32 %v8193_v16  ;;  %v8176_v59 = vsub.f32 %v16703_v21, %v8148_v29  ;;  %v7693_v22 = vpack.c.bf16 %v7685_v60, %v7684_v0  ;;  %v16848_v0 = vpop.f32.mrf.mxu1 }
0x24ef   :  { %11794 = vpow2.f32 %v8189_v13 }
0x24f0   :  { %10752 = vmatmul.mubr.bf16.gmra.mxu1 %v7693_v22  ;;  %v8195_v36 = vmul.f32 1.442695, %v8176_v59  ;;  %v16852_v60 = vpop.f32.mrf.mxu1 }
0x24f1   :  { %v8152_v31 = vpop.xlane.xlu0 %8151 }
0x24f2   :  { %11796 = vpow2.f32 %v8195_v36  ;;  %v8178_v41 = vsub.f32 %v16707_v33, %v8152_v31  ;;  %v8187_v33 = vsub.f32 %v16690_v7, %v8170_v27  ;;  %v16854_v29 = vpop.f32.mrf.mxu1 }
0x24f3   :  { %11798 = vpow2.f32 %v8191_v52 }
0x24f4   :  { %v8199_v8 = vmul.f32 1.442695, %v8178_v41  ;;  %v8217_v1 = vmul.f32 1.442695, %v8187_v33  ;;  %v16856_v13 = vpop.f32.mrf.mxu1 }
0x24f5   :  { %v8154_v17 = vpop.xlane.xlu0 %8153 }
0x24f6   :  { %v8179_v15 = vsub.f32 %v16713_v63, %v8154_v17  ;;  %v16858_v59 = vpop.f32.mrf.mxu1 }
0x24f8   :  { %v8201_v5 = vmul.f32 1.442695, %v8179_v15  ;;  %v16860_v22 = vpop.f32.mrf.mxu1 }
0x24f9   :  { %v8156_v21 = vpop.xlane.xlu0 %8155 }
0x24fa   :  { %11800 = vpow2.f32 %v8201_v5  ;;  %v8180_v62 = vsub.f32 %v16719_v2, %v8156_v21  ;;  %v16862_v12 = vpop.f32.mrf.mxu1 }
0x24fb   :  { %v16792_v18 = vpop.eup %11792  ;;  %11802 = vpow2.f32 %v8197_v4 }
0x24fc   :  { %8225 = vadd.xlane.f32.xlu0 %v16792_v18  ;;  %11804 = vpow2.f32 %v8199_v8  ;;  %v8203_v14 = vmul.f32 1.442695, %v8180_v62  ;;  %v16795_v45 = vpop.eup %11794  ;;  %v16864_v31 = vpop.f32.mrf.mxu1 }
0x24fd   :  { %v8158_v50 = vpop.xlane.xlu0 %8157 }
0x24fe   :  { %11806 = vpow2.f32 %v8203_v14  ;;  %v8181_v38 = vsub.f32 %v16725_v28, %v8158_v50  ;;  %v16866_v36 = vpop.f32.mrf.mxu1 }
0x24ff   :  { %v16800_v44 = vpop.eup %11796 }
0x2500   :  { %8221 = vadd.xlane.f32.xlu0 %v16795_v45  ;;  %v16803_v55 = vpop.eup %11798  ;;  %v8205_v35 = vmul.f32 1.442695, %v8181_v38  ;;  %v16868_v37 = vpop.f32.mrf.mxu1 }
0x2501   :  { %v8160_v63 = vpop.xlane.xlu0 %8159 }
0x2502   :  { %v8182_v40 = vsub.f32 %v16731_v9, %v8160_v63  ;;  %v16870_v52 = vpop.f32.mrf.mxu1 }
0x2504   :  { %v8207_v2 = vmul.f32 1.442695, %v8182_v40  ;;  %8227 = vadd.xlane.f32.xlu0 %v16800_v44 }
0x2505   :  { %v8162_v51 = vpop.xlane.xlu0 %8161 }
0x2506   :  { %11808 = vpow2.f32 %v8207_v2  ;;  %v8183_v34 = vsub.f32 %v16735_v48, %v8162_v51  ;;  %v8304_v51 = vpop.permute.xlu1 %8303 }
0x2507   :  { %v16807_v61 = vpop.eup %11800  ;;  %11810 = vpow2.f32 %v8217_v1 }
0x2508   :  { %v8209_v7 = vmul.f32 1.442695, %v8183_v34  ;;  %8223 = vadd.xlane.f32.xlu0 %v16803_v55  ;;  %8233 = vadd.xlane.f32.xlu1 %v16807_v61  ;;  %v16811_v23 = vpop.eup %11802 }
0x2509   :  { %v8164_v9 = vpop.xlane.xlu0 %8163  ;;  %v16814_v10 = vpop.eup %11804 }
0x250a   :  { %11812 = vpow2.f32 %v8209_v7  ;;  %v8184_v19 = vsub.f32 %v16739_v46, %v8164_v9 }
0x250b   :  { %11814 = vpow2.f32 %v8205_v35  ;;  %v16819_v57 = vpop.eup %11806 }
0x250c   :  { %8231 = vadd.xlane.f32.xlu0 %v16814_v10  ;;  %8229 = vadd.xlane.f32.xlu1 %v16811_v23  ;;  %v8211_v48 = vmul.f32 1.442695, %v8184_v19 }
0x250d   :  { %v8166_v28 = vpop.xlane.xlu0 %8165 }
0x250e   :  { %v8185_v27 = vsub.f32 %v16743_v20, %v8166_v28  ;;  %11816 = vpow2.f32 %v8211_v48  ;;  %v8302_v28 = vpop.permute.xlu1 %8301 }
0x2510   :  { %8235 = vadd.xlane.f32.xlu1 %v16819_v57  ;;  %v8213_v58 = vmul.f32 1.442695, %v8185_v27 }
0x2511   :  { %v8168_v53 = vpop.xlane.xlu0 %8167 }
0x2512   :  { %v8186_v46 = vsub.f32 %v16747_v49, %v8168_v53  ;;  %11818 = vpow2.f32 %v8213_v58 }
0x2513   :  { %v16823_v43 = vpop.eup %11808 }
0x2514   :  { %v8215_v26 = vmul.f32 1.442695, %v8186_v46  ;;  %8239 = vadd.xlane.f32.xlu0 %v16823_v43  ;;  %v16826_v56 = vpop.eup %11810 }
0x2515   :  { %v8172_v30 = vpop.xlane.xlu0 %8171 }
0x2516   :  { %11820 = vpow2.f32 %v8215_v26  ;;  %v8188_v20 = vsub.f32 %v16751_v3, %v8172_v30  ;;  %v8296_v26 = vpop.permute.xlu1 %8295 }
0x2517   :  { %v16829_v32 = vpop.eup %11812 }
0x2518   :  { %v8219_v24 = vmul.f32 1.442695, %v8188_v20  ;;  %8241 = vadd.xlane.f32.xlu1 %v16829_v32  ;;  %8249 = vadd.xlane.f32.xlu0 %v16826_v56  ;;  %v16833_v49 = vpop.eup %11814 }
0x2519   :  { %v8306_v62 = vpop.permute.xlu0 %8305 }
0x251a   :  { %11822 = vpow2.f32 %v8219_v24 }
0x251b   :  { %v16836_v39 = vpop.eup %11816 }
0x251c   :  { %8237 = vadd.xlane.f32.xlu1 %v16833_v49 }
0x251d   :  { %v8300_v2 = vpop.permute.xlu0 %8299 }
0x251f   :  { %v16839_v47 = vpop.eup %11818 }
0x2520   :  { %8243 = vadd.xlane.f32.xlu1 %v16836_v39 }
0x2521   :  { %v8298_v35 = vpop.permute.xlu0 %8297 }
0x2523   :  { %v16841_v16 = vpop.eup %11820 }
0x2524   :  { %8245 = vadd.xlane.f32.xlu1 %v16839_v47  ;;  %8247 = vadd.xlane.f32.xlu0 %v16841_v16 }
0x2527   :  { %v16845_v3 = vpop.eup %11822 }
0x2528   :  { %8251 = vadd.xlane.f32.xlu1 %v16845_v3 }
0x253a   :  { %8293 = vrot.lane.b32.xlu0 %v15672_v25, %s11971_s27  ;;  %v16872_v25 = vpop.f32.mrf.mxu1 }
0x253c   :  { %v16874_v17 = vpop.f32.mrf.mxu1 }
0x253e   :  { %v16876_v41 = vpop.f32.mrf.mxu1 }
0x2540   :  { %v16878_v15 = vpop.f32.mrf.mxu1 }
0x2542   :  { %v16880_v5 = vpop.f32.mrf.mxu1 }
0x2571   :  { %v10741_v4 = vpop.f32.mrf.mxu1 }
0x2573   :  { %v7752_v21 = vpop.f32.mrf.mxu1 }
0x2575   :  { %v10742_v8 = vpop.f32.mrf.mxu1 }
0x2576   :  { %v7816_v33 = vpack.c.bf16 %v10742_v8, %v10741_v4 }
0x2577   :  { %v7755_v50 = vpop.f32.mrf.mxu1 }
0x2578   :  { %v7815_v14 = vpack.c.bf16 %v7755_v50, %v7752_v21 }
0x2579   :  { %v10745_v63 = vpop.f32.mrf.mxu1 }
0x257a   :  { %10757 = vmatprep.mubr.msk.bf16.mxu1 %vm366_vm2, %v7815_v14 }
0x257b   :  { %v7768_v40 = vpop.f32.mrf.mxu1  ;;  %10758 = vmatmul.mubr.msk.bf16.vlgmr.msra.gmra.mxu1 %vm366_vm2, %v7816_v33 }
0x257c   :  { %10806 = vmatpush3.bf16.msra.mxu1 %v16777_v42 }
0x257d   :  { %10807 = vmatprep.subr.bf16.mxu1 %v8306_v62  ;;  %v10746_v1 = vpop.f32.mrf.mxu1 }
0x257e   :  { %v7818_v7 = vpack.c.bf16 %v10746_v1, %v10745_v63 }
0x257f   :  { %v7771_v38 = vpop.f32.mrf.mxu1 }
0x2580   :  { %v7817_v34 = vpack.c.bf16 %v7771_v38, %v7768_v40  ;;  %10808 = vmatpush3.bf16.msra.mxu1 %v8306_v62 }
0x2581   :  { %10809 = vmatprep.subr.bf16.mxu1 %v8304_v51  ;;  %v10749_v9 = vpop.f32.mrf.mxu1 }
0x2582   :  { %10761 = vmatprep.mubr.msk.bf16.mxu1 %vm366_vm2, %v7817_v34 }
0x2583   :  { %v7784_v19 = vpop.f32.mrf.mxu1  ;;  %10762 = vmatmul.mubr.msk.bf16.gmra.mxu1 %vm366_vm2, %v7818_v7 }
0x2584   :  { %10810 = vmatpush3.bf16.msra.mxu1 %v8304_v51 }
0x2585   :  { %10811 = vmatprep.subr.bf16.mxu1 %v8302_v28  ;;  %v10750_v42 = vpop.f32.mrf.mxu1  ;;  %v8226_v48 = vpop.xlane.xlu0 %8225 }
0x2586   :  { %v7820_v53 = vpack.c.bf16 %v10750_v42, %v10749_v9 }
0x2587   :  { %v7787_v27 = vpop.f32.mrf.mxu1 }
0x2588   :  { %v7819_v58 = vpack.c.bf16 %v7787_v27, %v7784_v19  ;;  %10812 = vmatpush3.bf16.msra.mxu1 %v8302_v28 }
0x2589   :  { %10813 = vmatprep.subr.bf16.mxu1 %v8300_v2  ;;  %v8222_v46 = vpop.xlane.xlu0 %8221 }
0x258a   :  { %10765 = vmatprep.mubr.msk.bf16.mxu1 %vm366_vm2, %v7819_v58 }
0x258b   :  { %10766 = vmatmul.mubr.msk.bf16.gmra.mxu1 %vm366_vm2, %v7820_v53 }
0x258c   :  { %10814 = vmatpush3.bf16.msra.mxu1 %v8300_v2 }
0x258d   :  { %10815 = vmatprep.subr.bf16.mxu1 %v8298_v35  ;;  %v8228_v30 = vpop.xlane.xlu0 %8227 }
0x2590   :  { %10816 = vmatpush3.bf16.msra.mxu1 %v8298_v35 }
0x2591   :  { %10817 = vmatprep.subr.bf16.mxu1 %v8296_v26  ;;  %v8234_v20 = vpop.xlane.xlu1 %8233  ;;  %v8224_v24 = vpop.xlane.xlu0 %8223 }
0x2592   :  { %11824 = vrcp.f32 %v8224_v24 }
0x2593   :  { %11826 = vrcp.f32 %v8222_v46 }
0x2594   :  { %10818 = vmatpush3.bf16.msra.mxu1 %v8296_v26  ;;  %11828 = vrcp.f32 %v8228_v30 }
0x2595   :  { %v8230_v4 = vpop.xlane.xlu1 %8229  ;;  %v8232_v21 = vpop.xlane.xlu0 %8231 }
0x2596   :  { %11830 = vrcp.f32 %v8232_v21 }
0x2597   :  { %11832 = vrcp.f32 %v8230_v4 }
0x2598   :  { %11834 = vrcp.f32 %v8226_v48 }
0x2599   :  { %v8236_v62 = vpop.xlane.xlu1 %8235 }
0x259a   :  { %11836 = vrcp.f32 %v8236_v62 }
0x259d   :  { %v8240_v8 = vpop.xlane.xlu0 %8239 }
0x259f   :  { %v11825_v1 = vpop.eup %11824 }
0x25a0   :  { %v11827_v38 = vpop.eup %11826  ;;  %v8270_v9 = vmul.f32 %v11825_v1, %v16803_v55 }
0x25a1   :  { %v8242_v50 = vpop.xlane.xlu1 %8241  ;;  %v8250_v14 = vpop.xlane.xlu0 %8249  ;;  %v8269_v28 = vmul.f32 %v11827_v38, %v16795_v45 }
0x25a2   :  { %v11829_v42 = vpop.eup %11828 }
0x25a3   :  { %v11831_v27 = vpop.eup %11830  ;;  %v8285_v58 = vpack.c.bf16 %v8270_v9, %v8269_v28  ;;  %v8272_v55 = vmul.f32 %v11829_v42, %v16800_v44 }
0x25a4   :  { %v11833_v53 = vpop.eup %11832  ;;  %v8274_v45 = vmul.f32 %v11831_v27, %v16814_v10 }
0x25a5   :  { %v8238_v63 = vpop.xlane.xlu1 %8237  ;;  %v11835_v26 = vpop.eup %11834  ;;  %v8273_v30 = vmul.f32 %v11833_v53, %v16811_v23 }
0x25a6   :  { %11838 = vrcp.f32 %v8238_v63 }
0x25a7   :  { %11840 = vrcp.f32 %v8234_v20  ;;  %v8271_v20 = vmul.f32 %v11835_v26, %v16792_v18  ;;  %v11837_v4 = vpop.eup %11836 }
0x25a8   :  { %11842 = vrcp.f32 %v8240_v8  ;;  %v8287_v8 = vpack.c.bf16 %v8274_v45, %v8273_v30  ;;  %v8276_v44 = vmul.f32 %v11837_v4, %v16819_v57 }
0x25a9   :  { %v8244_v34 = vpop.xlane.xlu1 %8243  ;;  %v8286_v24 = vpack.c.bf16 %v8272_v55, %v8271_v20 }
0x25aa   :  { %11844 = vrcp.f32 %v8244_v34 }
0x25ad   :  { %v8248_v33 = vpop.xlane.xlu0 %8247  ;;  %v8246_v46 = vpop.xlane.xlu1 %8245 }
0x25ae   :  { %11846 = vrcp.f32 %v8248_v33 }
0x25af   :  { %11848 = vrcp.f32 %v8246_v46 }
0x25b0   :  { %v10753_v40 = vpop.f32.mrf.mxu1  ;;  %11850 = vrcp.f32 %v8242_v50 }
0x25b1   :  { %v8294_v2 = vpop.permute.xlu0 %8293  ;;  %v8252_v21 = vpop.xlane.xlu1 %8251 }
0x25b2   :  { %v7800_v51 = vpop.f32.mrf.mxu1  ;;  %10819 = vmatprep.subr.bf16.mxu1 %v8294_v2  ;;  %11852 = vrcp.f32 %v8252_v21 }
0x25b3   :  { %10820 = vmatpush3.bf16.msra.mxu1 %v8294_v2  ;;  %v11839_v62 = vpop.eup %11838  ;;  %11854 = vrcp.f32 %v8250_v14 }
0x25b4   :  { %v10754_v7 = vpop.f32.mrf.mxu1  ;;  %v11841_v63 = vpop.eup %11840  ;;  %v8277_v33 = vmul.f32 %v11839_v62, %v16833_v49 }
0x25b5   :  { %v7822_v48 = vpack.c.bf16 %v10754_v7, %v10753_v40  ;;  %v11843_v40 = vpop.eup %11842  ;;  %v8275_v23 = vmul.f32 %v11841_v63, %v16807_v61 }
0x25b6   :  { %v7803_v35 = vpop.f32.mrf.mxu1  ;;  %v8278_v18 = vmul.f32 %v11843_v40, %v16823_v43  ;;  %v6047_v43 = vld [vmem:[%s17328_s2 + $0xc8] sm:$0xff]  ;;  %v17562_v40 = vld [vmem:[#allocation22_spill] sm:$0xff] }
0x25b7   :  { %v7821_v19 = vpack.c.bf16 %v7803_v35, %v7800_v51  ;;  %v11845_v10 = vpop.eup %11844  ;;  %v8288_v50 = vpack.c.bf16 %v8276_v44, %v8275_v23  ;;  %v7343_v44 = vadd.f32 %v16866_v36, %v17562_v40  ;;  %v17563_v23 = vld [vmem:[#allocation20_spill] sm:$0xff]  ;;  %v16987_v40 = vld [vmem:[%s17330_s3 + $0x8] sm:$0xff] }
0x25b8   :  { %v8289_v1 = vpack.c.bf16 %v8278_v18, %v8277_v33  ;;  %v8280_v34 = vmul.f32 %v11845_v10, %v16836_v39  ;;  %v7335_v18 = vadd.f32 %v16868_v37, %v17563_v23 }
0x25b9   :  { %10769 = vmatprep.mubr.msk.bf16.mxu1 %vm366_vm2, %v7821_v19  ;;  %v8422_v19 = vpack.c.bf16 %v6047_v43, %v6047_v43  ;;  %v17568_v43 = vld [vmem:[#allocation25_spill] sm:$0xff] }
0x25ba   :  { %10770 = vmatmul.mubr.msk.bf16.gmra.mxu1 %vm366_vm2, %v7822_v48  ;;  %v7303_v48 = vadd.f32 %v16852_v60, %v16432_v11  ;;  %v17559_v60 = vld [vmem:[#allocation8_spill] sm:$0xff] }
0x25bb   :  { %10821 = vmatprep.mubr.bf16.mxu1 %v8285_v58  ;;  %v11847_v2 = vpop.eup %11846  ;;  %10978 = vmatprep.subr.msk.bf16.mxu1 %vm1277_vm3, %v8422_v19  ;;  %v8448_v39 = vsel %vm1277_vm3, %v8422_v19, 0  ;;  %v7319_v20 = vadd.f32 %v16860_v22, %v17559_v60 }
0x25bc   :  { %v11849_v51 = vpop.eup %11848  ;;  %v8282_v57 = vmul.f32 %v11847_v2, %v16841_v16  ;;  %v7311_v16 = vadd.f32 %v16848_v0, %v16430_v54  ;;  %v17558_v54 = vld [vmem:[#allocation17_spill] sm:$0xff] }
0x25bd   :  { %v11851_v38 = vpop.eup %11850  ;;  %v8281_v7 = vmul.f32 %v11849_v51, %v16839_v47  ;;  %v7327_v0 = vadd.f32 %v16858_v59, %v17558_v54  ;;  %v17565_v51 = vld [vmem:[#allocation18_spill] sm:$0xff] }
0x25be   :  { %v8279_v49 = vmul.f32 %v11851_v38, %v16829_v32  ;;  %v7338_v38 = vadd.f32 %v16872_v25, %v17565_v51 }
0x25bf   :  { %v11853_v61 = vpop.eup %11852  ;;  %v8291_v9 = vpack.c.bf16 %v8282_v57, %v8281_v7  ;;  %v17566_v57 = vld [vmem:[#allocation21_spill] sm:$0xff] }
0x25c0   :  { %v8290_v14 = vpack.c.bf16 %v8280_v34, %v8279_v49  ;;  %v11855_v35 = vpop.eup %11854  ;;  %v8284_v28 = vmul.f32 %v11853_v61, %v16845_v3  ;;  %v7314_v3 = vadd.f32 %v16854_v29, %v16434_v6  ;;  %v17560_v29 = vld [vmem:[#allocation26_spill] sm:$0xff]  ;;  %v7359_v37 = vadd.f32 %v16874_v17, %v17566_v57  ;;  %v17572_v57 = vld [vmem:[#allocation13_spill] sm:$0xff] }
0x25c1   :  { %v8283_v47 = vmul.f32 %v11855_v35, %v16826_v56  ;;  %v17557_v56 = vld [vmem:[#allocation10_spill] sm:$0xff]  ;;  %v7330_v4 = vadd.f32 %v16862_v12, %v17560_v29  ;;  %v7362_v35 = vadd.f32 %v16878_v15, %v17568_v43 }
0x25c2   :  { %10822 = vmatmul.mubr.bf16.vlgmr.msra.gmra.mxu1 %v8286_v24  ;;  %v7306_v26 = vadd.f32 %v16856_v13, %v17557_v56 }
0x25c3   :  { %10825 = vmatprep.mubr.bf16.mxu1 %v8287_v8  ;;  %10838 = vmatpush3.bf16.msra.mxu1 %v8448_v39  ;;  %v8292_v32 = vpack.c.bf16 %v8284_v28, %v8283_v47  ;;  %v17561_v8 = vld [vmem:[#allocation31_spill] sm:$0xff]  ;;  %v17569_v28 = vld [vmem:[#allocation28_spill] sm:$0xff] }
0x25c4   :  { %v7322_v62 = vadd.f32 %v16864_v31, %v17561_v8  ;;  %v7354_v39 = vadd.f32 %v16880_v5, %v17569_v28 }
0x25ca   :  { %10826 = vmatmul.mubr.bf16.gmra.mxu1 %v8288_v50  ;;  %v17564_v50 = vld [vmem:[#allocation11_spill] sm:$0xff] }
0x25cb   :  { %10829 = vmatprep.mubr.bf16.mxu1 %v8289_v1  ;;  %v7346_v2 = vadd.f32 %v16870_v52, %v17564_v50 }
0x25d2   :  { %10830 = vmatmul.mubr.bf16.gmra.mxu1 %v8290_v14  ;;  %v17567_v14 = vld [vmem:[#allocation24_spill] sm:$0xff] }
0x25d3   :  { %10833 = vmatprep.mubr.bf16.mxu1 %v8291_v9  ;;  %v7351_v61 = vadd.f32 %v16876_v41, %v17567_v14 }
0x25da   :  { %10834 = vmatmul.mubr.bf16.gmra.mxu1 %v8292_v32 }
0x263b   :  { %v10759_v42 = vpop.f32.mrf.mxu1 }
0x263c   :  { %v16916_v27 = vadd.f32 %v10759_v42, %v7311_v16 }
0x263d   :  { %v7885_v58 = vpop.f32.mrf.mxu1 }
0x263e   :  { %v16920_v53 = vadd.f32 %v7885_v58, %v7303_v48 }
0x263f   :  { %v10760_v46 = vpop.f32.mrf.mxu1 }
0x2640   :  { %v16924_v55 = vadd.f32 %v10760_v46, %v7314_v3 }
0x2641   :  { %v7888_v30 = vpop.f32.mrf.mxu1 }
0x2642   :  { %v16928_v45 = vadd.f32 %v7888_v30, %v7306_v26 }
0x2643   :  { %v10763_v11 = vpop.f32.mrf.mxu1 }
0x2644   :  { %v16932_v24 = vadd.f32 %v10763_v11, %v7327_v0 }
0x2645   :  { %v7901_v6 = vpop.f32.mrf.mxu1 }
0x2646   :  { %v16936_v21 = vadd.f32 %v7901_v6, %v7319_v20 }
0x2647   :  { %v10764_v13 = vpop.f32.mrf.mxu1 }
0x2648   :  { %v16940_v63 = vadd.f32 %v10764_v13, %v7330_v4 }
0x2649   :  { %v7904_v59 = vpop.f32.mrf.mxu1 }
0x264a   :  { %v16944_v33 = vadd.f32 %v7904_v59, %v7322_v62 }
0x264b   :  { %v10767_v22 = vpop.f32.mrf.mxu1 }
0x264c   :  { %v16948_v10 = vadd.f32 %v10767_v22, %v7343_v44  ;;  %v17570_v44 = vld [vmem:[#allocation2_spill] sm:$0xff] }
0x264d   :  { %v7917_v12 = vpop.f32.mrf.mxu1  ;;  %v17571_v22 = vsub.s32 4, %v17570_v44 }
0x264e   :  { %v16952_v1 = vadd.f32 %v7917_v12, %v7335_v18 }
0x264f   :  { %v10768_v31 = vpop.f32.mrf.mxu1  ;;  %v16992_v23 = vrot.slane %v16987_v40, %v17571_v22 }
0x2650   :  { %v16956_v34 = vadd.f32 %v10768_v31, %v7346_v2 }
0x2651   :  { %v7920_v36 = vpop.f32.mrf.mxu1 }
0x2652   :  { %v16958_v7 = vadd.f32 %v7920_v36, %v7338_v38 }
0x267a   :  { %v10771_v49 = vpop.f32.mrf.mxu1 }
0x267b   :  { %v16964_v9 = vadd.f32 %v10771_v49, %v7359_v37 }
0x267c   :  { %v7933_v52 = vpop.f32.mrf.mxu1 }
0x267d   :  { %v16968_v19 = vadd.f32 %v7933_v52, %v7351_v61  ;;  %v17573_v52 = vld [vmem:[#allocation30_spill] sm:$0xff] }
0x267e   :  { %v10772_v25 = vpop.f32.mrf.mxu1 }
0x267f   :  { %v16972_v47 = vadd.f32 %v10772_v25, %v7362_v35 }
0x2680   :  { %v7936_v32 = vpop.f32.mrf.mxu1 }
0x2681   :  { %v16974_v17 = vadd.f32 %v7936_v32, %v7354_v39  ;;  %v17574_v39 = vld [vmem:[#allocation23_spill] sm:$0xff] }
0x2682   :  { %v10823_v16 = vpop.f32.mrf.mxu1 }
0x2684   :  { %v8351_v42 = vpop.f32.mrf.mxu1 }
0x2686   :  { %v10824_v41 = vpop.f32.mrf.mxu1 }
0x2687   :  { %v8415_v3 = vpack.c.bf16 %v10824_v41, %v10823_v16 }
0x2688   :  { %v8354_v48 = vpop.f32.mrf.mxu1 }
0x2689   :  { %v8414_v58 = vpack.c.bf16 %v8354_v48, %v8351_v42 }
0x268a   :  { %v10827_v46 = vpop.f32.mrf.mxu1 }
0x268b   :  { %10839 = vmatprep.mubr.msk.bf16.mxu1 %vm366_vm2, %v8414_v58 }
0x268c   :  { %v8367_v15 = vpop.f32.mrf.mxu1  ;;  %10840 = vmatmul.mubr.msk.bf16.vlgmr.msra.gmra.mxu1 %vm366_vm2, %v8415_v3  ;;  %v17575_v3 = vld [vmem:[#allocation19_spill] sm:$0xff] }
0x268e   :  { %v10828_v56 = vpop.f32.mrf.mxu1 }
0x268f   :  { %v8417_v30 = vpack.c.bf16 %v10828_v56, %v10827_v46 }
0x2690   :  { %v8370_v26 = vpop.f32.mrf.mxu1 }
0x2691   :  { %v8416_v5 = vpack.c.bf16 %v8370_v26, %v8367_v15 }
0x2692   :  { %v10831_v54 = vpop.f32.mrf.mxu1 }
0x2693   :  { %10843 = vmatprep.mubr.msk.bf16.mxu1 %vm366_vm2, %v8416_v5 }
0x2694   :  { %v8383_v0 = vpop.f32.mrf.mxu1  ;;  %10844 = vmatmul.mubr.msk.bf16.gmra.mxu1 %vm366_vm2, %v8417_v30  ;;  %v17576_v30 = vld [vmem:[#allocation14_spill] sm:$0xff] }
0x2696   :  { %v10832_v11 = vpop.f32.mrf.mxu1 }
0x2697   :  { %v8419_v6 = vpack.c.bf16 %v10832_v11, %v10831_v54  ;;  %v17577_v54 = vld [vmem:[#allocation27_spill] sm:$0xff] }
0x2698   :  { %v8386_v60 = vpop.f32.mrf.mxu1 }
0x2699   :  { %v8418_v20 = vpack.c.bf16 %v8386_v60, %v8383_v0 }
0x269a   :  { %v10835_v29 = vpop.f32.mrf.mxu1 }
0x269b   :  { %10847 = vmatprep.mubr.msk.bf16.mxu1 %vm366_vm2, %v8418_v20 }
0x269c   :  { %v8399_v4 = vpop.f32.mrf.mxu1  ;;  %10848 = vmatmul.mubr.msk.bf16.gmra.mxu1 %vm366_vm2, %v8419_v6 }
0x269e   :  { %v10836_v13 = vpop.f32.mrf.mxu1 }
0x269f   :  { %v8421_v59 = vpack.c.bf16 %v10836_v13, %v10835_v29 }
0x26a0   :  { %v8402_v8 = vpop.f32.mrf.mxu1 }
0x26a1   :  { %v8420_v62 = vpack.c.bf16 %v8402_v8, %v8399_v4  ;;  %v17578_v4 = vld [vmem:[#allocation15_spill] sm:$0xff] }
0x26a3   :  { %10851 = vmatprep.mubr.msk.bf16.mxu1 %vm366_vm2, %v8420_v62 }
0x26a4   :  { %10852 = vmatmul.mubr.msk.bf16.gmra.mxu1 %vm366_vm2, %v8421_v59  ;;  %v17579_v59 = vld [vmem:[#allocation7_spill] sm:$0xff] }
0x274c   :  { %v10841_v18 = vpop.f32.mrf.mxu1 }
0x274d   :  { %v8549_v12 = vadd.f32 %v10841_v18, %v16916_v27 }
0x274e   :  { %v8484_v50 = vpop.f32.mrf.mxu1 }
0x274f   :  { %v8569_v2 = vadd.f32 %v16992_v23, %v8549_v12  ;;  %v8547_v31 = vadd.f32 %v8484_v50, %v16920_v53 }
0x2750   :  { %v10842_v51 = vpop.f32.mrf.mxu1 }
0x2751   :  { %v8567_v38 = vadd.f32 %v16992_v23, %v8547_v31  ;;  %v8550_v36 = vadd.f32 %v10842_v51, %v16924_v55  ;;  %v17000_v37 = vadd.f32 %v8569_v2, %v17572_v57  ;;  %v17580_v2 = vld [vmem:[#allocation3_spill] sm:$0xff] }
0x2752   :  { %v8487_v49 = vpop.f32.mrf.mxu1 }
0x2753   :  { %v8570_v14 = vadd.f32 %v16992_v23, %v8550_v36  ;;  %v8548_v61 = vadd.f32 %v8487_v49, %v16928_v45  ;;  %v8605_v27 = vsel %vm212_vm1, %v17000_v37, 0.0  ;;  %v17007_v43 = vadd.f32 %v8567_v38, %v17573_v52  ;;  %v17582_v52 = vld [vmem:[#allocation9_spill] sm:$0xff] }
0x2754   :  { %8606 = vadd.xlane.f32.xlu1 %v8605_v27  ;;  %v10845_v53 = vpop.f32.mrf.mxu1 }
0x2755   :  { %v8568_v25 = vadd.f32 %v16992_v23, %v8548_v61  ;;  %v8599_v28 = vsel %vm212_vm1, %v17007_v43, 0.0  ;;  %v17014_v32 = vadd.f32 %v8570_v14, %v17574_v39  ;;  %v8553_v16 = vadd.f32 %v10845_v53, %v16932_v24 }
0x2756   :  { %v8500_v35 = vpop.f32.mrf.mxu1 }
0x2757   :  { %v8551_v55 = vadd.f32 %v8500_v35, %v16936_v21  ;;  %v8608_v58 = vsel %vm212_vm1, %v17014_v32, 0.0  ;;  %v17022_v21 = vadd.f32 %v8568_v25, %v17575_v3  ;;  %v8573_v24 = vadd.f32 %v16992_v23, %v8553_v16 }
0x2758   :  { %8600 = vadd.xlane.f32.xlu1 %v8599_v28  ;;  %v10846_v45 = vpop.f32.mrf.mxu1  ;;  %v17583_v28 = vld [vmem:[#allocation6_spill] sm:$0xff] }
0x2759   :  { %v8571_v41 = vadd.f32 %v16992_v23, %v8551_v55  ;;  %v8554_v56 = vadd.f32 %v10846_v45, %v16940_v63  ;;  %v8602_v5 = vsel %vm212_vm1, %v17022_v21, 0.0  ;;  %v17042_v13 = vadd.f32 %v8573_v24, %v17578_v4 }
0x275a   :  { %v8503_v42 = vpop.f32.mrf.mxu1 }
0x275b   :  { %v8552_v48 = vadd.f32 %v8503_v42, %v16944_v33  ;;  %v17033_v0 = vadd.f32 %v8571_v41, %v17577_v54  ;;  %v8574_v20 = vadd.f32 %v16992_v23, %v8554_v56  ;;  %v17584_v41 = vld [vmem:[#allocation29_spill] sm:$0xff] }
0x275c   :  { %8609 = vadd.xlane.f32.xlu1 %v8608_v58  ;;  %v10849_v46 = vpop.f32.mrf.mxu1 }
0x275d   :  { %v8572_v15 = vadd.f32 %v16992_v23, %v8552_v48  ;;  %v8557_v6 = vadd.f32 %v10849_v46, %v16948_v10  ;;  %v8611_v29 = vsel %vm212_vm1, %v17033_v0, 0.0  ;;  %v17046_v22 = vadd.f32 %v8574_v20, %v17579_v59  ;;  %v17585_v46 = vld [vmem:[#allocation12_spill] sm:$0xff] }
0x275e   :  { %v8516_v26 = vpop.f32.mrf.mxu1  ;;  %v8617_v10 = vsel %vm212_vm1, %v17042_v13, 0.0 }
0x275f   :  { %v17030_v33 = vadd.f32 %v8572_v15, %v17576_v30  ;;  %v8577_v18 = vadd.f32 %v16992_v23, %v8557_v6  ;;  %v8555_v12 = vadd.f32 %v8516_v26, %v16952_v1  ;;  %v8620_v51 = vsel %vm212_vm1, %v17046_v22, 0.0  ;;  %v17581_v1 = vld [vmem:[#allocation4_spill] sm:$0xff]  ;;  %v17586_v26 = vld [vmem:[#allocation5_spill] sm:$0xff] }
0x2760   :  { %8603 = vadd.xlane.f32.xlu1 %v8602_v5  ;;  %v10850_v11 = vpop.f32.mrf.mxu1  ;;  %v17587_v5 = vld [vmem:[#allocation16_spill] sm:$0xff] }
0x2761   :  { %v8614_v60 = vsel %vm212_vm1, %v17030_v33, 0.0  ;;  %v8558_v38 = vadd.f32 %v10850_v11, %v16956_v34  ;;  %v17063_v57 = vadd.f32 %v8577_v18, %v17581_v1 }
0x2762   :  { %8615 = vadd.xlane.f32.xlu0 %v8614_v60  ;;  %v8519_v63 = vpop.f32.mrf.mxu1 }
0x2763   :  { %v8578_v14 = vadd.f32 %v16992_v23, %v8558_v38  ;;  %v8556_v61 = vadd.f32 %v8519_v63, %v16958_v7  ;;  %v8629_v27 = vsel %vm212_vm1, %v17063_v57, 0.0 }
0x2764   :  { %8612 = vadd.xlane.f32.xlu1 %v8611_v29  ;;  %v10853_v8 = vpop.f32.mrf.mxu1 }
0x2765   :  { %v8561_v62 = vadd.f32 %v10853_v8, %v16964_v9  ;;  %v8575_v9 = vadd.f32 %v16992_v23, %v8555_v12  ;;  %v8576_v35 = vadd.f32 %v16992_v23, %v8556_v61  ;;  %v17077_v39 = vadd.f32 %v8578_v14, %v17583_v28 }
0x2766   :  { %v8532_v49 = vpop.f32.mrf.mxu1 }
0x2767   :  { %v8581_v50 = vadd.f32 %v16992_v23, %v8561_v62  ;;  %v17070_v53 = vadd.f32 %v8575_v9, %v17582_v52  ;;  %v8559_v25 = vadd.f32 %v8532_v49, %v16968_v19  ;;  %v8632_v42 = vsel %vm212_vm1, %v17077_v39, 0.0 }
0x2768   :  { %8618 = vadd.xlane.f32.xlu1 %v8617_v10  ;;  %v10854_v34 = vpop.f32.mrf.mxu1  ;;  %v17084_v48 = vadd.f32 %v8576_v35, %v17584_v41 }
0x2769   :  { %v17054_v31 = vadd.f32 %v8581_v50, %v17580_v2  ;;  %v8623_v55 = vsel %vm212_vm1, %v17070_v53, 0.0  ;;  %v8579_v7 = vadd.f32 %v16992_v23, %v8559_v25  ;;  %v8562_v19 = vadd.f32 %v10854_v34, %v16972_v47 }
0x276a   :  { %v8535_v45 = vpop.f32.mrf.mxu1  ;;  %v8626_v3 = vsel %vm212_vm1, %v17084_v48, 0.0 }
0x276b   :  { %v8641_v36 = vsel %vm212_vm1, %v17054_v31, 0.0  ;;  %v8560_v16 = vadd.f32 %v8535_v45, %v16974_v17  ;;  %v17091_v15 = vadd.f32 %v8579_v7, %v17585_v46  ;;  %v8582_v17 = vadd.f32 %v16992_v23, %v8562_v19 }
0x276c   :  { %8621 = vadd.xlane.f32.xlu1 %v8620_v51  ;;  %8642 = vadd.xlane.f32.xlu0 %v8641_v36 }
0x276d   :  { %v8580_v58 = vadd.f32 %v16992_v23, %v8560_v16  ;;  %v8635_v56 = vsel %vm212_vm1, %v17091_v15, 0.0  ;;  %v17102_v30 = vadd.f32 %v8582_v17, %v17587_v5 }
0x276f   :  { %v17097_v24 = vadd.f32 %v8580_v58, %v17586_v26  ;;  %v8644_v54 = vsel %vm212_vm1, %v17102_v30, 0.0 }
0x2770   :  { %8630 = vadd.xlane.f32.xlu1 %v8629_v27 }
0x2771   :  { %v8638_v47 = vsel %vm212_vm1, %v17097_v24, 0.0 }
0x2774   :  { %8624 = vadd.xlane.f32.xlu1 %v8623_v55 }
0x2778   :  { %8633 = vadd.xlane.f32.xlu1 %v8632_v42 }
0x277c   :  { %8627 = vadd.xlane.f32.xlu1 %v8626_v3 }
0x2780   :  { %8636 = vadd.xlane.f32.xlu1 %v8635_v56 }
0x2784   :  { %8639 = vadd.xlane.f32.xlu1 %v8638_v47 }
0x2788   :  { %8645 = vadd.xlane.f32.xlu1 %v8644_v54 }
0x27dd   :  { %v8607_v11 = vpop.xlane.xlu1 %8606 }
0x27de   :  { %v8649_v23 = vmul.f32 0.03125, %v8607_v11 }
0x27e0   :  { %v17107_v63 = vsub.f32 %v17000_v37, %v8649_v23 }
0x27e1   :  { %v8601_v60 = vpop.xlane.xlu1 %8600 }
0x27e2   :  { %v8647_v20 = vmul.f32 0.03125, %v8601_v60  ;;  %v8681_v59 = vmul.f32 %v17107_v63, %v17107_v63 }
0x27e4   :  { %v17110_v6 = vsub.f32 %v17007_v43, %v8647_v20  ;;  %v8701_v2 = vsel %vm212_vm1, %v8681_v59, 0.0 }
0x27e5   :  { %v8610_v29 = vpop.xlane.xlu1 %8609 }
0x27e6   :  { %v8679_v4 = vmul.f32 %v17110_v6, %v17110_v6  ;;  %v8650_v8 = vmul.f32 0.03125, %v8610_v29 }
0x27e8   :  { %v8695_v62 = vsel %vm212_vm1, %v8679_v4, 0.0  ;;  %v17118_v37 = vsub.f32 %v17014_v32, %v8650_v8 }
0x27e9   :  { %v8604_v18 = vpop.xlane.xlu1 %8603  ;;  %8696 = vadd.xlane.f32.xlu0 %v8695_v62 }
0x27ea   :  { %v8648_v12 = vmul.f32 0.03125, %v8604_v18 }
0x27eb   :  { %v8616_v50 = vpop.xlane.xlu0 %8615 }
0x27ec   :  { %v17121_v43 = vsub.f32 %v17022_v21, %v8648_v12  ;;  %v8652_v10 = vmul.f32 0.03125, %v8616_v50  ;;  %v8682_v21 = vmul.f32 %v17118_v37, %v17118_v37 }
0x27ed   :  { %v8613_v51 = vpop.xlane.xlu1 %8612  ;;  %8702 = vadd.xlane.f32.xlu0 %v8701_v2 }
0x27ee   :  { %v8651_v9 = vmul.f32 0.03125, %v8613_v51  ;;  %v8680_v38 = vmul.f32 %v17121_v43, %v17121_v43  ;;  %v17127_v36 = vsub.f32 %v17030_v33, %v8652_v10  ;;  %v8704_v52 = vsel %vm212_vm1, %v8682_v21, 0.0 }
0x27f0   :  { %v17130_v1 = vsub.f32 %v17033_v0, %v8651_v9  ;;  %v8698_v32 = vsel %vm212_vm1, %v8680_v38, 0.0  ;;  %v8684_v0 = vmul.f32 %v17127_v36, %v17127_v36 }
0x27f1   :  { %v8619_v49 = vpop.xlane.xlu1 %8618  ;;  %8699 = vadd.xlane.f32.xlu1 %v8698_v32 }
0x27f2   :  { %v8653_v14 = vmul.f32 0.03125, %v8619_v49  ;;  %v8683_v61 = vmul.f32 %v17130_v1, %v17130_v1  ;;  %v8710_v28 = vsel %vm212_vm1, %v8684_v0, 0.0  ;;  %v8888_v49 = vld [vmem:[%s17328_s2 + $0xe0] sm:$0xff] }
0x27f4   :  { %v17138_v27 = vsub.f32 %v17042_v13, %v8653_v14  ;;  %v8707_v33 = vsel %vm212_vm1, %v8683_v61, 0.0  ;;  %v8886_v14 = vld [vmem:[%s17328_s2 + $0xd0] sm:$0xff]  ;;  %v11972_v61 = vmov 0.0  }
0x27f5   :  { %v8622_v34 = vpop.xlane.xlu1 %8621  ;;  %8708 = vadd.xlane.f32.xlu0 %v8707_v33  ;;  %8705 = vadd.xlane.f32.xlu1 %v8704_v52  ;;  %v8643_v47 = vpop.xlane.xlu0 %8642  ;;  %v8887_v52 = vld [vmem:[%s17328_s2 + $0xd8] sm:$0xff]  ;;  %9023 = vst [vmem:[%s17332_s4] sm:$0xff] %v11972_v61 }
0x27f6   :  { %v8654_v35 = vmul.f32 0.03125, %v8622_v34  ;;  %v8685_v25 = vmul.f32 %v17138_v27, %v17138_v27  ;;  %v8661_v11 = vmul.f32 0.03125, %v8643_v47  ;;  %10855 = vmatprep.subr.bf16.mxu0 %v11972_v61  ;;  %10859 = vmatprep.mubr.msk.bf16.mxu0 %vm11973_vm4, %v11972_v61  ;;  %v8891_v0 = vpack.c.bf16 %v8887_v52, %v8886_v14 }
0x27f7   :  { %10863 = vmatprep.subr.bf16.mxu1 %v11972_v61  ;;  %10867 = vmatprep.mubr.msk.bf16.mxu1 %vm11973_vm4, %v11972_v61 }
0x27f8   :  { %v17147_v55 = vsub.f32 %v17046_v22, %v8654_v35  ;;  %v8713_v13 = vsel %vm212_vm1, %v8685_v25, 0.0  ;;  %v17175_v4 = vsub.f32 %v17054_v31, %v8661_v11 }
0x27f9   :  { %v8631_v45 = vpop.xlane.xlu1 %8630  ;;  %8714 = vadd.xlane.f32.xlu0 %v8713_v13  ;;  %8711 = vadd.xlane.f32.xlu1 %v8710_v28 }
0x27fa   :  { %v8686_v7 = vmul.f32 %v17147_v55, %v17147_v55  ;;  %v8657_v16 = vmul.f32 0.03125, %v8631_v45 }
0x27fc   :  { %v8716_v42 = vsel %vm212_vm1, %v8686_v7, 0.0  ;;  %v17155_v58 = vsub.f32 %v17063_v57, %v8657_v16 }
0x27fd   :  { %v8625_v41 = vpop.xlane.xlu1 %8624  ;;  %8717 = vadd.xlane.f32.xlu1 %v8716_v42 }
0x27fe   :  { %v8655_v19 = vmul.f32 0.03125, %v8625_v41  ;;  %v8689_v26 = vmul.f32 %v17155_v58, %v17155_v58 }
0x2800   :  { %v17158_v22 = vsub.f32 %v17070_v53, %v8655_v19  ;;  %v8725_v23 = vsel %vm212_vm1, %v8689_v26, 0.0 }
0x2801   :  { %v8634_v3 = vpop.xlane.xlu1 %8633 }
0x2802   :  { %v8687_v46 = vmul.f32 %v17158_v22, %v17158_v22  ;;  %v8658_v17 = vmul.f32 0.03125, %v8634_v3 }
0x2804   :  { %v8719_v56 = vsel %vm212_vm1, %v8687_v46, 0.0  ;;  %v17166_v57 = vsub.f32 %v17077_v39, %v8658_v17 }
0x2805   :  { %v8628_v5 = vpop.xlane.xlu1 %8627  ;;  %8720 = vadd.xlane.f32.xlu0 %v8719_v56 }
0x2806   :  { %v8656_v54 = vmul.f32 0.03125, %v8628_v5 }
0x2808   :  { %v17169_v53 = vsub.f32 %v17084_v48, %v8656_v54  ;;  %v8690_v48 = vmul.f32 %v17166_v57, %v17166_v57 }
0x2809   :  { %8726 = vadd.xlane.f32.xlu0 %v8725_v23  ;;  %v8637_v60 = vpop.xlane.xlu1 %8636 }
0x280a   :  { %v8659_v20 = vmul.f32 0.03125, %v8637_v60  ;;  %v8688_v29 = vmul.f32 %v17169_v53, %v17169_v53  ;;  %v8728_v50 = vsel %vm212_vm1, %v8690_v48, 0.0  ;;  %v17588_v60 = vsub.s32 5, %v17570_v44 }
0x280c   :  { %v17178_v8 = vsub.f32 %v17091_v15, %v8659_v20  ;;  %v8722_v39 = vsel %vm212_vm1, %v8688_v29, 0.0  ;;  %v8693_v15 = vmul.f32 %v17175_v4, %v17175_v4  ;;  %v17222_v20 = vrot.slane %v16987_v40, %v17588_v60 }
0x280d   :  { %8723 = vadd.xlane.f32.xlu1 %v8722_v39  ;;  %v8640_v62 = vpop.xlane.xlu1 %8639 }
0x280e   :  { %v8660_v59 = vmul.f32 0.03125, %v8640_v62  ;;  %v8691_v18 = vmul.f32 %v17178_v8, %v17178_v8 }
0x2810   :  { %v17186_v12 = vsub.f32 %v17097_v24, %v8660_v59  ;;  %v8731_v31 = vsel %vm212_vm1, %v8691_v18, 0.0  ;;  %v8737_v24 = vsel %vm212_vm1, %v8693_v15, 0.0 }
0x2811   :  { %8732 = vadd.xlane.f32.xlu0 %v8731_v31  ;;  %8729 = vadd.xlane.f32.xlu1 %v8728_v50  ;;  %v8646_v10 = vpop.xlane.xlu1 %8645  ;;  %v17589_v31 = vsub.s32 6, %v17570_v44 }
0x2812   :  { %v8662_v2 = vmul.f32 0.03125, %v8646_v10  ;;  %v8692_v51 = vmul.f32 %v17186_v12, %v17186_v12 }
0x2813   :  { %v17228_v50 = vrot.slane %v16987_v40, %v17589_v31 }
0x2814   :  { %v17195_v9 = vsub.f32 %v17102_v30, %v8662_v2  ;;  %v8734_v38 = vsel %vm212_vm1, %v8692_v51, 0.0  ;;  %v8889_v30 = vld [vmem:[%s17328_s2 + $0xe8] sm:$0xff] }
0x2815   :  { %8738 = vadd.xlane.f32.xlu0 %v8737_v24  ;;  %8735 = vadd.xlane.f32.xlu1 %v8734_v38  ;;  %v8892_v33 = vpack.c.bf16 %v8889_v30, %v8888_v49 }
0x2816   :  { %v8694_v32 = vmul.f32 %v17195_v9, %v17195_v9 }
0x2817   :  { %10856 = vmatpush3.bf16.msra.mxu0 %v8892_v33 }
0x2818   :  { %v8740_v21 = vsel %vm212_vm1, %v8694_v32, 0.0  ;;  %10857 = vmatprep.subr.bf16.mxu0 %v11972_v61 }
0x2819   :  { %8741 = vadd.xlane.f32.xlu1 %v8740_v21 }
0x281b   :  { %10858 = vmatpush3.bf16.msra.mxu0 %v8891_v0 }
0x2872   :  { %v8697_v34 = vpop.xlane.xlu0 %8696 }
0x2873   :  { %v8743_v35 = vmul.f32 0.03125, %v8697_v34 }
0x2875   :  { %v8759_v25 = vadd.f32 1e-05, %v8743_v35 }
0x2876   :  { %v8703_v13 = vpop.xlane.xlu0 %8702 }
0x2877   :  { %11856 = vrsqrt.f32 %v8759_v25  ;;  %v8745_v28 = vmul.f32 0.03125, %v8703_v13 }
0x2879   :  { %v8761_v45 = vadd.f32 1e-05, %v8745_v28 }
0x287a   :  { %v8700_v7 = vpop.xlane.xlu1 %8699 }
0x287b   :  { %11858 = vrsqrt.f32 %v8761_v45  ;;  %v8744_v16 = vmul.f32 0.03125, %v8700_v7 }
0x287d   :  { %v8760_v42 = vadd.f32 1e-05, %v8744_v16 }
0x287e   :  { %v8709_v41 = vpop.xlane.xlu0 %8708  ;;  %v8706_v19 = vpop.xlane.xlu1 %8705 }
0x287f   :  { %11860 = vrsqrt.f32 %v8760_v42  ;;  %v8747_v3 = vmul.f32 0.03125, %v8709_v41  ;;  %v8746_v46 = vmul.f32 0.03125, %v8706_v19 }
0x2881   :  { %v8763_v17 = vadd.f32 1e-05, %v8747_v3  ;;  %v8762_v56 = vadd.f32 1e-05, %v8746_v46 }
0x2882   :  { %v8715_v26 = vpop.xlane.xlu0 %8714  ;;  %v8712_v47 = vpop.xlane.xlu1 %8711 }
0x2883   :  { %11862 = vrsqrt.f32 %v8763_v17  ;;  %v8749_v5 = vmul.f32 0.03125, %v8715_v26  ;;  %v8748_v54 = vmul.f32 0.03125, %v8712_v47 }
0x2884   :  { %v11857_v11 = vpop.eup %11856  ;;  %11864 = vrsqrt.f32 %v8762_v56 }
0x2885   :  { %v8764_v23 = vadd.f32 1e-05, %v8748_v54  ;;  %v8791_v29 = vmul.f32 %v11857_v11, %v17110_v6  ;;  %v8765_v48 = vadd.f32 1e-05, %v8749_v5 }
0x2886   :  { %v8718_v39 = vpop.xlane.xlu1 %8717 }
0x2887   :  { %v8750_v62 = vmul.f32 0.03125, %v8718_v39  ;;  %11866 = vrsqrt.f32 %v8764_v23  ;;  %v8811_v15 = vmul.f32 %v17222_v20, %v8791_v29 }
0x2888   :  { %v11859_v59 = vpop.eup %11858  ;;  %11868 = vrsqrt.f32 %v8765_v48 }
0x2889   :  { %v8766_v18 = vadd.f32 1e-05, %v8750_v62  ;;  %v8793_v10 = vmul.f32 %v11859_v59, %v17107_v63  ;;  %v8831_v51 = vadd.f32 %v17228_v50, %v8811_v15 }
0x288b   :  { %11870 = vrsqrt.f32 %v8766_v18  ;;  %v8813_v24 = vmul.f32 %v17222_v20, %v8793_v10  ;;  %v8847_v63 = vsel %vm212_vm1, %v8831_v51, 0.0 }
0x288c   :  { %v11861_v2 = vpop.eup %11860 }
0x288d   :  { %v8792_v6 = vmul.f32 %v11861_v2, %v17121_v43  ;;  %v8833_v33 = vadd.f32 %v17228_v50, %v8813_v24 }
0x288e   :  { %v8721_v38 = vpop.xlane.xlu0 %8720 }
0x288f   :  { %v8812_v32 = vmul.f32 %v17222_v20, %v8792_v6  ;;  %v8751_v44 = vmul.f32 0.03125, %v8721_v38  ;;  %v8850_v41 = vsel %vm212_vm1, %v8833_v33, 0.0 }
0x2890   :  { %v11863_v21 = vpop.eup %11862 }
0x2891   :  { %v11865_v49 = vpop.eup %11864  ;;  %v8832_v30 = vadd.f32 %v17228_v50, %v8812_v32  ;;  %v8767_v14 = vadd.f32 1e-05, %v8751_v44  ;;  %v8795_v34 = vmul.f32 %v11863_v21, %v17130_v1 }
0x2892   :  { %v8794_v52 = vmul.f32 %v11865_v49, %v17118_v37  ;;  %v8727_v43 = vpop.xlane.xlu0 %8726 }
0x2893   :  { %v8848_v0 = vsel %vm212_vm1, %v8832_v30, 0.0  ;;  %11872 = vrsqrt.f32 %v8767_v14  ;;  %v8753_v35 = vmul.f32 0.03125, %v8727_v43  ;;  %v8815_v37 = vmul.f32 %v17222_v20, %v8795_v34 }
0x2894   :  { %v8849_v25 = vadd.f32 %v8848_v0, %v8847_v63  ;;  %v8814_v13 = vmul.f32 %v17222_v20, %v8794_v52  ;;  %v11867_v28 = vpop.eup %11866 }
0x2895   :  { %v8769_v45 = vadd.f32 1e-05, %v8753_v35  ;;  %v8796_v16 = vmul.f32 %v11867_v28, %v17127_v36  ;;  %v11869_v3 = vpop.eup %11868  ;;  %v8835_v54 = vadd.f32 %v17228_v50, %v8815_v37 }
0x2896   :  { %v8834_v7 = vadd.f32 %v17228_v50, %v8814_v13  ;;  %v8724_v42 = vpop.xlane.xlu1 %8723  ;;  %v8851_v1 = vadd.f32 %v8850_v41, %v8849_v25  ;;  %v8797_v36 = vmul.f32 %v11869_v3, %v17138_v27 }
0x2897   :  { %11874 = vrsqrt.f32 %v8769_v45  ;;  %v8752_v19 = vmul.f32 0.03125, %v8724_v42  ;;  %v8816_v56 = vmul.f32 %v17222_v20, %v8796_v16  ;;  %v8854_v31 = vsel %vm212_vm1, %v8835_v54, 0.0 }
0x2898   :  { %v11871_v46 = vpop.eup %11870  ;;  %v8852_v17 = vsel %vm212_vm1, %v8834_v7, 0.0  ;;  %v8817_v15 = vmul.f32 %v17222_v20, %v8797_v36 }
0x2899   :  { %v8768_v26 = vadd.f32 1e-05, %v8752_v19  ;;  %v8853_v11 = vadd.f32 %v8852_v17, %v8851_v1  ;;  %v8798_v23 = vmul.f32 %v11871_v46, %v17147_v55  ;;  %v8836_v39 = vadd.f32 %v17228_v50, %v8816_v56 }
0x289a   :  { %v8733_v47 = vpop.xlane.xlu0 %8732  ;;  %v8730_v5 = vpop.xlane.xlu1 %8729  ;;  %v8837_v21 = vadd.f32 %v17228_v50, %v8817_v15 }
0x289b   :  { %11876 = vrsqrt.f32 %v8768_v26  ;;  %v8755_v60 = vmul.f32 0.03125, %v8733_v47  ;;  %v8754_v29 = vmul.f32 0.03125, %v8730_v5  ;;  %v8855_v27 = vadd.f32 %v8854_v31, %v8853_v11 }
0x289c   :  { %v8818_v51 = vmul.f32 %v17222_v20, %v8798_v23  ;;  %v8856_v55 = vsel %vm212_vm1, %v8836_v39, 0.0 }
0x289d   :  { %v8771_v48 = vadd.f32 1e-05, %v8755_v60  ;;  %v8770_v62 = vadd.f32 1e-05, %v8754_v29  ;;  %v8857_v63 = vadd.f32 %v8856_v55, %v8855_v27 }
0x289e   :  { %v8739_v59 = vpop.xlane.xlu0 %8738  ;;  %v8736_v18 = vpop.xlane.xlu1 %8735  ;;  %v8838_v33 = vadd.f32 %v17228_v50, %v8818_v51 }
0x289f   :  { %v8757_v10 = vmul.f32 0.03125, %v8739_v59  ;;  %v8756_v2 = vmul.f32 0.03125, %v8736_v18  ;;  %11878 = vrsqrt.f32 %v8771_v48 }
0x28a0   :  { %v11873_v6 = vpop.eup %11872  ;;  %11880 = vrsqrt.f32 %v8770_v62  ;;  %v8860_v25 = vsel %vm212_vm1, %v8838_v33, 0.0 }
0x28a1   :  { %v8799_v24 = vmul.f32 %v11873_v6, %v17158_v22  ;;  %v8773_v38 = vadd.f32 1e-05, %v8757_v10  ;;  %v8772_v32 = vadd.f32 1e-05, %v8756_v2  ;;  %v8858_v22 = vsel %vm212_vm1, %v8837_v21, 0.0 }
0x28a2   :  { %v8742_v44 = vpop.xlane.xlu1 %8741  ;;  %v8859_v35 = vadd.f32 %v8858_v22, %v8857_v63  ;;  %v8961_v22 = vld [vmem:[%s17328_s2 + $0x100] sm:$0xff] }
0x28a3   :  { %v8819_v49 = vmul.f32 %v17222_v20, %v8799_v24  ;;  %11882 = vrsqrt.f32 %v8773_v38  ;;  %v8758_v30 = vmul.f32 0.03125, %v8742_v44 }
0x28a4   :  { %v11875_v14 = vpop.eup %11874  ;;  %11884 = vrsqrt.f32 %v8772_v32  ;;  %v8861_v16 = vadd.f32 %v8860_v25, %v8859_v35 }
0x28a5   :  { %v8801_v52 = vmul.f32 %v11875_v14, %v17155_v58  ;;  %v8774_v43 = vadd.f32 1e-05, %v8758_v30  ;;  %v8839_v0 = vadd.f32 %v17228_v50, %v8819_v49  ;;  %v8894_v30 = vrot.slane %v16987_v40, 7 }
0x28a7   :  { %11886 = vrsqrt.f32 %v8774_v43  ;;  %v8821_v13 = vmul.f32 %v17222_v20, %v8801_v52  ;;  %v8862_v45 = vsel %vm212_vm1, %v8839_v0, 0.0  ;;  %v8962_v0 = vld [vmem:[%s17328_s2 + $0x108] sm:$0xff] }
0x28a8   :  { %v11877_v34 = vpop.eup %11876  ;;  %v8863_v19 = vadd.f32 %v8862_v45, %v8861_v16  ;;  %v8959_v45 = vld [vmem:[%s17328_s2 + $0xf0] sm:$0xff] }
0x28a9   :  { %v8800_v28 = vmul.f32 %v11877_v34, %v17169_v53  ;;  %v8841_v42 = vadd.f32 %v17228_v50, %v8821_v13  ;;  %v8965_v34 = vpack.c.bf16 %v8962_v0, %v8961_v22 }
0x28ab   :  { %v8820_v7 = vmul.f32 %v17222_v20, %v8800_v28  ;;  %v8866_v47 = vsel %vm212_vm1, %v8841_v42, 0.0  ;;  %10864 = vmatpush3.bf16.msra.mxu1 %v8965_v34 }
0x28ac   :  { %v11879_v58 = vpop.eup %11878  ;;  %10865 = vmatprep.subr.bf16.mxu1 %v11972_v61 }
0x28ad   :  { %v8840_v41 = vadd.f32 %v17228_v50, %v8820_v7  ;;  %v11881_v37 = vpop.eup %11880  ;;  %v8803_v3 = vmul.f32 %v11879_v58, %v17178_v8  ;;  %v8960_v7 = vld [vmem:[%s17328_s2 + $0xf8] sm:$0xff] }
0x28ae   :  { %v8802_v46 = vmul.f32 %v11881_v37, %v17166_v57  ;;  %v8964_v16 = vpack.c.bf16 %v8960_v7, %v8959_v45  ;;  %v20_v37 = vld [vmem:[%s17330_s3 + $0x10] sm:$0xff] }
0x28af   :  { %v8864_v1 = vsel %vm212_vm1, %v8840_v41, 0.0  ;;  %v8823_v56 = vmul.f32 %v17222_v20, %v8803_v3  ;;  %v8955_v3 = vrot.slane %v20_v37, 1 }
0x28b0   :  { %v11883_v17 = vpop.eup %11882  ;;  %v8865_v53 = vadd.f32 %v8864_v1, %v8863_v19  ;;  %v8822_v5 = vmul.f32 %v17222_v20, %v8802_v46  ;;  %10866 = vmatpush3.bf16.msra.mxu1 %v8964_v16 }
0x28b1   :  { %v11885_v26 = vpop.eup %11884  ;;  %v8805_v54 = vmul.f32 %v11883_v17, %v17175_v4  ;;  %v8843_v8 = vadd.f32 %v17228_v50, %v8823_v56 }
0x28b2   :  { %v8867_v36 = vadd.f32 %v8866_v47, %v8865_v53  ;;  %v8804_v11 = vmul.f32 %v11885_v26, %v17186_v12  ;;  %v8842_v23 = vadd.f32 %v17228_v50, %v8822_v5  ;;  %v8966_v26 = vrot.slane %v20_v37, 2 }
0x28b3   :  { %v8825_v57 = vmul.f32 %v17222_v20, %v8805_v54  ;;  %v8870_v4 = vsel %vm212_vm1, %v8843_v8, 0.0 }
0x28b4   :  { %v11887_v60 = vpop.eup %11886  ;;  %v8824_v29 = vmul.f32 %v17222_v20, %v8804_v11  ;;  %v8868_v39 = vsel %vm212_vm1, %v8842_v23, 0.0 }
0x28b5   :  { %v8806_v48 = vmul.f32 %v11887_v60, %v17195_v9  ;;  %v8869_v62 = vadd.f32 %v8868_v39, %v8867_v36  ;;  %v8845_v12 = vadd.f32 %v17228_v50, %v8825_v57 }
0x28b6   :  { %v8844_v59 = vadd.f32 %v17228_v50, %v8824_v29 }
0x28b7   :  { %v8826_v18 = vmul.f32 %v17222_v20, %v8806_v48  ;;  %v8871_v31 = vadd.f32 %v8870_v4, %v8869_v62  ;;  %v8874_v6 = vsel %vm212_vm1, %v8845_v12, 0.0 }
0x28b8   :  { %v8872_v15 = vsel %vm212_vm1, %v8844_v59, 0.0 }
0x28b9   :  { %v8846_v10 = vadd.f32 %v17228_v50, %v8826_v18  ;;  %v8873_v2 = vadd.f32 %v8872_v15, %v8871_v31 }
0x28bb   :  { %v8876_v27 = vsel %vm212_vm1, %v8846_v10, 0.0  ;;  %v8875_v9 = vadd.f32 %v8874_v6, %v8873_v2 }
0x28bd   :  { %v8877_v51 = vadd.f32 %v8876_v27, %v8875_v9 }
0x28bf   :  { %v8878_v55 = vrot.slane %v8877_v51, 4 }
0x28c1   :  { %v8879_v24 = vadd.f32 %v8878_v55, %v8877_v51 }
0x28c3   :  { %v8880_v38 = vrot.slane %v8879_v24, 2 }
0x28c5   :  { %v8881_v32 = vadd.f32 %v8880_v38, %v8879_v24 }
0x28c7   :  { %v8882_v44 = vrot.slane %v8881_v32, 1 }
0x28c9   :  { %v8883_v21 = vadd.f32 %v8882_v44, %v8881_v32 }
0x28cb   :  { %v8885_v49 = vmul.f32 0.0078125, %v8883_v21 }
0x28cd   :  { %v8890_v20 = vpack.c.bf16 %v8885_v49, %v8885_v49 }
0x28cf   :  { %10860 = vmatmul.mubr.msk.bf16.vlgmr.msra.gmra.mxu0 %vm212_vm1, %v8890_v20 }
0x298f   :  { %v8933_v50 = vpop.f32.mrf.mxu0 }
0x2990   :  { %v8934_v14 = vadd.f32 %v8933_v50, %v8894_v30 }
0x2991   :  { %v10861_v63 = vpop.f32.mrf.mxu0 }
0x2992   :  { %v8940_v33 = vsel %vm8939_vm5, %v8934_v14, 0.0 }
0x2993   :  { %8941 = vadd.xlane.f32.xlu0 %v8940_v33  ;;  %v8936_v52 = vpop.f32.mrf.mxu0 }
0x2995   :  { %v10862_v43 = vpop.f32.mrf.mxu0 }
0x2a1c   :  { %v8942_v40 = vpop.xlane.xlu0 %8941 }
0x2a1d   :  { %v8943_v35 = vmul.f32 0.03125, %v8942_v40 }
0x2a1f   :  { %v8944_v25 = vsub.f32 %v8934_v14, %v8943_v35 }
0x2a21   :  { %v8945_v13 = vmul.f32 %v8944_v25, %v8944_v25 }
0x2a23   :  { %v8946_v28 = vsel %vm8939_vm5, %v8945_v13, 0.0 }
0x2a24   :  { %8947 = vadd.xlane.f32.xlu1 %v8946_v28 }
0x2aad   :  { %v8948_v58 = vpop.xlane.xlu1 %8947 }
0x2aae   :  { %v8949_v42 = vmul.f32 0.03125, %v8948_v58 }
0x2ab0   :  { %v8950_v41 = vadd.f32 1e-05, %v8949_v42 }
0x2ab2   :  { %11888 = vrsqrt.f32 %v8950_v41 }
0x2abf   :  { %v11889_v19 = vpop.eup %11888 }
0x2ac0   :  { %v8952_v1 = vmul.f32 %v11889_v19, %v8944_v25 }
0x2ac2   :  { %v8953_v46 = vmul.f32 %v8952_v1, %v20_v37 }
0x2ac4   :  { %v8957_v17 = vadd.f32 %v8955_v3, %v8953_v46 }
0x2ac6   :  { %v8958_v53 = vmax.f32 %v8957_v17, 0.0 }
0x2ac8   :  { %v8963_v56 = vpack.c.bf16 %v8958_v53, %v8958_v53 }
0x2aca   :  { %10868 = vmatmul.mubr.msk.bf16.vlgmr.msra.gmra.mxu1 %vm212_vm1, %v8963_v56 }
0x2b8a   :  { %v9005_v47 = vpop.f32.mrf.mxu1 }
0x2b8b   :  { %v9006_v5 = vadd.f32 %v9005_v47, %v8966_v26 }
0x2b8c   :  { %v10869_v54 = vpop.f32.mrf.mxu1 }
0x2b8d   :  { %v9012_v36 = vsel %vm9011_vm6, %v9006_v5, -inf  ;;  %9024 = vst.msk [vmem:[%s17332_s4] sm:$0x1] %vm9011_vm6, %v9006_v5 }
0x2b8e   :  { %9013 = vmax.xlane.f32.xlu0 %v9012_v36  ;;  %v9008_v11 = vpop.f32.mrf.mxu1 }
0x2b90   :  { %v10870_v8 = vpop.f32.mrf.mxu1 }
0x2c17   :  { %v9014_v23 = vpop.xlane.xlu0 %9013 }
0x2c18   :  { %v9015_v57 = vsub.f32 %v9006_v5, %v9014_v23 }
0x2c1a   :  { %v9016_v60 = vmul.f32 1.442695, %v9015_v57 }
0x2c1c   :  { %11890 = vpow2.f32 %v9016_v60 }
0x2c29   :  { %v11891_v61 = vpop.eup %11890 }
0x2c2a   :  { %v9018_v29 = vsel %vm9011_vm6, %v11891_v61, 0.0 }
0x2c2b   :  { %9019 = vadd.xlane.f32.xlu1 %v9018_v29 }
0x2cb4   :  { %v9020_v39 = vpop.xlane.xlu1 %9019 }
0x2cb5   :  { %11892 = vrcp.f32 %v9020_v39 }
0x2cc2   :  { %v11893_v48 = vpop.eup %11892 }
0x2cc3   :  { %v9022_v62 = vmul.f32 %v11893_v48, %v11891_v61 }
0x2cc5   :  { %9025 = vst.msk [vmem:[%s17332_s4 + $0x1] sm:$0x1] %vm9011_vm6, %v9022_v62 }

</bundles_post_ra>
